<compile_context>
chip_gen: v5e
topology: v5e:2x2
jax: 0.10.0
libtpu: 0.0.40
codegen_flags: <defaults>
</compile_context>

<pallas_src>
import numpy as np
import jax
import jax.numpy as jnp
from jax.experimental import pallas as pl
from jax.experimental.pallas import tpu as pltpu

# Sizes from QNetConv(input_shape=(15, 7, 3), output_size=4)
H, W, CIN = 15, 7, 3
COUT = 8
NOUT = 4
HP, WP = H + 2, W + 2          # zero-padded spatial dims (17, 9)
LP = HP * WP                   # real flattened padded spatial length (153)
LP_PAD = 160                   # slab width per channel, padded so KMID is 256-aligned
KIN = CIN * LP_PAD             # 480  (input slab width before K alignment)
KIN_PAD = 512                  # deconv1 matmul K dim padded to a 128/256 multiple
KMID = COUT * LP_PAD           # 1280 (multiple of 256: full MXU passes, dense vregs)
NOUT_PAD = 128                 # FC output padded to a full lane tile (dense stores)


def qnet_kernel(x_ref, w1_ref, b1_ref, w2_ref, b2_ref, wfc_ref, bfc_ref, out_ref):
    # x_ref: (TB, KIN_PAD) bf16 zero-padded channel-major slabs; 1 batch row/sublane.
    x = x_ref[...]

    # deconv1 (ConvTranspose2d folded to a conv, then to one block-Toeplitz matmul).
    # Pad positions get exactly 0: zero weight columns + masked bias + relu(0) = 0.
    h1 = jnp.maximum(
        jnp.dot(x, w1_ref[...], preferred_element_type=jnp.float32) + b1_ref[...],
        0.0)                                                   # (TB, KMID) f32

    # conv2 as one block-Toeplitz matmul (reads h1's zero pad positions directly —
    # no VMEM scratch slab, no shifted slices, no mask).
    h2 = jnp.maximum(
        jnp.dot(h1.astype(jnp.bfloat16), w2_ref[...],
                preferred_element_type=jnp.float32) + b2_ref[...],
        0.0)                                                   # (TB, KMID) f32

    # flatten + fc1 as a single matmul into a 128-lane padded output block.
    out_ref[...] = (
        jnp.dot(h2.astype(jnp.bfloat16), wfc_ref[...],
                preferred_element_type=jnp.float32) + bfc_ref[...])


def _interior_flat_positions():
    """Flat indices (within the HP*WP padded grid) of the real HxW pixels, h-major."""
    hh, ww = np.meshgrid(np.arange(H), np.arange(W), indexing="ij")
    return ((hh + 1) * WP + (ww + 1)).reshape(-1)              # (H*W,)


def prepare_params(wt1, b1, w2, b2, wfc, bfc):
    """Fold both convs into block-Toeplitz matmul weights (bf16) + f32 bias slabs.

    Runs ONCE at init (hoisted out of the forward path per the perf review).
    """
    wt1 = np.asarray(wt1, np.float32); b1 = np.asarray(b1, np.float32)
    w2 = np.asarray(w2, np.float32); b2 = np.asarray(b2, np.float32)
    wfc = np.asarray(wfc, np.float32); bfc = np.asarray(bfc, np.float32)

    pos = _interior_flat_positions()                           # (105,)

    # ConvTranspose2d(s=1,p=1) == Conv2d(p=1) with W[o,c,kh,kw] = Wt[c,o,2-kh,2-kw]
    wconv1 = np.transpose(wt1[:, :, ::-1, ::-1], (1, 0, 2, 3))  # (COUT, CIN, 3, 3)

    def conv_as_matmul(wconv, cin, k_rows):
        # Wbig[c*LP_PAD + p_in, o*LP_PAD + p_out] = wconv[o, c, kh, kw] with
        # p_in = p_out + (kh-1)*WP + (kw-1); pad/alignment columns stay zero.
        wbig = np.zeros((k_rows, COUT * LP_PAD), np.float32)
        rows = np.arange(cin) * LP_PAD
        cols = np.arange(COUT) * LP_PAD
        for kh in range(3):
            for kw in range(3):
                d = (kh - 1) * WP + (kw - 1)
                wtap = wconv[:, :, kh, kw].T                   # (cin, COUT)
                for p_out in pos:
                    wbig[np.ix_(rows + p_out + d, cols + p_out)] += wtap
        return wbig

    w1big = conv_as_matmul(wconv1, CIN, KIN_PAD)               # (512, 1280)
    w2big = conv_as_matmul(w2, COUT, KMID)                     # (1280, 1280)

    def bias_slab(b):
        s = np.zeros((COUT, LP_PAD), np.float32)
        s[:, pos] = b[:, None]                                 # bias only at real pixels
        return s.reshape(1, COUT * LP_PAD)

    b1big = bias_slab(b1)
    b2big = bias_slab(b2)

    # FC weight relaid to slab order, zero at pad positions, padded to 128 lanes.
    wfc_r = np.zeros((COUT, LP_PAD, NOUT_PAD), np.float32)
    wfc_r[:, pos, :NOUT] = np.transpose(wfc.reshape(NOUT, COUT, H * W), (1, 2, 0))
    wfc_r = wfc_r.reshape(COUT * LP_PAD, NOUT_PAD)
    bfc_big = np.zeros((1, NOUT_PAD), np.float32)
    bfc_big[0, :NOUT] = bfc

    # Weights in bf16 (native MXU path); biases stay f32 (added to f32 accumulators).
    return (jnp.asarray(w1big, jnp.bfloat16), jnp.asarray(b1big),
            jnp.asarray(w2big, jnp.bfloat16), jnp.asarray(b2big),
            jnp.asarray(wfc_r, jnp.bfloat16), jnp.asarray(bfc_big))


@jax.jit
def _qnet_forward_impl(params, x_nhwc):
    w1big, b1big, w2big, b2big, wfc_r, bfc_big = params
    B = x_nhwc.shape[0]

    # Batch tiling: TB multiple of 8, <= 128; when more than one tile is needed use
    # an even tile count so the "parallel" grid axis splits evenly across v7x's two
    # TensorCores (B=300 -> 4 tiles of 80; B=2 -> 1 tile of 8).
    G = -(-B // 128)
    if G > 1 and G % 2:
        G += 1
    TB = ((-(-B // G)) + 7) // 8 * 8
    B_pad = G * TB

    # Host glue: NHWC -> NCHW (matches x.permute(0,3,1,2)), zero-pad spatially,
    # flatten to a channel-major slab per batch row (153 -> 160 per channel), pad
    # the K dim to 512 and the batch to a tile multiple, cast to bf16.
    x_nchw = jnp.transpose(x_nhwc, (0, 3, 1, 2)).astype(jnp.float32)
    x_p = jnp.pad(x_nchw, ((0, B_pad - B), (0, 0), (1, 1), (1, 1)))
    x_p = x_p.reshape(B_pad, CIN, LP)
    x_p = jnp.pad(x_p, ((0, 0), (0, 0), (0, LP_PAD - LP))).reshape(B_pad, KIN)
    x_slab = jnp.pad(x_p, ((0, 0), (0, KIN_PAD - KIN))).astype(jnp.bfloat16)

    # Constant operands: index_map is always (0, 0) -> single-buffer them (the
    # second pipeline buffer would be pure dead VMEM).
    def const(shape):
        return pl.BlockSpec(shape, lambda i: (0, 0), pipeline_mode=pl.Buffered(1))

    grid_spec = pltpu.PrefetchScalarGridSpec(
        num_scalar_prefetch=0,
        grid=(G,),
        in_specs=[
            pl.BlockSpec((TB, KIN_PAD), lambda i: (i, 0)),    # x batch tile
            const((KIN_PAD, KMID)),                           # deconv1 block-Toeplitz
            const((1, KMID)),                                 # deconv1 bias slab
            const((KMID, KMID)),                              # conv2 block-Toeplitz
            const((1, KMID)),                                 # conv2 bias slab
            const((KMID, NOUT_PAD)),                          # fc weight (relaid, padded)
            const((1, NOUT_PAD)),                             # fc bias (padded)
        ],
        out_specs=pl.BlockSpec((TB, NOUT_PAD), lambda i: (i, 0)),
    )
    # VMEM budget (bf16 weights, single-buffered): ~4.7 MiB weights + ~0.5 MiB
    # double-buffered x/out tiles + ~2-3 MiB f32 intermediates/scratch -> well
    # under 20 MiB (and under v7x's 64 MiB/TC even with both cores loaded).
    out = pl.pallas_call(
        qnet_kernel,
        out_shape=jax.ShapeDtypeStruct((B_pad, NOUT_PAD), jnp.float32),
        grid_spec=grid_spec,
        compiler_params=pltpu.CompilerParams(
            dimension_semantics=("parallel",),      # independent batch tiles (v7x: 2 TCs)
            vmem_limit_bytes=20 * 1024 * 1024),
    )(x_slab, w1big, b1big, w2big, b2big, wfc_r, bfc_big)
    return out[:B, :NOUT]


def make_qnet_forward(wt1, b1, w2, b2, wfc, bfc):
    """Build the forward fn once: weights are folded/uploaded here, not per call."""
    params = prepare_params(wt1, b1, w2, b2, wfc, bfc)
    return lambda x_nhwc: _qnet_forward_impl(params, x_nhwc)


def reference_forward(x_nhwc, wt1, b1, w2, b2, wfc, bfc):
    """Pure numpy reference implementing the PyTorch forward definition directly."""
    x = np.transpose(np.asarray(x_nhwc, np.float64), (0, 3, 1, 2))
    wt1 = np.asarray(wt1, np.float64); b1 = np.asarray(b1, np.float64)
    w2 = np.asarray(w2, np.float64); b2 = np.asarray(b2, np.float64)
    wfc = np.asarray(wfc, np.float64); bfc = np.asarray(bfc, np.float64)
    B = x.shape[0]

    # ConvTranspose2d(3->8, k3, s1, p1) via its scatter definition.
    y1 = np.zeros((B, COUT, H, W))
    for kh in range(3):
        for kw in range(3):
            for i in range(H):
                for j in range(W):
                    io, jo = i + kh - 1, j + kw - 1
                    if 0 <= io < H and 0 <= jo < W:
                        y1[:, :, io, jo] += x[:, :, i, j] @ wt1[:, :, kh, kw]
    y1 = np.maximum(y1 + b1.reshape(1, COUT, 1, 1), 0.0)

    # Conv2d(8->8, k3, s1, p1)
    xp = np.pad(y1, ((0, 0), (0, 0), (1, 1), (1, 1)))
    y2 = np.zeros((B, COUT, H, W))
    for kh in range(3):
        for kw in range(3):
            y2 += np.einsum('bchw,oc->bohw',
                            xp[:, :, kh:kh + H, kw:kw + W], w2[:, :, kh, kw])
    y2 = np.maximum(y2 + b2.reshape(1, COUT, 1, 1), 0.0)

    return y2.reshape(B, -1) @ wfc.T + bfc


if __name__ == "__main__":
    key = jax.random.PRNGKey(0)
    ks = jax.random.split(key, 8)
    wt1 = jax.random.normal(ks[1], (CIN, COUT, 3, 3), jnp.float32) * 0.1   # ConvTranspose2d weight
    b1 = jax.random.normal(ks[2], (COUT,), jnp.float32) * 0.1
    w2 = jax.random.normal(ks[3], (COUT, COUT, 3, 3), jnp.float32) * 0.1   # Conv2d weight
    b2 = jax.random.normal(ks[4], (COUT,), jnp.float32) * 0.1
    wfc = jax.random.normal(ks[5], (NOUT, COUT * H * W), jnp.float32) * 0.05  # Linear weight
    bfc = jax.random.normal(ks[6], (NOUT,), jnp.float32) * 0.1

    forward = make_qnet_forward(wt1, b1, w2, b2, wfc, bfc)     # weights prepared ONCE

    # B=2: single-tile sanity check.  B=300: multi-step, batch-parallel grid
    # (4 tiles of TB=80 -> even split across v7x's two TensorCores).
    for B, xkey in ((2, ks[0]), (300, ks[7])):
        x = jax.random.normal(xkey, (B, H, W, CIN), jnp.float32)           # NHWC input
        out = jax.block_until_ready(forward(x))
        ref = reference_forward(x, wt1, b1, w2, b2, wfc, bfc)
        assert out.shape == (B, NOUT)
        # bf16 weights/activations on the MXU accumulate ~1e-2 abs error over the
        # 840-wide FC reduction, so the check tolerance is 5e-2 (was 1e-3 in f32).
        assert np.allclose(np.asarray(out), ref, rtol=5e-2, atol=5e-2), (
            B, float(np.abs(np.asarray(out) - ref).max()))
    print("KERNEL_OK")
</pallas_src>

<mosaic_0001>
module attributes {stable_mosaic.version = 11 : i64} {
  func.func @qnet_kernel(%arg0: i32, %arg1: memref<8x512xbf16, #tpu.memory_space<vmem>>, %arg2: memref<512x1280xbf16, #tpu.memory_space<vmem>>, %arg3: memref<1x1280xf32, #tpu.memory_space<vmem>>, %arg4: memref<1280x1280xbf16, #tpu.memory_space<vmem>>, %arg5: memref<1x1280xf32, #tpu.memory_space<vmem>>, %arg6: memref<1280x128xbf16, #tpu.memory_space<vmem>>, %arg7: memref<1x128xf32, #tpu.memory_space<vmem>>, %arg8: memref<8x128xf32, #tpu.memory_space<vmem>>) attributes {dimension_semantics = [#tpu.dimension_semantics<parallel>], iteration_bounds = array<i64: 1>, scalar_prefetch = 0 : i64, scratch_operands = 0 : i64, tpu.core_type = #tpu.core_type<tc>, window_params = [{transform_indices = @transform_0, window_bounds = array<i64: 8, 512>}, {pipeline_mode = #tpu.pipeline_mode<synchronous>, transform_indices = @transform_1, window_bounds = array<i64: 512, 1280>}, {pipeline_mode = #tpu.pipeline_mode<synchronous>, transform_indices = @transform_2, window_bounds = array<i64: 1, 1280>}, {pipeline_mode = #tpu.pipeline_mode<synchronous>, transform_indices = @transform_3, window_bounds = array<i64: 1280, 1280>}, {pipeline_mode = #tpu.pipeline_mode<synchronous>, transform_indices = @transform_4, window_bounds = array<i64: 1, 1280>}, {pipeline_mode = #tpu.pipeline_mode<synchronous>, transform_indices = @transform_5, window_bounds = array<i64: 1280, 128>}, {pipeline_mode = #tpu.pipeline_mode<synchronous>, transform_indices = @transform_6, window_bounds = array<i64: 1, 128>}, {transform_indices = @transform_7, window_bounds = array<i64: 8, 128>}]} {
    %c0 = arith.constant 0 : index
    %c0_0 = arith.constant 0 : index
    %0 = vector.load %arg1[%c0, %c0_0] : memref<8x512xbf16, #tpu.memory_space<vmem>>, vector<8x512xbf16>
    %c0_1 = arith.constant 0 : index
    %c0_2 = arith.constant 0 : index
    %1 = vector.load %arg2[%c0_1, %c0_2] : memref<512x1280xbf16, #tpu.memory_space<vmem>>, vector<512x1280xbf16>
    %cst = arith.constant dense<0.000000e+00> : vector<8x1280xf32>
    %2 = tpu.matmul %0, %1, %cst {dimension_numbers = #tpu.dot_dimension_numbers<[1], [0], [0], [1], [0, 0, 1, 1], [], []>} : vector<8x512xbf16>, vector<512x1280xbf16>, vector<8x1280xf32> -> vector<8x1280xf32>
    %c0_3 = arith.constant 0 : index
    %c0_4 = arith.constant 0 : index
    %3 = vector.load %arg3[%c0_3, %c0_4] : memref<1x1280xf32, #tpu.memory_space<vmem>>, vector<1x1280xf32>
    %4 = vector.broadcast %3 : vector<1x1280xf32> to vector<8x1280xf32>
    %5 = arith.addf %2, %4 : vector<8x1280xf32>
    %cst_5 = arith.constant 0.000000e+00 : f32
    %6 = vector.broadcast %cst_5 : f32 to vector<8x1280xf32>
    %7 = arith.maximumf %5, %6 : vector<8x1280xf32>
    %8 = arith.truncf %7 : vector<8x1280xf32> to vector<8x1280xbf16>
    %c0_6 = arith.constant 0 : index
    %c0_7 = arith.constant 0 : index
    %9 = vector.load %arg4[%c0_6, %c0_7] : memref<1280x1280xbf16, #tpu.memory_space<vmem>>, vector<1280x1280xbf16>
    %cst_8 = arith.constant dense<0.000000e+00> : vector<8x1280xf32>
    %10 = tpu.matmul %8, %9, %cst_8 {dimension_numbers = #tpu.dot_dimension_numbers<[1], [0], [0], [1], [0, 0, 1, 1], [], []>} : vector<8x1280xbf16>, vector<1280x1280xbf16>, vector<8x1280xf32> -> vector<8x1280xf32>
    %c0_9 = arith.constant 0 : index
    %c0_10 = arith.constant 0 : index
    %11 = vector.load %arg5[%c0_9, %c0_10] : memref<1x1280xf32, #tpu.memory_space<vmem>>, vector<1x1280xf32>
    %12 = vector.broadcast %11 : vector<1x1280xf32> to vector<8x1280xf32>
    %13 = arith.addf %10, %12 : vector<8x1280xf32>
    %cst_11 = arith.constant 0.000000e+00 : f32
    %14 = vector.broadcast %cst_11 : f32 to vector<8x1280xf32>
    %15 = arith.maximumf %13, %14 : vector<8x1280xf32>
    %16 = arith.truncf %15 : vector<8x1280xf32> to vector<8x1280xbf16>
    %c0_12 = arith.constant 0 : index
    %c0_13 = arith.constant 0 : index
    %17 = vector.load %arg6[%c0_12, %c0_13] : memref<1280x128xbf16, #tpu.memory_space<vmem>>, vector<1280x128xbf16>
    %cst_14 = arith.constant dense<0.000000e+00> : vector<8x128xf32>
    %18 = tpu.matmul %16, %17, %cst_14 {dimension_numbers = #tpu.dot_dimension_numbers<[1], [0], [0], [1], [0, 0, 1, 1], [], []>} : vector<8x1280xbf16>, vector<1280x128xbf16>, vector<8x128xf32> -> vector<8x128xf32>
    %c0_15 = arith.constant 0 : index
    %c0_16 = arith.constant 0 : index
    %19 = vector.load %arg7[%c0_15, %c0_16] : memref<1x128xf32, #tpu.memory_space<vmem>>, vector<1x128xf32>
    %20 = vector.broadcast %19 : vector<1x128xf32> to vector<8x128xf32>
    %21 = arith.addf %18, %20 : vector<8x128xf32>
    %c0_17 = arith.constant 0 : index
    %c0_18 = arith.constant 0 : index
    %22 = vector.load %arg8[%c0_17, %c0_18] : memref<8x128xf32, #tpu.memory_space<vmem>>, vector<8x128xf32>
    tpu.vector_store %arg8[%c0_17, %c0_18], %21 {strides = array<i32>} : memref<8x128xf32, #tpu.memory_space<vmem>>, vector<8x128xf32>,
    return
  }
  func.func @transform_0(%arg0: i32) -> (i32, i32) {
    %c0_i32 = arith.constant 0 : i32
    %c0_i32_0 = arith.constant 0 : i32
    return %arg0, %c0_i32 : i32, i32
  }
  func.func @transform_1(%arg0: i32) -> (i32, i32) {
    %c0_i32 = arith.constant 0 : i32
    %c0_i32_0 = arith.constant 0 : i32
    %c0_i32_1 = arith.constant 0 : i32
    return %c0_i32, %c0_i32_0 : i32, i32
  }
  func.func @transform_2(%arg0: i32) -> (i32, i32) {
    %c0_i32 = arith.constant 0 : i32
    %c0_i32_0 = arith.constant 0 : i32
    %c0_i32_1 = arith.constant 0 : i32
    return %c0_i32, %c0_i32_0 : i32, i32
  }
  func.func @transform_3(%arg0: i32) -> (i32, i32) {
    %c0_i32 = arith.constant 0 : i32
    %c0_i32_0 = arith.constant 0 : i32
    %c0_i32_1 = arith.constant 0 : i32
    return %c0_i32, %c0_i32_0 : i32, i32
  }
  func.func @transform_4(%arg0: i32) -> (i32, i32) {
    %c0_i32 = arith.constant 0 : i32
    %c0_i32_0 = arith.constant 0 : i32
    %c0_i32_1 = arith.constant 0 : i32
    return %c0_i32, %c0_i32_0 : i32, i32
  }
  func.func @transform_5(%arg0: i32) -> (i32, i32) {
    %c0_i32 = arith.constant 0 : i32
    %c0_i32_0 = arith.constant 0 : i32
    %c0_i32_1 = arith.constant 0 : i32
    return %c0_i32, %c0_i32_0 : i32, i32
  }
  func.func @transform_6(%arg0: i32) -> (i32, i32) {
    %c0_i32 = arith.constant 0 : i32
    %c0_i32_0 = arith.constant 0 : i32
    %c0_i32_1 = arith.constant 0 : i32
    return %c0_i32, %c0_i32_0 : i32, i32
  }
  func.func @transform_7(%arg0: i32) -> (i32, i32) {
    %c0_i32 = arith.constant 0 : i32
    %c0_i32_0 = arith.constant 0 : i32
    return %arg0, %c0_i32 : i32, i32
  }
}

</mosaic_0001>

<bundles_post_ra>
// kernel: _qnet_forward_impl.1
= control target key start
LH: loop header
LB: loop body
LE: loop exit
PB: predicated region body
PF: predicated region fallthrough
CT: control target
= control target key end

     0   :  { %12 = vsyncpa [#allocation3], 0  ;;  %s16220_s0 = inlined_call_operand.vmem [shape: bf16[8,512], index: 0, kind: input, shape index: {}]   ;;  %s16221_s1 = inlined_call_operand.hbm [shape: bf16[512,1280], index: 1, kind: input, shape index: {}]   ;;  %s16222_s2 = inlined_call_operand.hbm [shape: f32[1,1280], index: 2, kind: input, shape index: {}]   ;;  %s16223_s3 = inlined_call_operand.hbm [shape: bf16[1280,1280], index: 3, kind: input, shape index: {}]   ;;  %s16224_s4 = inlined_call_operand.hbm [shape: f32[1,1280], index: 4, kind: input, shape index: {}]   ;;  %s16225_s5 = inlined_call_operand.hbm [shape: bf16[1280,128], index: 5, kind: input, shape index: {}]   ;;  %s16226_s6 = inlined_call_operand.hbm [shape: f32[1,128], index: 6, kind: input, shape index: {}]   ;;  %s16227_s7 = inlined_call_operand.vmem [shape: f32[8,128], index: 7, kind: output, shape index: {}]  }
   0x1   :  { %13 = vsyncpa [#allocation5], 0 }
   0x2   :  { %14 = vsyncpa [#allocation8], 0  ;;  %s36_s26 = sshll.u32 %s16222_s2, 4  ;;  %s37_s26 = int_to_ptr.hbm [resolvable:$true] %s36_s26 }
   0x3   :  { %15 = vsyncpa [#allocation11], 0  ;;  %s15708_s27 = smov [#allocation4]   ;;  %s60_s8 = sshll.u32 %s16224_s4, 4  ;;  %s61_s8 = int_to_ptr.hbm [resolvable:$true] %s60_s8 }
   0x4   :  { %s38_s28 = sshll.u32 %s15708_s27, 4  ;;  %s15709_s9 = smov [#allocation7]   ;;  %s39_s28 = int_to_ptr.vmem [resolvable:$true] %s38_s28 }
   0x5   :  { %41 = dma.hbm_to_vmem [thread:$0]  %s37_s26, 160, %s39_s28, [#allocation5]  }
   0x6   :  { %s62_s10 = sshll.u32 %s15709_s9, 4  ;;  %s22_s13 = sshll.u32 %s16221_s1, 4  ;;  %s63_s10 = int_to_ptr.vmem [resolvable:$true] %s62_s10  ;;  %s23_s13 = int_to_ptr.hbm [resolvable:$true] %s22_s13 }
   0x7   :  { %65 = dma.hbm_to_vmem [thread:$0]  %s61_s8, 160, %s63_s10, [#allocation8]  }
   0x8   :  { %s15710_s2 = smov [#allocation2]   ;;  %s46_s17 = sshll.u32 %s16223_s3, 4  ;;  %s47_s17 = int_to_ptr.hbm [resolvable:$true] %s46_s17 }
   0x9   :  { %s24_s14 = sshll.u32 %s15710_s2, 4  ;;  %s15711_s18 = smov 640   ;;  %s25_s14 = int_to_ptr.vmem [resolvable:$true] %s24_s14 }
   0xa   :  { %s15712_s4 = smov 40   ;;  %s15713_s19 = smov [#allocation6]  }
   0xb   :  { %30 = dma.hbm_to_vmem [thread:$0]  %s23_s13, 40960, %s25_s14, [#allocation3], %s15711_s18, %s15711_s18, %s15712_s4  }
   0xc   :  { %s48_s20 = sshll.u32 %s15713_s19, 4  ;;  %s70_s1 = sshll.u32 %s16225_s5, 4  ;;  %s49_s20 = int_to_ptr.vmem [resolvable:$true] %s48_s20  ;;  %s71_s1 = int_to_ptr.hbm [resolvable:$true] %s70_s1 }
   0xd   :  { %54 = dma.hbm_to_vmem [thread:$0]  %s47_s17, 102400, %s49_s20, [#allocation5], %s15711_s18, %s15711_s18, %s15712_s4  }
   0xe   :  { %s15714_s23 = smov [#allocation9]   ;;  %s84_s3 = sshll.u32 %s16226_s6, 4  ;;  %s85_s3 = int_to_ptr.hbm [resolvable:$true] %s84_s3 }
   0xf   :  { %s72_s24 = sshll.u32 %s15714_s23, 4  ;;  %s15715_s27 = smov 64   ;;  %s73_s24 = int_to_ptr.vmem [resolvable:$true] %s72_s24 }
  0x10   :  { %s15716_s28 = smov 4   ;;  %s15717_s29 = smov [#allocation10]  }
  0x11   :  { %78 = dma.hbm_to_vmem [thread:$0]  %s71_s1, 10240, %s73_s24, [#allocation8], %s15715_s27, %s15715_s27, %s15716_s28  }
  0x12   :  { %s86_s30 = sshll.u32 %s15717_s29, 4  ;;  %s87_s30 = int_to_ptr.vmem [resolvable:$true] %s86_s30 }
  0x13   :  { %89 = dma.hbm_to_vmem [thread:$0]  %s85_s3, 16, %s87_s30, [#allocation11]  }
  0x14   :  { %15700 = dma.done.wait [#allocation3], 40960  }
  0x15   :  { %15701 = vsyncadd [#allocation3], 4294926336 }
  0x16   :  { %15702 = dma.done.wait [#allocation5], 102560  }
  0x17   :  { %15703 = vsyncadd [#allocation5], 4294864736 }
  0x18   :  { %15704 = dma.done.wait [#allocation8], 10400  }
  0x19   :  { %15705 = vsyncadd [#allocation8], 4294956896 }
  0x1a   :  { %15706 = dma.done.wait [#allocation11], 16  }
  0x1b   :  { %15707 = vsyncadd [#allocation11], 4294967280  ;;  %v9823_v0 = vld [vmem:[#allocation2 + $0x230] sm:$0xf]  ;;  %v14416_v1 = vld [vmem:[#allocation2 + $0x254] sm:$0xf0] }
  0x1c   :  { %v10143_v2 = vld [vmem:[#allocation2 + $0x4b0] sm:$0xf]  ;;  %v9824_v3 = vor.u32 %v14416_v1, %v9823_v0  ;;  %v14496_v4 = vld [vmem:[#allocation2 + $0x4d4] sm:$0xf0]  ;;  %v9783_v11 = vld [vmem:[#allocation2 + $0x1e0] sm:$0xf] }
  0x1d   :  { %v10463_v5 = vld [vmem:[#allocation2 + $0x730] sm:$0xf]  ;;  %v14576_v6 = vld [vmem:[#allocation2 + $0x754] sm:$0xf0]  ;;  %v10144_v7 = vor.u32 %v14496_v4, %v10143_v2  ;;  %v14406_v13 = vld [vmem:[#allocation2 + $0x204] sm:$0xf0] }
  0x1e   :  { %v10464_v8 = vor.u32 %v14576_v6, %v10463_v5  ;;  %v10783_v9 = vld [vmem:[#allocation2 + $0x9b0] sm:$0xf]  ;;  %v14656_v10 = vld [vmem:[#allocation2 + $0x9d4] sm:$0xf0]  ;;  %2074 = vmatpush.bf16.msra.mxu0 %v9824_v3  ;;  %v10103_v14 = vld [vmem:[#allocation2 + $0x460] sm:$0xf]  ;;  %v9784_v16 = vor.u32 %v14406_v13, %v9783_v11 }
  0x1f   :  { %v10784_v12 = vor.u32 %v14656_v10, %v10783_v9  ;;  %v14486_v15 = vld [vmem:[#allocation2 + $0x484] sm:$0xf0]  ;;  %2087 = vmatpush.bf16.msra.mxu1 %v10144_v7  ;;  %v10423_v18 = vld [vmem:[#allocation2 + $0x6e0] sm:$0xf]  ;;  %v9743_v23 = vld [vmem:[#allocation2 + $0x190] sm:$0xf] }
  0x20   :  { %2100 = vmatpush.bf16.msra.mxu2 %v10464_v8  ;;  %v10104_v17 = vor.u32 %v14486_v15, %v10103_v14  ;;  %v14566_v19 = vld [vmem:[#allocation2 + $0x704] sm:$0xf0]  ;;  %v10743_v20 = vld [vmem:[#allocation2 + $0x960] sm:$0xf]  ;;  %v14396_v24 = vld [vmem:[#allocation2 + $0x1b4] sm:$0xf0] }
  0x21   :  { %2113 = vmatpush.bf16.msra.mxu3 %v10784_v12  ;;  %v10424_v21 = vor.u32 %v14566_v19, %v10423_v18  ;;  %v14646_v22 = vld [vmem:[#allocation2 + $0x984] sm:$0xf0]  ;;  %v10063_v26 = vld [vmem:[#allocation2 + $0x410] sm:$0xf]  ;;  %v14476_v27 = vld [vmem:[#allocation2 + $0x434] sm:$0xf0]  ;;  %v9744_v29 = vor.u32 %v14396_v24, %v9743_v23 }
  0x22   :  { %v10744_v25 = vor.u32 %v14646_v22, %v10743_v20  ;;  %v10383_v28 = vld [vmem:[#allocation2 + $0x690] sm:$0xf]  ;;  %2075 = vmatpush.bf16.msra.mxu0 %v9784_v16  ;;  %v14556_v30 = vld [vmem:[#allocation2 + $0x6b4] sm:$0xf0]  ;;  %v10064_v33 = vor.u32 %v14476_v27, %v10063_v26  ;;  %v9703_v35 = vld [vmem:[#allocation2 + $0x140] sm:$0xf] }
  0x23   :  { %v10703_v31 = vld [vmem:[#allocation2 + $0x910] sm:$0xf]  ;;  %v14636_v32 = vld [vmem:[#allocation2 + $0x934] sm:$0xf0]  ;;  %2088 = vmatpush.bf16.msra.mxu1 %v10104_v17  ;;  %v10384_v34 = vor.u32 %v14556_v30, %v10383_v28  ;;  %v14386_v36 = vld [vmem:[#allocation2 + $0x164] sm:$0xf0] }
  0x24   :  { %2101 = vmatpush.bf16.msra.mxu2 %v10424_v21  ;;  %v10023_v37 = vld [vmem:[#allocation2 + $0x3c0] sm:$0xf]  ;;  %v10704_v38 = vor.u32 %v14636_v32, %v10703_v31  ;;  %v14466_v39 = vld [vmem:[#allocation2 + $0x3e4] sm:$0xf0]  ;;  %v9704_v44 = vor.u32 %v14386_v36, %v9703_v35  ;;  %v9663_v47 = vld [vmem:[#allocation2 + $0xf0] sm:$0xf] }
  0x25   :  { %2114 = vmatpush.bf16.msra.mxu3 %v10744_v25  ;;  %v10343_v40 = vld [vmem:[#allocation2 + $0x640] sm:$0xf]  ;;  %v14546_v41 = vld [vmem:[#allocation2 + $0x664] sm:$0xf0]  ;;  %v10024_v45 = vor.u32 %v14466_v39, %v10023_v37  ;;  %v14376_v48 = vld [vmem:[#allocation2 + $0x114] sm:$0xf0] }
  0x26   :  { %v10663_v42 = vld [vmem:[#allocation2 + $0x8c0] sm:$0xf]  ;;  %v14626_v43 = vld [vmem:[#allocation2 + $0x8e4] sm:$0xf0]  ;;  %2076 = vmatpush.bf16.msra.mxu0 %v9744_v29  ;;  %v10344_v46 = vor.u32 %v14546_v41, %v10343_v40  ;;  %v9983_v49 = vld [vmem:[#allocation2 + $0x370] sm:$0xf]  ;;  %v9664_v56 = vor.u32 %v14376_v48, %v9663_v47 }
  0x27   :  { %2089 = vmatpush.bf16.msra.mxu1 %v10064_v33  ;;  %v10664_v50 = vor.u32 %v14626_v43, %v10663_v42  ;;  %v14456_v51 = vld [vmem:[#allocation2 + $0x394] sm:$0xf0]  ;;  %v10303_v52 = vld [vmem:[#allocation2 + $0x5f0] sm:$0xf]  ;;  %v9623_v59 = vld [vmem:[#allocation2 + $0xa0] sm:$0xf] }
  0x28   :  { %2102 = vmatpush.bf16.msra.mxu2 %v10384_v34  ;;  %v14536_v53 = vld [vmem:[#allocation2 + $0x614] sm:$0xf0]  ;;  %v10623_v54 = vld [vmem:[#allocation2 + $0x870] sm:$0xf]  ;;  %v9984_v57 = vor.u32 %v14456_v51, %v9983_v49  ;;  %v14366_v60 = vld [vmem:[#allocation2 + $0xc4] sm:$0xf0] }
  0x29   :  { %2115 = vmatpush.bf16.msra.mxu3 %v10704_v38  ;;  %v14616_v55 = vld [vmem:[#allocation2 + $0x894] sm:$0xf0]  ;;  %v10304_v58 = vor.u32 %v14536_v53, %v10303_v52  ;;  %v9943_v61 = vld [vmem:[#allocation2 + $0x320] sm:$0xf]  ;;  %v14446_v63 = vld [vmem:[#allocation2 + $0x344] sm:$0xf0]  ;;  %v9624_v4 = vor.u32 %v14366_v60, %v9623_v59 }
  0x2a   :  { %2077 = vmatpush.bf16.msra.mxu0 %v9704_v44  ;;  %v10624_v62 = vor.u32 %v14616_v55, %v10623_v54  ;;  %v10263_v0 = vld [vmem:[#allocation2 + $0x5a0] sm:$0xf]  ;;  %v14526_v1 = vld [vmem:[#allocation2 + $0x5c4] sm:$0xf0]  ;;  %v9944_v5 = vor.u32 %v14446_v63, %v9943_v61  ;;  %v9583_v7 = vld [vmem:[#allocation2 + $0x50] sm:$0xf] }
  0x2b   :  { %2090 = vmatpush.bf16.msra.mxu1 %v10024_v45  ;;  %v10583_v2 = vld [vmem:[#allocation2 + $0x820] sm:$0xf]  ;;  %v14606_v3 = vld [vmem:[#allocation2 + $0x844] sm:$0xf0]  ;;  %v10264_v6 = vor.u32 %v14526_v1, %v10263_v0  ;;  %v14356_v8 = vld [vmem:[#allocation2 + $0x74] sm:$0xf0] }
  0x2c   :  { %2103 = vmatpush.bf16.msra.mxu2 %v10344_v46  ;;  %v9903_v9 = vld [vmem:[#allocation2 + $0x2d0] sm:$0xf]  ;;  %v10584_v10 = vor.u32 %v14606_v3, %v10583_v2  ;;  %v14436_v11 = vld [vmem:[#allocation2 + $0x2f4] sm:$0xf0]  ;;  %v9584_v16 = vor.u32 %v14356_v8, %v9583_v7  ;;  %v9543_v17 = vld [vmem:[#allocation2] sm:$0xf] }
  0x2d   :  { %2116 = vmatpush.bf16.msra.mxu3 %v10664_v50  ;;  %v10223_v12 = vld [vmem:[#allocation2 + $0x550] sm:$0xf]  ;;  %v14516_v13 = vld [vmem:[#allocation2 + $0x574] sm:$0xf0]  ;;  %v14346_v18 = vld [vmem:[#allocation2 + $0x24] sm:$0xf0]  ;;  %v9904_v19 = vor.u32 %v14436_v11, %v9903_v9 }
  0x2e   :  { %2078 = vmatpush.bf16.msra.mxu0 %v9664_v56  ;;  %v10543_v14 = vld [vmem:[#allocation2 + $0x7d0] sm:$0xf]  ;;  %v14596_v15 = vld [vmem:[#allocation2 + $0x7f4] sm:$0xf0]  ;;  %v10224_v20 = vor.u32 %v14516_v13, %v10223_v12  ;;  %v9863_v21 = vld [vmem:[#allocation2 + $0x280] sm:$0xf]  ;;  %v9544_v31 = vor.u32 %v14346_v18, %v9543_v17 }
  0x2f   :  { %2091 = vmatpush.bf16.msra.mxu1 %v9984_v57  ;;  %v14426_v22 = vld [vmem:[#allocation2 + $0x2a4] sm:$0xf0]  ;;  %v10183_v23 = vld [vmem:[#allocation2 + $0x500] sm:$0xf]  ;;  %v10544_v24 = vor.u32 %v14596_v15, %v10543_v14  ;;  %v14411_v28 = vld [vmem:[#allocation2 + $0x234] sm:$0xf] }
  0x30   :  { %2104 = vmatpush.bf16.msra.mxu2 %v10304_v58  ;;  %v14506_v25 = vld [vmem:[#allocation2 + $0x524] sm:$0xf0]  ;;  %v10503_v26 = vld [vmem:[#allocation2 + $0x780] sm:$0xf]  ;;  %v9825_v29 = vld [vmem:[#allocation2 + $0x258] sm:$0xf0]  ;;  %v9864_v35 = vor.u32 %v14426_v22, %v9863_v21 }
  0x31   :  { %2117 = vmatpush.bf16.msra.mxu3 %v10624_v62  ;;  %v14586_v27 = vld [vmem:[#allocation2 + $0x7a4] sm:$0xf0]  ;;  %v14491_v30 = vld [vmem:[#allocation2 + $0x4b4] sm:$0xf]  ;;  %v10145_v32 = vld [vmem:[#allocation2 + $0x4d8] sm:$0xf0]  ;;  %v10184_v36 = vor.u32 %v14506_v25, %v10183_v23  ;;  %v9828_v40 = vor.u32 %v14411_v28, %v9825_v29 }
  0x32   :  { %2079 = vmatpush.bf16.msra.mxu0 %v9624_v4  ;;  %v14571_v33 = vld [vmem:[#allocation2 + $0x734] sm:$0xf]  ;;  %v10465_v34 = vld [vmem:[#allocation2 + $0x758] sm:$0xf0]  ;;  %v10504_v39 = vor.u32 %v14586_v27, %v10503_v26  ;;  %v10148_v41 = vor.u32 %v14491_v30, %v10145_v32  ;;  %v14401_v43 = vld [vmem:[#allocation2 + $0x1e4] sm:$0xf] }
  0x33   :  { %2092 = vmatpush.bf16.msra.mxu1 %v9944_v5  ;;  %v14651_v37 = vld [vmem:[#allocation2 + $0x9b4] sm:$0xf]  ;;  %v10785_v38 = vld [vmem:[#allocation2 + $0x9d8] sm:$0xf0]  ;;  %v10468_v42 = vor.u32 %v14571_v33, %v10465_v34  ;;  %v9785_v44 = vld [vmem:[#allocation2 + $0x208] sm:$0xf0] }
  0x34   :  { %2105 = vmatpush.bf16.msra.mxu2 %v10264_v6  ;;  %v14481_v45 = vld [vmem:[#allocation2 + $0x464] sm:$0xf]  ;;  %v10788_v46 = vor.u32 %v14651_v37, %v10785_v38  ;;  %v10105_v47 = vld [vmem:[#allocation2 + $0x488] sm:$0xf0]  ;;  %v9788_v52 = vor.u32 %v14401_v43, %v9785_v44  ;;  %v14391_v53 = vld [vmem:[#allocation2 + $0x194] sm:$0xf] }
  0x35   :  { %2118 = vmatpush.bf16.msra.mxu3 %v10584_v10  ;;  %v14561_v48 = vld [vmem:[#allocation2 + $0x6e4] sm:$0xf]  ;;  %v10425_v49 = vld [vmem:[#allocation2 + $0x708] sm:$0xf0]  ;;  %v10108_v54 = vor.u32 %v14481_v45, %v10105_v47  ;;  %v9745_v56 = vld [vmem:[#allocation2 + $0x1b8] sm:$0xf0] }
  0x36   :  { %2080 = vmatpush.bf16.msra.mxu0 %v9584_v16  ;;  %v14641_v50 = vld [vmem:[#allocation2 + $0x964] sm:$0xf]  ;;  %v10745_v51 = vld [vmem:[#allocation2 + $0x988] sm:$0xf0]  ;;  %v10428_v55 = vor.u32 %v14561_v48, %v10425_v49  ;;  %v14471_v57 = vld [vmem:[#allocation2 + $0x414] sm:$0xf]  ;;  %v9748_v0 = vor.u32 %v14391_v53, %v9745_v56 }
  0x37   :  { %2093 = vmatpush.bf16.msra.mxu1 %v9904_v19  ;;  %v10065_v58 = vld [vmem:[#allocation2 + $0x438] sm:$0xf0]  ;;  %v10748_v59 = vor.u32 %v14641_v50, %v10745_v51  ;;  %v14551_v60 = vld [vmem:[#allocation2 + $0x694] sm:$0xf]  ;;  %v115_v2 = vld [vmem:[%s16220_s0 + $0x8] sm:$0xff] }
  0x38   :  { %2106 = vmatpush.bf16.msra.mxu2 %v10224_v20  ;;  %v10385_v61 = vld [vmem:[#allocation2 + $0x6b8] sm:$0xf0]  ;;  %v14631_v62 = vld [vmem:[#allocation2 + $0x914] sm:$0xf]  ;;  %v10068_v1 = vor.u32 %v14471_v57, %v10065_v58  ;;  %v114_v3 = vld [vmem:[%s16220_s0] sm:$0xff]  ;;  %v464_v8 = vunpack.c.l.b16 %v115_v2  ;;  %v465_v10 = vunpack.c.h.b16 %v115_v2 }
  0x39   :  { %2119 = vmatpush.bf16.msra.mxu3 %v10544_v24  ;;  %v10705_v63 = vld [vmem:[#allocation2 + $0x938] sm:$0xf0]  ;;  %v10388_v4 = vor.u32 %v14551_v60, %v10385_v61  ;;  %v14381_v5 = vld [vmem:[#allocation2 + $0x144] sm:$0xf]  ;;  %v9705_v6 = vld [vmem:[#allocation2 + $0x168] sm:$0xf0]  ;;  %v462_v9 = vunpack.c.l.b16 %v114_v3  ;;  %v463_v15 = vunpack.c.h.b16 %v114_v3 }
  0x3a   :  { %2081 = vmatpush.bf16.msra.mxu0 %v9544_v31  ;;  %v14461_v7 = vld [vmem:[#allocation2 + $0x3c4] sm:$0xf]  ;;  %v10708_v11 = vor.u32 %v14631_v62, %v10705_v63  ;;  %v10025_v12 = vld [vmem:[#allocation2 + $0x3e8] sm:$0xf0]  ;;  %v15782_v18 = vpack.c.b16 %v464_v8, %v464_v8  ;;  %v15786_v20 = vpack.c.b16 %v465_v10, %v465_v10  ;;  %v9708_v21 = vor.u32 %v14381_v5, %v9705_v6  ;;  %v14371_v25 = vld [vmem:[#allocation2 + $0xf4] sm:$0xf] }
  0x3b   :  { %2094 = vmatpush.bf16.msra.mxu1 %v9864_v35  ;;  %v14541_v13 = vld [vmem:[#allocation2 + $0x644] sm:$0xf]  ;;  %v10345_v14 = vld [vmem:[#allocation2 + $0x668] sm:$0xf0]  ;;  %v15784_v19 = vpack.c.b16 %v462_v9, %v462_v9  ;;  %v15788_v22 = vpack.c.b16 %v463_v15, %v463_v15  ;;  %v10028_v23 = vor.u32 %v14461_v7, %v10025_v12  ;;  %v9665_v26 = vld [vmem:[#allocation2 + $0x118] sm:$0xf0] }
  0x3c   :  { %2107 = vmatpush.bf16.msra.mxu2 %v10184_v36  ;;  %v14621_v16 = vld [vmem:[#allocation2 + $0x8c4] sm:$0xf]  ;;  %v10665_v17 = vld [vmem:[#allocation2 + $0x8e8] sm:$0xf0]  ;;  %v10348_v24 = vor.u32 %v14541_v13, %v10345_v14  ;;  %v14451_v27 = vld [vmem:[#allocation2 + $0x374] sm:$0xf]  ;;  %v9668_v34 = vor.u32 %v14371_v25, %v9665_v26 }
  0x3d   :  { %2120 = vmatpush.bf16.msra.mxu3 %v10504_v39  ;;  %v10668_v28 = vor.u32 %v14621_v16, %v10665_v17  ;;  %v9985_v29 = vld [vmem:[#allocation2 + $0x398] sm:$0xf0]  ;;  %v14531_v30 = vld [vmem:[#allocation2 + $0x5f4] sm:$0xf]  ;;  %2082 = vmatmul.bf16.vlgmr.msra.gmra.mxu0 %v15784_v19  ;;  %v14361_v37 = vld [vmem:[#allocation2 + $0xa4] sm:$0xf] }
  0x3e   :  { %2126 = vmatpush.bf16.msrb.mxu0 %v9828_v40  ;;  %v10305_v31 = vld [vmem:[#allocation2 + $0x618] sm:$0xf0]  ;;  %v14611_v32 = vld [vmem:[#allocation2 + $0x874] sm:$0xf]  ;;  %2095 = vmatmul.bf16.vlgmr.msra.gmra.mxu1 %v15788_v22  ;;  %v9988_v35 = vor.u32 %v14451_v27, %v9985_v29  ;;  %v9625_v38 = vld [vmem:[#allocation2 + $0xc8] sm:$0xf0] }
  0x3f   :  { %2139 = vmatpush.bf16.msrb.mxu1 %v10148_v41  ;;  %2108 = vmatmul.bf16.vlgmr.msra.gmra.mxu2 %v15782_v18  ;;  %v10625_v33 = vld [vmem:[#allocation2 + $0x898] sm:$0xf0]  ;;  %v10308_v36 = vor.u32 %v14531_v30, %v10305_v31  ;;  %v14441_v39 = vld [vmem:[#allocation2 + $0x324] sm:$0xf]  ;;  %v9945_v41 = vld [vmem:[#allocation2 + $0x348] sm:$0xf0] }
  0x40   :  { %2152 = vmatpush.bf16.msrb.mxu2 %v10468_v42  ;;  %2121 = vmatmul.bf16.vlgmr.msra.gmra.mxu3 %v15786_v20  ;;  %v10628_v40 = vor.u32 %v14611_v32, %v10625_v33  ;;  %v14521_v42 = vld [vmem:[#allocation2 + $0x5a4] sm:$0xf]  ;;  %v10265_v43 = vld [vmem:[#allocation2 + $0x5c8] sm:$0xf0]  ;;  %v9948_v47 = vor.u32 %v14441_v39, %v9945_v41  ;;  %v14351_v49 = vld [vmem:[#allocation2 + $0x54] sm:$0xf] }
  0x41   :  { %2165 = vmatpush.bf16.msrb.mxu3 %v10788_v46  ;;  %v14601_v44 = vld [vmem:[#allocation2 + $0x824] sm:$0xf]  ;;  %v10585_v45 = vld [vmem:[#allocation2 + $0x848] sm:$0xf0]  ;;  %v9628_v46 = vor.u32 %v14361_v37, %v9625_v38  ;;  %v10268_v48 = vor.u32 %v14521_v42, %v10265_v43  ;;  %v9585_v50 = vld [vmem:[#allocation2 + $0x78] sm:$0xf0] }
  0x42   :  { %2127 = vmatpush.bf16.msrb.mxu0 %v9788_v52  ;;  %v14431_v51 = vld [vmem:[#allocation2 + $0x2d4] sm:$0xf]  ;;  %v10588_v52 = vor.u32 %v14601_v44, %v10585_v45  ;;  %v9905_v53 = vld [vmem:[#allocation2 + $0x2f8] sm:$0xf0]  ;;  %v9588_v58 = vor.u32 %v14351_v49, %v9585_v50  ;;  %v9545_v60 = vld [vmem:[#allocation2 + $0x28] sm:$0xf0] }
  0x43   :  { %2140 = vmatpush.bf16.msrb.mxu1 %v10108_v54  ;;  %v14511_v54 = vld [vmem:[#allocation2 + $0x554] sm:$0xf]  ;;  %v10545_v57 = vld [vmem:[#allocation2 + $0x7f8] sm:$0xf0]  ;;  %v9908_v61 = vor.u32 %v14431_v51, %v9905_v53  ;;  %v14421_v63 = vld [vmem:[#allocation2 + $0x284] sm:$0xf] }
  0x44   :  { %2153 = vmatpush.bf16.msrb.mxu2 %v10428_v55  ;;  %v10225_v55 = vld [vmem:[#allocation2 + $0x578] sm:$0xf0]  ;;  %v14591_v56 = vld [vmem:[#allocation2 + $0x7d4] sm:$0xf]  ;;  %v10185_v3 = vld [vmem:[#allocation2 + $0x528] sm:$0xf0] }
  0x45   :  { %2166 = vmatpush.bf16.msrb.mxu3 %v10748_v59  ;;  %v14341_v59 = vld [vmem:[#allocation2 + $0x4] sm:$0xf]  ;;  %v10228_v62 = vor.u32 %v14511_v54, %v10225_v55  ;;  %v10548_v2 = vor.u32 %v14591_v56, %v10545_v57  ;;  %v10505_v5 = vld [vmem:[#allocation2 + $0x7a8] sm:$0xf0]  ;;  %v9831_v6 = vld [vmem:[#allocation2 + $0x238] sm:$0xf] }
  0x46   :  { %2128 = vmatpush.bf16.msrb.mxu0 %v9748_v0  ;;  %v9865_v0 = vld [vmem:[#allocation2 + $0x2a8] sm:$0xf0]  ;;  %v14417_v7 = vld [vmem:[#allocation2 + $0x25c] sm:$0xf0]  ;;  %v10151_v8 = vld [vmem:[#allocation2 + $0x4b8] sm:$0xf]  ;;  %v9548_v9 = vor.u32 %v14341_v59, %v9545_v60 }
  0x47   :  { %2141 = vmatpush.bf16.msrb.mxu1 %v10068_v1  ;;  %v14501_v1 = vld [vmem:[#allocation2 + $0x504] sm:$0xf]  ;;  %v14497_v10 = vld [vmem:[#allocation2 + $0x4dc] sm:$0xf0]  ;;  %v9868_v13 = vor.u32 %v14421_v63, %v9865_v0  ;;  %v10791_v15 = vld [vmem:[#allocation2 + $0x9b8] sm:$0xf] }
  0x48   :  { %2154 = vmatpush.bf16.msrb.mxu2 %v10388_v4  ;;  %v14581_v4 = vld [vmem:[#allocation2 + $0x784] sm:$0xf]  ;;  %v14577_v12 = vld [vmem:[#allocation2 + $0x75c] sm:$0xf0]  ;;  %v10188_v14 = vor.u32 %v14501_v1, %v10185_v3  ;;  %v9791_v25 = vld [vmem:[#allocation2 + $0x1e8] sm:$0xf] }
  0x49   :  { %2167 = vmatpush.bf16.msrb.mxu3 %v10708_v11  ;;  %v10471_v11 = vld [vmem:[#allocation2 + $0x738] sm:$0xf]  ;;  %v14657_v16 = vld [vmem:[#allocation2 + $0x9dc] sm:$0xf0]  ;;  %v10508_v17 = vor.u32 %v14581_v4, %v10505_v5  ;;  %v14407_v26 = vld [vmem:[#allocation2 + $0x20c] sm:$0xf0] }
  0x4a   :  { %2129 = vmatpush.bf16.msrb.mxu0 %v9708_v21  ;;  %v9832_v21 = vor.u32 %v14417_v7, %v9831_v6  ;;  %v10111_v27 = vld [vmem:[#allocation2 + $0x468] sm:$0xf]  ;;  %v14487_v29 = vld [vmem:[#allocation2 + $0x48c] sm:$0xf0]  ;;  %v9751_v37 = vld [vmem:[#allocation2 + $0x198] sm:$0xf] }
  0x4b   :  { %2142 = vmatpush.bf16.msrb.mxu1 %v10028_v23  ;;  %v10152_v23 = vor.u32 %v14497_v10, %v10151_v8  ;;  %v10431_v30 = vld [vmem:[#allocation2 + $0x6e8] sm:$0xf]  ;;  %v14567_v31 = vld [vmem:[#allocation2 + $0x70c] sm:$0xf0]  ;;  %v14397_v38 = vld [vmem:[#allocation2 + $0x1bc] sm:$0xf0] }
  0x4c   :  { %2155 = vmatpush.bf16.msrb.mxu2 %v10348_v24  ;;  %v10472_v24 = vor.u32 %v14577_v12, %v10471_v11  ;;  %v10751_v32 = vld [vmem:[#allocation2 + $0x968] sm:$0xf]  ;;  %v14647_v33 = vld [vmem:[#allocation2 + $0x98c] sm:$0xf0]  ;;  %v10071_v39 = vld [vmem:[#allocation2 + $0x418] sm:$0xf] }
  0x4d   :  { %2168 = vmatpush.bf16.msrb.mxu3 %v10668_v28  ;;  %v10792_v28 = vor.u32 %v14657_v16, %v10791_v15  ;;  %v14477_v41 = vld [vmem:[#allocation2 + $0x43c] sm:$0xf0]  ;;  %v10391_v42 = vld [vmem:[#allocation2 + $0x698] sm:$0xf]  ;;  %v9711_v49 = vld [vmem:[#allocation2 + $0x148] sm:$0xf] }
  0x4e   :  { %2130 = vmatpush.bf16.msrb.mxu0 %v9668_v34  ;;  %v9792_v34 = vor.u32 %v14407_v26, %v9791_v25  ;;  %v14557_v43 = vld [vmem:[#allocation2 + $0x6bc] sm:$0xf0]  ;;  %v10711_v44 = vld [vmem:[#allocation2 + $0x918] sm:$0xf]  ;;  %v14387_v50 = vld [vmem:[#allocation2 + $0x16c] sm:$0xf0] }
  0x4f   :  { %2143 = vmatpush.bf16.msrb.mxu1 %v9988_v35  ;;  %v10112_v35 = vor.u32 %v14487_v29, %v10111_v27  ;;  %v14637_v45 = vld [vmem:[#allocation2 + $0x93c] sm:$0xf0]  ;;  %v10031_v51 = vld [vmem:[#allocation2 + $0x3c8] sm:$0xf]  ;;  %v14467_v53 = vld [vmem:[#allocation2 + $0x3ec] sm:$0xf0] }
  0x50   :  { %2156 = vmatpush.bf16.msrb.mxu2 %v10308_v36  ;;  %v10432_v36 = vor.u32 %v14567_v31, %v10431_v30  ;;  %v10351_v54 = vld [vmem:[#allocation2 + $0x648] sm:$0xf]  ;;  %v14547_v55 = vld [vmem:[#allocation2 + $0x66c] sm:$0xf0]  ;;  %v10032_v59 = vor.u32 %v14467_v53, %v10031_v51  ;;  %v9991_v63 = vld [vmem:[#allocation2 + $0x378] sm:$0xf] }
  0x51   :  { %2169 = vmatpush.bf16.msrb.mxu3 %v10628_v40  ;;  %v10752_v40 = vor.u32 %v14647_v33, %v10751_v32  ;;  %v10671_v56 = vld [vmem:[#allocation2 + $0x8c8] sm:$0xf]  ;;  %v14627_v57 = vld [vmem:[#allocation2 + $0x8ec] sm:$0xf0]  ;;  %v10352_v60 = vor.u32 %v14547_v55, %v10351_v54  ;;  %v14457_v1 = vld [vmem:[#allocation2 + $0x39c] sm:$0xf0] }
  0x52   :  { %2131 = vmatpush.bf16.msrb.mxu0 %v9628_v46  ;;  %v9752_v46 = vor.u32 %v14397_v38, %v9751_v37  ;;  %v10672_v0 = vor.u32 %v14627_v57, %v10671_v56  ;;  %v14537_v3 = vld [vmem:[#allocation2 + $0x61c] sm:$0xf0]  ;;  %v10631_v4 = vld [vmem:[#allocation2 + $0x878] sm:$0xf]  ;;  %v9992_v7 = vor.u32 %v14457_v1, %v9991_v63  ;;  %v14367_v10 = vld [vmem:[#allocation2 + $0xcc] sm:$0xf0] }
  0x53   :  { %2144 = vmatpush.bf16.msrb.mxu1 %v9948_v47  ;;  %v10072_v47 = vor.u32 %v14477_v41, %v10071_v39  ;;  %v14617_v5 = vld [vmem:[#allocation2 + $0x89c] sm:$0xf0]  ;;  %v9951_v11 = vld [vmem:[#allocation2 + $0x328] sm:$0xf]  ;;  %v14527_v15 = vld [vmem:[#allocation2 + $0x5cc] sm:$0xf0] }
  0x54   :  { %2157 = vmatpush.bf16.msrb.mxu2 %v10268_v48  ;;  %v10392_v48 = vor.u32 %v14557_v43, %v10391_v42  ;;  %v10632_v12 = vor.u32 %v14617_v5, %v10631_v4  ;;  %v10591_v16 = vld [vmem:[#allocation2 + $0x828] sm:$0xf]  ;;  %v9591_v25 = vld [vmem:[#allocation2 + $0x58] sm:$0xf]  ;;  %v14357_v26 = vld [vmem:[#allocation2 + $0x7c] sm:$0xf0] }
  0x55   :  { %2170 = vmatpush.bf16.msrb.mxu3 %v10588_v52  ;;  %v10712_v52 = vor.u32 %v14637_v45, %v10711_v44  ;;  %v9911_v27 = vld [vmem:[#allocation2 + $0x2d8] sm:$0xf]  ;;  %v14437_v29 = vld [vmem:[#allocation2 + $0x2fc] sm:$0xf0]  ;;  %v9871_v39 = vld [vmem:[#allocation2 + $0x288] sm:$0xf] }
  0x56   :  { %2132 = vmatpush.bf16.msrb.mxu0 %v9588_v58  ;;  %v9712_v58 = vor.u32 %v14387_v50, %v9711_v49  ;;  %v10231_v30 = vld [vmem:[#allocation2 + $0x558] sm:$0xf]  ;;  %v14517_v31 = vld [vmem:[#allocation2 + $0x57c] sm:$0xf0]  ;;  %v9912_v37 = vor.u32 %v14437_v29, %v9911_v27  ;;  %v10191_v41 = vld [vmem:[#allocation2 + $0x508] sm:$0xf] }
  0x57   :  { %2145 = vmatpush.bf16.msrb.mxu1 %v9908_v61  ;;  %v9671_v61 = vld [vmem:[#allocation2 + $0xf8] sm:$0xf]  ;;  %v14597_v33 = vld [vmem:[#allocation2 + $0x7fc] sm:$0xf0]  ;;  %v10232_v38 = vor.u32 %v14517_v31, %v10231_v30  ;;  %v14507_v43 = vld [vmem:[#allocation2 + $0x52c] sm:$0xf0] }
  0x58   :  { %2158 = vmatpush.bf16.msrb.mxu2 %v10228_v62  ;;  %v14377_v62 = vld [vmem:[#allocation2 + $0x11c] sm:$0xf0]  ;;  %v10551_v32 = vld [vmem:[#allocation2 + $0x7d8] sm:$0xf]  ;;  %v10511_v44 = vld [vmem:[#allocation2 + $0x788] sm:$0xf]  ;;  %v10192_v54 = vor.u32 %v14507_v43, %v10191_v41 }
  0x59   :  { %2171 = vmatpush.bf16.msrb.mxu3 %v10548_v2  ;;  %v10311_v2 = vld [vmem:[#allocation2 + $0x5f8] sm:$0xf]  ;;  %v9672_v6 = vor.u32 %v14377_v62, %v9671_v61  ;;  %v10552_v42 = vor.u32 %v14597_v33, %v10551_v32  ;;  %v14587_v45 = vld [vmem:[#allocation2 + $0x7ac] sm:$0xf0]  ;;  %v10153_v50 = vld [vmem:[#allocation2 + $0x4e0] sm:$0xf0] }
  0x5a   :  { %2133 = vmatpush.bf16.msrb.mxu0 %v9548_v9  ;;  %v10312_v8 = vor.u32 %v14537_v3, %v10311_v2  ;;  %v9631_v9 = vld [vmem:[#allocation2 + $0xa8] sm:$0xf]  ;;  %v14572_v51 = vld [vmem:[#allocation2 + $0x73c] sm:$0xf]  ;;  %v10793_v56 = vld [vmem:[#allocation2 + $0x9e0] sm:$0xf0]  ;;  %v10512_v57 = vor.u32 %v14587_v45, %v10511_v44 }
  0x5b   :  { %2146 = vmatpush.bf16.msrb.mxu1 %v9868_v13  ;;  %v14447_v13 = vld [vmem:[#allocation2 + $0x34c] sm:$0xf0]  ;;  %v14652_v55 = vld [vmem:[#allocation2 + $0x9bc] sm:$0xf]  ;;  %v14402_v61 = vld [vmem:[#allocation2 + $0x1ec] sm:$0xf] }
  0x5c   :  { %2159 = vmatpush.bf16.msrb.mxu2 %v10188_v14  ;;  %v10271_v14 = vld [vmem:[#allocation2 + $0x5a8] sm:$0xf]  ;;  %v9793_v62 = vld [vmem:[#allocation2 + $0x210] sm:$0xf0]  ;;  %v14482_v63 = vld [vmem:[#allocation2 + $0x46c] sm:$0xf] }
  0x5d   :  { %2172 = vmatpush.bf16.msrb.mxu3 %v10508_v17  ;;  %2134 = vmatmul.bf16.vlgmr.msrb.gmra.mxu0 %v15784_v19  ;;  %v14607_v17 = vld [vmem:[#allocation2 + $0x84c] sm:$0xf0]  ;;  %v10113_v1 = vld [vmem:[#allocation2 + $0x490] sm:$0xf0]  ;;  %v14562_v2 = vld [vmem:[#allocation2 + $0x6ec] sm:$0xf] }
  0x5e   :  { %2178 = vmatpush.bf16.msra.mxu0 %v9832_v21  ;;  %2147 = vmatmul.bf16.vlgmr.msrb.gmra.mxu1 %v15788_v22  ;;  %v9632_v21 = vor.u32 %v14367_v10, %v9631_v9  ;;  %v10433_v3 = vld [vmem:[#allocation2 + $0x710] sm:$0xf0]  ;;  %v14642_v4 = vld [vmem:[#allocation2 + $0x96c] sm:$0xf]  ;;  %v14392_v9 = vld [vmem:[#allocation2 + $0x19c] sm:$0xf] }
  0x5f   :  { %2191 = vmatpush.bf16.msra.mxu1 %v10152_v23  ;;  %2160 = vmatmul.bf16.vlgmr.msrb.gmra.mxu2 %v15782_v18  ;;  %v9952_v23 = vor.u32 %v14447_v13, %v9951_v11  ;;  %v10753_v5 = vld [vmem:[#allocation2 + $0x990] sm:$0xf0]  ;;  %v9753_v10 = vld [vmem:[#allocation2 + $0x1c0] sm:$0xf0]  ;;  %v14472_v11 = vld [vmem:[#allocation2 + $0x41c] sm:$0xf] }
  0x60   :  { %2204 = vmatpush.bf16.msra.mxu2 %v10472_v24  ;;  %2173 = vmatmul.bf16.vlgmr.msrb.gmra.mxu3 %v15786_v20  ;;  %v10272_v24 = vor.u32 %v14527_v15, %v10271_v14  ;;  %v10073_v13 = vld [vmem:[#allocation2 + $0x440] sm:$0xf0]  ;;  %v14552_v14 = vld [vmem:[#allocation2 + $0x69c] sm:$0xf]  ;;  %v14462_v27 = vld [vmem:[#allocation2 + $0x3cc] sm:$0xf] }
  0x61   :  { %2217 = vmatpush.bf16.msra.mxu3 %v10792_v28  ;;  %v10592_v28 = vor.u32 %v14607_v17, %v10591_v16  ;;  %v10393_v15 = vld [vmem:[#allocation2 + $0x6c0] sm:$0xf0]  ;;  %v14632_v16 = vld [vmem:[#allocation2 + $0x91c] sm:$0xf]  ;;  %v10033_v29 = vld [vmem:[#allocation2 + $0x3f0] sm:$0xf0] }
  0x62   :  { %2179 = vmatpush.bf16.msra.mxu0 %v9792_v34  ;;  %v9592_v34 = vor.u32 %v14357_v26, %v9591_v25  ;;  %v10713_v17 = vld [vmem:[#allocation2 + $0x940] sm:$0xf0]  ;;  %v14382_v25 = vld [vmem:[#allocation2 + $0x14c] sm:$0xf]  ;;  %v9713_v26 = vld [vmem:[#allocation2 + $0x170] sm:$0xf0] }
  0x63   :  { %2192 = vmatpush.bf16.msra.mxu1 %v10112_v35  ;;  %v9551_v35 = vld [vmem:[#allocation2 + $0x8] sm:$0xf]  ;;  %v14542_v30 = vld [vmem:[#allocation2 + $0x64c] sm:$0xf]  ;;  %v10353_v31 = vld [vmem:[#allocation2 + $0x670] sm:$0xf0] }
  0x64   :  { %2205 = vmatpush.bf16.msra.mxu2 %v10432_v36  ;;  %v14347_v36 = vld [vmem:[#allocation2 + $0x2c] sm:$0xf0]  ;;  %v14622_v32 = vld [vmem:[#allocation2 + $0x8cc] sm:$0xf]  ;;  %v10673_v33 = vld [vmem:[#allocation2 + $0x8f0] sm:$0xf0] }
  0x65   :  { %2218 = vmatpush.bf16.msra.mxu3 %v10752_v40  ;;  %v14427_v40 = vld [vmem:[#allocation2 + $0x2ac] sm:$0xf0]  ;;  %v9552_v49 = vor.u32 %v14347_v36, %v9551_v35  ;;  %v10036_v35 = vor.u32 %v14462_v27, %v10033_v29  ;;  %v10356_v36 = vor.u32 %v14542_v30, %v10353_v31  ;;  %v9993_v41 = vld [vmem:[#allocation2 + $0x3a0] sm:$0xf0]  ;;  %v14612_v44 = vld [vmem:[#allocation2 + $0x87c] sm:$0xf] }
  0x66   :  { %2180 = vmatpush.bf16.msra.mxu0 %v9752_v46  ;;  %v14412_v46 = vld [vmem:[#allocation2 + $0x23c] sm:$0xf]  ;;  %v9872_v53 = vor.u32 %v14427_v40, %v9871_v39  ;;  %v10676_v40 = vor.u32 %v14622_v32, %v10673_v33  ;;  %v10313_v43 = vld [vmem:[#allocation2 + $0x620] sm:$0xf0]  ;;  %v10479_v27 = vld [vmem:[#allocation2 + $0x740] sm:$0xf] }
  0x67   :  { %2193 = vmatpush.bf16.msra.mxu1 %v10072_v47  ;;  %v9833_v47 = vld [vmem:[#allocation2 + $0x260] sm:$0xf0]  ;;  %v14452_v39 = vld [vmem:[#allocation2 + $0x37c] sm:$0xf]  ;;  %v10799_v31 = vld [vmem:[#allocation2 + $0x9c0] sm:$0xf] }
  0x68   :  { %2206 = vmatpush.bf16.msra.mxu2 %v10392_v48  ;;  %v14492_v48 = vld [vmem:[#allocation2 + $0x4bc] sm:$0xf]  ;;  %v10633_v45 = vld [vmem:[#allocation2 + $0x8a0] sm:$0xf0]  ;;  %v14658_v32 = vld [vmem:[#allocation2 + $0x9e4] sm:$0xf0] }
  0x69   :  { %2219 = vmatpush.bf16.msra.mxu3 %v10712_v52  ;;  %v10473_v52 = vld [vmem:[#allocation2 + $0x760] sm:$0xf0] }
  0x6a   :  { %2181 = vmatpush.bf16.msra.mxu0 %v9712_v58  ;;  %v9836_v58 = vor.u32 %v14412_v46, %v9833_v47  ;;  %v9996_v47 = vor.u32 %v14452_v39, %v9993_v41  ;;  %v10119_v39 = vld [vmem:[#allocation2 + $0x470] sm:$0xf]  ;;  %v14488_v41 = vld [vmem:[#allocation2 + $0x494] sm:$0xf0] }
  0x6b   :  { %2194 = vmatpush.bf16.msra.mxu1 %v10032_v59  ;;  %v10156_v59 = vor.u32 %v14492_v48, %v10153_v50  ;;  %v9633_v50 = vld [vmem:[#allocation2 + $0xd0] sm:$0xf0] }
  0x6c   :  { %2207 = vmatpush.bf16.msra.mxu2 %v10352_v60  ;;  %v10476_v60 = vor.u32 %v14572_v51, %v10473_v52  ;;  %v14442_v51 = vld [vmem:[#allocation2 + $0x32c] sm:$0xf]  ;;  %v10636_v52 = vor.u32 %v14612_v44, %v10633_v45  ;;  %v10759_v44 = vld [vmem:[#allocation2 + $0x970] sm:$0xf]  ;;  %v14648_v45 = vld [vmem:[#allocation2 + $0x994] sm:$0xf0] }
  0x6d   :  { %2220 = vmatpush.bf16.msra.mxu3 %v10672_v0  ;;  %v10796_v0 = vor.u32 %v14652_v55, %v10793_v56  ;;  %v10273_v55 = vld [vmem:[#allocation2 + $0x5d0] sm:$0xf0]  ;;  %v14602_v56 = vld [vmem:[#allocation2 + $0x82c] sm:$0xf] }
  0x6e   :  { %2182 = vmatpush.bf16.msra.mxu0 %v9672_v6  ;;  %v9796_v6 = vor.u32 %v14402_v61, %v9793_v62  ;;  %v14352_v61 = vld [vmem:[#allocation2 + $0x5c] sm:$0xf]  ;;  %v9593_v62 = vld [vmem:[#allocation2 + $0x80] sm:$0xf0] }
  0x6f   :  { %2195 = vmatpush.bf16.msra.mxu1 %v9992_v7  ;;  %v10116_v7 = vor.u32 %v14482_v63, %v10113_v1  ;;  %v14432_v63 = vld [vmem:[#allocation2 + $0x2dc] sm:$0xf]  ;;  %v9913_v1 = vld [vmem:[#allocation2 + $0x300] sm:$0xf0] }
  0x70   :  { %2208 = vmatpush.bf16.msra.mxu2 %v10312_v8  ;;  %v10436_v8 = vor.u32 %v14562_v2, %v10433_v3  ;;  %v14512_v2 = vld [vmem:[#allocation2 + $0x55c] sm:$0xf]  ;;  %v10233_v3 = vld [vmem:[#allocation2 + $0x580] sm:$0xf0] }
  0x71   :  { %2221 = vmatpush.bf16.msra.mxu3 %v10632_v12  ;;  %v10756_v12 = vor.u32 %v14642_v4, %v10753_v5  ;;  %v14592_v4 = vld [vmem:[#allocation2 + $0x7dc] sm:$0xf]  ;;  %v10553_v5 = vld [vmem:[#allocation2 + $0x800] sm:$0xf0] }
  0x72   :  { %2183 = vmatpush.bf16.msra.mxu0 %v9632_v21  ;;  %v9756_v21 = vor.u32 %v14392_v9, %v9753_v10  ;;  %v9916_v9 = vor.u32 %v14432_v63, %v9913_v1  ;;  %v10236_v10 = vor.u32 %v14512_v2, %v10233_v3  ;;  %v10039_v63 = vld [vmem:[#allocation2 + $0x3d0] sm:$0xf]  ;;  %v14468_v1 = vld [vmem:[#allocation2 + $0x3f4] sm:$0xf0] }
  0x73   :  { %2196 = vmatpush.bf16.msra.mxu1 %v9952_v23  ;;  %v10076_v23 = vor.u32 %v14472_v11, %v10073_v13  ;;  %v14422_v11 = vld [vmem:[#allocation2 + $0x28c] sm:$0xf]  ;;  %v10359_v2 = vld [vmem:[#allocation2 + $0x650] sm:$0xf]  ;;  %v14548_v3 = vld [vmem:[#allocation2 + $0x674] sm:$0xf0] }
  0x74   :  { %2209 = vmatpush.bf16.msra.mxu2 %v10272_v24  ;;  %v10396_v24 = vor.u32 %v14552_v14, %v10393_v15  ;;  %v14502_v13 = vld [vmem:[#allocation2 + $0x50c] sm:$0xf]  ;;  %v10556_v14 = vor.u32 %v14592_v4, %v10553_v5  ;;  %v10193_v15 = vld [vmem:[#allocation2 + $0x530] sm:$0xf0]  ;;  %v10679_v4 = vld [vmem:[#allocation2 + $0x8d0] sm:$0xf] }
  0x75   :  { %2222 = vmatpush.bf16.msra.mxu3 %v10592_v28  ;;  %v10716_v28 = vor.u32 %v14632_v16, %v10713_v17  ;;  %v14582_v16 = vld [vmem:[#allocation2 + $0x78c] sm:$0xf]  ;;  %v10513_v17 = vld [vmem:[#allocation2 + $0x7b0] sm:$0xf0]  ;;  %v10196_v30 = vor.u32 %v14502_v13, %v10193_v15  ;;  %v14628_v5 = vld [vmem:[#allocation2 + $0x8f4] sm:$0xf0] }
  0x76   :  { %2184 = vmatpush.bf16.msra.mxu0 %v9592_v34  ;;  %v9716_v34 = vor.u32 %v14382_v25, %v9713_v26  ;;  %v14498_v26 = vld [vmem:[#allocation2 + $0x4e4] sm:$0xf0]  ;;  %v10516_v33 = vor.u32 %v14582_v16, %v10513_v17  ;;  %v10639_v16 = vld [vmem:[#allocation2 + $0x880] sm:$0xf] }
  0x77   :  { %2197 = vmatpush.bf16.msra.mxu1 %v9912_v37  ;;  %v14372_v37 = vld [vmem:[#allocation2 + $0xfc] sm:$0xf]  ;;  %v14458_v13 = vld [vmem:[#allocation2 + $0x3a4] sm:$0xf0] }
  0x78   :  { %2210 = vmatpush.bf16.msra.mxu2 %v10232_v38  ;;  %v9673_v38 = vld [vmem:[#allocation2 + $0x120] sm:$0xf0]  ;;  %v14538_v15 = vld [vmem:[#allocation2 + $0x624] sm:$0xf0] }
  0x79   :  { %2223 = vmatpush.bf16.msra.mxu3 %v10552_v42  ;;  %v14532_v42 = vld [vmem:[#allocation2 + $0x5fc] sm:$0xf]  ;;  %v9676_v46 = vor.u32 %v14372_v37, %v9673_v38  ;;  %v9799_v37 = vld [vmem:[#allocation2 + $0x1f0] sm:$0xf]  ;;  %v14408_v38 = vld [vmem:[#allocation2 + $0x214] sm:$0xf0] }
  0x7a   :  { %2185 = vmatpush.bf16.msra.mxu0 %v9552_v49  ;;  %v10316_v48 = vor.u32 %v14532_v42, %v10313_v43  ;;  %v14362_v49 = vld [vmem:[#allocation2 + $0xac] sm:$0xf]  ;;  %v10439_v42 = vld [vmem:[#allocation2 + $0x6f0] sm:$0xf]  ;;  %v14568_v43 = vld [vmem:[#allocation2 + $0x714] sm:$0xf0] }
  0x7b   :  { %2198 = vmatpush.bf16.msra.mxu1 %v9872_v53  ;;  %v9953_v53 = vld [vmem:[#allocation2 + $0x350] sm:$0xf0]  ;;  %v14618_v17 = vld [vmem:[#allocation2 + $0x8a4] sm:$0xf0] }
  0x7c   :  { %2211 = vmatpush.bf16.msra.mxu2 %v10192_v54  ;;  %v14522_v54 = vld [vmem:[#allocation2 + $0x5ac] sm:$0xf] }
  0x7d   :  { %2224 = vmatpush.bf16.msra.mxu3 %v10512_v57  ;;  %2186 = vmatmul.bf16.vlgmr.msra.gmra.mxu0 %v15784_v19  ;;  %v10593_v57 = vld [vmem:[#allocation2 + $0x850] sm:$0xf0] }
  0x7e   :  { %2230 = vmatpush.bf16.msrb.mxu0 %v9836_v58  ;;  %2199 = vmatmul.bf16.vlgmr.msra.gmra.mxu1 %v15788_v22  ;;  %v9636_v58 = vor.u32 %v14362_v49, %v9633_v50  ;;  %v9759_v49 = vld [vmem:[#allocation2 + $0x1a0] sm:$0xf]  ;;  %v14398_v50 = vld [vmem:[#allocation2 + $0x1c4] sm:$0xf0] }
  0x7f   :  { %2243 = vmatpush.bf16.msrb.mxu1 %v10156_v59  ;;  %2212 = vmatmul.bf16.vlgmr.msra.gmra.mxu2 %v15782_v18  ;;  %v9956_v59 = vor.u32 %v14442_v51, %v9953_v53  ;;  %v10079_v51 = vld [vmem:[#allocation2 + $0x420] sm:$0xf]  ;;  %v14478_v53 = vld [vmem:[#allocation2 + $0x444] sm:$0xf0] }
  0x80   :  { %2256 = vmatpush.bf16.msrb.mxu2 %v10476_v60  ;;  %2225 = vmatmul.bf16.vlgmr.msra.gmra.mxu3 %v15786_v20  ;;  %v10276_v60 = vor.u32 %v14522_v54, %v10273_v55  ;;  %v10399_v54 = vld [vmem:[#allocation2 + $0x6a0] sm:$0xf]  ;;  %v14558_v55 = vld [vmem:[#allocation2 + $0x6c4] sm:$0xf0] }
  0x81   :  { %2269 = vmatpush.bf16.msrb.mxu3 %v10796_v0  ;;  %v10596_v0 = vor.u32 %v14602_v56, %v10593_v57  ;;  %v10719_v56 = vld [vmem:[#allocation2 + $0x920] sm:$0xf]  ;;  %v14638_v57 = vld [vmem:[#allocation2 + $0x944] sm:$0xf0] }
  0x82   :  { %2231 = vmatpush.bf16.msrb.mxu0 %v9796_v6  ;;  %v9596_v6 = vor.u32 %v14352_v61, %v9593_v62  ;;  %v9719_v61 = vld [vmem:[#allocation2 + $0x150] sm:$0xf]  ;;  %v14388_v62 = vld [vmem:[#allocation2 + $0x174] sm:$0xf0] }
  0x83   :  { %2244 = vmatpush.bf16.msrb.mxu1 %v10116_v7  ;;  %v14342_v7 = vld [vmem:[#allocation2 + $0xc] sm:$0xf] }
  0x84   :  { %2257 = vmatpush.bf16.msrb.mxu2 %v10436_v8  ;;  %v9553_v8 = vld [vmem:[#allocation2 + $0x30] sm:$0xf0] }
  0x85   :  { %2270 = vmatpush.bf16.msrb.mxu3 %v10756_v12  ;;  %v9873_v12 = vld [vmem:[#allocation2 + $0x2b0] sm:$0xf0]  ;;  %v9556_v25 = vor.u32 %v14342_v7, %v9553_v8  ;;  %v10040_v7 = vor.u32 %v14468_v1, %v10039_v63  ;;  %v10360_v8 = vor.u32 %v14548_v3, %v10359_v2  ;;  %v14573_v63 = vld [vmem:[#allocation2 + $0x744] sm:$0xf] }
  0x86   :  { %2232 = vmatpush.bf16.msrb.mxu0 %v9756_v21  ;;  %v9839_v21 = vld [vmem:[#allocation2 + $0x240] sm:$0xf]  ;;  %v9876_v29 = vor.u32 %v14422_v11, %v9873_v12  ;;  %v10680_v12 = vor.u32 %v14628_v5, %v10679_v4  ;;  %v14653_v3 = vld [vmem:[#allocation2 + $0x9c4] sm:$0xf]  ;;  %v10801_v4 = vld [vmem:[#allocation2 + $0x9e8] sm:$0xf0] }
  0x87   :  { %2245 = vmatpush.bf16.msrb.mxu1 %v10076_v23  ;;  %v14418_v23 = vld [vmem:[#allocation2 + $0x264] sm:$0xf0]  ;;  %v9999_v11 = vld [vmem:[#allocation2 + $0x380] sm:$0xf] }
  0x88   :  { %2258 = vmatpush.bf16.msrb.mxu2 %v10396_v24  ;;  %v10159_v24 = vld [vmem:[#allocation2 + $0x4c0] sm:$0xf] }
  0x89   :  { %2271 = vmatpush.bf16.msrb.mxu3 %v10716_v28  ;;  %v14578_v28 = vld [vmem:[#allocation2 + $0x764] sm:$0xf0] }
  0x8a   :  { %2233 = vmatpush.bf16.msrb.mxu0 %v9716_v34  ;;  %v9840_v34 = vor.u32 %v14418_v23, %v9839_v21  ;;  %v10000_v23 = vor.u32 %v14458_v13, %v9999_v11  ;;  %v14483_v11 = vld [vmem:[#allocation2 + $0x474] sm:$0xf]  ;;  %v10121_v13 = vld [vmem:[#allocation2 + $0x498] sm:$0xf0] }
  0x8b   :  { %2246 = vmatpush.bf16.msrb.mxu1 %v10036_v35  ;;  %v10160_v35 = vor.u32 %v14498_v26, %v10159_v24  ;;  %v14368_v26 = vld [vmem:[#allocation2 + $0xd4] sm:$0xf0] }
  0x8c   :  { %2259 = vmatpush.bf16.msrb.mxu2 %v10356_v36  ;;  %v10480_v36 = vor.u32 %v14578_v28, %v10479_v27  ;;  %v9959_v27 = vld [vmem:[#allocation2 + $0x330] sm:$0xf]  ;;  %v10640_v28 = vor.u32 %v14618_v17, %v10639_v16  ;;  %v14643_v16 = vld [vmem:[#allocation2 + $0x974] sm:$0xf]  ;;  %v10761_v17 = vld [vmem:[#allocation2 + $0x998] sm:$0xf0] }
  0x8d   :  { %2272 = vmatpush.bf16.msrb.mxu3 %v10676_v40  ;;  %v10800_v40 = vor.u32 %v14658_v32, %v10799_v31  ;;  %v14528_v31 = vld [vmem:[#allocation2 + $0x5d4] sm:$0xf0]  ;;  %v10599_v32 = vld [vmem:[#allocation2 + $0x830] sm:$0xf] }
  0x8e   :  { %2234 = vmatpush.bf16.msrb.mxu0 %v9676_v46  ;;  %v9800_v46 = vor.u32 %v14408_v38, %v9799_v37  ;;  %v9599_v37 = vld [vmem:[#allocation2 + $0x60] sm:$0xf]  ;;  %v14358_v38 = vld [vmem:[#allocation2 + $0x84] sm:$0xf0] }
  0x8f   :  { %2247 = vmatpush.bf16.msrb.mxu1 %v9996_v47  ;;  %v10120_v47 = vor.u32 %v14488_v41, %v10119_v39  ;;  %v9919_v39 = vld [vmem:[#allocation2 + $0x2e0] sm:$0xf]  ;;  %v14438_v41 = vld [vmem:[#allocation2 + $0x304] sm:$0xf0] }
  0x90   :  { %2260 = vmatpush.bf16.msrb.mxu2 %v10316_v48  ;;  %v10440_v48 = vor.u32 %v14568_v43, %v10439_v42  ;;  %v10239_v42 = vld [vmem:[#allocation2 + $0x560] sm:$0xf]  ;;  %v14518_v43 = vld [vmem:[#allocation2 + $0x584] sm:$0xf0] }
  0x91   :  { %2273 = vmatpush.bf16.msrb.mxu3 %v10636_v52  ;;  %v10760_v52 = vor.u32 %v14648_v45, %v10759_v44  ;;  %v10559_v44 = vld [vmem:[#allocation2 + $0x7e0] sm:$0xf]  ;;  %v14598_v45 = vld [vmem:[#allocation2 + $0x804] sm:$0xf0] }
  0x92   :  { %2235 = vmatpush.bf16.msrb.mxu0 %v9636_v58  ;;  %v9760_v58 = vor.u32 %v14398_v50, %v9759_v49  ;;  %v9920_v49 = vor.u32 %v14438_v41, %v9919_v39  ;;  %v10240_v50 = vor.u32 %v14518_v43, %v10239_v42  ;;  %v14463_v39 = vld [vmem:[#allocation2 + $0x3d4] sm:$0xf]  ;;  %v10041_v41 = vld [vmem:[#allocation2 + $0x3f8] sm:$0xf0] }
  0x93   :  { %2248 = vmatpush.bf16.msrb.mxu1 %v9956_v59  ;;  %v10080_v59 = vor.u32 %v14478_v53, %v10079_v51  ;;  %v9879_v51 = vld [vmem:[#allocation2 + $0x290] sm:$0xf]  ;;  %v14543_v42 = vld [vmem:[#allocation2 + $0x654] sm:$0xf]  ;;  %v10361_v43 = vld [vmem:[#allocation2 + $0x678] sm:$0xf0] }
  0x94   :  { %2261 = vmatpush.bf16.msrb.mxu2 %v10276_v60  ;;  %v10400_v60 = vor.u32 %v14558_v55, %v10399_v54  ;;  %v10199_v53 = vld [vmem:[#allocation2 + $0x510] sm:$0xf]  ;;  %v10560_v54 = vor.u32 %v14598_v45, %v10559_v44  ;;  %v14508_v55 = vld [vmem:[#allocation2 + $0x534] sm:$0xf0]  ;;  %v14623_v44 = vld [vmem:[#allocation2 + $0x8d4] sm:$0xf] }
  0x95   :  { %2274 = vmatpush.bf16.msrb.mxu3 %v10596_v0  ;;  %v10720_v0 = vor.u32 %v14638_v57, %v10719_v56  ;;  %v10519_v56 = vld [vmem:[#allocation2 + $0x790] sm:$0xf]  ;;  %v14588_v57 = vld [vmem:[#allocation2 + $0x7b4] sm:$0xf0]  ;;  %v10200_v2 = vor.u32 %v14508_v55, %v10199_v53  ;;  %v10681_v45 = vld [vmem:[#allocation2 + $0x8f8] sm:$0xf0] }
  0x96   :  { %2236 = vmatpush.bf16.msrb.mxu0 %v9596_v6  ;;  %v9720_v6 = vor.u32 %v14388_v62, %v9719_v61  ;;  %v10161_v62 = vld [vmem:[#allocation2 + $0x4e8] sm:$0xf0]  ;;  %v10520_v5 = vor.u32 %v14588_v57, %v10519_v56  ;;  %v10684_v53 = vor.u32 %v14623_v44, %v10681_v45  ;;  %v15810_v56 = vld [vmem:[#allocation4] sm:$0xff]  ;;  %v14419_v44 = vld [vmem:[#allocation2 + $0x26c] sm:$0xf0] }
  0x97   :  { %2249 = vmatpush.bf16.msrb.mxu1 %v9916_v9  ;;  %v9679_v9 = vld [vmem:[#allocation2 + $0x100] sm:$0xf]  ;;  %v10321_v55 = vld [vmem:[#allocation2 + $0x628] sm:$0xf0]  ;;  %v14613_v57 = vld [vmem:[#allocation2 + $0x884] sm:$0xf] }
  0x98   :  { %2262 = vmatpush.bf16.msrb.mxu2 %v10236_v10  ;;  %v14378_v10 = vld [vmem:[#allocation2 + $0x124] sm:$0xf0] }
  0x99   :  { %2275 = vmatpush.bf16.msrb.mxu3 %v10556_v14  ;;  %v10319_v14 = vld [vmem:[#allocation2 + $0x600] sm:$0xf]  ;;  %v9680_v21 = vor.u32 %v14378_v10, %v9679_v9  ;;  %v14403_v9 = vld [vmem:[#allocation2 + $0x1f4] sm:$0xf]  ;;  %v9801_v10 = vld [vmem:[#allocation2 + $0x218] sm:$0xf0] }
  0x9a   :  { %2237 = vmatpush.bf16.msrb.mxu0 %v9556_v25  ;;  %v10320_v24 = vor.u32 %v14538_v15, %v10319_v14  ;;  %v9639_v25 = vld [vmem:[#allocation2 + $0xb0] sm:$0xf]  ;;  %v14563_v14 = vld [vmem:[#allocation2 + $0x6f4] sm:$0xf]  ;;  %v10441_v15 = vld [vmem:[#allocation2 + $0x718] sm:$0xf0] }
  0x9b   :  { %2250 = vmatpush.bf16.msrb.mxu1 %v9876_v29  ;;  %v14448_v29 = vld [vmem:[#allocation2 + $0x354] sm:$0xf0]  ;;  %v10167_v45 = vld [vmem:[#allocation2 + $0x4c8] sm:$0xf] }
  0x9c   :  { %2263 = vmatpush.bf16.msrb.mxu2 %v10196_v30  ;;  %v10279_v30 = vld [vmem:[#allocation2 + $0x5b0] sm:$0xf] }
  0x9d   :  { %2276 = vmatpush.bf16.msrb.mxu3 %v10516_v33  ;;  %2238 = vmatmul.bf16.vlgmr.msrb.gmra.mxu0 %v15784_v19  ;;  %v14608_v33 = vld [vmem:[#allocation2 + $0x854] sm:$0xf0] }
  0x9e   :  { %2282 = vmatpush.bf16.msra.mxu0 %v9840_v34  ;;  %2251 = vmatmul.bf16.vlgmr.msrb.gmra.mxu1 %v15788_v22  ;;  %v9640_v34 = vor.u32 %v14368_v26, %v9639_v25  ;;  %v14393_v25 = vld [vmem:[#allocation2 + $0x1a4] sm:$0xf]  ;;  %v9761_v26 = vld [vmem:[#allocation2 + $0x1c8] sm:$0xf0] }
  0x9f   :  { %2295 = vmatpush.bf16.msra.mxu1 %v10160_v35  ;;  %2264 = vmatmul.bf16.vlgmr.msrb.gmra.mxu2 %v15782_v18  ;;  %v9960_v35 = vor.u32 %v14448_v29, %v9959_v27  ;;  %v14473_v27 = vld [vmem:[#allocation2 + $0x424] sm:$0xf]  ;;  %v10081_v29 = vld [vmem:[#allocation2 + $0x448] sm:$0xf0] }
  0xa0   :  { %2308 = vmatpush.bf16.msra.mxu2 %v10480_v36  ;;  %2277 = vmatmul.bf16.vlgmr.msrb.gmra.mxu3 %v15786_v20  ;;  %v10280_v36 = vor.u32 %v14528_v31, %v10279_v30  ;;  %v14553_v30 = vld [vmem:[#allocation2 + $0x6a4] sm:$0xf]  ;;  %v10401_v31 = vld [vmem:[#allocation2 + $0x6c8] sm:$0xf0] }
  0xa1   :  { %2321 = vmatpush.bf16.msra.mxu3 %v10800_v40  ;;  %v10600_v40 = vor.u32 %v14608_v33, %v10599_v32  ;;  %v14633_v32 = vld [vmem:[#allocation2 + $0x924] sm:$0xf]  ;;  %v10721_v33 = vld [vmem:[#allocation2 + $0x948] sm:$0xf0] }
  0xa2   :  { %2283 = vmatpush.bf16.msra.mxu0 %v9800_v46  ;;  %v9600_v46 = vor.u32 %v14358_v38, %v9599_v37  ;;  %v14383_v37 = vld [vmem:[#allocation2 + $0x154] sm:$0xf]  ;;  %v9721_v38 = vld [vmem:[#allocation2 + $0x178] sm:$0xf0] }
  0xa3   :  { %2296 = vmatpush.bf16.msra.mxu1 %v10120_v47  ;;  %v9559_v47 = vld [vmem:[#allocation2 + $0x10] sm:$0xf] }
  0xa4   :  { %2309 = vmatpush.bf16.msra.mxu2 %v10440_v48  ;;  %v14348_v48 = vld [vmem:[#allocation2 + $0x34] sm:$0xf0] }
  0xa5   :  { %2322 = vmatpush.bf16.msra.mxu3 %v10760_v52  ;;  %v14428_v52 = vld [vmem:[#allocation2 + $0x2b4] sm:$0xf0]  ;;  %v9560_v61 = vor.u32 %v14348_v48, %v9559_v47  ;;  %v14373_v47 = vld [vmem:[#allocation2 + $0x104] sm:$0xf]  ;;  %v10044_v48 = vor.u32 %v14463_v39, %v10041_v41  ;;  %v14583_v39 = vld [vmem:[#allocation2 + $0x794] sm:$0xf] }
  0xa6   :  { %2284 = vmatpush.bf16.msra.mxu0 %v9760_v58  ;;  %v14413_v58 = vld [vmem:[#allocation2 + $0x244] sm:$0xf]  ;;  %v9880_v1 = vor.u32 %v14428_v52, %v9879_v51  ;;  %v10001_v52 = vld [vmem:[#allocation2 + $0x3a8] sm:$0xf0] }
  0xa7   :  { %2297 = vmatpush.bf16.msra.mxu1 %v10080_v59  ;;  %v9841_v59 = vld [vmem:[#allocation2 + $0x268] sm:$0xf0]  ;;  %v14453_v51 = vld [vmem:[#allocation2 + $0x384] sm:$0xf] }
  0xa8   :  { %2310 = vmatpush.bf16.msra.mxu2 %v10400_v60  ;;  %v14493_v60 = vld [vmem:[#allocation2 + $0x4c4] sm:$0xf] }
  0xa9   :  { %2323 = vmatpush.bf16.msra.mxu3 %v10720_v0  ;;  %v10481_v0 = vld [vmem:[#allocation2 + $0x768] sm:$0xf0] }
  0xaa   :  { %2285 = vmatpush.bf16.msra.mxu0 %v9720_v6  ;;  %v9844_v6 = vor.u32 %v14413_v58, %v9841_v59  ;;  %v10641_v58 = vld [vmem:[#allocation2 + $0x8a8] sm:$0xf0] }
  0xab   :  { %2298 = vmatpush.bf16.msra.mxu1 %v10040_v7  ;;  %v10164_v7 = vor.u32 %v14493_v60, %v10161_v62  ;;  %v14363_v60 = vld [vmem:[#allocation2 + $0xb4] sm:$0xf] }
  0xac   :  { %2311 = vmatpush.bf16.msra.mxu2 %v10360_v8  ;;  %v10484_v8 = vor.u32 %v14573_v63, %v10481_v0  ;;  %v9641_v63 = vld [vmem:[#allocation2 + $0xd8] sm:$0xf0]  ;;  %v14443_v0 = vld [vmem:[#allocation2 + $0x334] sm:$0xf] }
  0xad   :  { %2324 = vmatpush.bf16.msra.mxu3 %v10680_v12  ;;  %v10804_v12 = vor.u32 %v14653_v3, %v10801_v4  ;;  %v9961_v3 = vld [vmem:[#allocation2 + $0x358] sm:$0xf0]  ;;  %v14523_v4 = vld [vmem:[#allocation2 + $0x5b4] sm:$0xf] }
  0xae   :  { %2286 = vmatpush.bf16.msra.mxu0 %v9680_v21  ;;  %v9804_v21 = vor.u32 %v14403_v9, %v9801_v10  ;;  %v9964_v10 = vor.u32 %v14443_v0, %v9961_v3  ;;  %v10127_v0 = vld [vmem:[#allocation2 + $0x478] sm:$0xf] }
  0xaf   :  { %2299 = vmatpush.bf16.msra.mxu1 %v10000_v23  ;;  %v10124_v23 = vor.u32 %v14483_v11, %v10121_v13  ;;  %v9601_v13 = vld [vmem:[#allocation2 + $0x88] sm:$0xf0]  ;;  %v10447_v3 = vld [vmem:[#allocation2 + $0x6f8] sm:$0xf] }
  0xb0   :  { %2312 = vmatpush.bf16.msra.mxu2 %v10320_v24  ;;  %v10444_v24 = vor.u32 %v14563_v14, %v10441_v15  ;;  %v14433_v14 = vld [vmem:[#allocation2 + $0x2e4] sm:$0xf] }
  0xb1   :  { %2325 = vmatpush.bf16.msra.mxu3 %v10640_v28  ;;  %v10764_v28 = vor.u32 %v14643_v16, %v10761_v17 }
  0xb2   :  { %2287 = vmatpush.bf16.msra.mxu0 %v9640_v34  ;;  %v9764_v34 = vor.u32 %v14393_v25, %v9761_v26  ;;  %v14593_v25 = vld [vmem:[#allocation2 + $0x7e4] sm:$0xf]  ;;  %v10561_v26 = vld [vmem:[#allocation2 + $0x808] sm:$0xf0] }
  0xb3   :  { %2300 = vmatpush.bf16.msra.mxu1 %v9960_v35  ;;  %v10084_v35 = vor.u32 %v14473_v27, %v10081_v29  ;;  %v14343_v29 = vld [vmem:[#allocation2 + $0x14] sm:$0xf] }
  0xb4   :  { %2313 = vmatpush.bf16.msra.mxu2 %v10280_v36  ;;  %v10404_v36 = vor.u32 %v14553_v30, %v10401_v31  ;;  %v9561_v30 = vld [vmem:[#allocation2 + $0x38] sm:$0xf0] }
  0xb5   :  { %2326 = vmatpush.bf16.msra.mxu3 %v10600_v40  ;;  %v10724_v40 = vor.u32 %v14633_v32, %v10721_v33  ;;  %v14423_v33 = vld [vmem:[#allocation2 + $0x294] sm:$0xf] }
  0xb6   :  { %2288 = vmatpush.bf16.msra.mxu0 %v9600_v46  ;;  %v9724_v46 = vor.u32 %v14383_v37, %v9721_v38  ;;  %v10564_v37 = vor.u32 %v14593_v25, %v10561_v26  ;;  %v10201_v38 = vld [vmem:[#allocation2 + $0x538] sm:$0xf0]  ;;  %v9727_v26 = vld [vmem:[#allocation2 + $0x158] sm:$0xf] }
  0xb7   :  { %2301 = vmatpush.bf16.msra.mxu1 %v9920_v49  ;;  %v10364_v49 = vor.u32 %v14543_v42, %v10361_v43  ;;  %v9847_v43 = vld [vmem:[#allocation2 + $0x248] sm:$0xf] }
  0xb8   :  { %2314 = vmatpush.bf16.msra.mxu2 %v10240_v50  ;;  %v9681_v50 = vld [vmem:[#allocation2 + $0x128] sm:$0xf0] }
  0xb9   :  { %2327 = vmatpush.bf16.msra.mxu3 %v10560_v54  ;;  %v14533_v54 = vld [vmem:[#allocation2 + $0x604] sm:$0xf]  ;;  %v9684_v59 = vor.u32 %v14373_v47, %v9681_v50  ;;  %v14499_v47 = vld [vmem:[#allocation2 + $0x4ec] sm:$0xf0] }
  0xba   :  { %2289 = vmatpush.bf16.msra.mxu0 %v9560_v61  ;;  %v10004_v61 = vor.u32 %v14453_v51, %v10001_v52  ;;  %v10324_v62 = vor.u32 %v14533_v54, %v10321_v55  ;;  %v2083_v9 = vpop.f32.mrf.mxu0  ;;  %v10807_v54 = vld [vmem:[#allocation2 + $0x9c8] sm:$0xf]  ;;  %v14659_v55 = vld [vmem:[#allocation2 + $0x9ec] sm:$0xf0] }
  0xbb   :  { %2302 = vmatpush.bf16.msra.mxu1 %v9880_v1  ;;  %v440_v1 = vperm.slane %v15810_v56, 0  ;;  %v2096_v16 = vpop.f32.mrf.mxu1 }
  0xbc   :  { %2315 = vmatpush.bf16.msra.mxu2 %v10200_v2  ;;  %v10644_v2 = vor.u32 %v14613_v57, %v10641_v58 }
  0xbd   :  { %2328 = vmatpush.bf16.msra.mxu3 %v10520_v5  ;;  %2290 = vmatmul.bf16.vlgmr.msra.gmra.mxu0 %v15784_v19  ;;  %v10281_v5 = vld [vmem:[#allocation2 + $0x5d8] sm:$0xf0]  ;;  %v2084_v15 = vadd.f32 %v2083_v9, %v440_v1  ;;  %v10808_v1 = vor.u32 %v14659_v55, %v10807_v54 }
  0xbe   :  { %2334 = vmatpush.bf16.msrb.mxu0 %v9844_v6  ;;  %2303 = vmatmul.bf16.vlgmr.msra.gmra.mxu1 %v15788_v22  ;;  %v14603_v6 = vld [vmem:[#allocation2 + $0x834] sm:$0xf]  ;;  %v10284_v11 = vor.u32 %v14523_v4, %v10281_v5  ;;  %v14569_v4 = vld [vmem:[#allocation2 + $0x71c] sm:$0xf0]  ;;  %v10767_v5 = vld [vmem:[#allocation2 + $0x978] sm:$0xf] }
  0xbf   :  { %2347 = vmatpush.bf16.msrb.mxu1 %v10164_v7  ;;  %2316 = vmatmul.bf16.vlgmr.msra.gmra.mxu2 %v15782_v18  ;;  %v10601_v7 = vld [vmem:[#allocation2 + $0x858] sm:$0xf0]  ;;  %v2097_v27 = vadd.f32 %v2096_v16, %v2084_v15  ;;  %v14479_v16 = vld [vmem:[#allocation2 + $0x44c] sm:$0xf0] }
  0xc0   :  { %2360 = vmatpush.bf16.msrb.mxu2 %v10484_v8  ;;  %2329 = vmatmul.bf16.vlgmr.msra.gmra.mxu3 %v15786_v20  ;;  %v9644_v8 = vor.u32 %v14363_v60, %v9641_v63  ;;  %v10604_v17 = vor.u32 %v14603_v6, %v10601_v7  ;;  %v10168_v60 = vor.u32 %v14499_v47, %v10167_v45  ;;  %v14409_v63 = vld [vmem:[#allocation2 + $0x21c] sm:$0xf0] }
  0xc1   :  { %2373 = vmatpush.bf16.msrb.mxu3 %v10804_v12  ;;  %v14353_v12 = vld [vmem:[#allocation2 + $0x64] sm:$0xf]  ;;  %v14649_v6 = vld [vmem:[#allocation2 + $0x99c] sm:$0xf0] }
  0xc2   :  { %2335 = vmatpush.bf16.msrb.mxu0 %v9804_v21  ;;  %v9921_v21 = vld [vmem:[#allocation2 + $0x308] sm:$0xf0]  ;;  %v2085_v51 = vpop.f32.mrf.mxu0  ;;  %v10768_v15 = vor.u32 %v14649_v6, %v10767_v5  ;;  %v10607_v5 = vld [vmem:[#allocation2 + $0x838] sm:$0xf]  ;;  %v14609_v6 = vld [vmem:[#allocation2 + $0x85c] sm:$0xf0] }
  0xc3   :  { %2348 = vmatpush.bf16.msrb.mxu1 %v10124_v23  ;;  %v14513_v23 = vld [vmem:[#allocation2 + $0x564] sm:$0xf]  ;;  %v9924_v31 = vor.u32 %v14433_v14, %v9921_v21  ;;  %v2122_v42 = vpop.f32.mrf.mxu3  ;;  %v2098_v57 = vpop.f32.mrf.mxu1  ;;  %v10087_v14 = vld [vmem:[#allocation2 + $0x428] sm:$0xf]  ;;  %v14559_v21 = vld [vmem:[#allocation2 + $0x6cc] sm:$0xf0] }
  0xc4   :  { %2361 = vmatpush.bf16.msrb.mxu2 %v10444_v24  ;;  %v10241_v24 = vld [vmem:[#allocation2 + $0x588] sm:$0xf0]  ;;  %v14539_v51 = vld [vmem:[#allocation2 + $0x62c] sm:$0xf0] }
  0xc5   :  { %2374 = vmatpush.bf16.msrb.mxu3 %v10764_v28  ;;  %v9604_v28 = vor.u32 %v14353_v12, %v9601_v13  ;;  %v10244_v32 = vor.u32 %v14513_v23, %v10241_v24  ;;  %v9767_v12 = vld [vmem:[#allocation2 + $0x1a8] sm:$0xf]  ;;  %v14399_v13 = vld [vmem:[#allocation2 + $0x1cc] sm:$0xf0] }
  0xc6   :  { %2336 = vmatpush.bf16.msrb.mxu0 %v9764_v34  ;;  %v9881_v34 = vld [vmem:[#allocation2 + $0x2b8] sm:$0xf0]  ;;  %v10727_v23 = vld [vmem:[#allocation2 + $0x928] sm:$0xf]  ;;  %v14639_v24 = vld [vmem:[#allocation2 + $0x94c] sm:$0xf0]  ;;  %v9768_v25 = vor.u32 %v14399_v13, %v9767_v12 }
  0xc7   :  { %2349 = vmatpush.bf16.msrb.mxu1 %v10084_v35  ;;  %v14503_v35 = vld [vmem:[#allocation2 + $0x514] sm:$0xf]  ;;  %v9884_v52 = vor.u32 %v14423_v33, %v9881_v34  ;;  %v14469_v33 = vld [vmem:[#allocation2 + $0x3fc] sm:$0xf0]  ;;  %v10367_v34 = vld [vmem:[#allocation2 + $0x658] sm:$0xf] }
  0xc8   :  { %2362 = vmatpush.bf16.msrb.mxu2 %v10404_v36  ;;  %v2109_v36 = vpop.f32.mrf.mxu2  ;;  %v9607_v12 = vld [vmem:[#allocation2 + $0x68] sm:$0xf]  ;;  %v14359_v13 = vld [vmem:[#allocation2 + $0x8c] sm:$0xf0] }
  0xc9   :  { %2375 = vmatpush.bf16.msrb.mxu3 %v10724_v40  ;;  %v10521_v40 = vld [vmem:[#allocation2 + $0x7b8] sm:$0xf0]  ;;  %v2110_v41 = vadd.f32 %v2109_v36, %v2097_v27  ;;  %v10088_v27 = vor.u32 %v14479_v16, %v10087_v14  ;;  %v10687_v36 = vld [vmem:[#allocation2 + $0x8d8] sm:$0xf]  ;;  %v9927_v14 = vld [vmem:[#allocation2 + $0x2e8] sm:$0xf]  ;;  %v10608_v16 = vor.u32 %v14609_v6, %v10607_v5 }
  0xca   :  { %2337 = vmatpush.bf16.msrb.mxu0 %v9724_v46  ;;  %v9564_v46 = vor.u32 %v14343_v29, %v9561_v30  ;;  %v10524_v58 = vor.u32 %v14583_v39, %v10521_v40  ;;  %v14389_v29 = vld [vmem:[#allocation2 + $0x17c] sm:$0xf0]  ;;  %v10047_v30 = vld [vmem:[#allocation2 + $0x3d8] sm:$0xf]  ;;  %v14394_v5 = vld [vmem:[#allocation2 + $0x1ac] sm:$0xf] }
  0xcb   :  { %2350 = vmatpush.bf16.msrb.mxu1 %v10044_v48  ;;  %v10487_v48 = vld [vmem:[#allocation2 + $0x748] sm:$0xf]  ;;  %v15813_v50 = vadd.f32 %v2122_v42, %v2110_v41  ;;  %v2124_v9 = vpop.f32.mrf.mxu3  ;;  %v10048_v40 = vor.u32 %v14469_v33, %v10047_v30  ;;  %v10207_v33 = vld [vmem:[#allocation2 + $0x518] sm:$0xf]  ;;  %v9769_v6 = vld [vmem:[#allocation2 + $0x1d0] sm:$0xf0] }
  0xcc   :  { %2363 = vmatpush.bf16.msrb.mxu2 %v10364_v49  ;;  %v14579_v49 = vld [vmem:[#allocation2 + $0x76c] sm:$0xf0]  ;;  %v9687_v42 = vld [vmem:[#allocation2 + $0x108] sm:$0xf] }
  0xcd   :  { %2376 = vmatpush.bf16.msrb.mxu3 %v10684_v53  ;;  %v10204_v53 = vor.u32 %v14503_v35, %v10201_v38  ;;  %v14549_v35 = vld [vmem:[#allocation2 + $0x67c] sm:$0xf0]  ;;  %v9728_v38 = vor.u32 %v14389_v29, %v9727_v26  ;;  %v9608_v26 = vor.u32 %v14359_v13, %v9607_v12  ;;  %v10409_v12 = vld [vmem:[#allocation2 + $0x6d0] sm:$0xf0]  ;;  %v14634_v13 = vld [vmem:[#allocation2 + $0x92c] sm:$0xf] }
  0xce   :  { %2338 = vmatpush.bf16.msrb.mxu0 %v9684_v59  ;;  %v9848_v59 = vor.u32 %v14419_v44, %v9847_v43  ;;  %v10368_v41 = vor.u32 %v14549_v35, %v10367_v34  ;;  %v14379_v43 = vld [vmem:[#allocation2 + $0x12c] sm:$0xf0]  ;;  %v10007_v44 = vld [vmem:[#allocation2 + $0x388] sm:$0xf] }
  0xcf   :  { %2351 = vmatpush.bf16.msrb.mxu1 %v10004_v61  ;;  %v10488_v61 = vor.u32 %v14579_v49, %v10487_v48  ;;  %v14459_v48 = vld [vmem:[#allocation2 + $0x3ac] sm:$0xf0]  ;;  %v10327_v49 = vld [vmem:[#allocation2 + $0x608] sm:$0xf]  ;;  %v9688_v55 = vor.u32 %v14379_v43, %v9687_v42  ;;  %v14494_v42 = vld [vmem:[#allocation2 + $0x4cc] sm:$0xf] }
  0xd0   :  { %2364 = vmatpush.bf16.msrb.mxu2 %v10324_v62  ;;  %v9807_v62 = vld [vmem:[#allocation2 + $0x1f8] sm:$0xf]  ;;  %v2111_v7 = vpop.f32.mrf.mxu2  ;;  %v10008_v57 = vor.u32 %v14459_v48, %v10007_v44  ;;  %v10169_v44 = vld [vmem:[#allocation2 + $0x4f0] sm:$0xf0] }
  0xd1   :  { %2377 = vmatpush.bf16.msrb.mxu3 %v10644_v2  ;;  %v14489_v2 = vld [vmem:[#allocation2 + $0x49c] sm:$0xf0] }
  0xd2   :  { %2339 = vmatpush.bf16.msrb.mxu0 %v9644_v8  ;;  %v9808_v8 = vor.u32 %v14409_v63, %v9807_v62 }
  0xd3   :  { %2352 = vmatpush.bf16.msrb.mxu1 %v9964_v10  ;;  %v10128_v10 = vor.u32 %v14489_v2, %v10127_v0  ;;  %v14449_v0 = vld [vmem:[#allocation2 + $0x35c] sm:$0xf0] }
  0xd4   :  { %2365 = vmatpush.bf16.msrb.mxu2 %v10284_v11  ;;  %v10448_v11 = vor.u32 %v14569_v4, %v10447_v3  ;;  %v14529_v2 = vld [vmem:[#allocation2 + $0x5dc] sm:$0xf0] }
  0xd5   :  { %2378 = vmatpush.bf16.msrb.mxu3 %v10604_v17  ;;  %v10407_v17 = vld [vmem:[#allocation2 + $0x6a8] sm:$0xf] }
  0xd6   :  { %2340 = vmatpush.bf16.msrb.mxu0 %v9604_v28  ;;  %v10408_v28 = vor.u32 %v14559_v21, %v10407_v17  ;;  %v14439_v17 = vld [vmem:[#allocation2 + $0x30c] sm:$0xf0]  ;;  %v10247_v21 = vld [vmem:[#allocation2 + $0x568] sm:$0xf] }
  0xd7   :  { %2353 = vmatpush.bf16.msrb.mxu1 %v9924_v31  ;;  %v441_v31 = vperm.slane %v15810_v56, 1  ;;  %v9928_v29 = vor.u32 %v14439_v17, %v9927_v14  ;;  %v10729_v14 = vld [vmem:[#allocation2 + $0x950] sm:$0xf0] }
  0xd8   :  { %2366 = vmatpush.bf16.msrb.mxu2 %v10244_v32  ;;  %v10728_v32 = vor.u32 %v14639_v24, %v10727_v23  ;;  %v14519_v23 = vld [vmem:[#allocation2 + $0x58c] sm:$0xf0]  ;;  %v10567_v24 = vld [vmem:[#allocation2 + $0x7e8] sm:$0xf] }
  0xd9   :  { %2379 = vmatpush.bf16.msrb.mxu3 %v10564_v37  ;;  %v14629_v37 = vld [vmem:[#allocation2 + $0x8fc] sm:$0xf0]  ;;  %v10248_v30 = vor.u32 %v14519_v23, %v10247_v21  ;;  %v9729_v23 = vld [vmem:[#allocation2 + $0x180] sm:$0xf0] }
  0xda   :  { %2341 = vmatpush.bf16.msrb.mxu0 %v9564_v46  ;;  %v2135_v39 = vpop.f32.mrf.mxu0  ;;  %v10688_v47 = vor.u32 %v14629_v37, %v10687_v36  ;;  %v14509_v36 = vld [vmem:[#allocation2 + $0x53c] sm:$0xf0]  ;;  %v10527_v37 = vld [vmem:[#allocation2 + $0x798] sm:$0xf] }
  0xdb   :  { %2354 = vmatpush.bf16.msrb.mxu1 %v9884_v52  ;;  %v2136_v45 = vadd.f32 %v2135_v39, %v441_v31  ;;  %v2148_v46 = vpop.f32.mrf.mxu1  ;;  %v10647_v52 = vld [vmem:[#allocation2 + $0x888] sm:$0xf]  ;;  %v9887_v31 = vld [vmem:[#allocation2 + $0x298] sm:$0xf]  ;;  %v10208_v48 = vor.u32 %v14509_v36, %v10207_v33  ;;  %v14374_v36 = vld [vmem:[#allocation2 + $0x10c] sm:$0xf] }
  0xdc   :  { %2367 = vmatpush.bf16.msrb.mxu2 %v10204_v53  ;;  %v14619_v53 = vld [vmem:[#allocation2 + $0x8ac] sm:$0xf0] }
  0xdd   :  { %2380 = vmatpush.bf16.msrb.mxu3 %v10524_v58  ;;  %2342 = vmatmul.bf16.vlgmr.msrb.gmra.mxu0 %v15784_v19  ;;  %v2149_v54 = vadd.f32 %v2148_v46, %v2136_v45  ;;  %v10328_v58 = vor.u32 %v14539_v51, %v10327_v49  ;;  %v10648_v63 = vor.u32 %v14619_v53, %v10647_v52  ;;  %v14574_v45 = vld [vmem:[#allocation2 + $0x74c] sm:$0xf]  ;;  %v10489_v46 = vld [vmem:[#allocation2 + $0x770] sm:$0xf0] }
  0xde   :  { %2386 = vmatpush.bf16.msra.mxu0 %v9848_v59  ;;  %2355 = vmatmul.bf16.vlgmr.msrb.gmra.mxu1 %v15788_v22  ;;  %v9647_v59 = vld [vmem:[#allocation2 + $0xb8] sm:$0xf]  ;;  %v14654_v49 = vld [vmem:[#allocation2 + $0x9cc] sm:$0xf]  ;;  %v10809_v51 = vld [vmem:[#allocation2 + $0x9f0] sm:$0xf0] }
  0xdf   :  { %2399 = vmatpush.bf16.msra.mxu1 %v10168_v60  ;;  %2368 = vmatmul.bf16.vlgmr.msrb.gmra.mxu2 %v15782_v18  ;;  %v14369_v60 = vld [vmem:[#allocation2 + $0xdc] sm:$0xf0] }
  0xe0   :  { %2412 = vmatpush.bf16.msra.mxu2 %v10488_v61  ;;  %2381 = vmatmul.bf16.vlgmr.msrb.gmra.mxu3 %v15786_v20  ;;  %v9967_v61 = vld [vmem:[#allocation2 + $0x338] sm:$0xf]  ;;  %v9648_v7 = vor.u32 %v14369_v60, %v9647_v59  ;;  %v14484_v59 = vld [vmem:[#allocation2 + $0x47c] sm:$0xf]  ;;  %v10812_v60 = vor.u32 %v14654_v49, %v10809_v51 }
  0xe1   :  { %2425 = vmatpush.bf16.msra.mxu3 %v10808_v1  ;;  %v10287_v1 = vld [vmem:[#allocation2 + $0x5b8] sm:$0xf] }
  0xe2   :  { %2387 = vmatpush.bf16.msra.mxu0 %v9808_v8  ;;  %v2161_v62 = vpop.f32.mrf.mxu2  ;;  %v2137_v9 = vpop.f32.mrf.mxu0 }
  0xe3   :  { %2400 = vmatpush.bf16.msra.mxu1 %v10128_v10  ;;  %v2162_v3 = vadd.f32 %v2161_v62, %v2149_v54  ;;  %v2174_v4 = vpop.f32.mrf.mxu3  ;;  %v9968_v10 = vor.u32 %v14449_v0, %v9967_v61  ;;  %v10172_v54 = vor.u32 %v14494_v42, %v10169_v44  ;;  %v10129_v61 = vld [vmem:[#allocation2 + $0x4a0] sm:$0xf0]  ;;  %v14564_v62 = vld [vmem:[#allocation2 + $0x6fc] sm:$0xf]  ;;  %v10009_v42 = vld [vmem:[#allocation2 + $0x3b0] sm:$0xf0] }
  0xe4   :  { %2413 = vmatpush.bf16.msra.mxu2 %v10448_v11  ;;  %v10288_v11 = vor.u32 %v14529_v2, %v10287_v1  ;;  %v14644_v0 = vld [vmem:[#allocation2 + $0x97c] sm:$0xf]  ;;  %v10769_v1 = vld [vmem:[#allocation2 + $0x9a0] sm:$0xf0]  ;;  %v10329_v44 = vld [vmem:[#allocation2 + $0x630] sm:$0xf0] }
  0xe5   :  { %2426 = vmatpush.bf16.msra.mxu3 %v10768_v15  ;;  %v15820_v8 = vadd.f32 %v2174_v4, %v2162_v3  ;;  %v2150_v15 = vpop.f32.mrf.mxu1  ;;  %v10132_v3 = vor.u32 %v14484_v59, %v10129_v61  ;;  %v10772_v9 = vor.u32 %v14644_v0, %v10769_v1  ;;  %v14524_v59 = vld [vmem:[#allocation2 + $0x5bc] sm:$0xf]  ;;  %v10609_v0 = vld [vmem:[#allocation2 + $0x860] sm:$0xf0] }
  0xe6   :  { %2388 = vmatpush.bf16.msra.mxu0 %v9768_v25  ;;  %v14599_v25 = vld [vmem:[#allocation2 + $0x80c] sm:$0xf0]  ;;  %v9772_v15 = vor.u32 %v14394_v5, %v9769_v6  ;;  %v14354_v6 = vld [vmem:[#allocation2 + $0x6c] sm:$0xf] }
  0xe7   :  { %2401 = vmatpush.bf16.msra.mxu1 %v10088_v27  ;;  %v9567_v27 = vld [vmem:[#allocation2 + $0x18] sm:$0xf]  ;;  %v10568_v35 = vor.u32 %v14599_v25, %v10567_v24  ;;  %v14464_v24 = vld [vmem:[#allocation2 + $0x3dc] sm:$0xf]  ;;  %v442_v25 = vperm.slane %v15810_v56, 2 }
  0xe8   :  { %2414 = vmatpush.bf16.msra.mxu2 %v10408_v28  ;;  %v14349_v28 = vld [vmem:[#allocation2 + $0x3c] sm:$0xf0] }
  0xe9   :  { %2427 = vmatpush.bf16.msra.mxu3 %v10728_v32  ;;  %v14429_v32 = vld [vmem:[#allocation2 + $0x2bc] sm:$0xf0]  ;;  %v9568_v43 = vor.u32 %v14349_v28, %v9567_v27  ;;  %v10049_v27 = vld [vmem:[#allocation2 + $0x400] sm:$0xf0]  ;;  %v14544_v28 = vld [vmem:[#allocation2 + $0x65c] sm:$0xf] }
  0xea   :  { %2389 = vmatpush.bf16.msra.mxu0 %v9728_v38  ;;  %v2163_v34 = vpop.f32.mrf.mxu2  ;;  %v14589_v38 = vld [vmem:[#allocation2 + $0x7bc] sm:$0xf0] }
  0xeb   :  { %2402 = vmatpush.bf16.msra.mxu1 %v10048_v40  ;;  %v2176_v39 = vpop.f32.mrf.mxu3  ;;  %v14414_v40 = vld [vmem:[#allocation2 + $0x24c] sm:$0xf]  ;;  %v10528_v52 = vor.u32 %v14589_v38, %v10527_v37  ;;  %v10052_v34 = vor.u32 %v14464_v24, %v10049_v27  ;;  %v9689_v37 = vld [vmem:[#allocation2 + $0x130] sm:$0xf0]  ;;  %v9889_v27 = vld [vmem:[#allocation2 + $0x2c0] sm:$0xf0] }
  0xec   :  { %2415 = vmatpush.bf16.msra.mxu2 %v10368_v41  ;;  %v9849_v41 = vld [vmem:[#allocation2 + $0x270] sm:$0xf0]  ;;  %v14454_v38 = vld [vmem:[#allocation2 + $0x38c] sm:$0xf] }
  0xed   :  { %2428 = vmatpush.bf16.msra.mxu3 %v10688_v47  ;;  %v9888_v47 = vor.u32 %v14429_v32, %v9887_v31  ;;  %v9852_v53 = vor.u32 %v14414_v40, %v9849_v41  ;;  %v10689_v31 = vld [vmem:[#allocation2 + $0x900] sm:$0xf0]  ;;  %v10012_v49 = vor.u32 %v14454_v38, %v10009_v42 }
  0xee   :  { %2390 = vmatpush.bf16.msra.mxu0 %v9688_v55  ;;  %v10492_v55 = vor.u32 %v14574_v45, %v10489_v46  ;;  %v14614_v45 = vld [vmem:[#allocation2 + $0x88c] sm:$0xf]  ;;  %v10649_v46 = vld [vmem:[#allocation2 + $0x8b0] sm:$0xf0] }
  0xef   :  { %2403 = vmatpush.bf16.msra.mxu1 %v10008_v57  ;;  %v14404_v57 = vld [vmem:[#allocation2 + $0x1fc] sm:$0xf] }
  0xf0   :  { %2416 = vmatpush.bf16.msra.mxu2 %v10328_v58  ;;  %v9809_v58 = vld [vmem:[#allocation2 + $0x220] sm:$0xf0] }
  0xf1   :  { %2429 = vmatpush.bf16.msra.mxu3 %v10648_v63  ;;  %v10449_v63 = vld [vmem:[#allocation2 + $0x720] sm:$0xf0]  ;;  %v9812_v2 = vor.u32 %v14404_v57, %v9809_v58  ;;  %v10652_v57 = vor.u32 %v14614_v45, %v10649_v46  ;;  %v14660_v45 = vld [vmem:[#allocation2 + $0x9f4] sm:$0xf0] }
  0xf2   :  { %2391 = vmatpush.bf16.msra.mxu0 %v9648_v7  ;;  %v10452_v4 = vor.u32 %v14564_v62, %v10449_v63  ;;  %v14474_v7 = vld [vmem:[#allocation2 + $0x42c] sm:$0xf]  ;;  %v9969_v58 = vld [vmem:[#allocation2 + $0x360] sm:$0xf0]  ;;  %v14604_v63 = vld [vmem:[#allocation2 + $0x83c] sm:$0xf] }
  0xf3   :  { %2404 = vmatpush.bf16.msra.mxu1 %v9968_v10  ;;  %v10089_v10 = vld [vmem:[#allocation2 + $0x450] sm:$0xf0] }
  0xf4   :  { %2417 = vmatpush.bf16.msra.mxu2 %v10288_v11  ;;  %v14554_v11 = vld [vmem:[#allocation2 + $0x6ac] sm:$0xf]  ;;  %v10092_v17 = vor.u32 %v14474_v7, %v10089_v10  ;;  %v9609_v7 = vld [vmem:[#allocation2 + $0x90] sm:$0xf0] }
  0xf5   :  { %2430 = vmatpush.bf16.msra.mxu3 %v10608_v16  ;;  %v14384_v16 = vld [vmem:[#allocation2 + $0x15c] sm:$0xf]  ;;  %v10412_v21 = vor.u32 %v14554_v11, %v10409_v12  ;;  %v10612_v11 = vor.u32 %v14604_v63, %v10609_v0  ;;  %v9929_v12 = vld [vmem:[#allocation2 + $0x310] sm:$0xf0]  ;;  %v9775_v0 = vld [vmem:[#allocation2 + $0x1b0] sm:$0xf] }
  0xf6   :  { %2392 = vmatpush.bf16.msra.mxu0 %v9608_v26  ;;  %v10732_v26 = vor.u32 %v14634_v13, %v10729_v14  ;;  %v9732_v32 = vor.u32 %v14384_v16, %v9729_v23  ;;  %v14514_v13 = vld [vmem:[#allocation2 + $0x56c] sm:$0xf]  ;;  %v10249_v14 = vld [vmem:[#allocation2 + $0x590] sm:$0xf0]  ;;  %v9569_v23 = vld [vmem:[#allocation2 + $0x40] sm:$0xf0] }
  0xf7   :  { %2405 = vmatpush.bf16.msra.mxu1 %v9928_v29  ;;  %v10369_v29 = vld [vmem:[#allocation2 + $0x680] sm:$0xf0]  ;;  %v10569_v16 = vld [vmem:[#allocation2 + $0x810] sm:$0xf0] }
  0xf8   :  { %2418 = vmatpush.bf16.msra.mxu2 %v10248_v30  ;;  %v14624_v30 = vld [vmem:[#allocation2 + $0x8dc] sm:$0xf] }
  0xf9   :  { %2431 = vmatpush.bf16.msra.mxu3 %v10568_v35  ;;  %v10372_v35 = vor.u32 %v14544_v28, %v10369_v29  ;;  %v10692_v41 = vor.u32 %v14624_v30, %v10689_v31  ;;  %v14504_v28 = vld [vmem:[#allocation2 + $0x51c] sm:$0xf]  ;;  %v10209_v31 = vld [vmem:[#allocation2 + $0x540] sm:$0xf0] }
  0xfa   :  { %2393 = vmatpush.bf16.msra.mxu0 %v9568_v43  ;;  %v2187_v33 = vpop.f32.mrf.mxu0  ;;  %v14534_v43 = vld [vmem:[#allocation2 + $0x60c] sm:$0xf] }
  0xfb   :  { %2406 = vmatpush.bf16.msra.mxu1 %v9888_v47  ;;  %v2188_v39 = vadd.f32 %v2187_v33, %v442_v25  ;;  %v2200_v40 = vpop.f32.mrf.mxu1  ;;  %v10332_v51 = vor.u32 %v14534_v43, %v10329_v44  ;;  %v10252_v25 = vor.u32 %v14514_v13, %v10249_v14  ;;  %v10529_v33 = vld [vmem:[#allocation2 + $0x7c0] sm:$0xf0]  ;;  %v10212_v43 = vor.u32 %v14504_v28, %v10209_v31  ;;  %v10815_v44 = vld [vmem:[#allocation2 + $0x9d0] sm:$0xf] }
  0xfc   :  { %2419 = vmatpush.bf16.msra.mxu2 %v10208_v48  ;;  %v9692_v48 = vor.u32 %v14374_v36, %v9689_v37  ;;  %v14420_v36 = vld [vmem:[#allocation2 + $0x274] sm:$0xf0]  ;;  %v10175_v37 = vld [vmem:[#allocation2 + $0x4d0] sm:$0xf] }
  0xfd   :  { %2432 = vmatpush.bf16.msra.mxu3 %v10528_v52  ;;  %2394 = vmatmul.bf16.vlgmr.msra.gmra.mxu0 %v15784_v19  ;;  %v2201_v47 = vadd.f32 %v2200_v40, %v2188_v39  ;;  %v14364_v52 = vld [vmem:[#allocation2 + $0xbc] sm:$0xf]  ;;  %v14500_v39 = vld [vmem:[#allocation2 + $0x4f4] sm:$0xf0]  ;;  %v10495_v40 = vld [vmem:[#allocation2 + $0x750] sm:$0xf] }
  0xfe   :  { %2438 = vmatpush.bf16.msrb.mxu0 %v9852_v53  ;;  %2407 = vmatmul.bf16.vlgmr.msra.gmra.mxu1 %v15788_v22  ;;  %v9649_v53 = vld [vmem:[#allocation2 + $0xe0] sm:$0xf0] }
  0xff   :  { %2451 = vmatpush.bf16.msrb.mxu1 %v10172_v54  ;;  %2420 = vmatmul.bf16.vlgmr.msra.gmra.mxu2 %v15782_v18  ;;  %v14444_v54 = vld [vmem:[#allocation2 + $0x33c] sm:$0xf]  ;;  %v9652_v1 = vor.u32 %v14364_v52, %v9649_v53  ;;  %v14410_v52 = vld [vmem:[#allocation2 + $0x224] sm:$0xf0]  ;;  %v10135_v53 = vld [vmem:[#allocation2 + $0x480] sm:$0xf] }
 0x100   :  { %2464 = vmatpush.bf16.msrb.mxu2 %v10492_v55  ;;  %2433 = vmatmul.bf16.vlgmr.msra.gmra.mxu3 %v15786_v20 }
 0x101   :  { %2477 = vmatpush.bf16.msrb.mxu3 %v10812_v60  ;;  %v10289_v60 = vld [vmem:[#allocation2 + $0x5e0] sm:$0xf0] }
 0x102   :  { %2439 = vmatpush.bf16.msrb.mxu0 %v9812_v2  ;;  %v2213_v55 = vpop.f32.mrf.mxu2  ;;  %v10292_v5 = vor.u32 %v14524_v59, %v10289_v60  ;;  %v10775_v59 = vld [vmem:[#allocation2 + $0x980] sm:$0xf]  ;;  %v14650_v60 = vld [vmem:[#allocation2 + $0x9a4] sm:$0xf0] }
 0x103   :  { %2452 = vmatpush.bf16.msrb.mxu1 %v10132_v3  ;;  %v2214_v61 = vadd.f32 %v2213_v55, %v2201_v47  ;;  %v2226_v62 = vpop.f32.mrf.mxu3  ;;  %v2189_v3 = vpop.f32.mrf.mxu0  ;;  %v14490_v55 = vld [vmem:[#allocation2 + $0x4a4] sm:$0xf0] }
 0x104   :  { %2465 = vmatpush.bf16.msrb.mxu2 %v10452_v4  ;;  %v9972_v4 = vor.u32 %v14444_v54, %v9969_v58  ;;  %v2202_v10 = vpop.f32.mrf.mxu1  ;;  %v10816_v54 = vor.u32 %v14660_v45, %v10815_v44  ;;  %v14570_v58 = vld [vmem:[#allocation2 + $0x724] sm:$0xf0]  ;;  %v10095_v3 = vld [vmem:[#allocation2 + $0x430] sm:$0xf] }
 0x105   :  { %2478 = vmatpush.bf16.msrb.mxu3 %v10772_v9  ;;  %v15827_v2 = vadd.f32 %v2226_v62, %v2214_v61  ;;  %v14434_v9 = vld [vmem:[#allocation2 + $0x2ec] sm:$0xf]  ;;  %v10136_v62 = vor.u32 %v14490_v55, %v10135_v53  ;;  %v14640_v10 = vld [vmem:[#allocation2 + $0x954] sm:$0xf0]  ;;  %v10295_v53 = vld [vmem:[#allocation2 + $0x5c0] sm:$0xf] }
 0x106   :  { %2440 = vmatpush.bf16.msrb.mxu0 %v9772_v15  ;;  %v14594_v15 = vld [vmem:[#allocation2 + $0x7ec] sm:$0xf]  ;;  %v9932_v24 = vor.u32 %v14434_v9, %v9929_v12  ;;  %v10735_v9 = vld [vmem:[#allocation2 + $0x930] sm:$0xf]  ;;  %v9735_v12 = vld [vmem:[#allocation2 + $0x160] sm:$0xf] }
 0x107   :  { %2453 = vmatpush.bf16.msrb.mxu1 %v10092_v17  ;;  %v9612_v17 = vor.u32 %v14354_v6, %v9609_v7  ;;  %v10572_v30 = vor.u32 %v14594_v15, %v10569_v16  ;;  %v10415_v6 = vld [vmem:[#allocation2 + $0x6b0] sm:$0xf]  ;;  %v14560_v7 = vld [vmem:[#allocation2 + $0x6d4] sm:$0xf0]  ;;  %v14390_v15 = vld [vmem:[#allocation2 + $0x184] sm:$0xf0] }
 0x108   :  { %2466 = vmatpush.bf16.msrb.mxu2 %v10412_v21  ;;  %v14344_v21 = vld [vmem:[#allocation2 + $0x1c] sm:$0xf]  ;;  %v10416_v14 = vor.u32 %v14560_v7, %v10415_v6  ;;  %v10055_v16 = vld [vmem:[#allocation2 + $0x3e0] sm:$0xf]  ;;  %v9736_v28 = vor.u32 %v14390_v15, %v9735_v12  ;;  %v14440_v7 = vld [vmem:[#allocation2 + $0x314] sm:$0xf0] }
 0x109   :  { %2479 = vmatpush.bf16.msrb.mxu3 %v10732_v26  ;;  %v14424_v26 = vld [vmem:[#allocation2 + $0x29c] sm:$0xf]  ;;  %v9572_v38 = vor.u32 %v14344_v21, %v9569_v23  ;;  %v10736_v21 = vor.u32 %v14640_v10, %v10735_v9  ;;  %v14470_v23 = vld [vmem:[#allocation2 + $0x404] sm:$0xf0]  ;;  %v10255_v9 = vld [vmem:[#allocation2 + $0x570] sm:$0xf] }
 0x10a   :  { %2441 = vmatpush.bf16.msrb.mxu0 %v9732_v32  ;;  %v2215_v29 = vpop.f32.mrf.mxu2  ;;  %v14584_v32 = vld [vmem:[#allocation2 + $0x79c] sm:$0xf]  ;;  %v9892_v42 = vor.u32 %v14424_v26, %v9889_v27  ;;  %v10695_v26 = vld [vmem:[#allocation2 + $0x8e0] sm:$0xf]  ;;  %v14630_v27 = vld [vmem:[#allocation2 + $0x904] sm:$0xf0] }
 0x10b   :  { %2454 = vmatpush.bf16.msrb.mxu1 %v10052_v34  ;;  %v2228_v34 = vpop.f32.mrf.mxu3  ;;  %v10532_v46 = vor.u32 %v14584_v32, %v10529_v33  ;;  %v9695_v32 = vld [vmem:[#allocation2 + $0x110] sm:$0xf]  ;;  %v14380_v33 = vld [vmem:[#allocation2 + $0x134] sm:$0xf0]  ;;  %v14350_v15 = vld [vmem:[#allocation2 + $0x44] sm:$0xf0] }
 0x10c   :  { %2467 = vmatpush.bf16.msrb.mxu2 %v10372_v35  ;;  %v9855_v35 = vld [vmem:[#allocation2 + $0x250] sm:$0xf]  ;;  %v14520_v10 = vld [vmem:[#allocation2 + $0x594] sm:$0xf0] }
 0x10d   :  { %2480 = vmatpush.bf16.msrb.mxu3 %v10692_v41  ;;  %v14580_v41 = vld [vmem:[#allocation2 + $0x774] sm:$0xf0]  ;;  %v9856_v47 = vor.u32 %v14420_v36, %v9855_v35  ;;  %v10015_v34 = vld [vmem:[#allocation2 + $0x390] sm:$0xf] }
 0x10e   :  { %2442 = vmatpush.bf16.msrb.mxu0 %v9692_v48  ;;  %v10176_v48 = vor.u32 %v14500_v39, %v10175_v37  ;;  %v14460_v37 = vld [vmem:[#allocation2 + $0x3b4] sm:$0xf0] }
 0x10f   :  { %2455 = vmatpush.bf16.msrb.mxu1 %v10012_v49  ;;  %v10496_v49 = vor.u32 %v14580_v41, %v10495_v40  ;;  %v14540_v39 = vld [vmem:[#allocation2 + $0x634] sm:$0xf0]  ;;  %v10655_v40 = vld [vmem:[#allocation2 + $0x890] sm:$0xf]  ;;  %v10016_v44 = vor.u32 %v14460_v37, %v10015_v34 }
 0x110   :  { %2468 = vmatpush.bf16.msrb.mxu2 %v10332_v51  ;;  %v9815_v51 = vld [vmem:[#allocation2 + $0x200] sm:$0xf]  ;;  %v14620_v41 = vld [vmem:[#allocation2 + $0x8b4] sm:$0xf0] }
 0x111   :  { %2481 = vmatpush.bf16.msrb.mxu3 %v10652_v57  ;;  %v10455_v57 = vld [vmem:[#allocation2 + $0x700] sm:$0xf]  ;;  %v9816_v61 = vor.u32 %v14410_v52, %v9815_v51  ;;  %v10656_v51 = vor.u32 %v14620_v41, %v10655_v40  ;;  %v14450_v52 = vld [vmem:[#allocation2 + $0x364] sm:$0xf0]  ;;  %v14600_v12 = vld [vmem:[#allocation2 + $0x814] sm:$0xf0] }
 0x112   :  { %2443 = vmatpush.bf16.msrb.mxu0 %v9652_v1  ;;  %v10456_v63 = vor.u32 %v14570_v58, %v10455_v57  ;;  %v14400_v1 = vld [vmem:[#allocation2 + $0x1d4] sm:$0xf0]  ;;  %v10615_v58 = vld [vmem:[#allocation2 + $0x840] sm:$0xf]  ;;  %v10817_v40 = vld [vmem:[#allocation2 + $0x9f8] sm:$0xf0] }
 0x113   :  { %2456 = vmatpush.bf16.msrb.mxu1 %v9972_v4  ;;  %v10776_v4 = vor.u32 %v14650_v60, %v10775_v59  ;;  %v14610_v59 = vld [vmem:[#allocation2 + $0x864] sm:$0xf0] }
 0x114   :  { %2469 = vmatpush.bf16.msrb.mxu2 %v10292_v5  ;;  %v14480_v5 = vld [vmem:[#allocation2 + $0x454] sm:$0xf0]  ;;  %v10616_v6 = vor.u32 %v14610_v59, %v10615_v58  ;;  %v14395_v59 = vld [vmem:[#allocation2 + $0x1b4] sm:$0xf] }
 0x115   :  { %2482 = vmatpush.bf16.msrb.mxu3 %v10612_v11  ;;  %v9776_v11 = vor.u32 %v14400_v1, %v9775_v0  ;;  %v10096_v13 = vor.u32 %v14480_v5, %v10095_v3  ;;  %v9615_v1 = vld [vmem:[#allocation2 + $0x70] sm:$0xf]  ;;  %v14360_v3 = vld [vmem:[#allocation2 + $0x94] sm:$0xf0] }
 0x116   :  { %2444 = vmatpush.bf16.msrb.mxu0 %v9612_v17  ;;  %v443_v17 = vperm.slane %v15810_v56, 3  ;;  %v10696_v56 = vor.u32 %v14630_v27, %v10695_v26  ;;  %v14510_v27 = vld [vmem:[#allocation2 + $0x544] sm:$0xf0] }
 0x117   :  { %2457 = vmatpush.bf16.msrb.mxu1 %v9932_v24  ;;  %v10375_v24 = vld [vmem:[#allocation2 + $0x660] sm:$0xf] }
 0x118   :  { %2470 = vmatpush.bf16.msrb.mxu2 %v10252_v25  ;;  %v14550_v25 = vld [vmem:[#allocation2 + $0x684] sm:$0xf0] }
 0x119   :  { %2483 = vmatpush.bf16.msrb.mxu3 %v10572_v30  ;;  %v10056_v30 = vor.u32 %v14470_v23, %v10055_v16  ;;  %v10376_v31 = vor.u32 %v14550_v25, %v10375_v24  ;;  %v14430_v23 = vld [vmem:[#allocation2 + $0x2c4] sm:$0xf0]  ;;  %v10215_v24 = vld [vmem:[#allocation2 + $0x520] sm:$0xf] }
 0x11a   :  { %2445 = vmatpush.bf16.msrb.mxu0 %v9572_v38  ;;  %v2239_v29 = vpop.f32.mrf.mxu0  ;;  %v10335_v38 = vld [vmem:[#allocation2 + $0x610] sm:$0xf] }
 0x11b   :  { %2458 = vmatpush.bf16.msrb.mxu1 %v9892_v42  ;;  %v2240_v35 = vadd.f32 %v2239_v29, %v443_v17  ;;  %v2252_v36 = vpop.f32.mrf.mxu1  ;;  %v10336_v45 = vor.u32 %v14540_v39, %v10335_v38  ;;  %v10256_v17 = vor.u32 %v14520_v10, %v10255_v9  ;;  %v14590_v29 = vld [vmem:[#allocation2 + $0x7c4] sm:$0xf0]  ;;  %v10216_v38 = vor.u32 %v14510_v27, %v10215_v24  ;;  %v14655_v39 = vld [vmem:[#allocation2 + $0x9d4] sm:$0xf]  ;;  %v10697_v24 = vld [vmem:[#allocation2 + $0x908] sm:$0xf0] }
 0x11c   :  { %2471 = vmatpush.bf16.msrb.mxu2 %v10212_v43  ;;  %v9696_v43 = vor.u32 %v14380_v33, %v9695_v32  ;;  %v9857_v32 = vld [vmem:[#allocation2 + $0x278] sm:$0xf0]  ;;  %v14495_v33 = vld [vmem:[#allocation2 + $0x4d4] sm:$0xf] }
 0x11d   :  { %2484 = vmatpush.bf16.msrb.mxu3 %v10532_v46  ;;  %2446 = vmatmul.bf16.vlgmr.msrb.gmra.mxu0 %v15784_v19  ;;  %v2253_v42 = vadd.f32 %v2252_v36, %v2240_v35  ;;  %v9655_v46 = vld [vmem:[#allocation2 + $0xc0] sm:$0xf]  ;;  %v10177_v35 = vld [vmem:[#allocation2 + $0x4f8] sm:$0xf0]  ;;  %v14575_v36 = vld [vmem:[#allocation2 + $0x754] sm:$0xf] }
 0x11e   :  { %2490 = vmatpush.bf16.msra.mxu0 %v9856_v47  ;;  %2459 = vmatmul.bf16.vlgmr.msrb.gmra.mxu1 %v15788_v22  ;;  %v14370_v47 = vld [vmem:[#allocation2 + $0xe4] sm:$0xf0] }
 0x11f   :  { %2503 = vmatpush.bf16.msra.mxu1 %v10176_v48  ;;  %2472 = vmatmul.bf16.vlgmr.msrb.gmra.mxu2 %v15782_v18  ;;  %v9975_v48 = vld [vmem:[#allocation2 + $0x340] sm:$0xf]  ;;  %v9656_v60 = vor.u32 %v14370_v47, %v9655_v46  ;;  %v9817_v46 = vld [vmem:[#allocation2 + $0x228] sm:$0xf0]  ;;  %v14485_v47 = vld [vmem:[#allocation2 + $0x484] sm:$0xf] }
 0x120   :  { %2516 = vmatpush.bf16.msra.mxu2 %v10496_v49  ;;  %2485 = vmatmul.bf16.vlgmr.msrb.gmra.mxu3 %v15786_v20 }
 0x121   :  { %2529 = vmatpush.bf16.msra.mxu3 %v10816_v54  ;;  %v14530_v54 = vld [vmem:[#allocation2 + $0x5e4] sm:$0xf0] }
 0x122   :  { %2491 = vmatpush.bf16.msra.mxu0 %v9816_v61  ;;  %v2265_v49 = vpop.f32.mrf.mxu2  ;;  %v10296_v0 = vor.u32 %v14530_v54, %v10295_v53  ;;  %v14645_v53 = vld [vmem:[#allocation2 + $0x984] sm:$0xf]  ;;  %v10777_v54 = vld [vmem:[#allocation2 + $0x9a8] sm:$0xf0] }
 0x123   :  { %2504 = vmatpush.bf16.msra.mxu1 %v10136_v62  ;;  %v2266_v55 = vadd.f32 %v2265_v49, %v2253_v42  ;;  %v2278_v57 = vpop.f32.mrf.mxu3  ;;  %v2241_v62 = vpop.f32.mrf.mxu0  ;;  %v10137_v49 = vld [vmem:[#allocation2 + $0x4a8] sm:$0xf0] }
 0x124   :  { %2517 = vmatpush.bf16.msra.mxu2 %v10456_v63  ;;  %v9976_v63 = vor.u32 %v14450_v52, %v9975_v48  ;;  %v2254_v5 = vpop.f32.mrf.mxu1  ;;  %v10820_v48 = vor.u32 %v14655_v39, %v10817_v40  ;;  %v10457_v52 = vld [vmem:[#allocation2 + $0x728] sm:$0xf0]  ;;  %v14475_v62 = vld [vmem:[#allocation2 + $0x434] sm:$0xf] }
 0x125   :  { %2530 = vmatpush.bf16.msra.mxu3 %v10776_v4  ;;  %v15834_v61 = vadd.f32 %v2278_v57, %v2266_v55  ;;  %v9935_v4 = vld [vmem:[#allocation2 + $0x2f0] sm:$0xf]  ;;  %v10140_v57 = vor.u32 %v14485_v47, %v10137_v49  ;;  %v10737_v5 = vld [vmem:[#allocation2 + $0x958] sm:$0xf0]  ;;  %v14525_v49 = vld [vmem:[#allocation2 + $0x5c4] sm:$0xf] }
 0x126   :  { %2492 = vmatpush.bf16.msra.mxu0 %v9776_v11  ;;  %v10575_v11 = vld [vmem:[#allocation2 + $0x7f0] sm:$0xf]  ;;  %v9936_v16 = vor.u32 %v14440_v7, %v9935_v4  ;;  %v14635_v4 = vld [vmem:[#allocation2 + $0x934] sm:$0xf]  ;;  %v14385_v7 = vld [vmem:[#allocation2 + $0x164] sm:$0xf] }
 0x127   :  { %2505 = vmatpush.bf16.msra.mxu1 %v10096_v13  ;;  %v9616_v13 = vor.u32 %v14360_v3, %v9615_v1  ;;  %v10576_v26 = vor.u32 %v14600_v12, %v10575_v11  ;;  %v14555_v1 = vld [vmem:[#allocation2 + $0x6b4] sm:$0xf]  ;;  %v10417_v3 = vld [vmem:[#allocation2 + $0x6d8] sm:$0xf0]  ;;  %v9737_v11 = vld [vmem:[#allocation2 + $0x188] sm:$0xf0] }
 0x128   :  { %2518 = vmatpush.bf16.msra.mxu2 %v10416_v14  ;;  %v9575_v14 = vld [vmem:[#allocation2 + $0x20] sm:$0xf]  ;;  %v10420_v10 = vor.u32 %v14555_v1, %v10417_v3  ;;  %v14465_v12 = vld [vmem:[#allocation2 + $0x3e4] sm:$0xf]  ;;  %v14435_v1 = vld [vmem:[#allocation2 + $0x2f4] sm:$0xf] }
 0x129   :  { %2531 = vmatpush.bf16.msra.mxu3 %v10736_v21  ;;  %v9895_v21 = vld [vmem:[#allocation2 + $0x2a0] sm:$0xf]  ;;  %v9576_v34 = vor.u32 %v14350_v15, %v9575_v14  ;;  %v10740_v15 = vor.u32 %v14635_v4, %v10737_v5  ;;  %v9937_v5 = vld [vmem:[#allocation2 + $0x318] sm:$0xf0] }
 0x12a   :  { %2493 = vmatpush.bf16.msra.mxu0 %v9736_v28  ;;  %v2267_v25 = vpop.f32.mrf.mxu2  ;;  %v10535_v28 = vld [vmem:[#allocation2 + $0x7a0] sm:$0xf]  ;;  %v9896_v37 = vor.u32 %v14430_v23, %v9895_v21  ;;  %v10377_v21 = vld [vmem:[#allocation2 + $0x688] sm:$0xf0]  ;;  %v14625_v23 = vld [vmem:[#allocation2 + $0x8e4] sm:$0xf] }
 0x12b   :  { %2506 = vmatpush.bf16.msra.mxu1 %v10056_v30  ;;  %v2280_v30 = vpop.f32.mrf.mxu3  ;;  %v10536_v41 = vor.u32 %v14590_v29, %v10535_v28  ;;  %v9740_v25 = vor.u32 %v14385_v7, %v9737_v11  ;;  %v14375_v29 = vld [vmem:[#allocation2 + $0x114] sm:$0xf]  ;;  %v10257_v7 = vld [vmem:[#allocation2 + $0x598] sm:$0xf0] }
 0x12c   :  { %2519 = vmatpush.bf16.msra.mxu2 %v10376_v31  ;;  %v14415_v31 = vld [vmem:[#allocation2 + $0x254] sm:$0xf]  ;;  %v9697_v30 = vld [vmem:[#allocation2 + $0x138] sm:$0xf0] }
 0x12d   :  { %2532 = vmatpush.bf16.msra.mxu3 %v10696_v56  ;;  %v10497_v56 = vld [vmem:[#allocation2 + $0x778] sm:$0xf0]  ;;  %v9860_v42 = vor.u32 %v14415_v31, %v9857_v32  ;;  %v14455_v31 = vld [vmem:[#allocation2 + $0x394] sm:$0xf]  ;;  %v9700_v40 = vor.u32 %v14375_v29, %v9697_v30 }
 0x12e   :  { %2494 = vmatpush.bf16.msra.mxu0 %v9696_v43  ;;  %v10180_v43 = vor.u32 %v14495_v33, %v10177_v35  ;;  %v10017_v35 = vld [vmem:[#allocation2 + $0x3b8] sm:$0xf0] }
 0x12f   :  { %2507 = vmatpush.bf16.msra.mxu1 %v10016_v44  ;;  %v10500_v44 = vor.u32 %v14575_v36, %v10497_v56  ;;  %v14535_v36 = vld [vmem:[#allocation2 + $0x614] sm:$0xf]  ;;  %v10337_v56 = vld [vmem:[#allocation2 + $0x638] sm:$0xf0] }
 0x130   :  { %2520 = vmatpush.bf16.msra.mxu2 %v10336_v45  ;;  %v14405_v45 = vld [vmem:[#allocation2 + $0x204] sm:$0xf]  ;;  %v11103_v30 = vld [vmem:[#allocation6 + $0x230] sm:$0xf] }
 0x131   :  { %2533 = vmatpush.bf16.msra.mxu3 %v10656_v51  ;;  %v14565_v51 = vld [vmem:[#allocation2 + $0x704] sm:$0xf]  ;;  %v9820_v55 = vor.u32 %v14405_v45, %v9817_v46 }
 0x132   :  { %2495 = vmatpush.bf16.msra.mxu0 %v9656_v60  ;;  %v10460_v58 = vor.u32 %v14565_v51, %v10457_v52  ;;  %v9777_v60 = vld [vmem:[#allocation2 + $0x1d8] sm:$0xf0]  ;;  %v14445_v45 = vld [vmem:[#allocation2 + $0x344] sm:$0xf]  ;;  %v10297_v51 = vld [vmem:[#allocation2 + $0x5e8] sm:$0xf0] }
 0x133   :  { %2508 = vmatpush.bf16.msra.mxu1 %v9976_v63  ;;  %v10780_v63 = vor.u32 %v14645_v53, %v10777_v54  ;;  %v14605_v54 = vld [vmem:[#allocation2 + $0x844] sm:$0xf] }
 0x134   :  { %2521 = vmatpush.bf16.msra.mxu2 %v10296_v0  ;;  %v10097_v0 = vld [vmem:[#allocation2 + $0x458] sm:$0xf0] }
 0x135   :  { %2534 = vmatpush.bf16.msra.mxu3 %v10616_v6  ;;  %v9780_v6 = vor.u32 %v14395_v59, %v9777_v60  ;;  %v10100_v9 = vor.u32 %v14475_v62, %v10097_v0  ;;  %v10300_v62 = vor.u32 %v14525_v49, %v10297_v51  ;;  %v9617_v0 = vld [vmem:[#allocation2 + $0x98] sm:$0xf0]  ;;  %v11703_v49 = vld [vmem:[#allocation6 + $0x6e0] sm:$0xf]  ;;  %v14886_v51 = vld [vmem:[#allocation6 + $0x704] sm:$0xf0] }
 0x136   :  { %2496 = vmatpush.bf16.msra.mxu0 %v9616_v13  ;;  %v15840_v13 = vld [vmem:[#allocation4] sm:$0xff] }
 0x137   :  { %2509 = vmatpush.bf16.msra.mxu1 %v9936_v16  ;;  %v444_v14 = vperm.slane %v15840_v13, 4  ;;  %v10057_v16 = vld [vmem:[#allocation2 + $0x408] sm:$0xf0] }
 0x138   :  { %2522 = vmatpush.bf16.msra.mxu2 %v10256_v17  ;;  %v14545_v17 = vld [vmem:[#allocation2 + $0x664] sm:$0xf]  ;;  %v10060_v27 = vor.u32 %v14465_v12, %v10057_v16 }
 0x139   :  { %2535 = vmatpush.bf16.msra.mxu3 %v10576_v26  ;;  %v10380_v28 = vor.u32 %v14545_v17, %v10377_v21  ;;  %v14345_v12 = vld [vmem:[#allocation2 + $0x24] sm:$0xf]  ;;  %v9897_v21 = vld [vmem:[#allocation2 + $0x2c8] sm:$0xf0] }
 0x13a   :  { %2497 = vmatpush.bf16.msra.mxu0 %v9576_v34  ;;  %v2291_v26 = vpop.f32.mrf.mxu0  ;;  %v10700_v34 = vor.u32 %v14625_v23, %v10697_v24  ;;  %v14425_v17 = vld [vmem:[#allocation2 + $0x2a4] sm:$0xf] }
 0x13b   :  { %2510 = vmatpush.bf16.msra.mxu1 %v9896_v37  ;;  %v2292_v32 = vadd.f32 %v2291_v26, %v444_v14  ;;  %v2304_v33 = vpop.f32.mrf.mxu1  ;;  %v14615_v37 = vld [vmem:[#allocation2 + $0x894] sm:$0xf]  ;;  %v9577_v14 = vld [vmem:[#allocation2 + $0x48] sm:$0xf0]  ;;  %v14505_v23 = vld [vmem:[#allocation2 + $0x524] sm:$0xf] }
 0x13c   :  { %2523 = vmatpush.bf16.msra.mxu2 %v10216_v38  ;;  %v10657_v38 = vld [vmem:[#allocation2 + $0x8b8] sm:$0xf0]  ;;  %v10217_v26 = vld [vmem:[#allocation2 + $0x548] sm:$0xf0] }
 0x13d   :  { %2536 = vmatpush.bf16.msra.mxu3 %v10536_v41  ;;  %2498 = vmatmul.bf16.vlgmr.msra.gmra.mxu0 %v15784_v19  ;;  %v2305_v39 = vadd.f32 %v2304_v33, %v2292_v32  ;;  %v10020_v41 = vor.u32 %v14455_v31, %v10017_v35  ;;  %v10660_v47 = vor.u32 %v14615_v37, %v10657_v38  ;;  %v14736_v31 = vld [vmem:[#allocation6 + $0x254] sm:$0xf0]  ;;  %v11423_v32 = vld [vmem:[#allocation6 + $0x4b0] sm:$0xf] }
 0x13e   :  { %2542 = vmatpush.bf16.msrb.mxu0 %v9860_v42  ;;  %2511 = vmatmul.bf16.vlgmr.msra.gmra.mxu1 %v15788_v22  ;;  %v10340_v42 = vor.u32 %v14535_v36, %v10337_v56  ;;  %v9580_v33 = vor.u32 %v14345_v12, %v9577_v14  ;;  %v11743_v35 = vld [vmem:[#allocation6 + $0x730] sm:$0xf]  ;;  %v14896_v36 = vld [vmem:[#allocation6 + $0x754] sm:$0xf0]  ;;  %v9900_v56 = vor.u32 %v14425_v17, %v9897_v21  ;;  %v14786_v14 = vld [vmem:[#allocation6 + $0x3e4] sm:$0xf0] }
 0x13f   :  { %2555 = vmatpush.bf16.msrb.mxu1 %v10180_v43  ;;  %2524 = vmatmul.bf16.vlgmr.msra.gmra.mxu2 %v15782_v18  ;;  %v14365_v43 = vld [vmem:[#allocation2 + $0xc4] sm:$0xf]  ;;  %v10220_v37 = vor.u32 %v14505_v23, %v10217_v26  ;;  %v12063_v38 = vld [vmem:[#allocation6 + $0x9b0] sm:$0xf] }
 0x140   :  { %2568 = vmatpush.bf16.msrb.mxu2 %v10500_v44  ;;  %2537 = vmatmul.bf16.vlgmr.msra.gmra.mxu3 %v15786_v20  ;;  %v9657_v44 = vld [vmem:[#allocation2 + $0xe8] sm:$0xf0]  ;;  %v11263_v26 = vld [vmem:[#allocation6 + $0x370] sm:$0xf] }
 0x141   :  { %2581 = vmatpush.bf16.msrb.mxu3 %v10820_v48  ;;  %v9977_v48 = vld [vmem:[#allocation2 + $0x368] sm:$0xf0] }
 0x142   :  { %2543 = vmatpush.bf16.msrb.mxu0 %v9820_v55  ;;  %v2317_v46 = vpop.f32.mrf.mxu2  ;;  %v10617_v55 = vld [vmem:[#allocation2 + $0x868] sm:$0xf0]  ;;  %v2293_v59 = vpop.f32.mrf.mxu0  ;;  %v9980_v60 = vor.u32 %v14445_v45, %v9977_v48  ;;  %v14726_v45 = vld [vmem:[#allocation6 + $0x204] sm:$0xf0] }
 0x143   :  { %2556 = vmatpush.bf16.msrb.mxu1 %v10140_v57  ;;  %v2318_v52 = vadd.f32 %v2317_v46, %v2305_v39  ;;  %v2330_v53 = vpop.f32.mrf.mxu3  ;;  %v9660_v57 = vor.u32 %v14365_v43, %v9657_v44  ;;  %v2306_v3 = vpop.f32.mrf.mxu1  ;;  %v10620_v4 = vor.u32 %v14605_v54, %v10617_v55  ;;  %v14976_v39 = vld [vmem:[#allocation6 + $0x9d4] sm:$0xf0]  ;;  %v11744_v43 = vor.u32 %v14896_v36, %v11743_v35  ;;  %v11063_v44 = vld [vmem:[#allocation6 + $0x1e0] sm:$0xf]  ;;  %v14806_v48 = vld [vmem:[#allocation6 + $0x484] sm:$0xf0] }
 0x144   :  { %2569 = vmatpush.bf16.msrb.mxu2 %v10460_v58  ;;  %v11383_v46 = vld [vmem:[#allocation6 + $0x460] sm:$0xf]  ;;  %v11064_v54 = vor.u32 %v14726_v45, %v11063_v44  ;;  %v11023_v59 = vld [vmem:[#allocation6 + $0x190] sm:$0xf]  ;;  %v14876_v3 = vld [vmem:[#allocation6 + $0x6b4] sm:$0xf0] }
 0x145   :  { %2582 = vmatpush.bf16.msrb.mxu3 %v10780_v63  ;;  %v15843_v58 = vadd.f32 %v2330_v53, %v2318_v52  ;;  %v14355_v63 = vld [vmem:[#allocation2 + $0x74] sm:$0xf]  ;;  %v12023_v52 = vld [vmem:[#allocation6 + $0x960] sm:$0xf]  ;;  %v11384_v55 = vor.u32 %v14806_v48, %v11383_v46 }
 0x146   :  { %2544 = vmatpush.bf16.msrb.mxu0 %v9780_v6  ;;  %v14515_v6 = vld [vmem:[#allocation2 + $0x574] sm:$0xf]  ;;  %v9620_v11 = vor.u32 %v14355_v63, %v9617_v0  ;;  %v14796_v0 = vld [vmem:[#allocation6 + $0x434] sm:$0xf0]  ;;  %v11863_v45 = vld [vmem:[#allocation6 + $0x820] sm:$0xf] }
 0x147   :  { %2557 = vmatpush.bf16.msrb.mxu1 %v10100_v9  ;;  %v14595_v9 = vld [vmem:[#allocation2 + $0x7f4] sm:$0xf]  ;;  %v10260_v16 = vor.u32 %v14515_v6, %v10257_v7 }
 0x148   :  { %2570 = vmatpush.bf16.msrb.mxu2 %v10420_v10  ;;  %v10577_v10 = vld [vmem:[#allocation2 + $0x818] sm:$0xf0]  ;;  %v14966_v53 = vld [vmem:[#allocation6 + $0x984] sm:$0xf0] }
 0x149   :  { %2583 = vmatpush.bf16.msrb.mxu3 %v10740_v15  ;;  %v9940_v15 = vor.u32 %v14435_v1, %v9937_v5  ;;  %v12024_v63 = vor.u32 %v14966_v53, %v12023_v52  ;;  %v11663_v1 = vld [vmem:[#allocation6 + $0x690] sm:$0xf]  ;;  %v14956_v5 = vld [vmem:[#allocation6 + $0x934] sm:$0xf0]  ;;  %v14926_v46 = vld [vmem:[#allocation6 + $0x844] sm:$0xf0] }
 0x14a   :  { %2545 = vmatpush.bf16.msrb.mxu0 %v9740_v25  ;;  %v2319_v24 = vpop.f32.mrf.mxu2  ;;  %v10580_v25 = vor.u32 %v14595_v9, %v10577_v10  ;;  %v11664_v9 = vor.u32 %v14876_v3, %v11663_v1  ;;  %v10983_v10 = vld [vmem:[#allocation6 + $0x140] sm:$0xf]  ;;  %v10863_v52 = vld [vmem:[#allocation6 + $0x50] sm:$0xf]  ;;  %v14676_v53 = vld [vmem:[#allocation6 + $0x74] sm:$0xf0] }
 0x14b   :  { %2558 = vmatpush.bf16.msrb.mxu1 %v10060_v27  ;;  %v14585_v27 = vld [vmem:[#allocation2 + $0x7a4] sm:$0xf]  ;;  %v2332_v29 = vpop.f32.mrf.mxu3  ;;  %v10943_v24 = vld [vmem:[#allocation6 + $0xf0] sm:$0xf]  ;;  %v10864_v1 = vor.u32 %v14676_v53, %v10863_v52  ;;  %v10823_v3 = vld [vmem:[#allocation6] sm:$0xf] }
 0x14c   :  { %2571 = vmatpush.bf16.msrb.mxu2 %v10380_v28  ;;  %v10537_v28 = vld [vmem:[#allocation2 + $0x7c8] sm:$0xf0]  ;;  %v14776_v29 = vld [vmem:[#allocation6 + $0x394] sm:$0xf0]  ;;  %v12303_v52 = vld [vmem:[#allocation6 + $0xb90] sm:$0xf] }
 0x14d   :  { %2584 = vmatpush.bf16.msrb.mxu3 %v10700_v34  ;;  %v14816_v34 = vld [vmem:[#allocation6 + $0x4d4] sm:$0xf0]  ;;  %v11264_v35 = vor.u32 %v14776_v29, %v11263_v26  ;;  %v2594_v26 = vmax.f32 %v15813_v50, 0.0  ;;  %v12663_v50 = vld [vmem:[#allocation6 + $0xe60] sm:$0xf] }
 0x14e   :  { %2546 = vmatpush.bf16.msrb.mxu0 %v9700_v40  ;;  %v10540_v40 = vor.u32 %v14585_v27, %v10537_v28  ;;  %v15036_v53 = vld [vmem:[#allocation6 + $0xbb4] sm:$0xf0] }
 0x14f   :  { %2559 = vmatpush.bf16.msrb.mxu1 %v10020_v41  ;;  %v11104_v41 = vor.u32 %v14736_v31, %v11103_v30  ;;  %v11583_v30 = vld [vmem:[#allocation6 + $0x5f0] sm:$0xf]  ;;  %v14856_v31 = vld [vmem:[#allocation6 + $0x614] sm:$0xf0] }
 0x150   :  { %2572 = vmatpush.bf16.msrb.mxu2 %v10340_v42  ;;  %v11424_v42 = vor.u32 %v14816_v34, %v11423_v32  ;;  %v11903_v32 = vld [vmem:[#allocation6 + $0x870] sm:$0xf]  ;;  %v11584_v36 = vor.u32 %v14856_v31, %v11583_v30 }
 0x151   :  { %2585 = vmatpush.bf16.msrb.mxu3 %v10660_v47  ;;  %v12064_v47 = vor.u32 %v14976_v39, %v12063_v38  ;;  %v11223_v38 = vld [vmem:[#allocation6 + $0x320] sm:$0xf]  ;;  %v13343_v31 = vld [vmem:[#allocation6 + $0x13b0] sm:$0xf] }
 0x152   :  { %2547 = vmatpush.bf16.msrb.mxu0 %v9660_v57  ;;  %v11704_v57 = vor.u32 %v14886_v51, %v11703_v49 }
 0x153   :  { %2560 = vmatpush.bf16.msrb.mxu1 %v9980_v60  ;;  %v14716_v60 = vld [vmem:[#allocation6 + $0x1b4] sm:$0xf0] }
 0x154   :  { %2573 = vmatpush.bf16.msrb.mxu2 %v10300_v62  ;;  %v11343_v62 = vld [vmem:[#allocation6 + $0x410] sm:$0xf]  ;;  %v11024_v6 = vor.u32 %v14716_v60, %v11023_v59  ;;  %v14756_v59 = vld [vmem:[#allocation6 + $0x2f4] sm:$0xf0] }
 0x155   :  { %2586 = vmatpush.bf16.msrb.mxu3 %v10620_v4  ;;  %v11983_v4 = vld [vmem:[#allocation6 + $0x910] sm:$0xf]  ;;  %v11344_v7 = vor.u32 %v14796_v0, %v11343_v62  ;;  %v14836_v62 = vld [vmem:[#allocation6 + $0x574] sm:$0xf0] }
 0x156   :  { %2548 = vmatpush.bf16.msrb.mxu0 %v9620_v11  ;;  %v11303_v11 = vld [vmem:[#allocation6 + $0x3c0] sm:$0xf]  ;;  %v11984_v12 = vor.u32 %v14956_v5, %v11983_v4  ;;  %v11503_v60 = vld [vmem:[#allocation6 + $0x550] sm:$0xf]  ;;  %v14916_v0 = vld [vmem:[#allocation6 + $0x7f4] sm:$0xf0] }
 0x157   :  { %2561 = vmatpush.bf16.msrb.mxu1 %v9940_v15  ;;  %v11623_v15 = vld [vmem:[#allocation6 + $0x640] sm:$0xf]  ;;  %v14666_v4 = vld [vmem:[#allocation6 + $0x24] sm:$0xf0] }
 0x158   :  { %2574 = vmatpush.bf16.msrb.mxu2 %v10260_v16  ;;  %v11943_v16 = vld [vmem:[#allocation6 + $0x8c0] sm:$0xf] }
 0x159   :  { %2587 = vmatpush.bf16.msrb.mxu3 %v10580_v25  ;;  %v14696_v25 = vld [vmem:[#allocation6 + $0x114] sm:$0xf0] }
 0x15a   :  { %2549 = vmatpush.bf16.msrb.mxu0 %v9580_v33  ;;  %v15849_v21 = vpop.f32.mrf.mxu0  ;;  %v14936_v33 = vld [vmem:[#allocation6 + $0x894] sm:$0xf0]  ;;  %v10944_v34 = vor.u32 %v14696_v25, %v10943_v24  ;;  %v13023_v24 = vld [vmem:[#allocation6 + $0x1130] sm:$0xf] }
 0x15b   :  { %2562 = vmatpush.bf16.msrb.mxu1 %v9900_v56  ;;  %v15851_v27 = vpop.f32.mrf.mxu1  ;;  %v10903_v56 = vld [vmem:[#allocation6 + $0xa0] sm:$0xf]  ;;  %v15216_v25 = vld [vmem:[#allocation6 + $0x1154] sm:$0xf0] }
 0x15c   :  { %2575 = vmatpush.bf16.msrb.mxu2 %v10220_v37  ;;  %v14686_v37 = vld [vmem:[#allocation6 + $0xc4] sm:$0xf0] }
 0x15d   :  { %2588 = vmatpush.bf16.msrb.mxu3 %v10540_v40  ;;  %2550 = vmatmul.bf16.vlgmr.msrb.gmra.mxu0 %v15784_v19  ;;  %v14706_v19 = vld [vmem:[#allocation6 + $0x164] sm:$0xf0]  ;;  %v11904_v40 = vor.u32 %v14936_v33, %v11903_v32  ;;  %v15296_v32 = vld [vmem:[#allocation6 + $0x13d4] sm:$0xf0]  ;;  %v2596_v33 = vmax.f32 %v15827_v2, 0.0  ;;  %v15861_v2 = vpack.c.bf16 %v2594_v26, %v2594_v26 }
 0x15e   :  { %7438 = vmatpush.bf16.msra.mxu0 %v11104_v41  ;;  %2563 = vmatmul.bf16.vlgmr.msrb.gmra.mxu1 %v15788_v22  ;;  %v14866_v22 = vld [vmem:[#allocation6 + $0x664] sm:$0xf0]  ;;  %v10984_v17 = vor.u32 %v14706_v19, %v10983_v10  ;;  %v11463_v10 = vld [vmem:[#allocation6 + $0x500] sm:$0xf] }
 0x15f   :  { %7451 = vmatpush.bf16.msra.mxu1 %v11424_v42  ;;  %2576 = vmatmul.bf16.vlgmr.msrb.gmra.mxu2 %v15782_v18  ;;  %v14946_v18 = vld [vmem:[#allocation6 + $0x8e4] sm:$0xf0]  ;;  %v11624_v23 = vor.u32 %v14866_v22, %v11623_v15  ;;  %v11543_v42 = vld [vmem:[#allocation6 + $0x5a0] sm:$0xf] }
 0x160   :  { %7464 = vmatpush.bf16.msra.mxu2 %v11744_v43  ;;  %2589 = vmatmul.bf16.vlgmr.msrb.gmra.mxu3 %v15786_v20  ;;  %v11304_v20 = vor.u32 %v14786_v14, %v11303_v11  ;;  %v11944_v28 = vor.u32 %v14946_v18, %v11943_v16  ;;  %v14766_v41 = vld [vmem:[#allocation6 + $0x344] sm:$0xf0]  ;;  %v11783_v14 = vld [vmem:[#allocation6 + $0x780] sm:$0xf]  ;;  %v12383_v16 = vld [vmem:[#allocation6 + $0xc30] sm:$0xf] }
 0x161   :  { %7477 = vmatpush.bf16.msra.mxu3 %v12064_v47  ;;  %v14846_v43 = vld [vmem:[#allocation6 + $0x5c4] sm:$0xf0]  ;;  %v10904_v47 = vor.u32 %v14686_v37, %v10903_v56  ;;  %v11224_v49 = vor.u32 %v14766_v41, %v11223_v38  ;;  %v15056_v18 = vld [vmem:[#allocation6 + $0xc54] sm:$0xf0]  ;;  %v13024_v37 = vor.u32 %v15216_v25, %v13023_v24  ;;  %v12343_v38 = vld [vmem:[#allocation6 + $0xbe0] sm:$0xf] }
 0x162   :  { %7439 = vmatpush.bf16.msra.mxu0 %v11064_v54  ;;  %v15853_v39 = vpop.f32.mrf.mxu2  ;;  %v2345_v48 = vpop.f32.mrf.mxu0  ;;  %v11544_v51 = vor.u32 %v14846_v43, %v11543_v42  ;;  %v11183_v54 = vld [vmem:[#allocation6 + $0x2d0] sm:$0xf]  ;;  %v14906_v15 = vld [vmem:[#allocation6 + $0x7a4] sm:$0xf0]  ;;  %v12983_v42 = vld [vmem:[#allocation6 + $0x10e0] sm:$0xf] }
 0x163   :  { %7452 = vmatpush.bf16.msra.mxu1 %v11384_v55  ;;  %v15855_v44 = vpop.f32.mrf.mxu3  ;;  %v2358_v55 = vpop.f32.mrf.mxu1  ;;  %v11184_v5 = vor.u32 %v14756_v59, %v11183_v54  ;;  %v15126_v41 = vld [vmem:[#allocation6 + $0xe84] sm:$0xf0]  ;;  %v15865_v48 = vpack.c.bf16 %v2596_v33, %v2596_v33  ;;  %v12623_v54 = vld [vmem:[#allocation6 + $0xe10] sm:$0xf]  ;;  %v15116_v59 = vld [vmem:[#allocation6 + $0xe34] sm:$0xf0] }
 0x164   :  { %7465 = vmatpush.bf16.msra.mxu2 %v11704_v57  ;;  %v11864_v57 = vor.u32 %v14926_v46, %v11863_v45  ;;  %v15206_v43 = vld [vmem:[#allocation6 + $0x1104] sm:$0xf0]  ;;  %v13303_v45 = vld [vmem:[#allocation6 + $0x1360] sm:$0xf]  ;;  %v15016_v24 = vld [vmem:[#allocation6 + $0xb14] sm:$0xf0] }
 0x165   :  { %7478 = vmatpush.bf16.msra.mxu3 %v12024_v63  ;;  %v11823_v63 = vld [vmem:[#allocation6 + $0x7d0] sm:$0xf]  ;;  %v15286_v46 = vld [vmem:[#allocation6 + $0x1384] sm:$0xf0]  ;;  %v15176_v33 = vld [vmem:[#allocation6 + $0x1014] sm:$0xf0] }
 0x166   :  { %7440 = vmatpush.bf16.msra.mxu0 %v11024_v6  ;;  %v11504_v6 = vor.u32 %v14836_v62, %v11503_v60  ;;  %v11824_v11 = vor.u32 %v14916_v0, %v11823_v63  ;;  %v12943_v60 = vld [vmem:[#allocation6 + $0x1090] sm:$0xf]  ;;  %v15196_v62 = vld [vmem:[#allocation6 + $0x10b4] sm:$0xf0] }
 0x167   :  { %7453 = vmatpush.bf16.msra.mxu1 %v11344_v7  ;;  %v11143_v7 = vld [vmem:[#allocation6 + $0x280] sm:$0xf]  ;;  %v13263_v63 = vld [vmem:[#allocation6 + $0x1310] sm:$0xf]  ;;  %v15276_v0 = vld [vmem:[#allocation6 + $0x1334] sm:$0xf0] }
 0x168   :  { %7466 = vmatpush.bf16.msra.mxu2 %v11664_v9  ;;  %v14746_v9 = vld [vmem:[#allocation6 + $0x2a4] sm:$0xf0]  ;;  %v12543_v25 = vld [vmem:[#allocation6 + $0xd70] sm:$0xf] }
 0x169   :  { %7479 = vmatpush.bf16.msra.mxu3 %v11984_v12  ;;  %v14826_v12 = vld [vmem:[#allocation6 + $0x524] sm:$0xf0]  ;;  %v11144_v29 = vor.u32 %v14746_v9, %v11143_v7  ;;  %v12583_v9 = vld [vmem:[#allocation6 + $0xdc0] sm:$0xf] }
 0x16a   :  { %7441 = vmatpush.bf16.msra.mxu0 %v10984_v17  ;;  %v2371_v19 = vpop.f32.mrf.mxu2  ;;  %v12703_v17 = vld [vmem:[#allocation6 + $0xeb0] sm:$0xf]  ;;  %v11464_v30 = vor.u32 %v14826_v12, %v11463_v10  ;;  %v15026_v7 = vld [vmem:[#allocation6 + $0xb64] sm:$0xf0]  ;;  %v446_v10 = vperm.slane %v15840_v13, 6 }
 0x16b   :  { %7454 = vmatpush.bf16.msra.mxu1 %v11304_v20  ;;  %v2384_v22 = vpop.f32.mrf.mxu3  ;;  %v10824_v20 = vor.u32 %v14666_v4, %v10823_v3  ;;  %v12263_v3 = vld [vmem:[#allocation6 + $0xb40] sm:$0xf]  ;;  %v445_v4 = vperm.slane %v15840_v13, 5  ;;  %v13264_v19 = vor.u32 %v15276_v0, %v13263_v63  ;;  %v12463_v63 = vld [vmem:[#allocation6 + $0xcd0] sm:$0xf] }
 0x16c   :  { %7467 = vmatpush.bf16.msra.mxu2 %v11624_v23  ;;  %v15136_v23 = vld [vmem:[#allocation6 + $0xed4] sm:$0xf0]  ;;  %v12903_v12 = vld [vmem:[#allocation6 + $0x1040] sm:$0xf]  ;;  %v15266_v22 = vld [vmem:[#allocation6 + $0x12e4] sm:$0xf0] }
 0x16d   :  { %7480 = vmatpush.bf16.msra.mxu3 %v11944_v28  ;;  %v2595_v28 = vmax.f32 %v15820_v8, 0.0  ;;  %v12704_v56 = vor.u32 %v15136_v23, %v12703_v17  ;;  %v13344_v8 = vor.u32 %v15296_v32, %v13343_v31  ;;  %v12223_v23 = vld [vmem:[#allocation6 + $0xaf0] sm:$0xf]  ;;  %v15096_v31 = vld [vmem:[#allocation6 + $0xd94] sm:$0xf0] }
 0x16e   :  { %7442 = vmatpush.bf16.msra.mxu0 %v10944_v34  ;;  %v2597_v34 = vmax.f32 %v15834_v61, 0.0  ;;  %v12863_v32 = vld [vmem:[#allocation6 + $0xff0] sm:$0xf] }
 0x16f   :  { %7455 = vmatpush.bf16.msra.mxu1 %v11264_v35  ;;  %v11784_v35 = vor.u32 %v14906_v15, %v11783_v14  ;;  %v15863_v61 = vpack.c.bf16 %v2595_v28, %v2595_v28  ;;  %v15186_v14 = vld [vmem:[#allocation6 + $0x1064] sm:$0xf0]  ;;  %v13223_v15 = vld [vmem:[#allocation6 + $0x12c0] sm:$0xf] }
 0x170   :  { %7468 = vmatpush.bf16.msra.mxu2 %v11584_v36  ;;  %v12384_v36 = vor.u32 %v15056_v18, %v12383_v16  ;;  %v15867_v55 = vpack.c.bf16 %v2597_v34, %v2597_v34  ;;  %v12264_v16 = vor.u32 %v15026_v7, %v12263_v3  ;;  %v13183_v34 = vld [vmem:[#allocation6 + $0x1270] sm:$0xf]  ;;  %v15076_v3 = vld [vmem:[#allocation6 + $0xcf4] sm:$0xf0] }
 0x171   :  { %7481 = vmatpush.bf16.msra.mxu3 %v11904_v40  ;;  %v15046_v40 = vld [vmem:[#allocation6 + $0xc04] sm:$0xf0]  ;;  %v15236_v7 = vld [vmem:[#allocation6 + $0x11f4] sm:$0xf0] }
 0x172   :  { %7443 = vmatpush.bf16.msra.mxu0 %v10904_v47  ;;  %v12344_v47 = vor.u32 %v15046_v40, %v12343_v38  ;;  %v12183_v40 = vld [vmem:[#allocation6 + $0xaa0] sm:$0xf] }
 0x173   :  { %7456 = vmatpush.bf16.msra.mxu1 %v11224_v49  ;;  %v12664_v49 = vor.u32 %v15126_v41, %v12663_v50  ;;  %v15006_v50 = vld [vmem:[#allocation6 + $0xac4] sm:$0xf0] }
 0x174   :  { %7469 = vmatpush.bf16.msra.mxu2 %v11544_v51  ;;  %v12984_v51 = vor.u32 %v15206_v43, %v12983_v42  ;;  %v15086_v43 = vld [vmem:[#allocation6 + $0xd44] sm:$0xf0] }
 0x175   :  { %7482 = vmatpush.bf16.msra.mxu3 %v11864_v57  ;;  %v13304_v57 = vor.u32 %v15286_v46, %v13303_v45  ;;  %v12823_v45 = vld [vmem:[#allocation6 + $0xfa0] sm:$0xf]  ;;  %v15166_v46 = vld [vmem:[#allocation6 + $0xfc4] sm:$0xf0] }
 0x176   :  { %7444 = vmatpush.bf16.msra.mxu0 %v10864_v1  ;;  %v12304_v1 = vor.u32 %v15036_v53, %v12303_v52  ;;  %v12184_v52 = vor.u32 %v15006_v50, %v12183_v40  ;;  %v13983_v40 = vld [vmem:[#allocation6 + $0x18b0] sm:$0xf]  ;;  %v15456_v50 = vld [vmem:[#allocation6 + $0x18d4] sm:$0xf0] }
 0x177   :  { %7457 = vmatpush.bf16.msra.mxu1 %v11184_v5  ;;  %v12624_v5 = vor.u32 %v15116_v59, %v12623_v54 }
 0x178   :  { %7470 = vmatpush.bf16.msra.mxu2 %v11504_v6  ;;  %v12944_v6 = vor.u32 %v15196_v62, %v12943_v60  ;;  %v12143_v60 = vld [vmem:[#allocation6 + $0xa50] sm:$0xf]  ;;  %v14996_v62 = vld [vmem:[#allocation6 + $0xa74] sm:$0xf0] }
 0x179   :  { %7483 = vmatpush.bf16.msra.mxu3 %v11824_v11  ;;  %v15106_v11 = vld [vmem:[#allocation6 + $0xde4] sm:$0xf0] }
 0x17a   :  { %7445 = vmatpush.bf16.msra.mxu0 %v10824_v20  ;;  %v2395_v18 = vpop.f32.mrf.mxu0  ;;  %v12584_v17 = vor.u32 %v15106_v11, %v12583_v9  ;;  %v12904_v20 = vor.u32 %v15186_v14, %v12903_v12  ;;  %v12144_v9 = vor.u32 %v14996_v62, %v12143_v60  ;;  %v12464_v12 = vor.u32 %v15076_v3, %v12463_v63  ;;  %v13583_v62 = vld [vmem:[#allocation6 + $0x1590] sm:$0xf]  ;;  %v15356_v63 = vld [vmem:[#allocation6 + $0x15b4] sm:$0xf0]  ;;  %v11345_v3 = vld [vmem:[#allocation6 + $0x438] sm:$0xf0] }
 0x17b   :  { %7458 = vmatpush.bf16.msra.mxu1 %v11144_v29  ;;  %v2396_v26 = vadd.f32 %v2395_v18, %v446_v10  ;;  %v2408_v28 = vpop.f32.mrf.mxu1  ;;  %v2344_v29 = vadd.f32 %v15849_v21, %v445_v4  ;;  %v12783_v4 = vld [vmem:[#allocation6 + $0xf50] sm:$0xf]  ;;  %v12103_v10 = vld [vmem:[#allocation6 + $0xa00] sm:$0xf] }
 0x17c   :  { %7471 = vmatpush.bf16.msra.mxu2 %v11464_v30  ;;  %v13224_v30 = vor.u32 %v15266_v22, %v13223_v15  ;;  %v12423_v15 = vld [vmem:[#allocation6 + $0xc80] sm:$0xf]  ;;  %v15066_v22 = vld [vmem:[#allocation6 + $0xca4] sm:$0xf0] }
 0x17d   :  { %7484 = vmatpush.bf16.msra.mxu3 %v11784_v35  ;;  %7446 = vmatmul.bf16.vlgmr.msra.gmra.mxu0 %v15861_v2  ;;  %v15256_v35 = vld [vmem:[#allocation6 + $0x1294] sm:$0xf0]  ;;  %v2409_v38 = vadd.f32 %v2408_v28, %v2396_v26  ;;  %v2357_v21 = vadd.f32 %v15851_v27, %v2344_v29  ;;  %v13663_v26 = vld [vmem:[#allocation6 + $0x1630] sm:$0xf]  ;;  %v14731_v29 = vld [vmem:[#allocation6 + $0x234] sm:$0xf] }
 0x17e   :  { %7490 = vmatpush.bf16.msrb.mxu0 %v12384_v36  ;;  %7459 = vmatmul.bf16.vlgmr.msra.gmra.mxu1 %v15863_v61  ;;  %v12224_v36 = vor.u32 %v15016_v24, %v12223_v23  ;;  %v13184_v42 = vor.u32 %v15256_v35, %v13183_v34  ;;  %v13063_v23 = vld [vmem:[#allocation6 + $0x1180] sm:$0xf]  ;;  %v15226_v24 = vld [vmem:[#allocation6 + $0x11a4] sm:$0xf0]  ;;  %v15376_v28 = vld [vmem:[#allocation6 + $0x1654] sm:$0xf0]  ;;  %v12424_v35 = vor.u32 %v15066_v22, %v12423_v15 }
 0x17f   :  { %7503 = vmatpush.bf16.msrb.mxu1 %v12704_v56  ;;  %7472 = vmatmul.bf16.vlgmr.msra.gmra.mxu2 %v15865_v48  ;;  %v12544_v56 = vor.u32 %v15096_v31, %v12543_v25  ;;  %v2370_v0 = vadd.f32 %v15853_v39, %v2357_v21  ;;  %v11105_v31 = vld [vmem:[#allocation6 + $0x258] sm:$0xf0]  ;;  %v13623_v21 = vld [vmem:[#allocation6 + $0x15e0] sm:$0xf]  ;;  %v10985_v15 = vld [vmem:[#allocation6 + $0x168] sm:$0xf0] }
 0x180   :  { %7516 = vmatpush.bf16.msrb.mxu2 %v13024_v37  ;;  %7485 = vmatmul.bf16.vlgmr.msra.gmra.mxu3 %v15867_v55  ;;  %v12864_v37 = vor.u32 %v15176_v33, %v12863_v32  ;;  %v14811_v32 = vld [vmem:[#allocation6 + $0x4b4] sm:$0xf]  ;;  %v11425_v33 = vld [vmem:[#allocation6 + $0x4d8] sm:$0xf0]  ;;  %v14781_v22 = vld [vmem:[#allocation6 + $0x3c4] sm:$0xf] }
 0x181   :  { %7529 = vmatpush.bf16.msrb.mxu3 %v13344_v8  ;;  %v12503_v8 = vld [vmem:[#allocation6 + $0xd20] sm:$0xf]  ;;  %v2383_v18 = vadd.f32 %v15855_v44, %v2370_v0  ;;  %v2598_v44 = vmax.f32 %v15843_v58, 0.0  ;;  %v13984_v58 = vor.u32 %v15456_v50, %v13983_v40  ;;  %v11025_v0 = vld [vmem:[#allocation6 + $0x1b8] sm:$0xf0] }
 0x182   :  { %7491 = vmatpush.bf16.msrb.mxu0 %v12344_v47  ;;  %v2421_v41 = vpop.f32.mrf.mxu2  ;;  %v2397_v53 = vpop.f32.mrf.mxu0  ;;  %v12504_v54 = vor.u32 %v15086_v43, %v12503_v8  ;;  %v11108_v8 = vor.u32 %v14731_v29, %v11105_v31  ;;  %v14721_v43 = vld [vmem:[#allocation6 + $0x1e4] sm:$0xf]  ;;  %v13503_v29 = vld [vmem:[#allocation6 + $0x14f0] sm:$0xf]  ;;  %v14691_v31 = vld [vmem:[#allocation6 + $0xf4] sm:$0xf] }
 0x183   :  { %7504 = vmatpush.bf16.msrb.mxu1 %v12664_v49  ;;  %v2434_v47 = vpop.f32.mrf.mxu3  ;;  %v13143_v49 = vld [vmem:[#allocation6 + $0x1220] sm:$0xf]  ;;  %v2422_v59 = vadd.f32 %v2421_v41, %v2409_v38  ;;  %v2410_v27 = vpop.f32.mrf.mxu1  ;;  %v13664_v38 = vor.u32 %v15376_v28, %v13663_v26  ;;  %v11428_v41 = vor.u32 %v14811_v32, %v11425_v33  ;;  %v14771_v32 = vld [vmem:[#allocation6 + $0x374] sm:$0xf]  ;;  %v11265_v33 = vld [vmem:[#allocation6 + $0x398] sm:$0xf0] }
 0x184   :  { %7517 = vmatpush.bf16.msrb.mxu2 %v12984_v51  ;;  %v15246_v51 = vld [vmem:[#allocation6 + $0x1244] sm:$0xf0]  ;;  %v14711_v27 = vld [vmem:[#allocation6 + $0x194] sm:$0xf]  ;;  %v13463_v50 = vld [vmem:[#allocation6 + $0x14a0] sm:$0xf] }
 0x185   :  { %7530 = vmatpush.bf16.msrb.mxu3 %v13304_v57  ;;  %v12824_v57 = vor.u32 %v15166_v46, %v12823_v45  ;;  %v2435_v11 = vadd.f32 %v2434_v47, %v2422_v59  ;;  %v11065_v45 = vld [vmem:[#allocation6 + $0x208] sm:$0xf0]  ;;  %v14801_v46 = vld [vmem:[#allocation6 + $0x464] sm:$0xf] }
 0x186   :  { %7492 = vmatpush.bf16.msrb.mxu0 %v12304_v1  ;;  %v13144_v1 = vor.u32 %v15246_v51, %v13143_v49  ;;  %v11385_v47 = vld [vmem:[#allocation6 + $0x488] sm:$0xf0]  ;;  %v15882_v51 = vpack.c.bf16 %v2598_v44, %v2598_v44  ;;  %v11068_v59 = vor.u32 %v14721_v43, %v11065_v45  ;;  %v13823_v44 = vld [vmem:[#allocation6 + $0x1770] sm:$0xf]  ;;  %v14761_v45 = vld [vmem:[#allocation6 + $0x324] sm:$0xf] }
 0x187   :  { %7505 = vmatpush.bf16.msrb.mxu1 %v12624_v5  ;;  %v15156_v5 = vld [vmem:[#allocation6 + $0xf74] sm:$0xf0]  ;;  %v2600_v34 = vmax.f32 %v2435_v11, 0.0  ;;  %v11388_v60 = vor.u32 %v14801_v46, %v11385_v47  ;;  %v15346_v11 = vld [vmem:[#allocation6 + $0x1564] sm:$0xf0] }
 0x188   :  { %7518 = vmatpush.bf16.msrb.mxu2 %v12944_v6  ;;  %v13103_v6 = vld [vmem:[#allocation6 + $0x11d0] sm:$0xf]  ;;  %v12784_v14 = vor.u32 %v15156_v5, %v12783_v4  ;;  %v13584_v5 = vor.u32 %v15356_v63, %v13583_v62  ;;  %v10905_v43 = vld [vmem:[#allocation6 + $0xc8] sm:$0xf0] }
 0x189   :  { %7531 = vmatpush.bf16.msrb.mxu3 %v13264_v19  ;;  %v14986_v19 = vld [vmem:[#allocation6 + $0xa24] sm:$0xf0]  ;;  %v15880_v49 = vpack.c.bf16 %v2600_v34, %v2600_v34  ;;  %v11225_v46 = vld [vmem:[#allocation6 + $0x348] sm:$0xf0] }
 0x18a   :  { %7493 = vmatpush.bf16.msrb.mxu0 %v12264_v16  ;;  %v12743_v16 = vld [vmem:[#allocation6 + $0xf00] sm:$0xf]  ;;  %v2423_v39 = vpop.f32.mrf.mxu2  ;;  %v11228_v63 = vor.u32 %v14761_v45, %v11225_v46  ;;  %v14961_v46 = vld [vmem:[#allocation6 + $0x964] sm:$0xf] }
 0x18b   :  { %7506 = vmatpush.bf16.msrb.mxu1 %v12584_v17  ;;  %v13104_v17 = vor.u32 %v15236_v7, %v13103_v6  ;;  %v2436_v25 = vpop.f32.mrf.mxu3  ;;  %v13543_v6 = vld [vmem:[#allocation6 + $0x1540] sm:$0xf]  ;;  %v13903_v7 = vld [vmem:[#allocation6 + $0x1810] sm:$0xf] }
 0x18c   :  { %7519 = vmatpush.bf16.msrb.mxu2 %v12904_v20  ;;  %v15146_v20 = vld [vmem:[#allocation6 + $0xf24] sm:$0xf0] }
 0x18d   :  { %7532 = vmatpush.bf16.msrb.mxu3 %v13224_v30  ;;  %v12104_v30 = vor.u32 %v14986_v19, %v12103_v10  ;;  %v11028_v10 = vor.u32 %v14711_v27, %v11025_v0  ;;  %v15316_v27 = vld [vmem:[#allocation6 + $0x1474] sm:$0xf0]  ;;  %v14671_v0 = vld [vmem:[#allocation6 + $0x54] sm:$0xf] }
 0x18e   :  { %7494 = vmatpush.bf16.msrb.mxu0 %v12224_v36  ;;  %v12744_v36 = vor.u32 %v15146_v20, %v12743_v16  ;;  %v11305_v16 = vld [vmem:[#allocation6 + $0x3e8] sm:$0xf0]  ;;  %v13863_v20 = vld [vmem:[#allocation6 + $0x17c0] sm:$0xf] }
 0x18f   :  { %7507 = vmatpush.bf16.msrb.mxu1 %v12544_v56  ;;  %v2599_v56 = vmax.f32 %v2383_v18, 0.0  ;;  %v13544_v18 = vor.u32 %v15346_v11, %v13543_v6  ;;  %v11308_v25 = vor.u32 %v14781_v22, %v11305_v16  ;;  %v11185_v6 = vld [vmem:[#allocation6 + $0x2f8] sm:$0xf0]  ;;  %v15306_v11 = vld [vmem:[#allocation6 + $0x1424] sm:$0xf0] }
 0x190   :  { %7520 = vmatpush.bf16.msrb.mxu2 %v12864_v37  ;;  %v13064_v37 = vor.u32 %v15226_v24, %v13063_v23  ;;  %v15426_v23 = vld [vmem:[#allocation6 + $0x17e4] sm:$0xf0]  ;;  %v14661_v16 = vld [vmem:[#allocation6 + $0x4] sm:$0xf] }
 0x191   :  { %7533 = vmatpush.bf16.msrb.mxu3 %v13184_v42  ;;  %v15366_v42 = vld [vmem:[#allocation6 + $0x1604] sm:$0xf0] }
 0x192   :  { %7495 = vmatpush.bf16.msrb.mxu0 %v12184_v52  ;;  %v15884_v52 = vpack.c.bf16 %v2599_v56, %v2599_v56  ;;  %v13624_v53 = vor.u32 %v15366_v42, %v13623_v21  ;;  %v15416_v56 = vld [vmem:[#allocation6 + $0x1794] sm:$0xf0] }
 0x193   :  { %7508 = vmatpush.bf16.msrb.mxu1 %v12504_v54  ;;  %v13943_v54 = vld [vmem:[#allocation6 + $0x1860] sm:$0xf]  ;;  %v13824_v47 = vor.u32 %v15416_v56, %v13823_v44  ;;  %v12065_v44 = vld [vmem:[#allocation6 + $0x9d8] sm:$0xf0] }
 0x194   :  { %7521 = vmatpush.bf16.msrb.mxu2 %v12824_v57  ;;  %v15446_v57 = vld [vmem:[#allocation6 + $0x1884] sm:$0xf0] }
 0x195   :  { %7534 = vmatpush.bf16.msrb.mxu3 %v13144_v1  ;;  %v14791_v1 = vld [vmem:[#allocation6 + $0x414] sm:$0xf]  ;;  %v13944_v4 = vor.u32 %v15446_v57, %v13943_v54  ;;  %v13423_v54 = vld [vmem:[#allocation6 + $0x1450] sm:$0xf] }
 0x196   :  { %7496 = vmatpush.bf16.msrb.mxu0 %v12144_v9  ;;  %v15436_v9 = vld [vmem:[#allocation6 + $0x1834] sm:$0xf0]  ;;  %v11348_v19 = vor.u32 %v14791_v1, %v11345_v3  ;;  %v10865_v1 = vld [vmem:[#allocation6 + $0x78] sm:$0xf0] }
 0x197   :  { %7509 = vmatpush.bf16.msrb.mxu1 %v12464_v12  ;;  %v14701_v12 = vld [vmem:[#allocation6 + $0x144] sm:$0xf]  ;;  %v13904_v39 = vor.u32 %v15436_v9, %v13903_v7  ;;  %v13383_v7 = vld [vmem:[#allocation6 + $0x1400] sm:$0xf] }
 0x198   :  { %7522 = vmatpush.bf16.msrb.mxu2 %v12784_v14  ;;  %v447_v14 = vperm.slane %v15840_v13, 7  ;;  %v10988_v24 = vor.u32 %v14701_v12, %v10985_v15  ;;  %v10945_v13 = vld [vmem:[#allocation6 + $0x118] sm:$0xf0]  ;;  %v13743_v12 = vld [vmem:[#allocation6 + $0x16d0] sm:$0xf]  ;;  %v10868_v15 = vor.u32 %v14671_v0, %v10865_v1 }
 0x199   :  { %7535 = vmatpush.bf16.msrb.mxu3 %v13104_v17  ;;  %v15894_v0 = vld [vmem:[#allocation4 + $0x8] sm:$0x3] }
 0x19a   :  { %7497 = vmatpush.bf16.msrb.mxu0 %v12104_v30  ;;  %v2447_v17 = vpop.f32.mrf.mxu0  ;;  %v15336_v30 = vld [vmem:[#allocation6 + $0x1514] sm:$0xf0] }
 0x19b   :  { %7510 = vmatpush.bf16.msrb.mxu1 %v12424_v35  ;;  %v2448_v26 = vadd.f32 %v2447_v17, %v447_v14  ;;  %v2460_v28 = vpop.f32.mrf.mxu1  ;;  %v13864_v35 = vor.u32 %v15426_v23, %v13863_v20  ;;  %v15396_v14 = vld [vmem:[#allocation6 + $0x16f4] sm:$0xf0]  ;;  %v11145_v20 = vld [vmem:[#allocation6 + $0x2a8] sm:$0xf0]  ;;  %v14891_v23 = vld [vmem:[#allocation6 + $0x734] sm:$0xf] }
 0x19c   :  { %7523 = vmatpush.bf16.msrb.mxu2 %v12744_v36  ;;  %v13504_v36 = vor.u32 %v15336_v30, %v13503_v29  ;;  %v15131_v29 = vld [vmem:[#allocation6 + $0xeb4] sm:$0xf]  ;;  %v13744_v30 = vor.u32 %v15396_v14, %v13743_v12  ;;  %v12265_v12 = vld [vmem:[#allocation6 + $0xb68] sm:$0xf0]  ;;  %v448_v14 = vperm.slane %v15894_v0, 0 }
 0x19d   :  { %7536 = vmatpush.bf16.msrb.mxu3 %v13064_v37  ;;  %7498 = vmatmul.bf16.vlgmr.msrb.gmra.mxu0 %v15882_v51  ;;  %v2461_v34 = vadd.f32 %v2460_v28, %v2448_v26  ;;  %v10948_v37 = vor.u32 %v14691_v31, %v10945_v13  ;;  %v15051_v26 = vld [vmem:[#allocation6 + $0xc34] sm:$0xf]  ;;  %v12385_v28 = vld [vmem:[#allocation6 + $0xc58] sm:$0xf0]  ;;  %v13384_v31 = vor.u32 %v15306_v11, %v13383_v7  ;;  %v14861_v7 = vld [vmem:[#allocation6 + $0x644] sm:$0xf] }
 0x19e   :  { %7542 = vmatpush.bf16.msra.mxu0 %v13664_v38  ;;  %7511 = vmatmul.bf16.vlgmr.msrb.gmra.mxu1 %v15884_v52  ;;  %v11268_v38 = vor.u32 %v14771_v32, %v11265_v33  ;;  %v12705_v13 = vld [vmem:[#allocation6 + $0xed8] sm:$0xf0]  ;;  %v13703_v32 = vld [vmem:[#allocation6 + $0x1680] sm:$0xf]  ;;  %v15386_v33 = vld [vmem:[#allocation6 + $0x16a4] sm:$0xf0] }
 0x19f   :  { %7524 = vmatmul.bf16.vlgmr.msrb.gmra.mxu2 %v15880_v49  ;;  %7555 = vmatpush.bf16.msra.mxu1 %v13984_v58  ;;  %v15021_v11 = vld [vmem:[#allocation6 + $0xb44] sm:$0xf] }
 0x1a0   :  { %7568 = vmatpush.bf16.msra.mxu2 %v11108_v8  ;;  %v15326_v8 = vld [vmem:[#allocation6 + $0x14c4] sm:$0xf0] }
 0x1a1   :  { %7581 = vmatpush.bf16.msra.mxu3 %v11428_v41  ;;  %v14681_v41 = vld [vmem:[#allocation6 + $0xa4] sm:$0xf] }
 0x1a2   :  { %7543 = vmatpush.bf16.msra.mxu0 %v13624_v53  ;;  %v2473_v40 = vpop.f32.mrf.mxu2  ;;  %v13464_v53 = vor.u32 %v15326_v8, %v13463_v50  ;;  %v2449_v57 = vpop.f32.mrf.mxu0  ;;  %v10908_v62 = vor.u32 %v14681_v41, %v10905_v43  ;;  %v11705_v50 = vld [vmem:[#allocation6 + $0x708] sm:$0xf0]  ;;  %v15041_v8 = vld [vmem:[#allocation6 + $0xbe4] sm:$0xf] }
 0x1a3   :  { %7556 = vmatpush.bf16.msra.mxu1 %v13944_v4  ;;  %v2474_v21 = vadd.f32 %v2473_v40, %v2461_v34  ;;  %v2486_v42 = vpop.f32.mrf.mxu3  ;;  %v2462_v3 = vpop.f32.mrf.mxu1  ;;  %v12708_v40 = vor.u32 %v15131_v29, %v12705_v13  ;;  %v12345_v41 = vld [vmem:[#allocation6 + $0xc08] sm:$0xf0]  ;;  %v11585_v29 = vld [vmem:[#allocation6 + $0x618] sm:$0xf0]  ;;  %v15091_v13 = vld [vmem:[#allocation6 + $0xd74] sm:$0xf] }
 0x1a4   :  { %7569 = vmatpush.bf16.msra.mxu2 %v11068_v59  ;;  %v13783_v59 = vld [vmem:[#allocation6 + $0x1720] sm:$0xf]  ;;  %v12665_v43 = vld [vmem:[#allocation6 + $0xe88] sm:$0xf0]  ;;  %v14951_v3 = vld [vmem:[#allocation6 + $0x914] sm:$0xf] }
 0x1a5   :  { %7582 = vmatpush.bf16.msra.mxu3 %v11388_v60  ;;  %v2487_v58 = vadd.f32 %v2486_v42, %v2474_v21  ;;  %v15406_v60 = vld [vmem:[#allocation6 + $0x1744] sm:$0xf0]  ;;  %v13704_v21 = vor.u32 %v15386_v33, %v13703_v32  ;;  %v15121_v42 = vld [vmem:[#allocation6 + $0xe64] sm:$0xf]  ;;  %v12545_v32 = vld [vmem:[#allocation6 + $0xd98] sm:$0xf0] }
 0x1a6   :  { %7544 = vmatpush.bf16.msra.mxu0 %v13584_v5  ;;  %v14751_v5 = vld [vmem:[#allocation6 + $0x2d4] sm:$0xf]  ;;  %v13784_v9 = vor.u32 %v15406_v60, %v13783_v59  ;;  %v12668_v57 = vor.u32 %v15121_v42, %v12665_v43  ;;  %v11665_v59 = vld [vmem:[#allocation6 + $0x6b8] sm:$0xf0]  ;;  %v15081_v43 = vld [vmem:[#allocation6 + $0xd24] sm:$0xf] }
 0x1a7   :  { %7557 = vmatpush.bf16.msra.mxu1 %v13904_v39  ;;  %v2601_v4 = vmax.f32 %v2487_v58, 0.0  ;;  %v11188_v22 = vor.u32 %v14751_v5, %v11185_v6  ;;  %v10825_v39 = vld [vmem:[#allocation6 + $0x28] sm:$0xf0]  ;;  %v15031_v60 = vld [vmem:[#allocation6 + $0xb94] sm:$0xf] }
 0x1a8   :  { %7570 = vmatpush.bf16.msra.mxu2 %v11028_v10  ;;  %v10828_v34 = vor.u32 %v14661_v16, %v10825_v39  ;;  %v14941_v39 = vld [vmem:[#allocation6 + $0x8c4] sm:$0xf] }
 0x1a9   :  { %7583 = vmatpush.bf16.msra.mxu3 %v11348_v19  ;;  %v15890_v10 = vpack.c.bf16 %v2601_v4, %v2601_v4  ;;  %v13424_v19 = vor.u32 %v15316_v27, %v13423_v54  ;;  %v14871_v54 = vld [vmem:[#allocation6 + $0x694] sm:$0xf]  ;;  %v12625_v27 = vld [vmem:[#allocation6 + $0xe38] sm:$0xf0] }
 0x1aa   :  { %7545 = vmatpush.bf16.msra.mxu0 %v13544_v18  ;;  %v14741_v18 = vld [vmem:[#allocation6 + $0x284] sm:$0xf]  ;;  %v2475_v17 = vpop.f32.mrf.mxu2  ;;  %v11985_v4 = vld [vmem:[#allocation6 + $0x938] sm:$0xf0]  ;;  %v11668_v5 = vor.u32 %v14871_v54, %v11665_v59  ;;  %v14831_v59 = vld [vmem:[#allocation6 + $0x554] sm:$0xf] }
 0x1ab   :  { %7558 = vmatpush.bf16.msra.mxu1 %v13864_v35  ;;  %7537 = vmatmul.bf16.vlgmr.msrb.gmra.mxu3 %v15890_v10  ;;  %v11148_v35 = vor.u32 %v14741_v18, %v11145_v20  ;;  %v11988_v16 = vor.u32 %v14951_v3, %v11985_v4  ;;  %v11945_v18 = vld [vmem:[#allocation6 + $0x8e8] sm:$0xf0]  ;;  %v12268_v20 = vor.u32 %v15021_v11, %v12265_v12 }
 0x1ac   :  { %7571 = vmatpush.bf16.msra.mxu2 %v10988_v24  ;;  %v11745_v24 = vld [vmem:[#allocation6 + $0x758] sm:$0xf0]  ;;  %v11948_v33 = vor.u32 %v14941_v39, %v11945_v18  ;;  %v12105_v18 = vld [vmem:[#allocation6 + $0xa28] sm:$0xf0] }
 0x1ad   :  { %7584 = vmatpush.bf16.msra.mxu3 %v11308_v25  ;;  %v2488_v25 = vpop.f32.mrf.mxu3  ;;  %v11748_v56 = vor.u32 %v14891_v23, %v11745_v24  ;;  %v14851_v24 = vld [vmem:[#allocation6 + $0x5f4] sm:$0xf] }
 0x1ae   :  { %7546 = vmatpush.bf16.msra.mxu0 %v13504_v36  ;;  %v14971_v36 = vld [vmem:[#allocation6 + $0x9b4] sm:$0xf] }
 0x1af   :  { %7559 = vmatpush.bf16.msra.mxu1 %v13824_v47  ;;  %v12068_v45 = vor.u32 %v14971_v36, %v12065_v44  ;;  %v12025_v47 = vld [vmem:[#allocation6 + $0x988] sm:$0xf0]  ;;  %v11905_v36 = vld [vmem:[#allocation6 + $0x898] sm:$0xf0]  ;;  %v11588_v44 = vor.u32 %v14851_v24, %v11585_v29  ;;  %v15211_v24 = vld [vmem:[#allocation6 + $0x1134] sm:$0xf] }
 0x1b0   :  { %7572 = vmatpush.bf16.msra.mxu2 %v10948_v37  ;;  %v12388_v37 = vor.u32 %v15051_v26, %v12385_v28  ;;  %v12028_v1 = vor.u32 %v14961_v46, %v12025_v47  ;;  %v14921_v47 = vld [vmem:[#allocation6 + $0x824] sm:$0xf] }
 0x1b1   :  { %7585 = vmatpush.bf16.msra.mxu3 %v11268_v38  ;;  %v14881_v38 = vld [vmem:[#allocation6 + $0x6e4] sm:$0xf] }
 0x1b2   :  { %7547 = vmatpush.bf16.msra.mxu0 %v13464_v53  ;;  %v11708_v58 = vor.u32 %v14881_v38, %v11705_v50  ;;  %v12348_v53 = vor.u32 %v15041_v8, %v12345_v41  ;;  %v12548_v38 = vor.u32 %v15091_v13, %v12545_v32  ;;  %v11545_v50 = vld [vmem:[#allocation6 + $0x5c8] sm:$0xf0]  ;;  %v15001_v8 = vld [vmem:[#allocation6 + $0xaa4] sm:$0xf]  ;;  %v13985_v13 = vld [vmem:[#allocation6 + $0x18d8] sm:$0xf0] }
 0x1b3   :  { %7560 = vmatpush.bf16.msra.mxu1 %v13784_v9  ;;  %v11625_v9 = vld [vmem:[#allocation6 + $0x668] sm:$0xf0] }
 0x1b4   :  { %7573 = vmatpush.bf16.msra.mxu2 %v10908_v62  ;;  %v12305_v62 = vld [vmem:[#allocation6 + $0xbb8] sm:$0xf0]  ;;  %v11628_v17 = vor.u32 %v14861_v7, %v11625_v9  ;;  %v12185_v41 = vld [vmem:[#allocation6 + $0xac8] sm:$0xf0]  ;;  %v14911_v9 = vld [vmem:[#allocation6 + $0x7d4] sm:$0xf] }
 0x1b5   :  { %7586 = vmatpush.bf16.msra.mxu3 %v11228_v63  ;;  %v15111_v63 = vld [vmem:[#allocation6 + $0xe14] sm:$0xf]  ;;  %v12308_v6 = vor.u32 %v15031_v60, %v12305_v62 }
 0x1b6   :  { %7548 = vmatpush.bf16.msra.mxu0 %v13424_v19  ;;  %v12628_v19 = vor.u32 %v15111_v63, %v12625_v27  ;;  %v11505_v63 = vld [vmem:[#allocation6 + $0x578] sm:$0xf0]  ;;  %v14991_v27 = vld [vmem:[#allocation6 + $0xa54] sm:$0xf] }
 0x1b7   :  { %7561 = vmatpush.bf16.msra.mxu1 %v13744_v30  ;;  %v15011_v30 = vld [vmem:[#allocation6 + $0xaf4] sm:$0xf]  ;;  %v11508_v12 = vor.u32 %v14831_v59, %v11505_v63  ;;  %v13905_v59 = vld [vmem:[#allocation6 + $0x1838] sm:$0xf0] }
 0x1b8   :  { %7574 = vmatpush.bf16.msra.mxu2 %v10868_v15  ;;  %v15101_v15 = vld [vmem:[#allocation6 + $0xdc4] sm:$0xf] }
 0x1b9   :  { %7587 = vmatpush.bf16.msra.mxu3 %v11188_v22  ;;  %v12585_v22 = vld [vmem:[#allocation6 + $0xde8] sm:$0xf0] }
 0x1ba   :  { %7549 = vmatpush.bf16.msra.mxu0 %v13384_v31  ;;  %v2499_v23 = vpop.f32.mrf.mxu0  ;;  %v12588_v25 = vor.u32 %v15101_v15, %v12585_v22  ;;  %v12225_v31 = vld [vmem:[#allocation6 + $0xb18] sm:$0xf0]  ;;  %v14821_v15 = vld [vmem:[#allocation6 + $0x504] sm:$0xf]  ;;  %v11465_v22 = vld [vmem:[#allocation6 + $0x528] sm:$0xf0] }
 0x1bb   :  { %7562 = vmatpush.bf16.msra.mxu1 %v13704_v21  ;;  %v2500_v26 = vadd.f32 %v2499_v23, %v448_v14  ;;  %v2512_v28 = vpop.f32.mrf.mxu1  ;;  %v11468_v32 = vor.u32 %v14821_v15, %v11465_v22 }
 0x1bc   :  { %7575 = vmatpush.bf16.msra.mxu2 %v10828_v34 }
 0x1bd   :  { %7588 = vmatpush.bf16.msra.mxu3 %v11148_v35  ;;  %v2513_v34 = vadd.f32 %v2512_v28, %v2500_v26  ;;  %v14931_v35 = vld [vmem:[#allocation6 + $0x874] sm:$0xf] }
 0x1be   :  { %7594 = vmatpush.bf16.msrb.mxu0 %v11748_v56  ;;  %v12228_v56 = vor.u32 %v15011_v30, %v12225_v31  ;;  %v11908_v46 = vor.u32 %v14931_v35, %v11905_v36  ;;  %v15371_v26 = vld [vmem:[#allocation6 + $0x1634] sm:$0xf]  ;;  %v13665_v30 = vld [vmem:[#allocation6 + $0x1658] sm:$0xf0]  ;;  %v11785_v35 = vld [vmem:[#allocation6 + $0x7a8] sm:$0xf0] }
 0x1bf   :  { %7576 = vmatmul.bf16.vlgmr.msra.gmra.mxu2 %v15861_v2  ;;  %7607 = vmatpush.bf16.msrb.mxu1 %v12068_v45  ;;  %v12505_v45 = vld [vmem:[#allocation6 + $0xd48] sm:$0xf0]  ;;  %v15451_v31 = vld [vmem:[#allocation6 + $0x18b4] sm:$0xf] }
 0x1c0   :  { %7620 = vmatpush.bf16.msrb.mxu2 %v12388_v37  ;;  %7589 = vmatmul.bf16.vlgmr.msra.gmra.mxu3 %v15863_v61  ;;  %v14841_v37 = vld [vmem:[#allocation6 + $0x5a4] sm:$0xf]  ;;  %v12508_v62 = vor.u32 %v15081_v43, %v12505_v45 }
 0x1c1   :  { %7633 = vmatpush.bf16.msrb.mxu3 %v12708_v40  ;;  %v11548_v54 = vor.u32 %v14841_v37, %v11545_v50  ;;  %v13988_v37 = vor.u32 %v15451_v31, %v13985_v13  ;;  %v15361_v50 = vld [vmem:[#allocation6 + $0x15e4] sm:$0xf]  ;;  %v13465_v31 = vld [vmem:[#allocation6 + $0x14c8] sm:$0xf0] }
 0x1c2   :  { %7595 = vmatpush.bf16.msrb.mxu0 %v11708_v58  ;;  %v2525_v40 = vpop.f32.mrf.mxu2  ;;  %v11865_v58 = vld [vmem:[#allocation6 + $0x848] sm:$0xf0]  ;;  %v2501_v60 = vpop.f32.mrf.mxu0  ;;  %v15401_v13 = vld [vmem:[#allocation6 + $0x1724] sm:$0xf] }
 0x1c3   :  { %7608 = vmatpush.bf16.msrb.mxu1 %v12028_v1  ;;  %v2526_v21 = vadd.f32 %v2525_v40, %v2513_v34  ;;  %v2538_v42 = vpop.f32.mrf.mxu3  ;;  %v12145_v1 = vld [vmem:[#allocation6 + $0xa78] sm:$0xf0]  ;;  %v2514_v3 = vpop.f32.mrf.mxu1  ;;  %v11868_v7 = vor.u32 %v14921_v47, %v11865_v58  ;;  %v14901_v34 = vld [vmem:[#allocation6 + $0x784] sm:$0xf]  ;;  %v12985_v40 = vld [vmem:[#allocation6 + $0x1108] sm:$0xf0] }
 0x1c4   :  { %7621 = vmatpush.bf16.msrb.mxu2 %v12348_v53  ;;  %v12148_v14 = vor.u32 %v14991_v27, %v12145_v1  ;;  %v15191_v47 = vld [vmem:[#allocation6 + $0x1094] sm:$0xf]  ;;  %v12945_v58 = vld [vmem:[#allocation6 + $0x10b8] sm:$0xf0]  ;;  %v15181_v1 = vld [vmem:[#allocation6 + $0x1044] sm:$0xf] }
 0x1c5   :  { %7634 = vmatpush.bf16.msrb.mxu3 %v12668_v57  ;;  %v2539_v53 = vadd.f32 %v2538_v42, %v2526_v21  ;;  %v12188_v57 = vor.u32 %v15001_v8, %v12185_v41  ;;  %v13625_v8 = vld [vmem:[#allocation6 + $0x1608] sm:$0xf0]  ;;  %v15441_v41 = vld [vmem:[#allocation6 + $0x1864] sm:$0xf]  ;;  %v11788_v42 = vor.u32 %v14901_v34, %v11785_v35  ;;  %v12948_v60 = vor.u32 %v15191_v47, %v12945_v58 }
 0x1c6   :  { %7596 = vmatpush.bf16.msrb.mxu0 %v11668_v5  ;;  %v15071_v5 = vld [vmem:[#allocation6 + $0xcd4] sm:$0xf]  ;;  %v13945_v21 = vld [vmem:[#allocation6 + $0x1888] sm:$0xf0]  ;;  %v13628_v45 = vor.u32 %v15361_v50, %v13625_v8  ;;  %v12785_v50 = vld [vmem:[#allocation6 + $0xf78] sm:$0xf0] }
 0x1c7   :  { %7609 = vmatpush.bf16.msrb.mxu1 %v11988_v16  ;;  %v2602_v4 = vmax.f32 %v2539_v53, 0.0  ;;  %v14981_v16 = vld [vmem:[#allocation6 + $0xa04] sm:$0xf]  ;;  %v15351_v53 = vld [vmem:[#allocation6 + $0x1594] sm:$0xf] }
 0x1c8   :  { %7622 = vmatpush.bf16.msrb.mxu2 %v12308_v6  ;;  %v12465_v6 = vld [vmem:[#allocation6 + $0xcf8] sm:$0xf0]  ;;  %v12905_v3 = vld [vmem:[#allocation6 + $0x1068] sm:$0xf0]  ;;  %v15311_v8 = vld [vmem:[#allocation6 + $0x1454] sm:$0xf] }
 0x1c9   :  { %7635 = vmatpush.bf16.msrb.mxu3 %v12628_v19  ;;  %v11825_v19 = vld [vmem:[#allocation6 + $0x7f8] sm:$0xf0]  ;;  %v15898_v11 = vpack.c.bf16 %v2602_v4, %v2602_v4  ;;  %v12468_v39 = vor.u32 %v15071_v5, %v12465_v6  ;;  %v15341_v4 = vld [vmem:[#allocation6 + $0x1544] sm:$0xf]  ;;  %v13545_v5 = vld [vmem:[#allocation6 + $0x1568] sm:$0xf0] }
 0x1ca   :  { %7597 = vmatpush.bf16.msrb.mxu0 %v11628_v17  ;;  %v15061_v17 = vld [vmem:[#allocation6 + $0xc84] sm:$0xf]  ;;  %v2527_v23 = vpop.f32.mrf.mxu2  ;;  %v11828_v29 = vor.u32 %v14911_v9, %v11825_v19  ;;  %v12908_v19 = vor.u32 %v15181_v1, %v12905_v3  ;;  %v13548_v15 = vor.u32 %v15341_v4, %v13545_v5  ;;  %v13705_v3 = vld [vmem:[#allocation6 + $0x16a8] sm:$0xf0]  ;;  %v11111_v4 = vld [vmem:[#allocation6 + $0x238] sm:$0xf] }
 0x1cb   :  { %7610 = vmatpush.bf16.msrb.mxu1 %v11948_v33  ;;  %7550 = vmatmul.bf16.vlgmr.msra.gmra.mxu0 %v15898_v11  ;;  %v2540_v28 = vpop.f32.mrf.mxu3  ;;  %v12108_v33 = vor.u32 %v14981_v16, %v12105_v18  ;;  %v15421_v6 = vld [vmem:[#allocation6 + $0x17c4] sm:$0xf]  ;;  %v12865_v16 = vld [vmem:[#allocation6 + $0x1018] sm:$0xf0]  ;;  %v14737_v5 = vld [vmem:[#allocation6 + $0x25c] sm:$0xf0] }
 0x1cc   :  { %7623 = vmatpush.bf16.msrb.mxu2 %v12268_v20  ;;  %v12425_v20 = vld [vmem:[#allocation6 + $0xca8] sm:$0xf0]  ;;  %v13505_v18 = vld [vmem:[#allocation6 + $0x1518] sm:$0xf0]  ;;  %v15161_v28 = vld [vmem:[#allocation6 + $0xfa4] sm:$0xf] }
 0x1cd   :  { %7636 = vmatpush.bf16.msrb.mxu3 %v12588_v25  ;;  %v13025_v25 = vld [vmem:[#allocation6 + $0x1158] sm:$0xf0]  ;;  %v12428_v36 = vor.u32 %v15061_v17, %v12425_v20  ;;  %v15411_v17 = vld [vmem:[#allocation6 + $0x1774] sm:$0xf] }
 0x1ce   :  { %7598 = vmatpush.bf16.msrb.mxu0 %v11588_v44  ;;  %v13028_v44 = vor.u32 %v15211_v24, %v13025_v25  ;;  %v13825_v20 = vld [vmem:[#allocation6 + $0x1798] sm:$0xf0] }
 0x1cf   :  { %7611 = vmatpush.bf16.msrb.mxu1 %v11908_v46  ;;  %v13948_v46 = vor.u32 %v15441_v41, %v13945_v21  ;;  %v13425_v21 = vld [vmem:[#allocation6 + $0x1478] sm:$0xf0] }
 0x1d0   :  { %7624 = vmatpush.bf16.msrb.mxu2 %v12228_v56  ;;  %v13668_v56 = vor.u32 %v15371_v26, %v13665_v30  ;;  %v13828_v26 = vor.u32 %v15411_v17, %v13825_v20  ;;  %v15321_v30 = vld [vmem:[#allocation6 + $0x14a4] sm:$0xf]  ;;  %v11071_v20 = vld [vmem:[#allocation6 + $0x1e8] sm:$0xf] }
 0x1d1   :  { %7637 = vmatpush.bf16.msrb.mxu3 %v12548_v38  ;;  %v15201_v38 = vld [vmem:[#allocation6 + $0x10e4] sm:$0xf] }
 0x1d2   :  { %7599 = vmatpush.bf16.msrb.mxu0 %v11548_v54  ;;  %v12988_v43 = vor.u32 %v15201_v38, %v12985_v40  ;;  %v13585_v54 = vld [vmem:[#allocation6 + $0x15b8] sm:$0xf0]  ;;  %v15151_v40 = vld [vmem:[#allocation6 + $0xf54] sm:$0xf] }
 0x1d3   :  { %7612 = vmatpush.bf16.msrb.mxu1 %v11868_v7  ;;  %v13588_v63 = vor.u32 %v15351_v53, %v13585_v54  ;;  %v13865_v7 = vld [vmem:[#allocation6 + $0x17e8] sm:$0xf0]  ;;  %v12788_v58 = vor.u32 %v15151_v40, %v12785_v50  ;;  %v15141_v53 = vld [vmem:[#allocation6 + $0xf04] sm:$0xf]  ;;  %v14957_v50 = vld [vmem:[#allocation6 + $0x93c] sm:$0xf0] }
 0x1d4   :  { %7625 = vmatpush.bf16.msrb.mxu2 %v12188_v57  ;;  %v15431_v57 = vld [vmem:[#allocation6 + $0x1814] sm:$0xf]  ;;  %v13868_v22 = vor.u32 %v15421_v6, %v13865_v7  ;;  %v12745_v54 = vld [vmem:[#allocation6 + $0xf28] sm:$0xf0]  ;;  %v11751_v7 = vld [vmem:[#allocation6 + $0x738] sm:$0xf] }
 0x1d5   :  { %7638 = vmatpush.bf16.msrb.mxu3 %v12508_v62  ;;  %v449_v62 = vperm.slane %v15894_v0, 1  ;;  %v13908_v27 = vor.u32 %v15431_v57, %v13905_v59  ;;  %v15171_v0 = vld [vmem:[#allocation6 + $0xff4] sm:$0xf]  ;;  %v13428_v57 = vor.u32 %v15311_v8, %v13425_v21  ;;  %v15908_v40 = vld [vmem:[#allocation7] sm:$0xff] }
 0x1d6   :  { %7600 = vmatpush.bf16.msrb.mxu0 %v11508_v12  ;;  %v12868_v24 = vor.u32 %v15171_v0, %v12865_v16  ;;  %v13305_v0 = vld [vmem:[#allocation6 + $0x1388] sm:$0xf0]  ;;  %v15261_v8 = vld [vmem:[#allocation6 + $0x12c4] sm:$0xf] }
 0x1d7   :  { %7613 = vmatpush.bf16.msrb.mxu1 %v11828_v29  ;;  %v12825_v29 = vld [vmem:[#allocation6 + $0xfc8] sm:$0xf0] }
 0x1d8   :  { %7626 = vmatpush.bf16.msrb.mxu2 %v12148_v14 }
 0x1d9   :  { %7639 = vmatpush.bf16.msrb.mxu3 %v12468_v39  ;;  %v15331_v39 = vld [vmem:[#allocation6 + $0x14f4] sm:$0xf] }
 0x1da   :  { %7601 = vmatpush.bf16.msrb.mxu0 %v11468_v32  ;;  %v2551_v9 = vpop.f32.mrf.mxu0  ;;  %v13508_v25 = vor.u32 %v15331_v39, %v13505_v18  ;;  %v13785_v32 = vld [vmem:[#allocation6 + $0x1748] sm:$0xf0]  ;;  %v11112_v18 = vor.u32 %v14737_v5, %v11111_v4  ;;  %v10951_v4 = vld [vmem:[#allocation6 + $0xf8] sm:$0xf]  ;;  %v14697_v5 = vld [vmem:[#allocation6 + $0x11c] sm:$0xf0] }
 0x1db   :  { %7614 = vmatpush.bf16.msrb.mxu1 %v11788_v42  ;;  %v2552_v12 = vadd.f32 %v2551_v9, %v449_v62  ;;  %v2564_v14 = vpop.f32.mrf.mxu1  ;;  %v13788_v38 = vor.u32 %v15401_v13, %v13785_v32  ;;  %v15391_v42 = vld [vmem:[#allocation6 + $0x16d4] sm:$0xf]  ;;  %v13385_v62 = vld [vmem:[#allocation6 + $0x1428] sm:$0xf0]  ;;  %v14897_v9 = vld [vmem:[#allocation6 + $0x75c] sm:$0xf0] }
 0x1dc   :  { %7627 = vmatpush.bf16.msrb.mxu2 %v12108_v33  ;;  %v11752_v17 = vor.u32 %v14897_v9, %v11751_v7  ;;  %v13265_v13 = vld [vmem:[#allocation6 + $0x1338] sm:$0xf0] }
 0x1dd   :  { %7640 = vmatpush.bf16.msrb.mxu3 %v12428_v36  ;;  %7602 = vmatmul.bf16.vlgmr.msrb.gmra.mxu0 %v15865_v48  ;;  %v2565_v23 = vadd.f32 %v2564_v14, %v2552_v12  ;;  %v12748_v14 = vor.u32 %v15141_v53, %v12745_v54  ;;  %v11631_v53 = vld [vmem:[#allocation6 + $0x648] sm:$0xf]  ;;  %v14867_v54 = vld [vmem:[#allocation6 + $0x66c] sm:$0xf0] }
 0x1de   :  { %7646 = vmatpush.bf16.msra.mxu0 %v13028_v44  ;;  %v12828_v44 = vor.u32 %v15161_v28, %v12825_v29  ;;  %v14887_v28 = vld [vmem:[#allocation6 + $0x70c] sm:$0xf0]  ;;  %v12031_v29 = vld [vmem:[#allocation6 + $0x968] sm:$0xf] }
 0x1df   :  { %7628 = vmatmul.bf16.vlgmr.msrb.gmra.mxu2 %v15882_v51 }
 0x1e0   :  { %7672 = vmatpush.bf16.msra.mxu2 %v13668_v56  ;;  %7641 = vmatmul.bf16.vlgmr.msrb.gmra.mxu3 %v15884_v52 }
 0x1e1   :  { %7685 = vmatpush.bf16.msra.mxu3 %v13988_v37  ;;  %v13468_v37 = vor.u32 %v15321_v30, %v13465_v31  ;;  %v14967_v30 = vld [vmem:[#allocation6 + $0x98c] sm:$0xf0]  ;;  %v15271_v31 = vld [vmem:[#allocation6 + $0x1314] sm:$0xf] }
 0x1e2   :  { %7647 = vmatpush.bf16.msra.mxu0 %v12988_v43  ;;  %v2577_v33 = vpop.f32.mrf.mxu2  ;;  %v2553_v36 = vpop.f32.mrf.mxu0  ;;  %v13745_v43 = vld [vmem:[#allocation6 + $0x16f8] sm:$0xf0] }
 0x1e3   :  { %v2578_v34 = vadd.f32 %v2577_v33, %v2565_v23  ;;  %v2590_v35 = vpop.f32.mrf.mxu3  ;;  %v2566_v56 = vpop.f32.mrf.mxu1  ;;  %v13748_v59 = vor.u32 %v15391_v42, %v13745_v43  ;;  %v14727_v23 = vld [vmem:[#allocation6 + $0x20c] sm:$0xf0]  ;;  %v11671_v36 = vld [vmem:[#allocation6 + $0x698] sm:$0xf]  ;;  %v3418_v43 = vperm.slane %v15908_v40, 0 }
 0x1e4   :  { %7673 = vmatpush.bf16.msra.mxu2 %v13628_v45  ;;  %v15291_v45 = vld [vmem:[#allocation6 + $0x13b4] sm:$0xf]  ;;  %v11072_v32 = vor.u32 %v14727_v23, %v11071_v20  ;;  %v13268_v56 = vor.u32 %v15271_v31, %v13265_v13  ;;  %v10911_v20 = vld [vmem:[#allocation6 + $0xa8] sm:$0xf]  ;;  %v14687_v23 = vld [vmem:[#allocation6 + $0xcc] sm:$0xf0] }
 0x1e5   :  { %7686 = vmatpush.bf16.msra.mxu3 %v13948_v46  ;;  %v2591_v41 = vadd.f32 %v2590_v35, %v2578_v34  ;;  %v13345_v46 = vld [vmem:[#allocation6 + $0x13d8] sm:$0xf0]  ;;  %v11031_v34 = vld [vmem:[#allocation6 + $0x198] sm:$0xf]  ;;  %v14717_v35 = vld [vmem:[#allocation6 + $0x1bc] sm:$0xf0] }
 0x1e6   :  { %7648 = vmatpush.bf16.msra.mxu0 %v12948_v60  ;;  %v15301_v60 = vld [vmem:[#allocation6 + $0x1404] sm:$0xf]  ;;  %v13348_v1 = vor.u32 %v15291_v45, %v13345_v46  ;;  %v11032_v21 = vor.u32 %v14717_v35, %v11031_v34  ;;  %v10991_v45 = vld [vmem:[#allocation6 + $0x148] sm:$0xf]  ;;  %v14707_v46 = vld [vmem:[#allocation6 + $0x16c] sm:$0xf0] }
 0x1e7   :  { %v2603_v47 = vmax.f32 %v2591_v41, 0.0  ;;  %v13388_v16 = vor.u32 %v15301_v60, %v13385_v62  ;;  %v13225_v41 = vld [vmem:[#allocation6 + $0x12e8] sm:$0xf0]  ;;  %v15251_v60 = vld [vmem:[#allocation6 + $0x1274] sm:$0xf] }
 0x1e8   :  { %7674 = vmatpush.bf16.msra.mxu2 %v13588_v63  ;;  %v15381_v63 = vld [vmem:[#allocation6 + $0x1684] sm:$0xf]  ;;  %v13185_v62 = vld [vmem:[#allocation6 + $0x1298] sm:$0xf0]  ;;  %v15231_v31 = vld [vmem:[#allocation6 + $0x11d4] sm:$0xf] }
 0x1e9   :  { %7687 = vmatpush.bf16.msra.mxu3 %v13908_v27  ;;  %v15905_v27 = vpack.c.bf16 %v2603_v47, %v2603_v47  ;;  %v13708_v39 = vor.u32 %v15381_v63, %v13705_v3  ;;  %v11632_v3 = vor.u32 %v14867_v54, %v11631_v53  ;;  %v13105_v13 = vld [vmem:[#allocation6 + $0x11f8] sm:$0xf0]  ;;  %v14817_v53 = vld [vmem:[#allocation6 + $0x4dc] sm:$0xf0] }
 0x1ea   :  { %7649 = vmatpush.bf16.msra.mxu0 %v12908_v19  ;;  %v2579_v6 = vpop.f32.mrf.mxu2  ;;  %v12071_v19 = vld [vmem:[#allocation6 + $0x9b8] sm:$0xf] }
 0x1eb   :  { %v2592_v12 = vpop.f32.mrf.mxu3  ;;  %7563 = vmatmul.bf16.vlgmr.msra.gmra.mxu1 %v15905_v27 }
 0x1ec   :  { %7675 = vmatpush.bf16.msra.mxu2 %v13548_v15  ;;  %v14977_v15 = vld [vmem:[#allocation6 + $0x9dc] sm:$0xf0]  ;;  %7659 = vmatpush.bf16.msra.mxu1 %v13348_v1  ;;  %v10992_v1 = vor.u32 %v14707_v46, %v10991_v45  ;;  %v11591_v12 = vld [vmem:[#allocation6 + $0x5f8] sm:$0xf]  ;;  %v15221_v46 = vld [vmem:[#allocation6 + $0x1184] sm:$0xf] }
 0x1ed   :  { %7688 = vmatpush.bf16.msra.mxu3 %v13868_v22  ;;  %v15281_v22 = vld [vmem:[#allocation6 + $0x1364] sm:$0xf]  ;;  %v14917_v45 = vld [vmem:[#allocation6 + $0x7fc] sm:$0xf0] }
 0x1ee   :  { %7650 = vmatpush.bf16.msra.mxu0 %v12868_v24  ;;  %v12072_v24 = vor.u32 %v14977_v15, %v12071_v19  ;;  %v13188_v19 = vor.u32 %v15251_v60, %v13185_v62  ;;  %v11911_v15 = vld [vmem:[#allocation6 + $0x878] sm:$0xf]  ;;  %v14667_v60 = vld [vmem:[#allocation6 + $0x2c] sm:$0xf0] }
 0x1f0   :  { %7676 = vmatpush.bf16.msra.mxu2 %v13508_v25  ;;  %v13308_v25 = vor.u32 %v15281_v22, %v13305_v0  ;;  %v14937_v22 = vld [vmem:[#allocation6 + $0x89c] sm:$0xf0]  ;;  %v15241_v0 = vld [vmem:[#allocation6 + $0x1224] sm:$0xf] }
 0x1f1   :  { %7689 = vmatpush.bf16.msra.mxu3 %v13828_v26  ;;  %v11711_v26 = vld [vmem:[#allocation6 + $0x6e8] sm:$0xf] }
 0x1f2   :  { %7651 = vmatpush.bf16.msra.mxu0 %v12828_v44  ;;  %v11712_v33 = vor.u32 %v14887_v28, %v11711_v26  ;;  %7660 = vmatpush.bf16.msra.mxu1 %v13308_v25  ;;  %v12032_v44 = vor.u32 %v14967_v30, %v12031_v29  ;;  %v11551_v26 = vld [vmem:[#allocation6 + $0x5a8] sm:$0xf]  ;;  %v14847_v28 = vld [vmem:[#allocation6 + $0x5cc] sm:$0xf0] }
 0x1f3   :  { %v11871_v29 = vld [vmem:[#allocation6 + $0x828] sm:$0xf]  ;;  %v14927_v30 = vld [vmem:[#allocation6 + $0x84c] sm:$0xf0] }
 0x1f4   :  { %7677 = vmatpush.bf16.msra.mxu2 %v13468_v37  ;;  %v14877_v37 = vld [vmem:[#allocation6 + $0x6bc] sm:$0xf0] }
 0x1f5   :  { %7690 = vmatpush.bf16.msra.mxu3 %v13788_v38  ;;  %v11991_v38 = vld [vmem:[#allocation6 + $0x918] sm:$0xf]  ;;  %v11672_v42 = vor.u32 %v14877_v37, %v11671_v36  ;;  %v10912_v36 = vor.u32 %v14687_v23, %v10911_v20  ;;  %v14677_v37 = vld [vmem:[#allocation6 + $0x7c] sm:$0xf0] }
 0x1f6   :  { %7652 = vmatpush.bf16.msra.mxu0 %v12788_v58  ;;  %7661 = vmatpush.bf16.msra.mxu1 %v13268_v56  ;;  %v11992_v47 = vor.u32 %v14957_v50, %v11991_v38  ;;  %v13228_v58 = vor.u32 %v15261_v8, %v13225_v41  ;;  %v10871_v56 = vld [vmem:[#allocation6 + $0x58] sm:$0xf]  ;;  %v11872_v50 = vor.u32 %v14927_v30, %v11871_v29  ;;  %v12991_v30 = vld [vmem:[#allocation6 + $0x10e8] sm:$0xf] }
 0x1f7   :  { %v13108_v8 = vor.u32 %v15231_v31, %v13105_v13  ;;  %v11511_v41 = vld [vmem:[#allocation6 + $0x558] sm:$0xf]  ;;  %v10872_v54 = vor.u32 %v14677_v37, %v10871_v56  ;;  %v15207_v31 = vld [vmem:[#allocation6 + $0x110c] sm:$0xf0]  ;;  %v13311_v13 = vld [vmem:[#allocation6 + $0x1368] sm:$0xf] }
 0x1f8   :  { %7678 = vmatpush.bf16.msra.mxu2 %v13428_v57  ;;  %v11951_v57 = vld [vmem:[#allocation6 + $0x8c8] sm:$0xf]  ;;  %v15037_v56 = vld [vmem:[#allocation6 + $0xbbc] sm:$0xf0] }
 0x1f9   :  { %7691 = vmatpush.bf16.msra.mxu3 %v13748_v59  ;;  %v14947_v59 = vld [vmem:[#allocation6 + $0x8ec] sm:$0xf0] }
 0x1fa   :  { %7653 = vmatpush.bf16.msra.mxu0 %v12748_v14  ;;  %v7447_v63 = vpop.f32.mrf.mxu0  ;;  %7662 = vmatpush.bf16.msra.mxu1 %v13228_v58  ;;  %v11952_v9 = vor.u32 %v14947_v59, %v11951_v57  ;;  %v14857_v14 = vld [vmem:[#allocation6 + $0x61c] sm:$0xf0]  ;;  %v11431_v58 = vld [vmem:[#allocation6 + $0x4b8] sm:$0xf]  ;;  %v10831_v59 = vld [vmem:[#allocation6 + $0x8] sm:$0xf] }
 0x1fb   :  { %v7448_v6 = vadd.f32 %v7447_v63, %v3418_v43  ;;  %v7460_v7 = vpop.f32.mrf.mxu1  ;;  %7615 = vmatmul.bf16.vlgmr.msrb.gmra.mxu1 %v15867_v55 }
 0x1fc   :  { %7679 = vmatpush.bf16.msra.mxu2 %v13388_v16  ;;  %v13145_v16 = vld [vmem:[#allocation6 + $0x1248] sm:$0xf0] }
 0x1fd   :  { %7692 = vmatpush.bf16.msra.mxu3 %v13708_v39  ;;  %7654 = vmatmul.bf16.vlgmr.msra.gmra.mxu0 %v15880_v49  ;;  %v7461_v39 = vadd.f32 %v7460_v7, %v7448_v6  ;;  %v13148_v25 = vor.u32 %v15241_v0, %v13145_v16  ;;  %v14907_v6 = vld [vmem:[#allocation6 + $0x7ac] sm:$0xf0]  ;;  %v12391_v7 = vld [vmem:[#allocation6 + $0xc38] sm:$0xf]  ;;  %v10832_v0 = vor.u32 %v14667_v60, %v10831_v59  ;;  %v12911_v59 = vld [vmem:[#allocation6 + $0x1048] sm:$0xf] }
 0x1fe   :  { %7698 = vmatpush.bf16.msrb.mxu0 %v11112_v18  ;;  %v10952_v18 = vor.u32 %v14697_v5, %v10951_v4  ;;  %7663 = vmatpush.bf16.msra.mxu1 %v13188_v19  ;;  %v11791_v4 = vld [vmem:[#allocation6 + $0x788] sm:$0xf]  ;;  %v11432_v5 = vor.u32 %v14817_v53, %v11431_v58  ;;  %v15027_v53 = vld [vmem:[#allocation6 + $0xb6c] sm:$0xf0] }
 0x1ff   :  { %7680 = vmatmul.bf16.vlgmr.msra.gmra.mxu2 %v15898_v11  ;;  %v11792_v20 = vor.u32 %v14907_v6, %v11791_v4  ;;  %v12271_v58 = vld [vmem:[#allocation6 + $0xb48] sm:$0xf]  ;;  %v15187_v60 = vld [vmem:[#allocation6 + $0x106c] sm:$0xf0] }
 0x200   :  { %7724 = vmatpush.bf16.msrb.mxu2 %v11752_v17  ;;  %7693 = vmatmul.bf16.vlgmr.msra.gmra.mxu3 %v15905_v27  ;;  %v11592_v17 = vor.u32 %v14857_v14, %v11591_v12  ;;  %v13031_v12 = vld [vmem:[#allocation6 + $0x1138] sm:$0xf]  ;;  %v15217_v14 = vld [vmem:[#allocation6 + $0x115c] sm:$0xf0]  ;;  %v12272_v6 = vor.u32 %v15027_v53, %v12271_v58  ;;  %v14747_v58 = vld [vmem:[#allocation6 + $0x2ac] sm:$0xf0] }
 0x201   :  { %7737 = vmatpush.bf16.msrb.mxu3 %v12072_v24  ;;  %v11912_v24 = vor.u32 %v14937_v22, %v11911_v15  ;;  %v13351_v15 = vld [vmem:[#allocation6 + $0x13b8] sm:$0xf] }
 0x202   :  { %7699 = vmatpush.bf16.msrb.mxu0 %v11072_v32  ;;  %v7473_v32 = vpop.f32.mrf.mxu2  ;;  %v7449_v35 = vpop.f32.mrf.mxu0  ;;  %7664 = vmatpush.bf16.msra.mxu1 %v13148_v25  ;;  %v12351_v25 = vld [vmem:[#allocation6 + $0xbe8] sm:$0xf]  ;;  %v12711_v53 = vld [vmem:[#allocation6 + $0xeb8] sm:$0xf] }
 0x203   :  { %v7486_v34 = vpop.f32.mrf.mxu3  ;;  %v7462_v38 = vpop.f32.mrf.mxu1 }
 0x204   :  { %7725 = vmatpush.bf16.msrb.mxu2 %v11712_v33  ;;  %v7474_v33 = vadd.f32 %v7473_v32, %v7461_v39  ;;  %v15297_v39 = vld [vmem:[#allocation6 + $0x13dc] sm:$0xf0]  ;;  %v15287_v32 = vld [vmem:[#allocation6 + $0x138c] sm:$0xf0] }
 0x205   :  { %7738 = vmatpush.bf16.msrb.mxu3 %v12032_v44  ;;  %v11552_v44 = vor.u32 %v14847_v28, %v11551_v26  ;;  %v15047_v26 = vld [vmem:[#allocation6 + $0xc0c] sm:$0xf0]  ;;  %v13352_v28 = vor.u32 %v15297_v39, %v13351_v15  ;;  %v13312_v37 = vor.u32 %v15287_v32, %v13311_v13  ;;  %v15257_v39 = vld [vmem:[#allocation6 + $0x129c] sm:$0xf0]  ;;  %v11191_v32 = vld [vmem:[#allocation6 + $0x2d8] sm:$0xf] }
 0x206   :  { %7700 = vmatpush.bf16.msrb.mxu0 %v11032_v21  ;;  %v14837_v21 = vld [vmem:[#allocation6 + $0x57c] sm:$0xf0]  ;;  %v15915_v43 = vadd.f32 %v7486_v34, %v7474_v33  ;;  %7665 = vmatpush.bf16.msra.mxu1 %v13108_v8  ;;  %v11351_v33 = vld [vmem:[#allocation6 + $0x418] sm:$0xf]  ;;  %v12352_v35 = vor.u32 %v15047_v26, %v12351_v25  ;;  %v12191_v25 = vld [vmem:[#allocation6 + $0xaa8] sm:$0xf] }
 0x207   :  { %v11512_v57 = vor.u32 %v14837_v21, %v11511_v41  ;;  %v14797_v34 = vld [vmem:[#allocation6 + $0x43c] sm:$0xf0]  ;;  %v13271_v41 = vld [vmem:[#allocation6 + $0x1318] sm:$0xf]  ;;  %v15007_v26 = vld [vmem:[#allocation6 + $0xacc] sm:$0xf0] }
 0x208   :  { %7726 = vmatpush.bf16.msrb.mxu2 %v11672_v42  ;;  %v11831_v42 = vld [vmem:[#allocation6 + $0x7d8] sm:$0xf]  ;;  %v11352_v38 = vor.u32 %v14797_v34, %v11351_v33  ;;  %v15197_v8 = vld [vmem:[#allocation6 + $0x10bc] sm:$0xf0]  ;;  %v15247_v13 = vld [vmem:[#allocation6 + $0x124c] sm:$0xf0] }
 0x209   :  { %7739 = vmatpush.bf16.msrb.mxu3 %v11992_v47  ;;  %v13065_v47 = vld [vmem:[#allocation6 + $0x11a8] sm:$0xf0]  ;;  %v11832_v62 = vor.u32 %v14917_v45, %v11831_v42  ;;  %v15277_v21 = vld [vmem:[#allocation6 + $0x133c] sm:$0xf0]  ;;  %v11311_v42 = vld [vmem:[#allocation6 + $0x3c8] sm:$0xf] }
 0x20a   :  { %7701 = vmatpush.bf16.msrb.mxu0 %v10992_v1  ;;  %v13068_v63 = vor.u32 %v15221_v46, %v13065_v47  ;;  %v11471_v1 = vld [vmem:[#allocation6 + $0x508] sm:$0xf]  ;;  %v7475_v19 = vpop.f32.mrf.mxu2  ;;  %v14787_v45 = vld [vmem:[#allocation6 + $0x3ec] sm:$0xf0]  ;;  %v14757_v33 = vld [vmem:[#allocation6 + $0x2fc] sm:$0xf0] }
 0x20b   :  { %v7488_v22 = vpop.f32.mrf.mxu3  ;;  %v15017_v19 = vld [vmem:[#allocation6 + $0xb1c] sm:$0xf0] }
 0x20c   :  { %7727 = vmatpush.bf16.msrb.mxu2 %v11632_v3  ;;  %v14827_v3 = vld [vmem:[#allocation6 + $0x52c] sm:$0xf0]  ;;  %7666 = vmatpush.bf16.msra.mxu1 %v13068_v63  ;;  %v12871_v22 = vld [vmem:[#allocation6 + $0xff8] sm:$0xf] }
 0x20d   :  { %7740 = vmatpush.bf16.msrb.mxu3 %v11952_v9  ;;  %v15057_v9 = vld [vmem:[#allocation6 + $0xc5c] sm:$0xf0]  ;;  %v11472_v16 = vor.u32 %v14827_v3, %v11471_v1  ;;  %v15267_v63 = vld [vmem:[#allocation6 + $0x12ec] sm:$0xf0]  ;;  %v11271_v1 = vld [vmem:[#allocation6 + $0x378] sm:$0xf] }
 0x20e   :  { %7702 = vmatpush.bf16.msrb.mxu0 %v10952_v18  ;;  %v11391_v18 = vld [vmem:[#allocation6 + $0x468] sm:$0xf]  ;;  %v12392_v23 = vor.u32 %v15057_v9, %v12391_v7  ;;  %v14777_v3 = vld [vmem:[#allocation6 + $0x39c] sm:$0xf0]  ;;  %v12912_v7 = vor.u32 %v15187_v60, %v12911_v59  ;;  %v12231_v9 = vld [vmem:[#allocation6 + $0xaf8] sm:$0xf] }
 0x20f   :  { %7667 = vmatmul.bf16.vlgmr.msra.gmra.mxu1 %v15890_v10  ;;  %v11272_v15 = vor.u32 %v14777_v3, %v11271_v1  ;;  %v12111_v60 = vld [vmem:[#allocation6 + $0xa08] sm:$0xf] }
 0x210   :  { %7728 = vmatpush.bf16.msrb.mxu2 %v11592_v17  ;;  %v14807_v17 = vld [vmem:[#allocation6 + $0x48c] sm:$0xf0]  ;;  %7711 = vmatpush.bf16.msrb.mxu1 %v11432_v5  ;;  %v12751_v3 = vld [vmem:[#allocation6 + $0xf08] sm:$0xf] }
 0x211   :  { %7741 = vmatpush.bf16.msrb.mxu3 %v11912_v24  ;;  %v13032_v24 = vor.u32 %v15217_v14, %v13031_v12  ;;  %v11392_v29 = vor.u32 %v14807_v17, %v11391_v18  ;;  %v11231_v18 = vld [vmem:[#allocation6 + $0x328] sm:$0xf]  ;;  %v14767_v17 = vld [vmem:[#allocation6 + $0x34c] sm:$0xf0] }
 0x212   :  { %7703 = vmatpush.bf16.msrb.mxu0 %v10912_v36  ;;  %v12992_v36 = vor.u32 %v15207_v31, %v12991_v30  ;;  %v15167_v30 = vld [vmem:[#allocation6 + $0xfcc] sm:$0xf0]  ;;  %v13151_v31 = vld [vmem:[#allocation6 + $0x1228] sm:$0xf] }
 0x214   :  { %7729 = vmatpush.bf16.msrb.mxu2 %v11552_v44  ;;  %v12311_v44 = vld [vmem:[#allocation6 + $0xb98] sm:$0xf]  ;;  %7712 = vmatpush.bf16.msrb.mxu1 %v11392_v29  ;;  %v11232_v29 = vor.u32 %v14767_v17, %v11231_v18  ;;  %v15127_v18 = vld [vmem:[#allocation6 + $0xe8c] sm:$0xf0] }
 0x215   :  { %7742 = vmatpush.bf16.msrb.mxu3 %v11872_v50  ;;  %v12951_v50 = vld [vmem:[#allocation6 + $0x1098] sm:$0xf]  ;;  %v12312_v46 = vor.u32 %v15037_v56, %v12311_v44  ;;  %v12192_v56 = vor.u32 %v15007_v26, %v12191_v25  ;;  %v13631_v25 = vld [vmem:[#allocation6 + $0x15e8] sm:$0xf]  ;;  %v15367_v26 = vld [vmem:[#allocation6 + $0x160c] sm:$0xf0] }
 0x216   :  { %7704 = vmatpush.bf16.msrb.mxu0 %v10872_v54  ;;  %v12952_v47 = vor.u32 %v15197_v8, %v12951_v50  ;;  %v13272_v54 = vor.u32 %v15277_v21, %v13271_v41  ;;  %v14997_v50 = vld [vmem:[#allocation6 + $0xa7c] sm:$0xf0]  ;;  %v13152_v8 = vor.u32 %v15247_v13, %v13151_v31  ;;  %v11192_v41 = vor.u32 %v14757_v33, %v11191_v32  ;;  %v12791_v21 = vld [vmem:[#allocation6 + $0xf58] sm:$0xf]  ;;  %v14802_v31 = vld [vmem:[#allocation6 + $0x46c] sm:$0xf] }
 0x217   :  { %v11393_v13 = vld [vmem:[#allocation6 + $0x490] sm:$0xf0]  ;;  %v12631_v32 = vld [vmem:[#allocation6 + $0xe18] sm:$0xf]  ;;  %v15117_v33 = vld [vmem:[#allocation6 + $0xe3c] sm:$0xf0] }
 0x218   :  { %7730 = vmatpush.bf16.msrb.mxu2 %v11512_v57  ;;  %7713 = vmatpush.bf16.msrb.mxu1 %v11352_v38  ;;  %v11312_v57 = vor.u32 %v14787_v45, %v11311_v42  ;;  %v12151_v38 = vld [vmem:[#allocation6 + $0xa58] sm:$0xf]  ;;  %v15157_v42 = vld [vmem:[#allocation6 + $0xf7c] sm:$0xf0] }
 0x219   :  { %7743 = vmatpush.bf16.msrb.mxu3 %v11832_v62  ;;  %v13231_v62 = vld [vmem:[#allocation6 + $0x12c8] sm:$0xf]  ;;  %v13111_v45 = vld [vmem:[#allocation6 + $0x11d8] sm:$0xf]  ;;  %v12792_v59 = vor.u32 %v15157_v42, %v12791_v21  ;;  %v11353_v21 = vld [vmem:[#allocation6 + $0x440] sm:$0xf0] }
 0x21a   :  { %7705 = vmatpush.bf16.msrb.mxu0 %v10832_v0  ;;  %v7499_v4 = vpop.f32.mrf.mxu0  ;;  %v13232_v14 = vor.u32 %v15267_v63, %v13231_v62  ;;  %v15177_v0 = vld [vmem:[#allocation6 + $0x101c] sm:$0xf0]  ;;  %v14987_v62 = vld [vmem:[#allocation6 + $0xa2c] sm:$0xf0]  ;;  %v12591_v42 = vld [vmem:[#allocation6 + $0xdc8] sm:$0xf] }
 0x21b   :  { %v7512_v5 = vpop.f32.mrf.mxu1  ;;  %v7500_v12 = vadd.f32 %v7499_v4, %v15915_v43  ;;  %v12831_v43 = vld [vmem:[#allocation6 + $0xfa8] sm:$0xf]  ;;  %v15147_v4 = vld [vmem:[#allocation6 + $0xf2c] sm:$0xf0] }
 0x21c   :  { %7731 = vmatpush.bf16.msrb.mxu2 %v11472_v16  ;;  %7714 = vmatpush.bf16.msrb.mxu1 %v11312_v57  ;;  %v13191_v16 = vld [vmem:[#allocation6 + $0x1278] sm:$0xf]  ;;  %v12152_v57 = vor.u32 %v14997_v50, %v12151_v38  ;;  %v12752_v17 = vor.u32 %v15147_v4, %v12751_v3  ;;  %v12632_v38 = vor.u32 %v15117_v33, %v12631_v32  ;;  %v14712_v50 = vld [vmem:[#allocation6 + $0x19c] sm:$0xf]  ;;  %v11313_v3 = vld [vmem:[#allocation6 + $0x3f0] sm:$0xf0] }
 0x21d   :  { %7744 = vmatpush.bf16.msrb.mxu3 %v11792_v20  ;;  %7706 = vmatmul.bf16.vlgmr.msrb.gmra.mxu0 %v15861_v2  ;;  %v7513_v20 = vadd.f32 %v7512_v5, %v7500_v12  ;;  %v13071_v5 = vld [vmem:[#allocation6 + $0x1188] sm:$0xf]  ;;  %v14732_v12 = vld [vmem:[#allocation6 + $0x23c] sm:$0xf]  ;;  %v12551_v4 = vld [vmem:[#allocation6 + $0xd78] sm:$0xf] }
 0x21e   :  { %7750 = vmatpush.bf16.msra.mxu0 %v12392_v23  ;;  %v12232_v23 = vor.u32 %v15017_v19, %v12231_v9  ;;  %v13671_v9 = vld [vmem:[#allocation6 + $0x1638] sm:$0xf]  ;;  %v15377_v19 = vld [vmem:[#allocation6 + $0x165c] sm:$0xf0]  ;;  %v3419_v33 = vperm.slane %v15908_v40, 1 }
 0x21f   :  { %7732 = vmatmul.bf16.vlgmr.msrb.gmra.mxu2 %v15865_v48  ;;  %v15077_v32 = vld [vmem:[#allocation6 + $0xcfc] sm:$0xf0] }
 0x220   :  { %7776 = vmatpush.bf16.msra.mxu2 %v13032_v24  ;;  %7745 = vmatmul.bf16.vlgmr.msrb.gmra.mxu3 %v15867_v55  ;;  %v12872_v24 = vor.u32 %v15177_v0, %v12871_v22  ;;  %v12112_v0 = vor.u32 %v14987_v62, %v12111_v60  ;;  %v14702_v62 = vld [vmem:[#allocation6 + $0x14c] sm:$0xf] }
 0x221   :  { %7789 = vmatpush.bf16.msra.mxu3 %v13352_v28  ;;  %7715 = vmatpush.bf16.msrb.mxu1 %v11272_v15  ;;  %v13192_v28 = vor.u32 %v15257_v39, %v13191_v16  ;;  %v14812_v15 = vld [vmem:[#allocation6 + $0x4bc] sm:$0xf]  ;;  %v11433_v16 = vld [vmem:[#allocation6 + $0x4e0] sm:$0xf0]  ;;  %v12671_v39 = vld [vmem:[#allocation6 + $0xe68] sm:$0xf] }
 0x222   :  { %7751 = vmatpush.bf16.msra.mxu0 %v12352_v35  ;;  %v7525_v34 = vpop.f32.mrf.mxu2 }
 0x223   :  { %v15922_v35 = vadd.f32 %v7525_v34, %v7513_v20  ;;  %v7514_v44 = vpop.f32.mrf.mxu1  ;;  %v13632_v34 = vor.u32 %v15367_v26, %v13631_v25 }
 0x224   :  { %7777 = vmatpush.bf16.msra.mxu2 %v12992_v36  ;;  %v7501_v36 = vpop.f32.mrf.mxu0  ;;  %v13591_v44 = vld [vmem:[#allocation6 + $0x1598] sm:$0xf] }
 0x225   :  { %7790 = vmatpush.bf16.msra.mxu3 %v13312_v37  ;;  %v12832_v37 = vor.u32 %v15167_v30, %v12831_v43  ;;  %7716 = vmatpush.bf16.msrb.mxu1 %v11232_v29  ;;  %v12672_v29 = vor.u32 %v15127_v18, %v12671_v39  ;;  %v14722_v43 = vld [vmem:[#allocation6 + $0x1ec] sm:$0xf]  ;;  %v11073_v30 = vld [vmem:[#allocation6 + $0x210] sm:$0xf0]  ;;  %v15087_v39 = vld [vmem:[#allocation6 + $0xd4c] sm:$0xf0] }
 0x226   :  { %7752 = vmatpush.bf16.msra.mxu0 %v12312_v46  ;;  %v15237_v46 = vld [vmem:[#allocation6 + $0x11fc] sm:$0xf0]  ;;  %v11076_v36 = vor.u32 %v14722_v43, %v11073_v30  ;;  %v14762_v43 = vld [vmem:[#allocation6 + $0x32c] sm:$0xf] }
 0x227   :  { %v13112_v63 = vor.u32 %v15237_v46, %v13111_v45  ;;  %v15107_v45 = vld [vmem:[#allocation6 + $0xdec] sm:$0xf0] }
 0x228   :  { %7778 = vmatpush.bf16.msra.mxu2 %v12952_v47  ;;  %v11151_v47 = vld [vmem:[#allocation6 + $0x288] sm:$0xf] }
 0x229   :  { %7791 = vmatpush.bf16.msra.mxu3 %v13272_v54  ;;  %v15137_v54 = vld [vmem:[#allocation6 + $0xedc] sm:$0xf0]  ;;  %7717 = vmatpush.bf16.msrb.mxu1 %v11192_v41  ;;  %v11152_v1 = vor.u32 %v14747_v58, %v11151_v47  ;;  %v14792_v41 = vld [vmem:[#allocation6 + $0x41c] sm:$0xf] }
 0x22a   :  { %7753 = vmatpush.bf16.msra.mxu0 %v12272_v6  ;;  %v12712_v6 = vor.u32 %v15137_v54, %v12711_v53  ;;  %v7527_v22 = vpop.f32.mrf.mxu2  ;;  %v13551_v53 = vld [vmem:[#allocation6 + $0x1548] sm:$0xf]  ;;  %v15347_v54 = vld [vmem:[#allocation6 + $0x156c] sm:$0xf0] }
 0x22b   :  { %v10953_v22 = vld [vmem:[#allocation6 + $0x120] sm:$0xf0] }
 0x22c   :  { %7779 = vmatpush.bf16.msra.mxu2 %v12912_v7  ;;  %v15227_v7 = vld [vmem:[#allocation6 + $0x11ac] sm:$0xf0] }
 0x22d   :  { %7792 = vmatpush.bf16.msra.mxu3 %v13232_v14  ;;  %v11113_v14 = vld [vmem:[#allocation6 + $0x260] sm:$0xf0]  ;;  %7718 = vmatpush.bf16.msrb.mxu1 %v11152_v1  ;;  %v13072_v20 = vor.u32 %v15227_v7, %v13071_v5  ;;  %v14782_v1 = vld [vmem:[#allocation6 + $0x3cc] sm:$0xf]  ;;  %v15097_v5 = vld [vmem:[#allocation6 + $0xd9c] sm:$0xf0] }
 0x22e   :  { %7754 = vmatpush.bf16.msra.mxu0 %v12232_v23  ;;  %v13672_v23 = vor.u32 %v15377_v19, %v13671_v9  ;;  %v7538_v58 = vpop.f32.mrf.mxu3  ;;  %v13511_v9 = vld [vmem:[#allocation6 + $0x14f8] sm:$0xf]  ;;  %v15337_v19 = vld [vmem:[#allocation6 + $0x151c] sm:$0xf0] }
 0x22f   :  { %v15929_v60 = vadd.f32 %v7538_v58, %v15922_v35  ;;  %v14772_v35 = vld [vmem:[#allocation6 + $0x37c] sm:$0xf]  ;;  %v13512_v18 = vor.u32 %v15337_v19, %v13511_v9  ;;  %v11753_v19 = vld [vmem:[#allocation6 + $0x760] sm:$0xf0] }
 0x230   :  { %7780 = vmatpush.bf16.msra.mxu2 %v12872_v24  ;;  %v11116_v24 = vor.u32 %v14732_v12, %v11113_v14  ;;  %7719 = vmatmul.bf16.vlgmr.msrb.gmra.mxu1 %v15863_v61  ;;  %v11316_v12 = vor.u32 %v14782_v1, %v11313_v3  ;;  %v12552_v14 = vor.u32 %v15097_v5, %v12551_v4  ;;  %v10833_v1 = vld [vmem:[#allocation6 + $0x30] sm:$0xf0]  ;;  %v14742_v3 = vld [vmem:[#allocation6 + $0x28c] sm:$0xf]  ;;  %v14892_v9 = vld [vmem:[#allocation6 + $0x73c] sm:$0xf] }
 0x231   :  { %7793 = vmatpush.bf16.msra.mxu3 %v13192_v28  ;;  %7763 = vmatpush.bf16.msra.mxu1 %v12712_v6  ;;  %v11436_v28 = vor.u32 %v14812_v15, %v11433_v16  ;;  %v13552_v6 = vor.u32 %v15347_v54, %v13551_v53  ;;  %v14692_v15 = vld [vmem:[#allocation6 + $0xfc] sm:$0xf]  ;;  %v12511_v16 = vld [vmem:[#allocation6 + $0xd28] sm:$0xf]  ;;  %v15307_v54 = vld [vmem:[#allocation6 + $0x142c] sm:$0xf0] }
 0x232   :  { %7755 = vmatpush.bf16.msra.mxu0 %v12192_v56  ;;  %v15357_v56 = vld [vmem:[#allocation6 + $0x15bc] sm:$0xf0]  ;;  %v12512_v26 = vor.u32 %v15087_v39, %v12511_v16  ;;  %v13391_v53 = vld [vmem:[#allocation6 + $0x1408] sm:$0xf]  ;;  %v15447_v39 = vld [vmem:[#allocation6 + $0x188c] sm:$0xf0] }
 0x233   :  { %v13592_v46 = vor.u32 %v15357_v56, %v13591_v44  ;;  %v13431_v44 = vld [vmem:[#allocation6 + $0x1458] sm:$0xf]  ;;  %v15317_v56 = vld [vmem:[#allocation6 + $0x147c] sm:$0xf0]  ;;  %v13951_v16 = vld [vmem:[#allocation6 + $0x1868] sm:$0xf] }
 0x234   :  { %7781 = vmatpush.bf16.msra.mxu2 %v12832_v37  ;;  %v11396_v37 = vor.u32 %v14802_v31, %v11393_v13  ;;  %v11233_v31 = vld [vmem:[#allocation6 + $0x350] sm:$0xf0]  ;;  %v12471_v13 = vld [vmem:[#allocation6 + $0xcd8] sm:$0xf]  ;;  %v13432_v58 = vor.u32 %v15317_v56, %v13431_v44 }
 0x235   :  { %7794 = vmatpush.bf16.msra.mxu3 %v13152_v8  ;;  %7764 = vmatpush.bf16.msra.mxu1 %v12672_v29  ;;  %v11033_v8 = vld [vmem:[#allocation6 + $0x1c0] sm:$0xf0]  ;;  %v10913_v29 = vld [vmem:[#allocation6 + $0xd0] sm:$0xf0] }
 0x236   :  { %7756 = vmatpush.bf16.msra.mxu0 %v12152_v57  ;;  %v11036_v47 = vor.u32 %v14712_v50, %v11033_v8  ;;  %v11356_v57 = vor.u32 %v14792_v41, %v11353_v21  ;;  %v14672_v50 = vld [vmem:[#allocation6 + $0x5c] sm:$0xf]  ;;  %v10873_v8 = vld [vmem:[#allocation6 + $0x80] sm:$0xf0] }
 0x237   :  { %v14752_v41 = vld [vmem:[#allocation6 + $0x2dc] sm:$0xf]  ;;  %v11193_v21 = vld [vmem:[#allocation6 + $0x300] sm:$0xf0]  ;;  %v10876_v40 = vor.u32 %v14672_v50, %v10873_v8 }
 0x238   :  { %7782 = vmatpush.bf16.msra.mxu2 %v12792_v59  ;;  %v12592_v59 = vor.u32 %v15107_v45, %v12591_v42  ;;  %v12431_v42 = vld [vmem:[#allocation6 + $0xc88] sm:$0xf]  ;;  %v15067_v45 = vld [vmem:[#allocation6 + $0xcac] sm:$0xf0] }
 0x239   :  { %7795 = vmatpush.bf16.msra.mxu3 %v13112_v63  ;;  %7765 = vmatpush.bf16.msra.mxu1 %v12632_v38  ;;  %v10993_v63 = vld [vmem:[#allocation6 + $0x170] sm:$0xf0]  ;;  %v12472_v38 = vor.u32 %v15077_v32, %v12471_v13  ;;  %v13911_v13 = vld [vmem:[#allocation6 + $0x1818] sm:$0xf]  ;;  %v15437_v32 = vld [vmem:[#allocation6 + $0x183c] sm:$0xf0] }
 0x23a   :  { %7757 = vmatpush.bf16.msra.mxu0 %v12112_v0  ;;  %v10996_v7 = vor.u32 %v14702_v62, %v10993_v63  ;;  %v11273_v0 = vld [vmem:[#allocation6 + $0x3a0] sm:$0xf0]  ;;  %v12432_v62 = vor.u32 %v15067_v45, %v12431_v42  ;;  %v14662_v63 = vld [vmem:[#allocation6 + $0xc] sm:$0xf]  ;;  %v13912_v8 = vor.u32 %v15437_v32, %v13911_v13  ;;  %v15112_v42 = vld [vmem:[#allocation6 + $0xe1c] sm:$0xf] }
 0x23b   :  { %v11276_v25 = vor.u32 %v14772_v35, %v11273_v0  ;;  %v13392_v35 = vor.u32 %v15307_v54, %v13391_v53  ;;  %v12713_v0 = vld [vmem:[#allocation6 + $0xee0] sm:$0xf0]  ;;  %v13871_v45 = vld [vmem:[#allocation6 + $0x17c8] sm:$0xf]  ;;  %v11633_v53 = vld [vmem:[#allocation6 + $0x670] sm:$0xf0] }
 0x23c   :  { %7783 = vmatpush.bf16.msra.mxu2 %v12752_v17  ;;  %v10956_v17 = vor.u32 %v14692_v15, %v10953_v22  ;;  %v12393_v15 = vld [vmem:[#allocation6 + $0xc60] sm:$0xf0]  ;;  %v15132_v22 = vld [vmem:[#allocation6 + $0xebc] sm:$0xf]  ;;  %v12513_v13 = vld [vmem:[#allocation6 + $0xd50] sm:$0xf0] }
 0x23d   :  { %7796 = vmatpush.bf16.msra.mxu3 %v13072_v20  ;;  %7758 = vmatmul.bf16.vlgmr.msra.gmra.mxu0 %v15882_v51  ;;  %v7540_v20 = vpop.f32.mrf.mxu3  ;;  %v13751_v32 = vld [vmem:[#allocation6 + $0x16d8] sm:$0xf] }
 0x23e   :  { %7802 = vmatpush.bf16.msrb.mxu0 %v13672_v23  ;;  %7766 = vmatpush.bf16.msra.mxu1 %v12592_v59  ;;  %v13471_v23 = vld [vmem:[#allocation6 + $0x14a8] sm:$0xf]  ;;  %v11196_v59 = vor.u32 %v14752_v41, %v11193_v21  ;;  %v11756_v20 = vor.u32 %v14892_v9, %v11753_v19  ;;  %v15032_v41 = vld [vmem:[#allocation6 + $0xb9c] sm:$0xf]  ;;  %v12313_v21 = vld [vmem:[#allocation6 + $0xbc0] sm:$0xf0] }
 0x23f   :  { %7784 = vmatmul.bf16.vlgmr.msra.gmra.mxu2 %v15880_v49  ;;  %v14852_v9 = vld [vmem:[#allocation6 + $0x5fc] sm:$0xf]  ;;  %v11593_v19 = vld [vmem:[#allocation6 + $0x620] sm:$0xf0] }
 0x240   :  { %7828 = vmatpush.bf16.msrb.mxu2 %v11116_v24  ;;  %7797 = vmatmul.bf16.vlgmr.msra.gmra.mxu3 %v15890_v10  ;;  %v15327_v24 = vld [vmem:[#allocation6 + $0x14cc] sm:$0xf0] }
 0x241   :  { %7841 = vmatpush.bf16.msrb.mxu3 %v11436_v28  ;;  %v14682_v28 = vld [vmem:[#allocation6 + $0xac] sm:$0xf] }
 0x242   :  { %7803 = vmatpush.bf16.msrb.mxu0 %v13632_v34  ;;  %7767 = vmatpush.bf16.msra.mxu1 %v12552_v14  ;;  %v7577_v30 = vpop.f32.mrf.mxu2  ;;  %v13472_v34 = vor.u32 %v15327_v24, %v13471_v23  ;;  %v15052_v14 = vld [vmem:[#allocation6 + $0xc3c] sm:$0xf]  ;;  %v14882_v24 = vld [vmem:[#allocation6 + $0x6ec] sm:$0xf] }
 0x243   :  { %v12396_v23 = vor.u32 %v15052_v14, %v12393_v15 }
 0x244   :  { %7829 = vmatpush.bf16.msrb.mxu2 %v11076_v36  ;;  %v10916_v36 = vor.u32 %v14682_v28, %v10913_v29  ;;  %v13952_v28 = vor.u32 %v15447_v39, %v13951_v16  ;;  %v15042_v29 = vld [vmem:[#allocation6 + $0xbec] sm:$0xf]  ;;  %v12553_v16 = vld [vmem:[#allocation6 + $0xda0] sm:$0xf0]  ;;  %v13791_v39 = vld [vmem:[#allocation6 + $0x1728] sm:$0xf] }
 0x245   :  { %7842 = vmatpush.bf16.msrb.mxu3 %v11396_v37  ;;  %v11236_v37 = vor.u32 %v14762_v43, %v11233_v31  ;;  %v12353_v43 = vld [vmem:[#allocation6 + $0xc10] sm:$0xf0] }
 0x246   :  { %7804 = vmatpush.bf16.msrb.mxu0 %v13592_v46  ;;  %7768 = vmatpush.bf16.msra.mxu1 %v12512_v26  ;;  %v13991_v46 = vld [vmem:[#allocation6 + $0x18b8] sm:$0xf]  ;;  %v12716_v26 = vor.u32 %v15132_v22, %v12713_v0  ;;  %v12673_v31 = vld [vmem:[#allocation6 + $0xe90] sm:$0xf0]  ;;  %v12356_v44 = vor.u32 %v15042_v29, %v12353_v43  ;;  %v15012_v22 = vld [vmem:[#allocation6 + $0xafc] sm:$0xf] }
 0x247   :  { %v15092_v0 = vld [vmem:[#allocation6 + $0xd7c] sm:$0xf]  ;;  %v15002_v29 = vld [vmem:[#allocation6 + $0xaac] sm:$0xf]  ;;  %v12193_v43 = vld [vmem:[#allocation6 + $0xad0] sm:$0xf0] }
 0x248   :  { %7830 = vmatpush.bf16.msrb.mxu2 %v11036_v47  ;;  %v15457_v47 = vld [vmem:[#allocation6 + $0x18dc] sm:$0xf0] }
 0x249   :  { %7843 = vmatpush.bf16.msrb.mxu3 %v11356_v57  ;;  %v7578_v57 = vadd.f32 %v7577_v30, %v3419_v33  ;;  %v13992_v5 = vor.u32 %v15457_v47, %v13991_v46  ;;  %v15122_v30 = vld [vmem:[#allocation6 + $0xe6c] sm:$0xf]  ;;  %v7551_v33 = vpop.f32.mrf.mxu0  ;;  %v15427_v46 = vld [vmem:[#allocation6 + $0x17ec] sm:$0xf0] }
 0x24a   :  { %7805 = vmatpush.bf16.msrb.mxu0 %v13552_v6  ;;  %7769 = vmatpush.bf16.msra.mxu1 %v12472_v38  ;;  %v7579_v4 = vpop.f32.mrf.mxu2  ;;  %v7590_v6 = vpop.f32.mrf.mxu3  ;;  %v11673_v38 = vld [vmem:[#allocation6 + $0x6c0] sm:$0xf0]  ;;  %v12676_v50 = vor.u32 %v15122_v30, %v12673_v31  ;;  %v15082_v30 = vld [vmem:[#allocation6 + $0xd2c] sm:$0xf] }
 0x24b   :  { %v15417_v4 = vld [vmem:[#allocation6 + $0x179c] sm:$0xf0] }
 0x24c   :  { %7831 = vmatpush.bf16.msrb.mxu2 %v10996_v7  ;;  %v11153_v7 = vld [vmem:[#allocation6 + $0x2b0] sm:$0xf0] }
 0x24d   :  { %7844 = vmatpush.bf16.msrb.mxu3 %v11316_v12  ;;  %v15932_v12 = vadd.f32 %v7590_v6, %v7578_v57  ;;  %v13872_v57 = vor.u32 %v15427_v46, %v13871_v45  ;;  %v12473_v45 = vld [vmem:[#allocation6 + $0xd00] sm:$0xf0]  ;;  %v13711_v46 = vld [vmem:[#allocation6 + $0x1688] sm:$0xf] }
 0x24e   :  { %7806 = vmatpush.bf16.msrb.mxu0 %v13512_v18  ;;  %7770 = vmatpush.bf16.msra.mxu1 %v12432_v62  ;;  %v10836_v18 = vor.u32 %v14662_v63, %v10833_v1  ;;  %v12273_v62 = vld [vmem:[#allocation6 + $0xb70] sm:$0xf0]  ;;  %v15102_v63 = vld [vmem:[#allocation6 + $0xdcc] sm:$0xf] }
 0x24f   :  { %v12593_v1 = vld [vmem:[#allocation6 + $0xdf0] sm:$0xf0] }
 0x250   :  { %7832 = vmatpush.bf16.msrb.mxu2 %v10956_v17  ;;  %v11156_v17 = vor.u32 %v14742_v3, %v11153_v7  ;;  %v13831_v3 = vld [vmem:[#allocation6 + $0x1778] sm:$0xf]  ;;  %v12596_v14 = vor.u32 %v15102_v63, %v12593_v1  ;;  %v14982_v1 = vld [vmem:[#allocation6 + $0xa0c] sm:$0xf] }
 0x251   :  { %7845 = vmatpush.bf16.msrb.mxu3 %v11276_v25  ;;  %v11713_v25 = vld [vmem:[#allocation6 + $0x710] sm:$0xf0]  ;;  %7771 = vmatmul.bf16.vlgmr.msra.gmra.mxu1 %v15884_v52  ;;  %v13832_v15 = vor.u32 %v15417_v4, %v13831_v3  ;;  %v15062_v4 = vld [vmem:[#allocation6 + $0xc8c] sm:$0xf] }
 0x252   :  { %7807 = vmatpush.bf16.msrb.mxu0 %v13472_v34  ;;  %7815 = vmatpush.bf16.msrb.mxu1 %v13992_v5  ;;  %v15936_v34 = vadd.f32 %v7551_v33, %v15929_v60  ;;  %v7592_v56 = vpop.f32.mrf.mxu3  ;;  %v12633_v60 = vld [vmem:[#allocation6 + $0xe40] sm:$0xf0]  ;;  %v7553_v5 = vpop.f32.mrf.mxu0  ;;  %v15397_v33 = vld [vmem:[#allocation6 + $0x16fc] sm:$0xf0]  ;;  %v12113_v3 = vld [vmem:[#allocation6 + $0xa30] sm:$0xf0] }
 0x253   :  { %v12636_v54 = vor.u32 %v15112_v42, %v12633_v60  ;;  %v12196_v56 = vor.u32 %v15002_v29, %v12193_v43  ;;  %v12153_v42 = vld [vmem:[#allocation6 + $0xa80] sm:$0xf0]  ;;  %v15072_v60 = vld [vmem:[#allocation6 + $0xcdc] sm:$0xf] }
 0x254   :  { %7833 = vmatpush.bf16.msrb.mxu2 %v10916_v36  ;;  %v11716_v36 = vor.u32 %v14882_v24, %v11713_v25  ;;  %v11553_v24 = vld [vmem:[#allocation6 + $0x5d0] sm:$0xf0]  ;;  %v12556_v25 = vor.u32 %v15092_v0, %v12553_v16  ;;  %v13993_v16 = vld [vmem:[#allocation6 + $0x18e0] sm:$0xf0] }
 0x255   :  { %7846 = vmatpush.bf16.msrb.mxu3 %v11236_v37  ;;  %v14872_v37 = vld [vmem:[#allocation6 + $0x69c] sm:$0xf] }
 0x256   :  { %7808 = vmatpush.bf16.msrb.mxu0 %v13432_v58  ;;  %7816 = vmatpush.bf16.msrb.mxu1 %v13952_v28  ;;  %v11676_v47 = vor.u32 %v14872_v37, %v11673_v38  ;;  %v12316_v58 = vor.u32 %v15032_v41, %v12313_v21  ;;  %v14832_v38 = vld [vmem:[#allocation6 + $0x55c] sm:$0xf]  ;;  %v13752_v41 = vor.u32 %v15397_v33, %v13751_v32  ;;  %v15442_v32 = vld [vmem:[#allocation6 + $0x186c] sm:$0xf]  ;;  %v13953_v33 = vld [vmem:[#allocation6 + $0x1890] sm:$0xf0] }
 0x257   :  { %v14992_v21 = vld [vmem:[#allocation6 + $0xa5c] sm:$0xf] }
 0x258   :  { %7834 = vmatpush.bf16.msrb.mxu2 %v10876_v40  ;;  %v14862_v40 = vld [vmem:[#allocation6 + $0x64c] sm:$0xf] }
 0x259   :  { %7847 = vmatpush.bf16.msrb.mxu3 %v11196_v59  ;;  %v15022_v59 = vld [vmem:[#allocation6 + $0xb4c] sm:$0xf]  ;;  %v11636_v6 = vor.u32 %v14862_v40, %v11633_v53  ;;  %v12073_v40 = vld [vmem:[#allocation6 + $0x9e0] sm:$0xf0] }
 0x25a   :  { %7809 = vmatpush.bf16.msrb.mxu0 %v13392_v35  ;;  %7817 = vmatpush.bf16.msrb.mxu1 %v13912_v8  ;;  %v12276_v7 = vor.u32 %v15022_v59, %v12273_v62  ;;  %v12233_v35 = vld [vmem:[#allocation6 + $0xb20] sm:$0xf0]  ;;  %v12516_v8 = vor.u32 %v15082_v30, %v12513_v13  ;;  %v12476_v59 = vor.u32 %v15072_v60, %v12473_v45  ;;  %v15362_v30 = vld [vmem:[#allocation6 + $0x15ec] sm:$0xf]  ;;  %v13633_v13 = vld [vmem:[#allocation6 + $0x1610] sm:$0xf0] }
 0x25b   :  { %v15352_v45 = vld [vmem:[#allocation6 + $0x159c] sm:$0xf] }
 0x25c   :  { %7835 = vmatpush.bf16.msrb.mxu2 %v10836_v18  ;;  %v15407_v18 = vld [vmem:[#allocation6 + $0x174c] sm:$0xf0] }
 0x25d   :  { %7848 = vmatpush.bf16.msrb.mxu3 %v11156_v17  ;;  %7810 = vmatmul.bf16.vlgmr.msrb.gmra.mxu0 %v15898_v11  ;;  %v11596_v17 = vor.u32 %v14852_v9, %v11593_v19  ;;  %v13792_v28 = vor.u32 %v15407_v18, %v13791_v39  ;;  %v15212_v9 = vld [vmem:[#allocation6 + $0x113c] sm:$0xf]  ;;  %v13033_v19 = vld [vmem:[#allocation6 + $0x1160] sm:$0xf0]  ;;  %v14962_v39 = vld [vmem:[#allocation6 + $0x96c] sm:$0xf] }
 0x25e   :  { %7854 = vmatpush.bf16.msra.mxu0 %v11756_v20  ;;  %7818 = vmatpush.bf16.msrb.mxu1 %v13872_v57  ;;  %v12236_v20 = vor.u32 %v15012_v22, %v12233_v35  ;;  %v11473_v57 = vld [vmem:[#allocation6 + $0x530] sm:$0xf0]  ;;  %v15452_v22 = vld [vmem:[#allocation6 + $0x18bc] sm:$0xf] }
 0x25f   :  { %7836 = vmatmul.bf16.vlgmr.msrb.gmra.mxu2 %v15861_v2  ;;  %v12033_v18 = vld [vmem:[#allocation6 + $0x990] sm:$0xf0]  ;;  %v13996_v29 = vor.u32 %v15452_v22, %v13993_v16  ;;  %v12873_v22 = vld [vmem:[#allocation6 + $0x1020] sm:$0xf0]  ;;  %v15332_v16 = vld [vmem:[#allocation6 + $0x14fc] sm:$0xf] }
 0x260   :  { %7880 = vmatpush.bf16.msra.mxu2 %v12396_v23  ;;  %7849 = vmatmul.bf16.vlgmr.msrb.gmra.mxu3 %v15863_v61  ;;  %v14842_v23 = vld [vmem:[#allocation6 + $0x5ac] sm:$0xf]  ;;  %v12036_v43 = vor.u32 %v14962_v39, %v12033_v18  ;;  %v13513_v39 = vld [vmem:[#allocation6 + $0x1520] sm:$0xf0]  ;;  %v15412_v18 = vld [vmem:[#allocation6 + $0x177c] sm:$0xf] }
 0x261   :  { %7893 = vmatpush.bf16.msra.mxu3 %v12716_v26 }
 0x262   :  { %7855 = vmatpush.bf16.msra.mxu0 %v11716_v36  ;;  %7819 = vmatpush.bf16.msrb.mxu1 %v13832_v15  ;;  %v15941_v26 = vpop.f32.mrf.mxu2  ;;  %v7603_v36 = vpop.f32.mrf.mxu0  ;;  %v13673_v15 = vld [vmem:[#allocation6 + $0x1660] sm:$0xf0] }
 0x263   :  { %v15943_v31 = vpop.f32.mrf.mxu3  ;;  %v15946_v37 = vadd.f32 %v7603_v36, %v15932_v12  ;;  %v14822_v12 = vld [vmem:[#allocation6 + $0x50c] sm:$0xf]  ;;  %v14952_v36 = vld [vmem:[#allocation6 + $0x91c] sm:$0xf] }
 0x264   :  { %7881 = vmatpush.bf16.msra.mxu2 %v12356_v44  ;;  %v11556_v44 = vor.u32 %v14842_v23, %v11553_v24  ;;  %v11476_v0 = vor.u32 %v14822_v12, %v11473_v57  ;;  %v13036_v23 = vor.u32 %v15212_v9, %v13033_v19  ;;  %v15182_v12 = vld [vmem:[#allocation6 + $0x104c] sm:$0xf]  ;;  %v12913_v57 = vld [vmem:[#allocation6 + $0x1070] sm:$0xf0] }
 0x265   :  { %7894 = vmatpush.bf16.msra.mxu3 %v12676_v50  ;;  %v11513_v50 = vld [vmem:[#allocation6 + $0x580] sm:$0xf0]  ;;  %v12916_v19 = vor.u32 %v15182_v12, %v12913_v57 }
 0x266   :  { %7856 = vmatpush.bf16.msra.mxu0 %v11676_v47  ;;  %7820 = vmatpush.bf16.msrb.mxu1 %v13792_v28  ;;  %v15387_v47 = vld [vmem:[#allocation6 + $0x16ac] sm:$0xf0]  ;;  %v11516_v53 = vor.u32 %v14832_v38, %v11513_v50  ;;  %v12993_v28 = vld [vmem:[#allocation6 + $0x1110] sm:$0xf0]  ;;  %v13636_v50 = vor.u32 %v15362_v30, %v13633_v13  ;;  %v13753_v57 = vld [vmem:[#allocation6 + $0x1700] sm:$0xf0] }
 0x267   :  { %v13712_v63 = vor.u32 %v15387_v47, %v13711_v46  ;;  %v13593_v46 = vld [vmem:[#allocation6 + $0x15c0] sm:$0xf0]  ;;  %v15432_v47 = vld [vmem:[#allocation6 + $0x181c] sm:$0xf] }
 0x268   :  { %7882 = vmatpush.bf16.msra.mxu2 %v12316_v58  ;;  %v14972_v58 = vld [vmem:[#allocation6 + $0x9bc] sm:$0xf] }
 0x269   :  { %7895 = vmatpush.bf16.msra.mxu3 %v12636_v54  ;;  %v12156_v54 = vor.u32 %v14992_v21, %v12153_v42  ;;  %v12953_v21 = vld [vmem:[#allocation6 + $0x10c0] sm:$0xf0]  ;;  %v13956_v42 = vor.u32 %v15442_v32, %v13953_v33  ;;  %v15322_v32 = vld [vmem:[#allocation6 + $0x14ac] sm:$0xf]  ;;  %v13473_v33 = vld [vmem:[#allocation6 + $0x14d0] sm:$0xf0] }
 0x26a   :  { %7857 = vmatpush.bf16.msra.mxu0 %v11636_v6  ;;  %7821 = vmatpush.bf16.msrb.mxu1 %v13752_v41  ;;  %v7631_v62 = vpop.f32.mrf.mxu2  ;;  %v12076_v6 = vor.u32 %v14972_v58, %v12073_v40  ;;  %v7605_v35 = vpop.f32.mrf.mxu0  ;;  %v15192_v41 = vld [vmem:[#allocation6 + $0x109c] sm:$0xf]  ;;  %v13913_v58 = vld [vmem:[#allocation6 + $0x1840] sm:$0xf0]  ;;  %v14942_v40 = vld [vmem:[#allocation6 + $0x8cc] sm:$0xf] }
 0x26b   :  { %v7644_v5 = vpop.f32.mrf.mxu3 }
 0x26c   :  { %7883 = vmatpush.bf16.msra.mxu2 %v12276_v7  ;;  %v12433_v7 = vld [vmem:[#allocation6 + $0xcb0] sm:$0xf0]  ;;  %v14932_v5 = vld [vmem:[#allocation6 + $0x87c] sm:$0xf] }
 0x26d   :  { %7896 = vmatpush.bf16.msra.mxu3 %v12596_v14  ;;  %v15372_v14 = vld [vmem:[#allocation6 + $0x163c] sm:$0xf] }
 0x26e   :  { %7858 = vmatpush.bf16.msra.mxu0 %v11596_v17  ;;  %7822 = vmatpush.bf16.msrb.mxu1 %v13712_v63  ;;  %v12116_v17 = vor.u32 %v14982_v1, %v12113_v3  ;;  %v13676_v24 = vor.u32 %v15372_v14, %v13673_v15  ;;  %v15342_v63 = vld [vmem:[#allocation6 + $0x154c] sm:$0xf]  ;;  %v13553_v1 = vld [vmem:[#allocation6 + $0x1570] sm:$0xf0]  ;;  %v15172_v15 = vld [vmem:[#allocation6 + $0xffc] sm:$0xf] }
 0x26f   :  { %v15422_v3 = vld [vmem:[#allocation6 + $0x17cc] sm:$0xf]  ;;  %v13556_v14 = vor.u32 %v15342_v63, %v13553_v1  ;;  %v15292_v63 = vld [vmem:[#allocation6 + $0x13bc] sm:$0xf]  ;;  %v13353_v1 = vld [vmem:[#allocation6 + $0x13e0] sm:$0xf0] }
 0x270   :  { %7884 = vmatpush.bf16.msra.mxu2 %v12236_v20  ;;  %v12436_v20 = vor.u32 %v15062_v4, %v12433_v7  ;;  %v13873_v4 = vld [vmem:[#allocation6 + $0x17f0] sm:$0xf0] }
 0x271   :  { %7897 = vmatpush.bf16.msra.mxu3 %v12556_v25  ;;  %v15202_v25 = vld [vmem:[#allocation6 + $0x10ec] sm:$0xf]  ;;  %7823 = vmatmul.bf16.vlgmr.msrb.gmra.mxu1 %v15905_v27  ;;  %v13876_v35 = vor.u32 %v15422_v3, %v13873_v4 }
 0x272   :  { %7859 = vmatpush.bf16.msra.mxu0 %v11556_v44  ;;  %7867 = vmatpush.bf16.msra.mxu1 %v12076_v6  ;;  %v11993_v44 = vld [vmem:[#allocation6 + $0x940] sm:$0xf0]  ;;  %v12996_v38 = vor.u32 %v15202_v25, %v12993_v28  ;;  %v13516_v25 = vor.u32 %v15332_v16, %v13513_v39  ;;  %v15162_v28 = vld [vmem:[#allocation6 + $0xfac] sm:$0xf]  ;;  %v13713_v16 = vld [vmem:[#allocation6 + $0x16b0] sm:$0xf0] }
 0x273   :  { %v11996_v60 = vor.u32 %v14952_v36, %v11993_v44  ;;  %v11913_v6 = vld [vmem:[#allocation6 + $0x8a0] sm:$0xf0]  ;;  %v15402_v36 = vld [vmem:[#allocation6 + $0x172c] sm:$0xf]  ;;  %v11119_v39 = vld [vmem:[#allocation6 + $0x240] sm:$0xf] }
 0x274   :  { %7885 = vmatpush.bf16.msra.mxu2 %v12196_v56  ;;  %v7564_v56 = vpop.f32.mrf.mxu1  ;;  %v15142_v4 = vld [vmem:[#allocation6 + $0xf0c] sm:$0xf] }
 0x275   :  { %7898 = vmatpush.bf16.msra.mxu3 %v12516_v8  ;;  %v15950_v8 = vadd.f32 %v7564_v56, %v15936_v34  ;;  %v12956_v34 = vor.u32 %v15192_v41, %v12953_v21  ;;  %v13793_v56 = vld [vmem:[#allocation6 + $0x1750] sm:$0xf0] }
 0x276   :  { %7860 = vmatpush.bf16.msra.mxu0 %v11516_v53  ;;  %7868 = vmatpush.bf16.msra.mxu1 %v12036_v43  ;;  %v11953_v53 = vld [vmem:[#allocation6 + $0x8f0] sm:$0xf0] }
 0x277   :  { %v11956_v62 = vor.u32 %v14942_v40, %v11953_v53  ;;  %v15312_v53 = vld [vmem:[#allocation6 + $0x145c] sm:$0xf] }
 0x278   :  { %7886 = vmatpush.bf16.msra.mxu2 %v12156_v54  ;;  %v13596_v54 = vor.u32 %v15352_v45, %v13593_v46  ;;  %v15152_v46 = vld [vmem:[#allocation6 + $0xf5c] sm:$0xf] }
 0x279   :  { %7899 = vmatpush.bf16.msra.mxu3 %v12476_v59  ;;  %v13916_v59 = vor.u32 %v15432_v47, %v13913_v58  ;;  %v12793_v47 = vld [vmem:[#allocation6 + $0xf80] sm:$0xf0]  ;;  %v13796_v58 = vor.u32 %v15402_v36, %v13793_v56  ;;  %v11079_v56 = vld [vmem:[#allocation6 + $0x1f0] sm:$0xf] }
 0x27a   :  { %7861 = vmatpush.bf16.msra.mxu0 %v11476_v0  ;;  %7869 = vmatpush.bf16.msra.mxu1 %v11996_v60  ;;  %v15955_v7 = vpop.f32.mrf.mxu0  ;;  %v11916_v0 = vor.u32 %v14932_v5, %v11913_v6  ;;  %v13476_v60 = vor.u32 %v15322_v32, %v13473_v33  ;;  %v12796_v3 = vor.u32 %v15152_v46, %v12793_v47  ;;  %v12753_v5 = vld [vmem:[#allocation6 + $0xf30] sm:$0xf0]  ;;  %v13273_v46 = vld [vmem:[#allocation6 + $0x1340] sm:$0xf0] }
 0x27c   :  { %7887 = vmatpush.bf16.msra.mxu2 %v12116_v17  ;;  %v7566_v9 = vpop.f32.mrf.mxu1  ;;  %v13833_v17 = vld [vmem:[#allocation6 + $0x17a0] sm:$0xf0] }
 0x27d   :  { %7900 = vmatpush.bf16.msra.mxu3 %v12436_v20  ;;  %7862 = vmatmul.bf16.vlgmr.msra.gmra.mxu0 %v15865_v48  ;;  %v14922_v20 = vld [vmem:[#allocation6 + $0x82c] sm:$0xf]  ;;  %v13836_v43 = vor.u32 %v15412_v18, %v13833_v17  ;;  %v14738_v18 = vld [vmem:[#allocation6 + $0x264] sm:$0xf0] }
 0x27e   :  { %7906 = vmatpush.bf16.msrb.mxu0 %v13036_v23  ;;  %7870 = vmatpush.bf16.msra.mxu1 %v11956_v62  ;;  %v11873_v23 = vld [vmem:[#allocation6 + $0x850] sm:$0xf0]  ;;  %v11120_v33 = vor.u32 %v14738_v18, %v11119_v39 }
 0x27f   :  { %7888 = vmatmul.bf16.vlgmr.msra.gmra.mxu2 %v15882_v51  ;;  %v11876_v13 = vor.u32 %v14922_v20, %v11873_v23  ;;  %v11793_v62 = vld [vmem:[#allocation6 + $0x7b0] sm:$0xf0]  ;;  %v11759_v20 = vld [vmem:[#allocation6 + $0x740] sm:$0xf]  ;;  %v14898_v23 = vld [vmem:[#allocation6 + $0x764] sm:$0xf0] }
 0x280   :  { %7932 = vmatpush.bf16.msrb.mxu2 %v13676_v24  ;;  %7901 = vmatmul.bf16.vlgmr.msra.gmra.mxu3 %v15884_v52  ;;  %v12876_v24 = vor.u32 %v15172_v15, %v12873_v22  ;;  %v15302_v15 = vld [vmem:[#allocation6 + $0x140c] sm:$0xf]  ;;  %v11760_v36 = vor.u32 %v14898_v23, %v11759_v20 }
 0x281   :  { %7945 = vmatpush.bf16.msrb.mxu3 %v13996_v29  ;;  %v12833_v29 = vld [vmem:[#allocation6 + $0xfd0] sm:$0xf0]  ;;  %v15382_v22 = vld [vmem:[#allocation6 + $0x168c] sm:$0xf] }
 0x282   :  { %7907 = vmatpush.bf16.msrb.mxu0 %v12996_v38  ;;  %7871 = vmatpush.bf16.msra.mxu1 %v11916_v0  ;;  %v15957_v30 = vpop.f32.mrf.mxu2  ;;  %v14912_v38 = vld [vmem:[#allocation6 + $0x7dc] sm:$0xf]  ;;  %v7657_v41 = vpop.f32.mrf.mxu0  ;;  %v13356_v0 = vor.u32 %v15292_v63, %v13353_v1  ;;  %v13716_v32 = vor.u32 %v15382_v22, %v13713_v16  ;;  %v15262_v63 = vld [vmem:[#allocation6 + $0x12cc] sm:$0xf]  ;;  %v13233_v1 = vld [vmem:[#allocation6 + $0x12f0] sm:$0xf0] }
 0x283   :  { %v15959_v44 = vpop.f32.mrf.mxu3  ;;  %v11719_v41 = vld [vmem:[#allocation6 + $0x6f0] sm:$0xf]  ;;  %v13193_v16 = vld [vmem:[#allocation6 + $0x12a0] sm:$0xf0] }
 0x284   :  { %7933 = vmatpush.bf16.msrb.mxu2 %v13636_v50  ;;  %v11833_v50 = vld [vmem:[#allocation6 + $0x800] sm:$0xf0]  ;;  %v7616_v21 = vpop.f32.mrf.mxu1  ;;  %v11959_v22 = vld [vmem:[#allocation6 + $0x8d0] sm:$0xf] }
 0x285   :  { %7946 = vmatpush.bf16.msrb.mxu3 %v13956_v42  ;;  %v12836_v42 = vor.u32 %v15162_v28, %v12833_v29  ;;  %v7617_v45 = vadd.f32 %v7616_v21, %v15946_v37  ;;  %v11836_v40 = vor.u32 %v14912_v38, %v11833_v50  ;;  %v14978_v28 = vld [vmem:[#allocation6 + $0x9e4] sm:$0xf0]  ;;  %v15282_v29 = vld [vmem:[#allocation6 + $0x136c] sm:$0xf]  ;;  %v14728_v38 = vld [vmem:[#allocation6 + $0x214] sm:$0xf0] }
 0x286   :  { %7908 = vmatpush.bf16.msrb.mxu0 %v12956_v34  ;;  %7872 = vmatpush.bf16.msra.mxu1 %v11876_v13  ;;  %v13433_v34 = vld [vmem:[#allocation6 + $0x1480] sm:$0xf0]  ;;  %v14888_v21 = vld [vmem:[#allocation6 + $0x714] sm:$0xf0]  ;;  %v11080_v47 = vor.u32 %v14728_v38, %v11079_v56 }
 0x287   :  { %v7630_v12 = vadd.f32 %v15941_v26, %v7617_v45  ;;  %v13436_v37 = vor.u32 %v15312_v53, %v13433_v34  ;;  %v13393_v26 = vld [vmem:[#allocation6 + $0x1430] sm:$0xf0]  ;;  %v15272_v45 = vld [vmem:[#allocation6 + $0x131c] sm:$0xf]  ;;  %v14718_v53 = vld [vmem:[#allocation6 + $0x1c4] sm:$0xf0] }
 0x288   :  { %7934 = vmatpush.bf16.msrb.mxu2 %v13596_v54  ;;  %v15392_v54 = vld [vmem:[#allocation6 + $0x16dc] sm:$0xf]  ;;  %v13396_v13 = vor.u32 %v15302_v15, %v13393_v26  ;;  %v11639_v15 = vld [vmem:[#allocation6 + $0x650] sm:$0xf]  ;;  %v14868_v26 = vld [vmem:[#allocation6 + $0x674] sm:$0xf0] }
 0x289   :  { %7947 = vmatpush.bf16.msrb.mxu3 %v13916_v59  ;;  %v14902_v59 = vld [vmem:[#allocation6 + $0x78c] sm:$0xf]  ;;  %v7643_v6 = vadd.f32 %v15943_v31, %v7630_v12  ;;  %v13756_v9 = vor.u32 %v15392_v54, %v13753_v57  ;;  %v12756_v31 = vor.u32 %v15142_v4, %v12753_v5  ;;  %v13276_v54 = vor.u32 %v15272_v45, %v13273_v46  ;;  %v11679_v12 = vld [vmem:[#allocation6 + $0x6a0] sm:$0xf]  ;;  %v14878_v57 = vld [vmem:[#allocation6 + $0x6c4] sm:$0xf0] }
 0x28a   :  { %7909 = vmatpush.bf16.msrb.mxu0 %v12916_v19  ;;  %7873 = vmatpush.bf16.msra.mxu1 %v11836_v40  ;;  %v7683_v19 = vpop.f32.mrf.mxu2  ;;  %v11039_v40 = vld [vmem:[#allocation6 + $0x1a0] sm:$0xf]  ;;  %v10999_v5 = vld [vmem:[#allocation6 + $0x150] sm:$0xf]  ;;  %v11640_v23 = vor.u32 %v14868_v26, %v11639_v15  ;;  %v14668_v26 = vld [vmem:[#allocation6 + $0x34] sm:$0xf0] }
 0x28b   :  { %v7656_v17 = vadd.f32 %v15955_v7, %v7643_v6  ;;  %v14708_v6 = vld [vmem:[#allocation6 + $0x174] sm:$0xf0]  ;;  %v11879_v45 = vld [vmem:[#allocation6 + $0x830] sm:$0xf] }
 0x28c   :  { %7935 = vmatpush.bf16.msrb.mxu2 %v13556_v14  ;;  %v11796_v14 = vor.u32 %v14902_v59, %v11793_v62  ;;  %v11999_v59 = vld [vmem:[#allocation6 + $0x920] sm:$0xf]  ;;  %v14958_v62 = vld [vmem:[#allocation6 + $0x944] sm:$0xf0]  ;;  %v11000_v20 = vor.u32 %v14708_v6, %v10999_v5  ;;  %v13073_v5 = vld [vmem:[#allocation6 + $0x11b0] sm:$0xf0] }
 0x28d   :  { %7948 = vmatpush.bf16.msrb.mxu3 %v13876_v35  ;;  %v7696_v35 = vpop.f32.mrf.mxu3  ;;  %v11439_v6 = vld [vmem:[#allocation6 + $0x4c0] sm:$0xf]  ;;  %v10839_v15 = vld [vmem:[#allocation6 + $0x10] sm:$0xf] }
 0x28e   :  { %7910 = vmatpush.bf16.msrb.mxu0 %v12876_v24  ;;  %v12079_v24 = vld [vmem:[#allocation6 + $0x9c0] sm:$0xf]  ;;  %7874 = vmatpush.bf16.msra.mxu1 %v11796_v14  ;;  %v13236_v14 = vor.u32 %v15262_v63, %v13233_v1  ;;  %v14948_v35 = vld [vmem:[#allocation6 + $0x8f4] sm:$0xf0]  ;;  %v14838_v1 = vld [vmem:[#allocation6 + $0x584] sm:$0xf0] }
 0x28f   :  { %v12080_v7 = vor.u32 %v14978_v28, %v12079_v24  ;;  %v10959_v24 = vld [vmem:[#allocation6 + $0x100] sm:$0xf] }
 0x290   :  { %7936 = vmatpush.bf16.msrb.mxu2 %v13516_v25  ;;  %v7618_v25 = vpop.f32.mrf.mxu1  ;;  %v11519_v63 = vld [vmem:[#allocation6 + $0x560] sm:$0xf] }
 0x291   :  { %7949 = vmatpush.bf16.msrb.mxu3 %v13836_v43  ;;  %v13313_v43 = vld [vmem:[#allocation6 + $0x1390] sm:$0xf0]  ;;  %7875 = vmatmul.bf16.vlgmr.msra.gmra.mxu1 %v15867_v55  ;;  %v14698_v25 = vld [vmem:[#allocation6 + $0x124] sm:$0xf0] }
 0x292   :  { %7911 = vmatpush.bf16.msrb.mxu0 %v12836_v42  ;;  %7919 = vmatpush.bf16.msrb.mxu1 %v13356_v0  ;;  %v13316_v50 = vor.u32 %v15282_v29, %v13313_v43  ;;  %v12039_v42 = vld [vmem:[#allocation6 + $0x970] sm:$0xf]  ;;  %v15252_v0 = vld [vmem:[#allocation6 + $0x127c] sm:$0xf]  ;;  %v11599_v29 = vld [vmem:[#allocation6 + $0x600] sm:$0xf] }
 0x293   :  { %v13196_v28 = vor.u32 %v15252_v0, %v13193_v16  ;;  %v14858_v43 = vld [vmem:[#allocation6 + $0x624] sm:$0xf0]  ;;  %v11479_v16 = vld [vmem:[#allocation6 + $0x510] sm:$0xf] }
 0x294   :  { %7937 = vmatpush.bf16.msrb.mxu2 %v13476_v60  ;;  %v14968_v60 = vld [vmem:[#allocation6 + $0x994] sm:$0xf0]  ;;  %v11600_v56 = vor.u32 %v14858_v43, %v11599_v29  ;;  %v13039_v29 = vld [vmem:[#allocation6 + $0x1140] sm:$0xf]  ;;  %v15218_v43 = vld [vmem:[#allocation6 + $0x1164] sm:$0xf0] }
 0x295   :  { %7950 = vmatpush.bf16.msrb.mxu3 %v13796_v58  ;;  %v11720_v58 = vor.u32 %v14888_v21, %v11719_v41  ;;  %v12040_v34 = vor.u32 %v14968_v60, %v12039_v42  ;;  %v11559_v42 = vld [vmem:[#allocation6 + $0x5b0] sm:$0xf]  ;;  %v14848_v60 = vld [vmem:[#allocation6 + $0x5d4] sm:$0xf0] }
 0x296   :  { %7912 = vmatpush.bf16.msrb.mxu0 %v12796_v3  ;;  %7920 = vmatpush.bf16.msrb.mxu1 %v13316_v50  ;;  %v11040_v3 = vor.u32 %v14718_v53, %v11039_v40  ;;  %v14688_v50 = vld [vmem:[#allocation6 + $0xd4] sm:$0xf0]  ;;  %v13113_v40 = vld [vmem:[#allocation6 + $0x1200] sm:$0xf0] }
 0x298   :  { %7938 = vmatpush.bf16.msrb.mxu2 %v13436_v37  ;;  %v11680_v37 = vor.u32 %v14878_v57, %v11679_v12  ;;  %v7668_v4 = vpop.f32.mrf.mxu1  ;;  %v10879_v12 = vld [vmem:[#allocation6 + $0x60] sm:$0xf]  ;;  %v14678_v57 = vld [vmem:[#allocation6 + $0x84] sm:$0xf0] }
 0x299   :  { %7951 = vmatpush.bf16.msrb.mxu3 %v13756_v9  ;;  %v12000_v9 = vor.u32 %v14958_v62, %v11999_v59  ;;  %v7669_v19 = vadd.f32 %v7668_v4, %v7656_v17  ;;  %v15222_v4 = vld [vmem:[#allocation6 + $0x118c] sm:$0xf] }
 0x29a   :  { %7913 = vmatpush.bf16.msrb.mxu0 %v12756_v31  ;;  %7921 = vmatpush.bf16.msrb.mxu1 %v13276_v54  ;;  %v15970_v18 = vpop.f32.mrf.mxu0  ;;  %v11960_v31 = vor.u32 %v14948_v35, %v11959_v22  ;;  %v11560_v54 = vor.u32 %v14848_v60, %v11559_v42  ;;  %v13076_v0 = vor.u32 %v15222_v4, %v13073_v5  ;;  %v12359_v42 = vld [vmem:[#allocation6 + $0xbf0] sm:$0xf]  ;;  %v15048_v60 = vld [vmem:[#allocation6 + $0xc14] sm:$0xf0]  ;;  %v15198_v4 = vld [vmem:[#allocation6 + $0x10c4] sm:$0xf0] }
 0x29b   :  { %v7682_v39 = vadd.f32 %v15957_v30, %v7669_v19  ;;  %v15242_v30 = vld [vmem:[#allocation6 + $0x122c] sm:$0xf]  ;;  %v10880_v19 = vor.u32 %v14678_v57, %v10879_v12  ;;  %v14798_v12 = vld [vmem:[#allocation6 + $0x444] sm:$0xf0]  ;;  %v12360_v57 = vor.u32 %v15048_v60, %v12359_v42  ;;  %v13279_v5 = vld [vmem:[#allocation6 + $0x1320] sm:$0xf] }
 0x29c   :  { %7939 = vmatpush.bf16.msrb.mxu2 %v13396_v13  ;;  %v11919_v13 = vld [vmem:[#allocation6 + $0x880] sm:$0xf]  ;;  %v15258_v42 = vld [vmem:[#allocation6 + $0x12a4] sm:$0xf0]  ;;  %v11239_v60 = vld [vmem:[#allocation6 + $0x330] sm:$0xf] }
 0x29d   :  { %7952 = vmatpush.bf16.msrb.mxu3 %v13716_v32  ;;  %7914 = vmatmul.bf16.vlgmr.msrb.gmra.mxu0 %v15880_v49  ;;  %v15973_v17 = vadd.f32 %v15959_v44, %v7682_v39  ;;  %v14938_v32 = vld [vmem:[#allocation6 + $0x8a4] sm:$0xf0]  ;;  %v14828_v39 = vld [vmem:[#allocation6 + $0x534] sm:$0xf0] }
 0x29e   :  { %7958 = vmatpush.bf16.msra.mxu0 %v11120_v33  ;;  %7922 = vmatpush.bf16.msrb.mxu1 %v13236_v14  ;;  %v13153_v33 = vld [vmem:[#allocation6 + $0x1250] sm:$0xf0]  ;;  %v11920_v44 = vor.u32 %v14938_v32, %v11919_v13  ;;  %v11520_v14 = vor.u32 %v14838_v1, %v11519_v63  ;;  %v13359_v13 = vld [vmem:[#allocation6 + $0x13c0] sm:$0xf]  ;;  %v10840_v32 = vor.u32 %v14668_v26, %v10839_v15  ;;  %v15038_v63 = vld [vmem:[#allocation6 + $0xbc4] sm:$0xf0] }
 0x29f   :  { %7940 = vmatmul.bf16.vlgmr.msrb.gmra.mxu2 %v15898_v11  ;;  %v13156_v21 = vor.u32 %v15242_v30, %v13153_v33  ;;  %v15298_v30 = vld [vmem:[#allocation6 + $0x13e4] sm:$0xf0]  ;;  %v11399_v33 = vld [vmem:[#allocation6 + $0x470] sm:$0xf] }
 0x2a0   :  { %7984 = vmatpush.bf16.msra.mxu2 %v11760_v36  ;;  %7953 = vmatmul.bf16.vlgmr.msrb.gmra.mxu3 %v15905_v27  ;;  %v10960_v36 = vor.u32 %v14698_v25, %v10959_v24  ;;  %v7670_v38 = vpop.f32.mrf.mxu1  ;;  %v14908_v25 = vld [vmem:[#allocation6 + $0x7b4] sm:$0xf0] }
 0x2a1   :  { %7997 = vmatpush.bf16.msra.mxu3 %v12080_v7  ;;  %v10919_v7 = vld [vmem:[#allocation6 + $0xb0] sm:$0xf] }
 0x2a2   :  { %7959 = vmatpush.bf16.msra.mxu0 %v11080_v47  ;;  %7923 = vmatpush.bf16.msrb.mxu1 %v13196_v28  ;;  %v15975_v41 = vpop.f32.mrf.mxu2  ;;  %v14928_v47 = vld [vmem:[#allocation6 + $0x854] sm:$0xf0]  ;;  %v7709_v53 = vpop.f32.mrf.mxu0  ;;  %v15058_v28 = vld [vmem:[#allocation6 + $0xc64] sm:$0xf0] }
 0x2a3   :  { %v15977_v46 = vpop.f32.mrf.mxu3  ;;  %v11880_v59 = vor.u32 %v14928_v47, %v11879_v45  ;;  %v13360_v45 = vor.u32 %v15298_v30, %v13359_v13  ;;  %v13319_v53 = vld [vmem:[#allocation6 + $0x1370] sm:$0xf] }
 0x2a4   :  { %7985 = vmatpush.bf16.msra.mxu2 %v11720_v58  ;;  %v15232_v58 = vld [vmem:[#allocation6 + $0x11dc] sm:$0xf] }
 0x2a5   :  { %7998 = vmatpush.bf16.msra.mxu3 %v12040_v34  ;;  %v10920_v34 = vor.u32 %v14688_v50, %v10919_v7  ;;  %v13116_v62 = vor.u32 %v15232_v58, %v13113_v40  ;;  %v15979_v7 = vld [vmem:[#allocation7] sm:$0xff]  ;;  %v12999_v58 = vld [vmem:[#allocation6 + $0x10f0] sm:$0xf]  ;;  %v15208_v40 = vld [vmem:[#allocation6 + $0x1114] sm:$0xf0] }
 0x2a6   :  { %7960 = vmatpush.bf16.msra.mxu0 %v11040_v3  ;;  %7924 = vmatpush.bf16.msrb.mxu1 %v13156_v21  ;;  %v11839_v3 = vld [vmem:[#allocation6 + $0x7e0] sm:$0xf]  ;;  %v3420_v50 = vperm.slane %v15979_v7, 2  ;;  %v13040_v21 = vor.u32 %v15218_v43, %v13039_v29  ;;  %v14778_v29 = vld [vmem:[#allocation6 + $0x3a4] sm:$0xf0] }
 0x2a8   :  { %7986 = vmatpush.bf16.msra.mxu2 %v11680_v37  ;;  %v14918_v37 = vld [vmem:[#allocation6 + $0x804] sm:$0xf0] }
 0x2a9   :  { %7999 = vmatpush.bf16.msra.mxu3 %v12000_v9  ;;  %v14818_v9 = vld [vmem:[#allocation6 + $0x4e4] sm:$0xf0]  ;;  %v11840_v22 = vor.u32 %v14918_v37, %v11839_v3  ;;  %v12959_v37 = vld [vmem:[#allocation6 + $0x10a0] sm:$0xf] }
 0x2aa   :  { %7961 = vmatpush.bf16.msra.mxu0 %v11000_v20  ;;  %7925 = vmatpush.bf16.msrb.mxu1 %v13116_v62  ;;  %v7735_v35 = vpop.f32.mrf.mxu2  ;;  %v11799_v20 = vld [vmem:[#allocation6 + $0x790] sm:$0xf]  ;;  %v11440_v24 = vor.u32 %v14818_v9, %v11439_v6  ;;  %v12319_v62 = vld [vmem:[#allocation6 + $0xba0] sm:$0xf]  ;;  %v7708_v6 = vadd.f32 %v15970_v18, %v3420_v50  ;;  %v15278_v9 = vld [vmem:[#allocation6 + $0x1344] sm:$0xf0] }
 0x2ab   :  { %v11800_v38 = vor.u32 %v14908_v25, %v11799_v20  ;;  %v12960_v35 = vor.u32 %v15198_v4, %v12959_v37  ;;  %v13280_v18 = vor.u32 %v15278_v9, %v13279_v5  ;;  %v12919_v20 = vld [vmem:[#allocation6 + $0x1050] sm:$0xf]  ;;  %v12879_v50 = vld [vmem:[#allocation6 + $0x1000] sm:$0xf]  ;;  %v14758_v37 = vld [vmem:[#allocation6 + $0x304] sm:$0xf0] }
 0x2ac   :  { %7987 = vmatpush.bf16.msra.mxu2 %v11640_v23  ;;  %v7748_v23 = vpop.f32.mrf.mxu3  ;;  %v12159_v9 = vld [vmem:[#allocation6 + $0xa60] sm:$0xf] }
 0x2ad   :  { %8000 = vmatpush.bf16.msra.mxu3 %v11960_v31  ;;  %v12399_v31 = vld [vmem:[#allocation6 + $0xc40] sm:$0xf]  ;;  %v7720_v15 = vpop.f32.mrf.mxu1  ;;  %v15188_v23 = vld [vmem:[#allocation6 + $0x1074] sm:$0xf0] }
 0x2ae   :  { %7962 = vmatpush.bf16.msra.mxu0 %v10960_v36  ;;  %v14808_v36 = vld [vmem:[#allocation6 + $0x494] sm:$0xf0]  ;;  %7926 = vmatpush.bf16.msrb.mxu1 %v13076_v0  ;;  %v7721_v26 = vadd.f32 %v7720_v15, %v7708_v6  ;;  %v12279_v0 = vld [vmem:[#allocation6 + $0xb50] sm:$0xf]  ;;  %v12920_v30 = vor.u32 %v15188_v23, %v12919_v20  ;;  %v15138_v20 = vld [vmem:[#allocation6 + $0xee4] sm:$0xf0] }
 0x2af   :  { %v11400_v47 = vor.u32 %v14808_v36, %v11399_v33  ;;  %v12239_v33 = vld [vmem:[#allocation6 + $0xb00] sm:$0xf]  ;;  %v15018_v36 = vld [vmem:[#allocation6 + $0xb24] sm:$0xf0] }
 0x2b0   :  { %7988 = vmatpush.bf16.msra.mxu2 %v11600_v56  ;;  %v11480_v56 = vor.u32 %v14828_v39, %v11479_v16  ;;  %v15028_v16 = vld [vmem:[#allocation6 + $0xb74] sm:$0xf0]  ;;  %v7734_v25 = vadd.f32 %v15975_v41, %v7721_v26  ;;  %v12799_v26 = vld [vmem:[#allocation6 + $0xf60] sm:$0xf] }
 0x2b1   :  { %8001 = vmatpush.bf16.msra.mxu3 %v11920_v44  ;;  %v12400_v44 = vor.u32 %v15058_v28, %v12399_v31  ;;  %7927 = vmatmul.bf16.vlgmr.msrb.gmra.mxu1 %v15890_v10  ;;  %v15268_v31 = vld [vmem:[#allocation6 + $0x12f4] sm:$0xf0]  ;;  %v11279_v28 = vld [vmem:[#allocation6 + $0x380] sm:$0xf] }
 0x2b2   :  { %7963 = vmatpush.bf16.msra.mxu0 %v10920_v34  ;;  %7971 = vmatpush.bf16.msra.mxu1 %v11440_v24  ;;  %v15288_v34 = vld [vmem:[#allocation6 + $0x1394] sm:$0xf0]  ;;  %v13239_v24 = vld [vmem:[#allocation6 + $0x12d0] sm:$0xf]  ;;  %v7747_v13 = vadd.f32 %v15977_v46, %v7734_v25  ;;  %v12240_v46 = vor.u32 %v15018_v36, %v12239_v33 }
 0x2b3   :  { %v13320_v1 = vor.u32 %v15288_v34, %v13319_v53  ;;  %v15008_v53 = vld [vmem:[#allocation6 + $0xad4] sm:$0xf0]  ;;  %v12119_v25 = vld [vmem:[#allocation6 + $0xa10] sm:$0xf] }
 0x2b4   :  { %7989 = vmatpush.bf16.msra.mxu2 %v11560_v54  ;;  %v11359_v54 = vld [vmem:[#allocation6 + $0x420] sm:$0xf] }
 0x2b5   :  { %8002 = vmatpush.bf16.msra.mxu3 %v11880_v59  ;;  %v13000_v59 = vor.u32 %v15208_v40, %v12999_v58  ;;  %v11360_v3 = vor.u32 %v14798_v12, %v11359_v54  ;;  %v12199_v40 = vld [vmem:[#allocation6 + $0xab0] sm:$0xf] }
 0x2b6   :  { %7964 = vmatpush.bf16.msra.mxu0 %v10880_v19  ;;  %7972 = vmatpush.bf16.msra.mxu1 %v11400_v47  ;;  %v11319_v19 = vld [vmem:[#allocation6 + $0x3d0] sm:$0xf]  ;;  %v7722_v47 = vpop.f32.mrf.mxu1  ;;  %v12200_v5 = vor.u32 %v15008_v53, %v12199_v40 }
 0x2b7   :  { %v12679_v47 = vld [vmem:[#allocation6 + $0xe70] sm:$0xf] }
 0x2b8   :  { %7990 = vmatpush.bf16.msra.mxu2 %v11520_v14  ;;  %v14788_v14 = vld [vmem:[#allocation6 + $0x3f4] sm:$0xf0] }
 0x2b9   :  { %8003 = vmatpush.bf16.msra.mxu3 %v11840_v22  ;;  %v12320_v22 = vor.u32 %v15038_v63, %v12319_v62  ;;  %v11320_v39 = vor.u32 %v14788_v14, %v11319_v19  ;;  %v13159_v62 = vld [vmem:[#allocation6 + $0x1230] sm:$0xf]  ;;  %v14998_v19 = vld [vmem:[#allocation6 + $0xa84] sm:$0xf0] }
 0x2ba   :  { %7965 = vmatpush.bf16.msra.mxu0 %v10840_v32  ;;  %7973 = vmatpush.bf16.msra.mxu1 %v11360_v3  ;;  %v7759_v43 = vpop.f32.mrf.mxu0  ;;  %v12280_v32 = vor.u32 %v15028_v16, %v12279_v0  ;;  %v11199_v3 = vld [vmem:[#allocation6 + $0x2e0] sm:$0xf]  ;;  %v15238_v0 = vld [vmem:[#allocation6 + $0x1204] sm:$0xf0]  ;;  %v11159_v16 = vld [vmem:[#allocation6 + $0x290] sm:$0xf]  ;;  %v12160_v23 = vor.u32 %v14998_v19, %v12159_v9 }
 0x2bb   :  { %v15989_v41 = vadd.f32 %v7759_v43, %v7747_v13  ;;  %v11200_v15 = vor.u32 %v14758_v37, %v11199_v3  ;;  %v12759_v13 = vld [vmem:[#allocation6 + $0xf10] sm:$0xf]  ;;  %v11081_v3 = vld [vmem:[#allocation6 + $0x218] sm:$0xf0]  ;;  %v14803_v37 = vld [vmem:[#allocation6 + $0x474] sm:$0xf] }
 0x2bc   :  { %7991 = vmatpush.bf16.msra.mxu2 %v11480_v56  ;;  %v13240_v56 = vor.u32 %v15268_v31, %v13239_v24  ;;  %v14988_v31 = vld [vmem:[#allocation6 + $0xa34] sm:$0xf0] }
 0x2bd   :  { %8004 = vmatpush.bf16.msra.mxu3 %v11800_v38  ;;  %7966 = vmatmul.bf16.vlgmr.msra.gmra.mxu0 %v15861_v2  ;;  %v11280_v38 = vor.u32 %v14778_v29, %v11279_v28 }
 0x2be   :  { %8010 = vmatpush.bf16.msrb.mxu0 %v12400_v44  ;;  %7974 = vmatpush.bf16.msra.mxu1 %v11320_v39  ;;  %v15178_v44 = vld [vmem:[#allocation6 + $0x1024] sm:$0xf0]  ;;  %v12719_v39 = vld [vmem:[#allocation6 + $0xec0] sm:$0xf] }
 0x2bf   :  { %7992 = vmatmul.bf16.vlgmr.msra.gmra.mxu2 %v15865_v48  ;;  %v12880_v58 = vor.u32 %v15178_v44, %v12879_v50  ;;  %v12720_v36 = vor.u32 %v15138_v20, %v12719_v39  ;;  %v15378_v50 = vld [vmem:[#allocation6 + $0x1664] sm:$0xf0]  ;;  %v14733_v44 = vld [vmem:[#allocation6 + $0x244] sm:$0xf]  ;;  %v12599_v39 = vld [vmem:[#allocation6 + $0xdd0] sm:$0xf] }
 0x2c0   :  { %8036 = vmatpush.bf16.msrb.mxu2 %v13040_v21  ;;  %8005 = vmatmul.bf16.vlgmr.msra.gmra.mxu3 %v15867_v55  ;;  %v13199_v21 = vld [vmem:[#allocation6 + $0x1280] sm:$0xf]  ;;  %v15108_v20 = vld [vmem:[#allocation6 + $0xdf4] sm:$0xf0] }
 0x2c1   :  { %8049 = vmatpush.bf16.msrb.mxu3 %v13360_v45  ;;  %v14768_v45 = vld [vmem:[#allocation6 + $0x354] sm:$0xf0]  ;;  %v13200_v34 = vor.u32 %v15258_v42, %v13199_v21  ;;  %v11121_v21 = vld [vmem:[#allocation6 + $0x268] sm:$0xf0]  ;;  %v14813_v42 = vld [vmem:[#allocation6 + $0x4c4] sm:$0xf] }
 0x2c2   :  { %8011 = vmatpush.bf16.msrb.mxu0 %v12360_v57  ;;  %7975 = vmatpush.bf16.msra.mxu1 %v11280_v38  ;;  %v15991_v54 = vpop.f32.mrf.mxu2  ;;  %v11240_v12 = vor.u32 %v14768_v45, %v11239_v60  ;;  %v12839_v57 = vld [vmem:[#allocation6 + $0xfb0] sm:$0xf]  ;;  %v7761_v4 = vpop.f32.mrf.mxu0  ;;  %v13679_v38 = vld [vmem:[#allocation6 + $0x1640] sm:$0xf]  ;;  %v12120_v60 = vor.u32 %v14988_v31, %v12119_v25  ;;  %v11441_v45 = vld [vmem:[#allocation6 + $0x4e8] sm:$0xf0] }
 0x2c3   :  { %v15993_v63 = vpop.f32.mrf.mxu3  ;;  %v13680_v53 = vor.u32 %v15378_v50, %v13679_v38  ;;  %v11401_v4 = vld [vmem:[#allocation6 + $0x498] sm:$0xf0]  ;;  %v12559_v38 = vld [vmem:[#allocation6 + $0xd80] sm:$0xf]  ;;  %v15098_v50 = vld [vmem:[#allocation6 + $0xda4] sm:$0xf0] }
 0x2c4   :  { %8037 = vmatpush.bf16.msrb.mxu2 %v13000_v59  ;;  %v15168_v59 = vld [vmem:[#allocation6 + $0xfd4] sm:$0xf0] }
 0x2c5   :  { %8050 = vmatpush.bf16.msrb.mxu3 %v13320_v1  ;;  %v15248_v1 = vld [vmem:[#allocation6 + $0x1254] sm:$0xf0]  ;;  %v12840_v6 = vor.u32 %v15168_v59, %v12839_v57  ;;  %v11444_v59 = vor.u32 %v14813_v42, %v11441_v45  ;;  %v15338_v45 = vld [vmem:[#allocation6 + $0x1524] sm:$0xf0] }
 0x2c6   :  { %8012 = vmatpush.bf16.msrb.mxu0 %v12320_v22  ;;  %7976 = vmatpush.bf16.msra.mxu1 %v11240_v12  ;;  %v13160_v14 = vor.u32 %v15248_v1, %v13159_v62  ;;  %v15158_v22 = vld [vmem:[#allocation6 + $0xf84] sm:$0xf0]  ;;  %v13639_v12 = vld [vmem:[#allocation6 + $0x15f0] sm:$0xf]  ;;  %v15368_v57 = vld [vmem:[#allocation6 + $0x1614] sm:$0xf0] }
 0x2c7   :  { %v12800_v24 = vor.u32 %v15158_v22, %v12799_v26  ;;  %v14723_v1 = vld [vmem:[#allocation6 + $0x1f4] sm:$0xf]  ;;  %v13640_v9 = vor.u32 %v15368_v57, %v13639_v12  ;;  %v11404_v26 = vor.u32 %v14803_v37, %v11401_v4  ;;  %v3421_v12 = vperm.slane %v15979_v7, 3  ;;  %v12519_v57 = vld [vmem:[#allocation6 + $0xd30] sm:$0xf] }
 0x2c8   :  { %8038 = vmatpush.bf16.msrb.mxu2 %v12960_v35  ;;  %v13119_v35 = vld [vmem:[#allocation6 + $0x11e0] sm:$0xf]  ;;  %v11084_v19 = vor.u32 %v14723_v1, %v11081_v3  ;;  %v13479_v3 = vld [vmem:[#allocation6 + $0x14b0] sm:$0xf]  ;;  %v15328_v37 = vld [vmem:[#allocation6 + $0x14d4] sm:$0xf0] }
 0x2c9   :  { %8051 = vmatpush.bf16.msrb.mxu3 %v13280_v18  ;;  %v14748_v18 = vld [vmem:[#allocation6 + $0x2b4] sm:$0xf0]  ;;  %v13120_v28 = vor.u32 %v15238_v0, %v13119_v35  ;;  %v14713_v35 = vld [vmem:[#allocation6 + $0x1a4] sm:$0xf]  ;;  %v11041_v0 = vld [vmem:[#allocation6 + $0x1c8] sm:$0xf0] }
 0x2ca   :  { %8013 = vmatpush.bf16.msrb.mxu0 %v12280_v32  ;;  %7977 = vmatpush.bf16.msra.mxu1 %v11200_v15  ;;  %v7787_v29 = vpop.f32.mrf.mxu2  ;;  %v11160_v43 = vor.u32 %v14748_v18, %v11159_v16  ;;  %v15148_v32 = vld [vmem:[#allocation6 + $0xf34] sm:$0xf0]  ;;  %v15358_v15 = vld [vmem:[#allocation6 + $0x15c4] sm:$0xf0]  ;;  %v14793_v16 = vld [vmem:[#allocation6 + $0x424] sm:$0xf]  ;;  %v11044_v31 = vor.u32 %v14713_v35, %v11041_v0 }
 0x2cb   :  { %v7800_v33 = vpop.f32.mrf.mxu3  ;;  %v11361_v18 = vld [vmem:[#allocation6 + $0x448] sm:$0xf0]  ;;  %v15348_v29 = vld [vmem:[#allocation6 + $0x1574] sm:$0xf0]  ;;  %v11241_v7 = vld [vmem:[#allocation6 + $0x358] sm:$0xf0] }
 0x2cc   :  { %8039 = vmatpush.bf16.msrb.mxu2 %v12920_v30  ;;  %v13079_v30 = vld [vmem:[#allocation6 + $0x1190] sm:$0xf]  ;;  %v14783_v33 = vld [vmem:[#allocation6 + $0x3d4] sm:$0xf]  ;;  %v15078_v35 = vld [vmem:[#allocation6 + $0xd04] sm:$0xf0] }
 0x2cd   :  { %8052 = vmatpush.bf16.msrb.mxu3 %v13240_v56  ;;  %v15228_v56 = vld [vmem:[#allocation6 + $0x11b4] sm:$0xf0] }
 0x2ce   :  { %8014 = vmatpush.bf16.msrb.mxu0 %v12240_v46  ;;  %v15128_v46 = vld [vmem:[#allocation6 + $0xe94] sm:$0xf0]  ;;  %7978 = vmatpush.bf16.msra.mxu1 %v11160_v43  ;;  %v13080_v40 = vor.u32 %v15228_v56, %v13079_v30  ;;  %v11364_v43 = vor.u32 %v14793_v16, %v11361_v18  ;;  %v11001_v30 = vld [vmem:[#allocation6 + $0x178] sm:$0xf0]  ;;  %v13480_v18 = vor.u32 %v15328_v37, %v13479_v3 }
 0x2cf   :  { %v12680_v62 = vor.u32 %v15128_v46, %v12679_v47  ;;  %v11321_v56 = vld [vmem:[#allocation6 + $0x3f8] sm:$0xf0]  ;;  %v14693_v47 = vld [vmem:[#allocation6 + $0x104] sm:$0xf] }
 0x2d0   :  { %8040 = vmatpush.bf16.msrb.mxu2 %v12880_v58  ;;  %v12760_v58 = vor.u32 %v15148_v32, %v12759_v13  ;;  %v12600_v13 = vor.u32 %v15108_v20, %v12599_v39  ;;  %v14703_v32 = vld [vmem:[#allocation6 + $0x154] sm:$0xf]  ;;  %v11324_v46 = vor.u32 %v14783_v33, %v11321_v56  ;;  %v13439_v20 = vld [vmem:[#allocation6 + $0x1460] sm:$0xf]  ;;  %v15458_v33 = vld [vmem:[#allocation6 + $0x18e4] sm:$0xf0] }
 0x2d1   :  { %8053 = vmatpush.bf16.msrb.mxu3 %v13200_v34  ;;  %v11124_v34 = vor.u32 %v14733_v44, %v11121_v21  ;;  %7979 = vmatmul.bf16.vlgmr.msra.gmra.mxu1 %v15863_v61  ;;  %v11004_v42 = vor.u32 %v14703_v32, %v11001_v30  ;;  %v15068_v32 = vld [vmem:[#allocation6 + $0xcb4] sm:$0xf0]  ;;  %v13999_v30 = vld [vmem:[#allocation6 + $0x18c0] sm:$0xf] }
 0x2d2   :  { %8015 = vmatpush.bf16.msrb.mxu0 %v12200_v5  ;;  %8023 = vmatpush.bf16.msrb.mxu1 %v12720_v36  ;;  %v12639_v5 = vld [vmem:[#allocation6 + $0xe20] sm:$0xf] }
 0x2d4   :  { %8041 = vmatpush.bf16.msrb.mxu2 %v12840_v6  ;;  %v15118_v6 = vld [vmem:[#allocation6 + $0xe44] sm:$0xf0] }
 0x2d5   :  { %8054 = vmatpush.bf16.msrb.mxu3 %v13160_v14  ;;  %v13599_v14 = vld [vmem:[#allocation6 + $0x15a0] sm:$0xf]  ;;  %v12640_v22 = vor.u32 %v15118_v6, %v12639_v5 }
 0x2d6   :  { %8016 = vmatpush.bf16.msrb.mxu0 %v12160_v23  ;;  %8024 = vmatpush.bf16.msrb.mxu1 %v12680_v62  ;;  %v7772_v23 = vpop.f32.mrf.mxu1  ;;  %v13600_v25 = vor.u32 %v15358_v15, %v13599_v14  ;;  %v14763_v14 = vld [vmem:[#allocation6 + $0x334] sm:$0xf] }
 0x2d8   :  { %8042 = vmatpush.bf16.msrb.mxu2 %v12800_v24  ;;  %v7773_v24 = vadd.f32 %v7772_v23, %v15989_v41  ;;  %v15318_v23 = vld [vmem:[#allocation6 + $0x1484] sm:$0xf0] }
 0x2d9   :  { %8055 = vmatpush.bf16.msrb.mxu3 %v13120_v28  ;;  %v13559_v28 = vld [vmem:[#allocation6 + $0x1550] sm:$0xf] }
 0x2da   :  { %8017 = vmatpush.bf16.msrb.mxu0 %v12120_v60  ;;  %8025 = vmatpush.bf16.msrb.mxu1 %v12640_v22  ;;  %v7786_v36 = vadd.f32 %v15991_v54, %v7773_v24  ;;  %v7811_v44 = vpop.f32.mrf.mxu0  ;;  %v13560_v21 = vor.u32 %v15348_v29, %v13559_v28  ;;  %v13519_v60 = vld [vmem:[#allocation6 + $0x1500] sm:$0xf]  ;;  %v11281_v54 = vld [vmem:[#allocation6 + $0x3a8] sm:$0xf0]  ;;  %v11244_v24 = vor.u32 %v14763_v14, %v11241_v7  ;;  %v14753_v29 = vld [vmem:[#allocation6 + $0x2e4] sm:$0xf] }
 0x2db   :  { %v12479_v22 = vld [vmem:[#allocation6 + $0xce0] sm:$0xf]  ;;  %v10881_v28 = vld [vmem:[#allocation6 + $0x88] sm:$0xf0]  ;;  %v15123_v7 = vld [vmem:[#allocation6 + $0xe74] sm:$0xf] }
 0x2dc   :  { %8043 = vmatpush.bf16.msrb.mxu2 %v12760_v58  ;;  %v7799_v41 = vadd.f32 %v15993_v63, %v7786_v36  ;;  %v12560_v58 = vor.u32 %v15098_v50, %v12559_v38  ;;  %v13520_v63 = vor.u32 %v15338_v45, %v13519_v60  ;;  %v13440_v36 = vor.u32 %v15318_v23, %v13439_v20  ;;  %v13399_v38 = vld [vmem:[#allocation6 + $0x1410] sm:$0xf]  ;;  %v15308_v50 = vld [vmem:[#allocation6 + $0x1434] sm:$0xf0]  ;;  %v10841_v60 = vld [vmem:[#allocation6 + $0x38] sm:$0xf0] }
 0x2dd   :  { %8056 = vmatpush.bf16.msrb.mxu3 %v13080_v40  ;;  %8018 = vmatmul.bf16.vlgmr.msrb.gmra.mxu0 %v15882_v51  ;;  %v10961_v40 = vld [vmem:[#allocation6 + $0x128] sm:$0xf0]  ;;  %v14743_v45 = vld [vmem:[#allocation6 + $0x294] sm:$0xf]  ;;  %v14873_v20 = vld [vmem:[#allocation6 + $0x6a4] sm:$0xf] }
 0x2de   :  { %8062 = vmatpush.bf16.msra.mxu0 %v13680_v53  ;;  %8026 = vmatpush.bf16.msrb.mxu1 %v12600_v13  ;;  %v14773_v53 = vld [vmem:[#allocation6 + $0x384] sm:$0xf]  ;;  %v7774_v62 = vpop.f32.mrf.mxu1  ;;  %v10964_v1 = vor.u32 %v14693_v47, %v10961_v40  ;;  %v12439_v13 = vld [vmem:[#allocation6 + $0xc90] sm:$0xf]  ;;  %v11681_v23 = vld [vmem:[#allocation6 + $0x6c8] sm:$0xf0] }
 0x2df   :  { %8044 = vmatmul.bf16.vlgmr.msrb.gmra.mxu2 %v15880_v49  ;;  %v11284_v4 = vor.u32 %v14773_v53, %v11281_v54  ;;  %v14893_v40 = vld [vmem:[#allocation6 + $0x744] sm:$0xf]  ;;  %v11761_v53 = vld [vmem:[#allocation6 + $0x768] sm:$0xf0] }
 0x2e0   :  { %8088 = vmatpush.bf16.msra.mxu2 %v11124_v34  ;;  %8057 = vmatmul.bf16.vlgmr.msrb.gmra.mxu3 %v15890_v10  ;;  %v16002_v34 = vadd.f32 %v7811_v44, %v7799_v41  ;;  %v15053_v54 = vld [vmem:[#allocation6 + $0xc44] sm:$0xf]  ;;  %v12721_v62 = vld [vmem:[#allocation6 + $0xee8] sm:$0xf0] }
 0x2e1   :  { %8101 = vmatpush.bf16.msra.mxu3 %v11444_v59  ;;  %v15088_v59 = vld [vmem:[#allocation6 + $0xd54] sm:$0xf0] }
 0x2e2   :  { %8063 = vmatpush.bf16.msra.mxu0 %v13640_v9  ;;  %8027 = vmatpush.bf16.msrb.mxu1 %v12560_v58  ;;  %v7837_v5 = vpop.f32.mrf.mxu2  ;;  %v12520_v6 = vor.u32 %v15088_v59, %v12519_v57  ;;  %v14683_v9 = vld [vmem:[#allocation6 + $0xb4] sm:$0xf]  ;;  %v7813_v0 = vpop.f32.mrf.mxu0  ;;  %v11161_v58 = vld [vmem:[#allocation6 + $0x2b8] sm:$0xf0]  ;;  %v15133_v57 = vld [vmem:[#allocation6 + $0xec4] sm:$0xf]  ;;  %v13400_v59 = vor.u32 %v15308_v50, %v13399_v38 }
 0x2e3   :  { %v7838_v15 = vadd.f32 %v7837_v5, %v3421_v12  ;;  %v12401_v12 = vld [vmem:[#allocation6 + $0xc68] sm:$0xf0]  ;;  %v11164_v37 = vor.u32 %v14743_v45, %v11161_v58  ;;  %v15438_v0 = vld [vmem:[#allocation6 + $0x1844] sm:$0xf0]  ;;  %v14863_v38 = vld [vmem:[#allocation6 + $0x654] sm:$0xf] }
 0x2e4   :  { %8089 = vmatpush.bf16.msra.mxu2 %v11084_v19  ;;  %v10921_v19 = vld [vmem:[#allocation6 + $0xd8] sm:$0xf0]  ;;  %v12404_v5 = vor.u32 %v15053_v54, %v12401_v12  ;;  %v14853_v54 = vld [vmem:[#allocation6 + $0x604] sm:$0xf]  ;;  %v11601_v12 = vld [vmem:[#allocation6 + $0x628] sm:$0xf0] }
 0x2e5   :  { %8102 = vmatpush.bf16.msra.mxu3 %v11404_v26  ;;  %v7850_v26 = vpop.f32.mrf.mxu3  ;;  %v10924_v39 = vor.u32 %v14683_v9, %v10921_v19  ;;  %v11721_v9 = vld [vmem:[#allocation6 + $0x718] sm:$0xf0]  ;;  %v12724_v19 = vor.u32 %v15133_v57, %v12721_v62  ;;  %v15013_v62 = vld [vmem:[#allocation6 + $0xb04] sm:$0xf] }
 0x2e6   :  { %8064 = vmatpush.bf16.msra.mxu0 %v13600_v25  ;;  %v16005_v16 = vadd.f32 %v7850_v26, %v7838_v15  ;;  %8028 = vmatpush.bf16.msrb.mxu1 %v12520_v6  ;;  %v12480_v25 = vor.u32 %v15078_v35, %v12479_v22  ;;  %v14883_v6 = vld [vmem:[#allocation6 + $0x6f4] sm:$0xf]  ;;  %v12361_v26 = vld [vmem:[#allocation6 + $0xc18] sm:$0xf0]  ;;  %v13919_v35 = vld [vmem:[#allocation6 + $0x1820] sm:$0xf] }
 0x2e7   :  { %v15043_v15 = vld [vmem:[#allocation6 + $0xbf4] sm:$0xf]  ;;  %v12681_v22 = vld [vmem:[#allocation6 + $0xe98] sm:$0xf0] }
 0x2e8   :  { %8090 = vmatpush.bf16.msra.mxu2 %v11044_v31  ;;  %v14673_v31 = vld [vmem:[#allocation6 + $0x64] sm:$0xf]  ;;  %v11641_v50 = vld [vmem:[#allocation6 + $0x678] sm:$0xf0] }
 0x2e9   :  { %8103 = vmatpush.bf16.msra.mxu3 %v11364_v43  ;;  %v11201_v43 = vld [vmem:[#allocation6 + $0x308] sm:$0xf0]  ;;  %v10884_v56 = vor.u32 %v14673_v31, %v10881_v28  ;;  %v15033_v31 = vld [vmem:[#allocation6 + $0xba4] sm:$0xf]  ;;  %v12601_v45 = vld [vmem:[#allocation6 + $0xdf8] sm:$0xf0] }
 0x2ea   :  { %8065 = vmatpush.bf16.msra.mxu0 %v13560_v21  ;;  %8029 = vmatpush.bf16.msrb.mxu1 %v12480_v25  ;;  %v11204_v44 = vor.u32 %v14753_v29, %v11201_v43  ;;  %v7839_v41 = vpop.f32.mrf.mxu2  ;;  %v12440_v21 = vor.u32 %v15068_v32, %v12439_v13  ;;  %v13920_v25 = vor.u32 %v15438_v0, %v13919_v35  ;;  %v12321_v28 = vld [vmem:[#allocation6 + $0xbc8] sm:$0xf0]  ;;  %v15113_v29 = vld [vmem:[#allocation6 + $0xe24] sm:$0xf]  ;;  %v13879_v13 = vld [vmem:[#allocation6 + $0x17d0] sm:$0xf] }
 0x2eb   :  { %v12641_v43 = vld [vmem:[#allocation6 + $0xe48] sm:$0xf0]  ;;  %v15428_v32 = vld [vmem:[#allocation6 + $0x17f4] sm:$0xf0]  ;;  %v15083_v35 = vld [vmem:[#allocation6 + $0xd34] sm:$0xf] }
 0x2ec   :  { %8091 = vmatpush.bf16.msra.mxu2 %v11004_v42  ;;  %v14663_v42 = vld [vmem:[#allocation6 + $0x14] sm:$0xf]  ;;  %v13880_v41 = vor.u32 %v15428_v32, %v13879_v13  ;;  %v14993_v13 = vld [vmem:[#allocation6 + $0xa64] sm:$0xf]  ;;  %v12161_v32 = vld [vmem:[#allocation6 + $0xa88] sm:$0xf0] }
 0x2ed   :  { %8104 = vmatpush.bf16.msra.mxu3 %v11324_v46  ;;  %v7852_v47 = vpop.f32.mrf.mxu3  ;;  %v14000_v46 = vor.u32 %v15458_v33, %v13999_v30  ;;  %v10844_v3 = vor.u32 %v14663_v42, %v10841_v60  ;;  %v12281_v42 = vld [vmem:[#allocation6 + $0xb78] sm:$0xf0]  ;;  %v15103_v60 = vld [vmem:[#allocation6 + $0xdd4] sm:$0xf] }
 0x2ee   :  { %8066 = vmatpush.bf16.msra.mxu0 %v13520_v63  ;;  %v13959_v63 = vld [vmem:[#allocation6 + $0x1870] sm:$0xf]  ;;  %8030 = vmatpush.bf16.msrb.mxu1 %v12440_v21  ;;  %v7824_v30 = vpop.f32.mrf.mxu1  ;;  %v15023_v21 = vld [vmem:[#allocation6 + $0xb54] sm:$0xf]  ;;  %v13839_v47 = vld [vmem:[#allocation6 + $0x1780] sm:$0xf]  ;;  %v12604_v57 = vor.u32 %v15103_v60, %v12601_v45 }
 0x2ef   :  { %v16012_v33 = vadd.f32 %v7824_v30, %v16002_v34  ;;  %v15073_v30 = vld [vmem:[#allocation6 + $0xce4] sm:$0xf]  ;;  %v11481_v60 = vld [vmem:[#allocation6 + $0x538] sm:$0xf0] }
 0x2f0   :  { %8092 = vmatpush.bf16.msra.mxu2 %v10964_v1  ;;  %v15448_v1 = vld [vmem:[#allocation6 + $0x1894] sm:$0xf0] }
 0x2f1   :  { %8105 = vmatpush.bf16.msra.mxu3 %v11284_v4  ;;  %v11764_v4 = vor.u32 %v14893_v40, %v11761_v53  ;;  %v13960_v14 = vor.u32 %v15448_v1, %v13959_v63  ;;  %8031 = vmatmul.bf16.vlgmr.msrb.gmra.mxu1 %v15884_v52  ;;  %v11644_v40 = vor.u32 %v14863_v38, %v11641_v50  ;;  %v12241_v63 = vld [vmem:[#allocation6 + $0xb28] sm:$0xf0]  ;;  %v15093_v1 = vld [vmem:[#allocation6 + $0xd84] sm:$0xf]  ;;  %v15388_v38 = vld [vmem:[#allocation6 + $0x16b4] sm:$0xf0] }
 0x2f2   :  { %8067 = vmatpush.bf16.msra.mxu0 %v13480_v18  ;;  %8075 = vmatpush.bf16.msra.mxu1 %v14000_v46  ;;  %v11724_v18 = vor.u32 %v14883_v6, %v11721_v9  ;;  %v15418_v46 = vld [vmem:[#allocation6 + $0x17a4] sm:$0xf0]  ;;  %v12284_v53 = vor.u32 %v15023_v21, %v12281_v42  ;;  %v11604_v6 = vor.u32 %v14853_v54, %v11601_v12  ;;  %v14843_v9 = vld [vmem:[#allocation6 + $0x5b4] sm:$0xf]  ;;  %v14973_v50 = vld [vmem:[#allocation6 + $0x9c4] sm:$0xf] }
 0x2f3   :  { %v12164_v21 = vor.u32 %v14993_v13, %v12161_v32  ;;  %v14823_v42 = vld [vmem:[#allocation6 + $0x514] sm:$0xf] }
 0x2f4   :  { %8093 = vmatpush.bf16.msra.mxu2 %v10924_v39  ;;  %v12364_v39 = vor.u32 %v15043_v15, %v12361_v26 }
 0x2f5   :  { %8106 = vmatpush.bf16.msra.mxu3 %v11244_v24  ;;  %v12684_v24 = vor.u32 %v15123_v7, %v12681_v22  ;;  %v15003_v7 = vld [vmem:[#allocation6 + $0xab4] sm:$0xf]  ;;  %v12201_v22 = vld [vmem:[#allocation6 + $0xad8] sm:$0xf0] }
 0x2f6   :  { %8068 = vmatpush.bf16.msra.mxu0 %v13440_v36  ;;  %8076 = vmatpush.bf16.msra.mxu1 %v13960_v14  ;;  %v11684_v36 = vor.u32 %v14873_v20, %v11681_v23  ;;  %v15398_v20 = vld [vmem:[#allocation6 + $0x1704] sm:$0xf0] }
 0x2f8   :  { %8094 = vmatpush.bf16.msra.mxu2 %v10884_v56  ;;  %v12324_v56 = vor.u32 %v15033_v31, %v12321_v28  ;;  %v14833_v31 = vld [vmem:[#allocation6 + $0x564] sm:$0xf]  ;;  %v11521_v28 = vld [vmem:[#allocation6 + $0x588] sm:$0xf0] }
 0x2f9   :  { %8107 = vmatpush.bf16.msra.mxu3 %v11204_v44  ;;  %v12644_v44 = vor.u32 %v15113_v29, %v12641_v43 }
 0x2fa   :  { %8069 = vmatpush.bf16.msra.mxu0 %v13400_v59  ;;  %8077 = vmatpush.bf16.msra.mxu1 %v13920_v25  ;;  %v7863_v58 = vpop.f32.mrf.mxu0  ;;  %v13840_v59 = vor.u32 %v15418_v46, %v13839_v47  ;;  %v12204_v25 = vor.u32 %v15003_v7, %v12201_v22  ;;  %v13001_v7 = vld [vmem:[#allocation6 + $0x1118] sm:$0xf0] }
 0x2fb   :  { %v16015_v34 = vadd.f32 %v7863_v58, %v16005_v16  ;;  %v12244_v16 = vor.u32 %v15013_v62, %v12241_v63  ;;  %v14983_v58 = vld [vmem:[#allocation6 + $0xa14] sm:$0xf]  ;;  %v13041_v62 = vld [vmem:[#allocation6 + $0x1168] sm:$0xf0]  ;;  %v15373_v63 = vld [vmem:[#allocation6 + $0x1644] sm:$0xf] }
 0x2fc   :  { %8095 = vmatpush.bf16.msra.mxu2 %v10844_v3  ;;  %v12561_v3 = vld [vmem:[#allocation6 + $0xda8] sm:$0xf0] }
 0x2fd   :  { %8108 = vmatpush.bf16.msra.mxu3 %v11164_v37  ;;  %8070 = vmatmul.bf16.vlgmr.msra.gmra.mxu0 %v15898_v11  ;;  %v13799_v37 = vld [vmem:[#allocation6 + $0x1730] sm:$0xf]  ;;  %v12564_v14 = vor.u32 %v15093_v1, %v12561_v3  ;;  %v13681_v1 = vld [vmem:[#allocation6 + $0x1668] sm:$0xf0]  ;;  %v15453_v3 = vld [vmem:[#allocation6 + $0x18c4] sm:$0xf] }
 0x2fe   :  { %8114 = vmatpush.bf16.msrb.mxu0 %v11764_v4  ;;  %8078 = vmatpush.bf16.msra.mxu1 %v13880_v41  ;;  %v15408_v4 = vld [vmem:[#allocation6 + $0x1754] sm:$0xf0]  ;;  %v11524_v41 = vor.u32 %v14833_v31, %v11521_v28 }
 0x2ff   :  { %8096 = vmatmul.bf16.vlgmr.msra.gmra.mxu2 %v15861_v2  ;;  %v13800_v26 = vor.u32 %v15408_v4, %v13799_v37  ;;  %v11484_v37 = vor.u32 %v14823_v42, %v11481_v60  ;;  %v14001_v4 = vld [vmem:[#allocation6 + $0x18e8] sm:$0xf0] }
 0x300   :  { %8140 = vmatpush.bf16.msrb.mxu2 %v12404_v5  ;;  %8109 = vmatmul.bf16.vlgmr.msra.gmra.mxu3 %v15863_v61  ;;  %v7826_v5 = vpop.f32.mrf.mxu1  ;;  %v14004_v22 = vor.u32 %v15453_v3, %v14001_v4  ;;  %v12881_v4 = vld [vmem:[#allocation6 + $0x1028] sm:$0xf0] }
 0x301   :  { %8153 = vmatpush.bf16.msrb.mxu3 %v12724_v19  ;;  %v11561_v19 = vld [vmem:[#allocation6 + $0x5d8] sm:$0xf0]  ;;  %v14963_v5 = vld [vmem:[#allocation6 + $0x974] sm:$0xf] }
 0x302   :  { %8115 = vmatpush.bf16.msrb.mxu0 %v11724_v18  ;;  %8079 = vmatpush.bf16.msra.mxu1 %v13840_v59  ;;  %v16017_v15 = vpop.f32.mrf.mxu2  ;;  %v12521_v18 = vld [vmem:[#allocation6 + $0xd58] sm:$0xf0]  ;;  %v7865_v23 = vpop.f32.mrf.mxu0  ;;  %v15213_v59 = vld [vmem:[#allocation6 + $0x1144] sm:$0xf] }
 0x303   :  { %v16019_v0 = vpop.f32.mrf.mxu3  ;;  %v12524_v29 = vor.u32 %v15083_v35, %v12521_v18  ;;  %v15363_v18 = vld [vmem:[#allocation6 + $0x15f4] sm:$0xf]  ;;  %v13961_v23 = vld [vmem:[#allocation6 + $0x1898] sm:$0xf0] }
 0x304   :  { %8141 = vmatpush.bf16.msrb.mxu2 %v12364_v39  ;;  %v13759_v39 = vld [vmem:[#allocation6 + $0x16e0] sm:$0xf] }
 0x305   :  { %8154 = vmatpush.bf16.msrb.mxu3 %v12684_v24  ;;  %v11564_v24 = vor.u32 %v14843_v9, %v11561_v19  ;;  %v13760_v43 = vor.u32 %v15398_v20, %v13759_v39  ;;  %v13044_v19 = vor.u32 %v15213_v59, %v13041_v62  ;;  %v13641_v39 = vld [vmem:[#allocation6 + $0x1618] sm:$0xf0]  ;;  %v15443_v20 = vld [vmem:[#allocation6 + $0x1874] sm:$0xf]  ;;  %v14933_v59 = vld [vmem:[#allocation6 + $0x884] sm:$0xf] }
 0x306   :  { %8116 = vmatpush.bf16.msrb.mxu0 %v11684_v36  ;;  %8080 = vmatpush.bf16.msra.mxu1 %v13800_v26  ;;  %v12481_v36 = vld [vmem:[#allocation6 + $0xd08] sm:$0xf0]  ;;  %v15203_v26 = vld [vmem:[#allocation6 + $0x10f4] sm:$0xf]  ;;  %v13644_v28 = vor.u32 %v15363_v18, %v13641_v39  ;;  %v13964_v13 = vor.u32 %v15443_v20, %v13961_v23  ;;  %v12841_v39 = vld [vmem:[#allocation6 + $0xfd8] sm:$0xf0] }
 0x307   :  { %v12484_v45 = vor.u32 %v15073_v30, %v12481_v36  ;;  %v13004_v31 = vor.u32 %v15203_v26, %v13001_v7  ;;  %v15353_v30 = vld [vmem:[#allocation6 + $0x15a4] sm:$0xf]  ;;  %v13601_v36 = vld [vmem:[#allocation6 + $0x15c8] sm:$0xf0]  ;;  %v14923_v26 = vld [vmem:[#allocation6 + $0x834] sm:$0xf] }
 0x308   :  { %8142 = vmatpush.bf16.msrb.mxu2 %v12324_v56  ;;  %v13719_v56 = vld [vmem:[#allocation6 + $0x1690] sm:$0xf]  ;;  %v13604_v60 = vor.u32 %v15353_v30, %v13601_v36  ;;  %v11921_v62 = vld [vmem:[#allocation6 + $0x8a8] sm:$0xf0]  ;;  %v11881_v7 = vld [vmem:[#allocation6 + $0x858] sm:$0xf0] }
 0x309   :  { %8155 = vmatpush.bf16.msrb.mxu3 %v12644_v44  ;;  %v12081_v44 = vld [vmem:[#allocation6 + $0x9e8] sm:$0xf0]  ;;  %v13720_v46 = vor.u32 %v15388_v38, %v13719_v56  ;;  %v15433_v56 = vld [vmem:[#allocation6 + $0x1824] sm:$0xf]  ;;  %v15163_v18 = vld [vmem:[#allocation6 + $0xfb4] sm:$0xf] }
 0x30a   :  { %8117 = vmatpush.bf16.msrb.mxu0 %v11644_v40  ;;  %8081 = vmatpush.bf16.msra.mxu1 %v13760_v43  ;;  %v7891_v47 = vpop.f32.mrf.mxu2  ;;  %v12121_v40 = vld [vmem:[#allocation6 + $0xa38] sm:$0xf0]  ;;  %v12084_v12 = vor.u32 %v14973_v50, %v12081_v44  ;;  %v12961_v43 = vld [vmem:[#allocation6 + $0x10c8] sm:$0xf0]  ;;  %v14943_v50 = vld [vmem:[#allocation6 + $0x8d4] sm:$0xf]  ;;  %v12844_v36 = vor.u32 %v15163_v18, %v12841_v39 }
 0x30b   :  { %v7904_v54 = vpop.f32.mrf.mxu3  ;;  %v13921_v38 = vld [vmem:[#allocation6 + $0x1848] sm:$0xf0]  ;;  %v11961_v44 = vld [vmem:[#allocation6 + $0x8f8] sm:$0xf0] }
 0x30c   :  { %8143 = vmatpush.bf16.msrb.mxu2 %v12284_v53  ;;  %v15063_v53 = vld [vmem:[#allocation6 + $0xc94] sm:$0xf]  ;;  %v12921_v47 = vld [vmem:[#allocation6 + $0x1078] sm:$0xf0] }
 0x30d   :  { %8156 = vmatpush.bf16.msrb.mxu3 %v12604_v57  ;;  %v12441_v57 = vld [vmem:[#allocation6 + $0xcb8] sm:$0xf0]  ;;  %v15423_v54 = vld [vmem:[#allocation6 + $0x17d4] sm:$0xf] }
 0x30e   :  { %8118 = vmatpush.bf16.msrb.mxu0 %v11604_v6  ;;  %v12041_v6 = vld [vmem:[#allocation6 + $0x998] sm:$0xf0]  ;;  %8082 = vmatpush.bf16.msra.mxu1 %v13720_v46  ;;  %v12444_v9 = vor.u32 %v15063_v53, %v12441_v57  ;;  %v13924_v46 = vor.u32 %v15433_v56, %v13921_v38  ;;  %v15153_v38 = vld [vmem:[#allocation6 + $0xf64] sm:$0xf] }
 0x30f   :  { %v12044_v35 = vor.u32 %v14963_v5, %v12041_v6  ;;  %v13561_v53 = vld [vmem:[#allocation6 + $0x1578] sm:$0xf0]  ;;  %v11924_v6 = vor.u32 %v14933_v59, %v11921_v62 }
 0x310   :  { %8144 = vmatpush.bf16.msrb.mxu2 %v12244_v16  ;;  %v12124_v16 = vor.u32 %v14983_v58, %v12121_v40  ;;  %v11964_v58 = vor.u32 %v14943_v50, %v11961_v44  ;;  %v15343_v40 = vld [vmem:[#allocation6 + $0x1554] sm:$0xf]  ;;  %v13881_v57 = vld [vmem:[#allocation6 + $0x17f8] sm:$0xf0]  ;;  %v12801_v50 = vld [vmem:[#allocation6 + $0xf88] sm:$0xf0] }
 0x311   :  { %8157 = vmatpush.bf16.msrb.mxu3 %v12564_v14  ;;  %v13684_v14 = vor.u32 %v15373_v63, %v13681_v1  ;;  %8083 = vmatmul.bf16.vlgmr.msra.gmra.mxu1 %v15905_v27  ;;  %v13564_v3 = vor.u32 %v15343_v40, %v13561_v53  ;;  %v13884_v5 = vor.u32 %v15423_v54, %v13881_v57  ;;  %v13361_v40 = vld [vmem:[#allocation6 + $0x13e8] sm:$0xf0]  ;;  %v12761_v57 = vld [vmem:[#allocation6 + $0xf38] sm:$0xf0] }
 0x312   :  { %8119 = vmatpush.bf16.msrb.mxu0 %v11564_v24  ;;  %8127 = vmatpush.bf16.msrb.mxu1 %v12084_v12  ;;  %v14953_v24 = vld [vmem:[#allocation6 + $0x924] sm:$0xf]  ;;  %v12804_v53 = vor.u32 %v15153_v38, %v12801_v50 }
 0x314   :  { %8145 = vmatpush.bf16.msrb.mxu2 %v12204_v25  ;;  %v12001_v25 = vld [vmem:[#allocation6 + $0x948] sm:$0xf0] }
 0x315   :  { %8158 = vmatpush.bf16.msrb.mxu3 %v12524_v29  ;;  %v15193_v29 = vld [vmem:[#allocation6 + $0x10a4] sm:$0xf]  ;;  %v12004_v32 = vor.u32 %v14953_v24, %v12001_v25  ;;  %v11884_v24 = vor.u32 %v14923_v26, %v11881_v7  ;;  %v15323_v25 = vld [vmem:[#allocation6 + $0x14b4] sm:$0xf]  ;;  %v14979_v7 = vld [vmem:[#allocation6 + $0x9ec] sm:$0xf0] }
 0x316   :  { %8120 = vmatpush.bf16.msrb.mxu0 %v11524_v41  ;;  %8128 = vmatpush.bf16.msrb.mxu1 %v12044_v35  ;;  %v7876_v41 = vpop.f32.mrf.mxu1  ;;  %v12964_v42 = vor.u32 %v15193_v29, %v12961_v43  ;;  %v13801_v43 = vld [vmem:[#allocation6 + $0x1758] sm:$0xf0] }
 0x318   :  { %8146 = vmatpush.bf16.msrb.mxu2 %v12164_v21  ;;  %v7877_v21 = vadd.f32 %v7876_v41, %v16015_v34 }
 0x319   :  { %8159 = vmatpush.bf16.msrb.mxu3 %v12484_v45  ;;  %v15183_v45 = vld [vmem:[#allocation6 + $0x1054] sm:$0xf] }
 0x31a   :  { %8121 = vmatpush.bf16.msrb.mxu0 %v11484_v37  ;;  %8129 = vmatpush.bf16.msrb.mxu1 %v12004_v32  ;;  %v7890_v12 = vadd.f32 %v16017_v15, %v7877_v21  ;;  %v7915_v63 = vpop.f32.mrf.mxu0  ;;  %v12924_v1 = vor.u32 %v15183_v45, %v12921_v47  ;;  %v15173_v37 = vld [vmem:[#allocation6 + $0x1004] sm:$0xf]  ;;  %v11841_v32 = vld [vmem:[#allocation6 + $0x808] sm:$0xf0]  ;;  %v14903_v47 = vld [vmem:[#allocation6 + $0x794] sm:$0xf] }
 0x31b   :  { %v15313_v21 = vld [vmem:[#allocation6 + $0x1464] sm:$0xf]  ;;  %v13761_v45 = vld [vmem:[#allocation6 + $0x1708] sm:$0xf0] }
 0x31c   :  { %8147 = vmatpush.bf16.msrb.mxu2 %v12124_v16  ;;  %v7903_v34 = vadd.f32 %v16019_v0, %v7890_v12  ;;  %v15333_v16 = vld [vmem:[#allocation6 + $0x1504] sm:$0xf]  ;;  %v12884_v0 = vor.u32 %v15173_v37, %v12881_v4  ;;  %v15143_v12 = vld [vmem:[#allocation6 + $0xf14] sm:$0xf] }
 0x31d   :  { %8160 = vmatpush.bf16.msrb.mxu3 %v12444_v9  ;;  %8122 = vmatmul.bf16.vlgmr.msrb.gmra.mxu0 %v15865_v48  ;;  %v13521_v9 = vld [vmem:[#allocation6 + $0x1528] sm:$0xf0]  ;;  %v12764_v26 = vor.u32 %v15143_v12, %v12761_v57 }
 0x31e   :  { %8166 = vmatpush.bf16.msra.mxu0 %v13044_v19  ;;  %8130 = vmatpush.bf16.msrb.mxu1 %v11964_v58  ;;  %v15413_v19 = vld [vmem:[#allocation6 + $0x1784] sm:$0xf]  ;;  %v16028_v15 = vadd.f32 %v7915_v63, %v7903_v34  ;;  %v13524_v35 = vor.u32 %v15333_v16, %v13521_v9  ;;  %v15303_v34 = vld [vmem:[#allocation6 + $0x1414] sm:$0xf]  ;;  %v14739_v16 = vld [vmem:[#allocation6 + $0x26c] sm:$0xf0] }
 0x31f   :  { %8148 = vmatmul.bf16.vlgmr.msrb.gmra.mxu2 %v15882_v51  ;;  %v15293_v58 = vld [vmem:[#allocation6 + $0x13c4] sm:$0xf]  ;;  %v11767_v9 = vld [vmem:[#allocation6 + $0x748] sm:$0xf] }
 0x320   :  { %8192 = vmatpush.bf16.msra.mxu2 %v13684_v14  ;;  %8161 = vmatmul.bf16.vlgmr.msrb.gmra.mxu3 %v15884_v52  ;;  %v13841_v14 = vld [vmem:[#allocation6 + $0x17a8] sm:$0xf0]  ;;  %v13364_v4 = vor.u32 %v15293_v58, %v13361_v40  ;;  %v15263_v58 = vld [vmem:[#allocation6 + $0x12d4] sm:$0xf]  ;;  %v13241_v40 = vld [vmem:[#allocation6 + $0x12f8] sm:$0xf0] }
 0x321   :  { %8205 = vmatpush.bf16.msra.mxu3 %v14004_v22  ;;  %v7878_v22 = vpop.f32.mrf.mxu1  ;;  %v13844_v20 = vor.u32 %v15413_v19, %v13841_v14  ;;  %v14899_v19 = vld [vmem:[#allocation6 + $0x76c] sm:$0xf0]  ;;  %v12087_v14 = vld [vmem:[#allocation6 + $0x9c8] sm:$0xf] }
 0x322   :  { %8167 = vmatpush.bf16.msra.mxu0 %v13004_v31  ;;  %8131 = vmatpush.bf16.msrb.mxu1 %v11924_v6  ;;  %v16030_v23 = vpop.f32.mrf.mxu2  ;;  %v13481_v31 = vld [vmem:[#allocation6 + $0x14d8] sm:$0xf0]  ;;  %v7917_v30 = vpop.f32.mrf.mxu0  ;;  %v11127_v6 = vld [vmem:[#allocation6 + $0x248] sm:$0xf]  ;;  %v15283_v22 = vld [vmem:[#allocation6 + $0x1374] sm:$0xf] }
 0x323   :  { %v16032_v29 = vpop.f32.mrf.mxu3  ;;  %v13484_v56 = vor.u32 %v15323_v25, %v13481_v31  ;;  %v11128_v39 = vor.u32 %v14739_v16, %v11127_v6  ;;  %v14729_v25 = vld [vmem:[#allocation6 + $0x21c] sm:$0xf0]  ;;  %v12088_v31 = vor.u32 %v14979_v7, %v12087_v14  ;;  %v15253_v6 = vld [vmem:[#allocation6 + $0x1284] sm:$0xf]  ;;  %v13201_v16 = vld [vmem:[#allocation6 + $0x12a8] sm:$0xf0] }
 0x324   :  { %8193 = vmatpush.bf16.msra.mxu2 %v13644_v28  ;;  %v15403_v28 = vld [vmem:[#allocation6 + $0x1734] sm:$0xf]  ;;  %v14969_v30 = vld [vmem:[#allocation6 + $0x99c] sm:$0xf0]  ;;  %v14699_v7 = vld [vmem:[#allocation6 + $0x12c] sm:$0xf0] }
 0x325   :  { %8206 = vmatpush.bf16.msra.mxu3 %v13964_v13  ;;  %v14913_v13 = vld [vmem:[#allocation6 + $0x7e4] sm:$0xf]  ;;  %v13804_v44 = vor.u32 %v15403_v28, %v13801_v43  ;;  %v11727_v43 = vld [vmem:[#allocation6 + $0x6f8] sm:$0xf] }
 0x326   :  { %8168 = vmatpush.bf16.msra.mxu0 %v12964_v42  ;;  %8132 = vmatpush.bf16.msrb.mxu1 %v11884_v24  ;;  %v11844_v41 = vor.u32 %v14913_v13, %v11841_v32  ;;  %v13441_v42 = vld [vmem:[#allocation6 + $0x1488] sm:$0xf0]  ;;  %v11087_v24 = vld [vmem:[#allocation6 + $0x1f8] sm:$0xf]  ;;  %v14889_v13 = vld [vmem:[#allocation6 + $0x71c] sm:$0xf0] }
 0x327   :  { %v13444_v54 = vor.u32 %v15313_v21, %v13441_v42  ;;  %v12047_v32 = vld [vmem:[#allocation6 + $0x978] sm:$0xf]  ;;  %v11088_v38 = vor.u32 %v14729_v25, %v11087_v24  ;;  %v11728_v50 = vor.u32 %v14889_v13, %v11727_v43  ;;  %v13161_v24 = vld [vmem:[#allocation6 + $0x1258] sm:$0xf0]  ;;  %v14689_v43 = vld [vmem:[#allocation6 + $0xdc] sm:$0xf0] }
 0x328   :  { %8194 = vmatpush.bf16.msra.mxu2 %v13604_v60  ;;  %v15393_v60 = vld [vmem:[#allocation6 + $0x16e4] sm:$0xf]  ;;  %v12048_v21 = vor.u32 %v14969_v30, %v12047_v32 }
 0x329   :  { %8207 = vmatpush.bf16.msra.mxu3 %v13924_v46  ;;  %v11801_v46 = vld [vmem:[#allocation6 + $0x7b8] sm:$0xf0]  ;;  %v13764_v59 = vor.u32 %v15393_v60, %v13761_v45  ;;  %v11687_v60 = vld [vmem:[#allocation6 + $0x6a8] sm:$0xf]  ;;  %v14879_v45 = vld [vmem:[#allocation6 + $0x6cc] sm:$0xf0] }
 0x32a   :  { %8169 = vmatpush.bf16.msra.mxu0 %v12924_v1  ;;  %8133 = vmatpush.bf16.msrb.mxu1 %v11844_v41  ;;  %v7943_v62 = vpop.f32.mrf.mxu2  ;;  %v11804_v63 = vor.u32 %v14903_v47, %v11801_v46  ;;  %v13401_v1 = vld [vmem:[#allocation6 + $0x1438] sm:$0xf0]  ;;  %v14719_v41 = vld [vmem:[#allocation6 + $0x1cc] sm:$0xf0]  ;;  %v12007_v47 = vld [vmem:[#allocation6 + $0x928] sm:$0xf]  ;;  %v11688_v57 = vor.u32 %v14879_v45, %v11687_v60 }
 0x32b   :  { %v7956_v37 = vpop.f32.mrf.mxu3  ;;  %v14959_v46 = vld [vmem:[#allocation6 + $0x94c] sm:$0xf0]  ;;  %v14709_v62 = vld [vmem:[#allocation6 + $0x17c] sm:$0xf0] }
 0x32c   :  { %8195 = vmatpush.bf16.msra.mxu2 %v13564_v3  ;;  %v15383_v3 = vld [vmem:[#allocation6 + $0x1694] sm:$0xf]  ;;  %v11967_v37 = vld [vmem:[#allocation6 + $0x8d8] sm:$0xf] }
 0x32d   :  { %8208 = vmatpush.bf16.msra.mxu3 %v13884_v5  ;;  %v13721_v5 = vld [vmem:[#allocation6 + $0x16b8] sm:$0xf0] }
 0x32e   :  { %8170 = vmatpush.bf16.msra.mxu0 %v12884_v0  ;;  %v13321_v0 = vld [vmem:[#allocation6 + $0x1398] sm:$0xf0]  ;;  %8134 = vmatpush.bf16.msrb.mxu1 %v11804_v63  ;;  %v13724_v18 = vor.u32 %v15383_v3, %v13721_v5  ;;  %v12008_v63 = vor.u32 %v14959_v46, %v12007_v47  ;;  %v14869_v3 = vld [vmem:[#allocation6 + $0x67c] sm:$0xf0]  ;;  %v10887_v47 = vld [vmem:[#allocation6 + $0x68] sm:$0xf] }
 0x32f   :  { %v13324_v28 = vor.u32 %v15283_v22, %v13321_v0  ;;  %v14949_v5 = vld [vmem:[#allocation6 + $0x8fc] sm:$0xf0]  ;;  %v13204_v0 = vor.u32 %v15253_v6, %v13201_v16  ;;  %v14679_v46 = vld [vmem:[#allocation6 + $0x8c] sm:$0xf0] }
 0x330   :  { %8196 = vmatpush.bf16.msra.mxu2 %v13524_v35  ;;  %v13404_v35 = vor.u32 %v15303_v34, %v13401_v1  ;;  %v13244_v34 = vor.u32 %v15263_v58, %v13241_v40  ;;  %v11647_v1 = vld [vmem:[#allocation6 + $0x658] sm:$0xf]  ;;  %v11968_v22 = vor.u32 %v14949_v5, %v11967_v37 }
 0x331   :  { %8209 = vmatpush.bf16.msra.mxu3 %v13844_v20  ;;  %v11768_v20 = vor.u32 %v14899_v19, %v11767_v9  ;;  %8135 = vmatmul.bf16.vlgmr.msrb.gmra.mxu1 %v15867_v55  ;;  %v11648_v14 = vor.u32 %v14869_v3, %v11647_v1  ;;  %v10888_v1 = vor.u32 %v14679_v46, %v10887_v47  ;;  %v10847_v37 = vld [vmem:[#allocation6 + $0x18] sm:$0xf]  ;;  %v15289_v47 = vld [vmem:[#allocation6 + $0x139c] sm:$0xf0]  ;;  %v11367_v46 = vld [vmem:[#allocation6 + $0x428] sm:$0xf] }
 0x332   :  { %8171 = vmatpush.bf16.msra.mxu0 %v12844_v36  ;;  %8179 = vmatpush.bf16.msra.mxu1 %v13364_v4  ;;  %v15273_v36 = vld [vmem:[#allocation6 + $0x1324] sm:$0xf] }
 0x334   :  { %8197 = vmatpush.bf16.msra.mxu2 %v13484_v56  ;;  %v13281_v56 = vld [vmem:[#allocation6 + $0x1348] sm:$0xf0] }
 0x335   :  { %8210 = vmatpush.bf16.msra.mxu3 %v13804_v44  ;;  %v11047_v44 = vld [vmem:[#allocation6 + $0x1a8] sm:$0xf]  ;;  %v13284_v42 = vor.u32 %v15273_v36, %v13281_v56  ;;  %v11567_v36 = vld [vmem:[#allocation6 + $0x5b8] sm:$0xf]  ;;  %v14849_v56 = vld [vmem:[#allocation6 + $0x5dc] sm:$0xf0] }
 0x336   :  { %8172 = vmatpush.bf16.msra.mxu0 %v12804_v53  ;;  %8180 = vmatpush.bf16.msra.mxu1 %v13324_v28  ;;  %v7928_v53 = vpop.f32.mrf.mxu1  ;;  %v11048_v12 = vor.u32 %v14719_v41, %v11047_v44  ;;  %v10927_v28 = vld [vmem:[#allocation6 + $0xb8] sm:$0xf]  ;;  %v14929_v44 = vld [vmem:[#allocation6 + $0x85c] sm:$0xf0]  ;;  %v15233_v41 = vld [vmem:[#allocation6 + $0x11e4] sm:$0xf]  ;;  %v11568_v45 = vor.u32 %v14849_v56, %v11567_v36 }
 0x337   :  { %v10928_v60 = vor.u32 %v14689_v43, %v10927_v28 }
 0x338   :  { %8198 = vmatpush.bf16.msra.mxu2 %v13444_v54  ;;  %v7929_v54 = vadd.f32 %v7928_v53, %v16028_v15  ;;  %v11527_v53 = vld [vmem:[#allocation6 + $0x568] sm:$0xf] }
 0x339   :  { %8211 = vmatpush.bf16.msra.mxu3 %v13764_v59  ;;  %v11007_v59 = vld [vmem:[#allocation6 + $0x158] sm:$0xf] }
 0x33a   :  { %8173 = vmatpush.bf16.msra.mxu0 %v12764_v26  ;;  %8181 = vmatpush.bf16.msra.mxu1 %v13284_v42  ;;  %v7942_v4 = vadd.f32 %v16030_v23, %v7929_v54  ;;  %v16040_v9 = vpop.f32.mrf.mxu0  ;;  %v11008_v19 = vor.u32 %v14709_v62, %v11007_v59  ;;  %v10967_v26 = vld [vmem:[#allocation6 + $0x108] sm:$0xf]  ;;  %v14859_v23 = vld [vmem:[#allocation6 + $0x62c] sm:$0xf0]  ;;  %v15223_v59 = vld [vmem:[#allocation6 + $0x1194] sm:$0xf] }
 0x33b   :  { %v14839_v54 = vld [vmem:[#allocation6 + $0x58c] sm:$0xf0]  ;;  %v13081_v62 = vld [vmem:[#allocation6 + $0x11b8] sm:$0xf0] }
 0x33c   :  { %8199 = vmatpush.bf16.msra.mxu2 %v13404_v35  ;;  %v16043_v15 = vadd.f32 %v16032_v29, %v7942_v4  ;;  %v11607_v35 = vld [vmem:[#allocation6 + $0x608] sm:$0xf]  ;;  %v10968_v29 = vor.u32 %v14699_v7, %v10967_v26  ;;  %v11528_v3 = vor.u32 %v14839_v54, %v11527_v53  ;;  %v14669_v4 = vld [vmem:[#allocation6 + $0x3c] sm:$0xf0]  ;;  %v13084_v16 = vor.u32 %v15223_v59, %v13081_v62  ;;  %v11807_v26 = vld [vmem:[#allocation6 + $0x798] sm:$0xf] }
 0x33d   :  { %8212 = vmatpush.bf16.msra.mxu3 %v13724_v18  ;;  %8174 = vmatmul.bf16.vlgmr.msra.gmra.mxu0 %v15880_v49  ;;  %v11927_v18 = vld [vmem:[#allocation6 + $0x888] sm:$0xf] }
 0x33e   :  { %8218 = vmatpush.bf16.msrb.mxu0 %v11128_v39  ;;  %8182 = vmatpush.bf16.msra.mxu1 %v13244_v34  ;;  %v14939_v39 = vld [vmem:[#allocation6 + $0x8ac] sm:$0xf0]  ;;  %v7930_v25 = vpop.f32.mrf.mxu1  ;;  %v12327_v54 = vld [vmem:[#allocation6 + $0xba8] sm:$0xf] }
 0x33f   :  { %8200 = vmatmul.bf16.vlgmr.msra.gmra.mxu2 %v15898_v11  ;;  %v11928_v13 = vor.u32 %v14939_v39, %v11927_v18  ;;  %v14819_v34 = vld [vmem:[#allocation6 + $0x4ec] sm:$0xf0]  ;;  %v13047_v18 = vld [vmem:[#allocation6 + $0x1148] sm:$0xf] }
 0x340   :  { %8244 = vmatpush.bf16.msrb.mxu2 %v11768_v20  ;;  %8213 = vmatmul.bf16.vlgmr.msra.gmra.mxu3 %v15905_v27  ;;  %v15243_v20 = vld [vmem:[#allocation6 + $0x1234] sm:$0xf]  ;;  %v15219_v39 = vld [vmem:[#allocation6 + $0x116c] sm:$0xf0]  ;;  %v12967_v62 = vld [vmem:[#allocation6 + $0x10a8] sm:$0xf] }
 0x341   :  { %8257 = vmatpush.bf16.msrb.mxu3 %v12088_v31  ;;  %v11608_v31 = vor.u32 %v14859_v23, %v11607_v35  ;;  %v13164_v30 = vor.u32 %v15243_v20, %v13161_v24  ;;  %v12407_v35 = vld [vmem:[#allocation6 + $0xc48] sm:$0xf]  ;;  %v15059_v23 = vld [vmem:[#allocation6 + $0xc6c] sm:$0xf0]  ;;  %v10848_v24 = vor.u32 %v14669_v4, %v10847_v37  ;;  %v13048_v56 = vor.u32 %v15219_v39, %v13047_v18  ;;  %v11327_v37 = vld [vmem:[#allocation6 + $0x3d8] sm:$0xf] }
 0x342   :  { %8219 = vmatpush.bf16.msrb.mxu0 %v11088_v38  ;;  %8183 = vmatpush.bf16.msra.mxu1 %v13204_v0  ;;  %v16045_v32 = vpop.f32.mrf.mxu2  ;;  %v11887_v38 = vld [vmem:[#allocation6 + $0x838] sm:$0xf]  ;;  %v7969_v42 = vpop.f32.mrf.mxu0  ;;  %v14909_v0 = vld [vmem:[#allocation6 + $0x7bc] sm:$0xf0]  ;;  %v13367_v20 = vld [vmem:[#allocation6 + $0x13c8] sm:$0xf]  ;;  %v12408_v36 = vor.u32 %v15059_v23, %v12407_v35 }
 0x343   :  { %v11888_v58 = vor.u32 %v14929_v44, %v11887_v38  ;;  %v15299_v25 = vld [vmem:[#allocation6 + $0x13ec] sm:$0xf0]  ;;  %v11808_v43 = vor.u32 %v14909_v0, %v11807_v26  ;;  %v12367_v38 = vld [vmem:[#allocation6 + $0xbf8] sm:$0xf]  ;;  %v15049_v44 = vld [vmem:[#allocation6 + $0xc1c] sm:$0xf0] }
 0x344   :  { %8245 = vmatpush.bf16.msrb.mxu2 %v11728_v50  ;;  %v16047_v50 = vpop.f32.mrf.mxu3  ;;  %v13007_v42 = vld [vmem:[#allocation6 + $0x10f8] sm:$0xf]  ;;  %v14789_v4 = vld [vmem:[#allocation6 + $0x3fc] sm:$0xf0]  ;;  %v11287_v39 = vld [vmem:[#allocation6 + $0x388] sm:$0xf] }
 0x345   :  { %8258 = vmatpush.bf16.msrb.mxu3 %v12048_v21  ;;  %v13121_v21 = vld [vmem:[#allocation6 + $0x1208] sm:$0xf0]  ;;  %v15029_v26 = vld [vmem:[#allocation6 + $0xb7c] sm:$0xf0]  ;;  %v13247_v35 = vld [vmem:[#allocation6 + $0x12d8] sm:$0xf] }
 0x346   :  { %8220 = vmatpush.bf16.msrb.mxu0 %v11048_v12  ;;  %8184 = vmatpush.bf16.msra.mxu1 %v13164_v30  ;;  %v13124_v40 = vor.u32 %v15233_v41, %v13121_v21  ;;  %v11847_v12 = vld [vmem:[#allocation6 + $0x7e8] sm:$0xf]  ;;  %v13368_v41 = vor.u32 %v15299_v25, %v13367_v20  ;;  %v15189_v0 = vld [vmem:[#allocation6 + $0x107c] sm:$0xf0]  ;;  %v14779_v20 = vld [vmem:[#allocation6 + $0x3ac] sm:$0xf0] }
 0x347   :  { %v15269_v18 = vld [vmem:[#allocation6 + $0x12fc] sm:$0xf0] }
 0x348   :  { %8246 = vmatpush.bf16.msrb.mxu2 %v11688_v57  ;;  %v14919_v57 = vld [vmem:[#allocation6 + $0x80c] sm:$0xf0] }
 0x349   :  { %8259 = vmatpush.bf16.msrb.mxu3 %v12008_v63  ;;  %v11447_v63 = vld [vmem:[#allocation6 + $0x4c8] sm:$0xf]  ;;  %v11848_v5 = vor.u32 %v14919_v57, %v11847_v12  ;;  %v15039_v12 = vld [vmem:[#allocation6 + $0xbcc] sm:$0xf0] }
 0x34a   :  { %8221 = vmatpush.bf16.msrb.mxu0 %v11008_v19  ;;  %8185 = vmatpush.bf16.msra.mxu1 %v13124_v40  ;;  %v7995_v6 = vpop.f32.mrf.mxu2  ;;  %v11487_v19 = vld [vmem:[#allocation6 + $0x518] sm:$0xf]  ;;  %v12368_v40 = vor.u32 %v15049_v44, %v12367_v38  ;;  %v15179_v38 = vld [vmem:[#allocation6 + $0x102c] sm:$0xf0]  ;;  %v13207_v44 = vld [vmem:[#allocation6 + $0x1288] sm:$0xf] }
 0x34c   :  { %8247 = vmatpush.bf16.msrb.mxu2 %v11648_v14  ;;  %v14829_v14 = vld [vmem:[#allocation6 + $0x53c] sm:$0xf0]  ;;  %v8008_v7 = vpop.f32.mrf.mxu3 }
 0x34d   :  { %8260 = vmatpush.bf16.msrb.mxu3 %v11968_v22  ;;  %v11448_v22 = vor.u32 %v14819_v34, %v11447_v63  ;;  %v11488_v28 = vor.u32 %v14829_v14, %v11487_v19  ;;  %v15199_v63 = vld [vmem:[#allocation6 + $0x10cc] sm:$0xf0]  ;;  %v13287_v34 = vld [vmem:[#allocation6 + $0x1328] sm:$0xf]  ;;  %v12287_v14 = vld [vmem:[#allocation6 + $0xb58] sm:$0xf]  ;;  %v11328_v7 = vor.u32 %v14789_v4, %v11327_v37 }
 0x34e   :  { %8222 = vmatpush.bf16.msrb.mxu0 %v10968_v29  ;;  %v11407_v29 = vld [vmem:[#allocation6 + $0x478] sm:$0xf]  ;;  %8186 = vmatpush.bf16.msra.mxu1 %v13084_v16  ;;  %v12328_v16 = vor.u32 %v15039_v12, %v12327_v54  ;;  %v12968_v19 = vor.u32 %v15199_v63, %v12967_v62  ;;  %v15169_v12 = vld [vmem:[#allocation6 + $0xfdc] sm:$0xf0]  ;;  %v11207_v63 = vld [vmem:[#allocation6 + $0x2e8] sm:$0xf] }
 0x34f   :  { %v12847_v54 = vld [vmem:[#allocation6 + $0xfb8] sm:$0xf]  ;;  %v15249_v62 = vld [vmem:[#allocation6 + $0x125c] sm:$0xf0]  ;;  %v12167_v4 = vld [vmem:[#allocation6 + $0xa68] sm:$0xf] }
 0x350   :  { %8248 = vmatpush.bf16.msrb.mxu2 %v11608_v31  ;;  %v14809_v31 = vld [vmem:[#allocation6 + $0x49c] sm:$0xf0]  ;;  %v12848_v37 = vor.u32 %v15169_v12, %v12847_v54  ;;  %v13647_v12 = vld [vmem:[#allocation6 + $0x15f8] sm:$0xf] }
 0x351   :  { %8261 = vmatpush.bf16.msrb.mxu3 %v11928_v13  ;;  %v16049_v13 = vld [vmem:[#allocation7] sm:$0xff]  ;;  %v11408_v21 = vor.u32 %v14809_v31, %v11407_v29  ;;  %8187 = vmatmul.bf16.vlgmr.msra.gmra.mxu1 %v15890_v10  ;;  %v12288_v29 = vor.u32 %v15029_v26, %v12287_v14  ;;  %v15159_v14 = vld [vmem:[#allocation6 + $0xf8c] sm:$0xf0]  ;;  %v13127_v26 = vld [vmem:[#allocation6 + $0x11e8] sm:$0xf] }
 0x352   :  { %8223 = vmatpush.bf16.msrb.mxu0 %v10928_v60  ;;  %v3422_v30 = vperm.slane %v16049_v13, 4  ;;  %8231 = vmatpush.bf16.msrb.mxu1 %v11448_v22  ;;  %v15209_v60 = vld [vmem:[#allocation6 + $0x111c] sm:$0xf0]  ;;  %v12927_v22 = vld [vmem:[#allocation6 + $0x1058] sm:$0xf] }
 0x353   :  { %v13008_v53 = vor.u32 %v15209_v60, %v13007_v42  ;;  %v12928_v31 = vor.u32 %v15189_v0, %v12927_v22  ;;  %v14769_v42 = vld [vmem:[#allocation6 + $0x35c] sm:$0xf0]  ;;  %v12727_v0 = vld [vmem:[#allocation6 + $0xec8] sm:$0xf] }
 0x354   :  { %8249 = vmatpush.bf16.msrb.mxu2 %v11568_v45  ;;  %v13327_v45 = vld [vmem:[#allocation6 + $0x1378] sm:$0xf]  ;;  %v14749_v22 = vld [vmem:[#allocation6 + $0x2bc] sm:$0xf0] }
 0x355   :  { %8262 = vmatpush.bf16.msrb.mxu3 %v11888_v58  ;;  %v14799_v58 = vld [vmem:[#allocation6 + $0x44c] sm:$0xf0]  ;;  %v13328_v57 = vor.u32 %v15289_v47, %v13327_v45  ;;  %v12207_v47 = vld [vmem:[#allocation6 + $0xab8] sm:$0xf] }
 0x356   :  { %8224 = vmatpush.bf16.msrb.mxu0 %v10888_v1  ;;  %8232 = vmatpush.bf16.msrb.mxu1 %v11408_v21  ;;  %v11368_v59 = vor.u32 %v14799_v58, %v11367_v46  ;;  %v7968_v1 = vadd.f32 %v16040_v9, %v3422_v30  ;;  %v13248_v30 = vor.u32 %v15269_v18, %v13247_v35  ;;  %v11247_v21 = vld [vmem:[#allocation6 + $0x338] sm:$0xf]  ;;  %v15009_v46 = vld [vmem:[#allocation6 + $0xadc] sm:$0xf0]  ;;  %v15139_v35 = vld [vmem:[#allocation6 + $0xeec] sm:$0xf0] }
 0x358   :  { %8250 = vmatpush.bf16.msrb.mxu2 %v11528_v3  ;;  %v15279_v3 = vld [vmem:[#allocation6 + $0x134c] sm:$0xf0] }
 0x359   :  { %8263 = vmatpush.bf16.msrb.mxu3 %v11848_v5  ;;  %v7980_v5 = vpop.f32.mrf.mxu1  ;;  %v13288_v9 = vor.u32 %v15279_v3, %v13287_v34  ;;  %v14759_v34 = vld [vmem:[#allocation6 + $0x30c] sm:$0xf0]  ;;  %v12208_v3 = vor.u32 %v15009_v46, %v12207_v47  ;;  %v15129_v47 = vld [vmem:[#allocation6 + $0xe9c] sm:$0xf0] }
 0x35a   :  { %8225 = vmatpush.bf16.msrb.mxu0 %v10848_v24  ;;  %v7981_v6 = vadd.f32 %v7980_v5, %v7968_v1  ;;  %8233 = vmatpush.bf16.msrb.mxu1 %v11368_v59  ;;  %v8019_v24 = vpop.f32.mrf.mxu0  ;;  %v14999_v5 = vld [vmem:[#allocation6 + $0xa8c] sm:$0xf0] }
 0x35c   :  { %8251 = vmatpush.bf16.msrb.mxu2 %v11488_v28  ;;  %v7994_v23 = vadd.f32 %v16045_v32, %v7981_v6  ;;  %v12247_v28 = vld [vmem:[#allocation6 + $0xb08] sm:$0xf] }
 0x35d   :  { %8264 = vmatpush.bf16.msrb.mxu3 %v11808_v43  ;;  %8226 = vmatmul.bf16.vlgmr.msrb.gmra.mxu0 %v15861_v2  ;;  %v15019_v43 = vld [vmem:[#allocation6 + $0xb2c] sm:$0xf0] }
 0x35e   :  { %8270 = vmatpush.bf16.msra.mxu0 %v12408_v36  ;;  %v8007_v25 = vadd.f32 %v16047_v50, %v7994_v23  ;;  %8234 = vmatpush.bf16.msrb.mxu1 %v11328_v7  ;;  %v11288_v36 = vor.u32 %v14779_v20, %v11287_v39  ;;  %v12248_v50 = vor.u32 %v15019_v43, %v12247_v28  ;;  %v11167_v7 = vld [vmem:[#allocation6 + $0x298] sm:$0xf]  ;;  %v14989_v20 = vld [vmem:[#allocation6 + $0xa3c] sm:$0xf0] }
 0x35f   :  { %8252 = vmatmul.bf16.vlgmr.msrb.gmra.mxu2 %v15865_v48  ;;  %v12168_v23 = vor.u32 %v14999_v5, %v12167_v4  ;;  %v12127_v39 = vld [vmem:[#allocation6 + $0xa18] sm:$0xf]  ;;  %v15149_v28 = vld [vmem:[#allocation6 + $0xf3c] sm:$0xf0]  ;;  %v12647_v4 = vld [vmem:[#allocation6 + $0xe28] sm:$0xf] }
 0x360   :  { %8296 = vmatpush.bf16.msra.mxu2 %v13048_v56  ;;  %8265 = vmatmul.bf16.vlgmr.msrb.gmra.mxu3 %v15867_v55  ;;  %v12887_v56 = vld [vmem:[#allocation6 + $0x1008] sm:$0xf]  ;;  %v16059_v32 = vadd.f32 %v8019_v24, %v8007_v25  ;;  %v13087_v43 = vld [vmem:[#allocation6 + $0x1198] sm:$0xf]  ;;  %v15119_v5 = vld [vmem:[#allocation6 + $0xe4c] sm:$0xf0] }
 0x361   :  { %8309 = vmatpush.bf16.msra.mxu3 %v13368_v41  ;;  %v15259_v41 = vld [vmem:[#allocation6 + $0x12ac] sm:$0xf0]  ;;  %v7982_v60 = vpop.f32.mrf.mxu1  ;;  %v12888_v45 = vor.u32 %v15179_v38, %v12887_v56  ;;  %v15229_v56 = vld [vmem:[#allocation6 + $0x11bc] sm:$0xf0]  ;;  %v13687_v38 = vld [vmem:[#allocation6 + $0x1648] sm:$0xf] }
 0x362   :  { %8271 = vmatpush.bf16.msra.mxu0 %v12368_v40  ;;  %8235 = vmatpush.bf16.msrb.mxu1 %v11288_v36  ;;  %v13208_v58 = vor.u32 %v15259_v41, %v13207_v44  ;;  %v16061_v40 = vpop.f32.mrf.mxu2  ;;  %v8021_v1 = vpop.f32.mrf.mxu0  ;;  %v12728_v36 = vor.u32 %v15139_v35, %v12727_v0  ;;  %v15379_v44 = vld [vmem:[#allocation6 + $0x166c] sm:$0xf0]  ;;  %v14734_v41 = vld [vmem:[#allocation6 + $0x24c] sm:$0xf]  ;;  %v12128_v60 = vor.u32 %v14989_v20, %v12127_v39  ;;  %v11369_v35 = vld [vmem:[#allocation6 + $0x450] sm:$0xf0] }
 0x363   :  { %v16063_v59 = vpop.f32.mrf.mxu3  ;;  %v11089_v1 = vld [vmem:[#allocation6 + $0x220] sm:$0xf0]  ;;  %v14794_v0 = vld [vmem:[#allocation6 + $0x42c] sm:$0xf] }
 0x364   :  { %8297 = vmatpush.bf16.msra.mxu2 %v13008_v53  ;;  %v11248_v53 = vor.u32 %v14769_v42, %v11247_v21  ;;  %v11129_v21 = vld [vmem:[#allocation6 + $0x270] sm:$0xf0]  ;;  %v14814_v42 = vld [vmem:[#allocation6 + $0x4cc] sm:$0xf] }
 0x365   :  { %8310 = vmatpush.bf16.msra.mxu3 %v13328_v57  ;;  %v13167_v57 = vld [vmem:[#allocation6 + $0x1238] sm:$0xf]  ;;  %v11132_v54 = vor.u32 %v14734_v41, %v11129_v21  ;;  %v12567_v41 = vld [vmem:[#allocation6 + $0xd88] sm:$0xf]  ;;  %v15099_v21 = vld [vmem:[#allocation6 + $0xdac] sm:$0xf0] }
 0x366   :  { %8272 = vmatpush.bf16.msra.mxu0 %v12328_v16  ;;  %8236 = vmatpush.bf16.msrb.mxu1 %v11248_v53  ;;  %v13168_v6 = vor.u32 %v15249_v62, %v13167_v57  ;;  %v11208_v16 = vor.u32 %v14759_v34, %v11207_v63  ;;  %v13688_v53 = vor.u32 %v15379_v44, %v13687_v38  ;;  %v15369_v57 = vld [vmem:[#allocation6 + $0x161c] sm:$0xf0]  ;;  %v14724_v34 = vld [vmem:[#allocation6 + $0x1fc] sm:$0xf]  ;;  %v11329_v44 = vld [vmem:[#allocation6 + $0x400] sm:$0xf0] }
 0x368   :  { %8298 = vmatpush.bf16.msra.mxu2 %v12968_v19  ;;  %v12807_v19 = vld [vmem:[#allocation6 + $0xf68] sm:$0xf] }
 0x369   :  { %8311 = vmatpush.bf16.msra.mxu3 %v13288_v9  ;;  %v15239_v9 = vld [vmem:[#allocation6 + $0x120c] sm:$0xf0]  ;;  %v12808_v18 = vor.u32 %v15159_v14, %v12807_v19  ;;  %v13607_v19 = vld [vmem:[#allocation6 + $0x15a8] sm:$0xf] }
 0x36a   :  { %8273 = vmatpush.bf16.msra.mxu0 %v12288_v29  ;;  %8237 = vmatpush.bf16.msrb.mxu1 %v11208_v16  ;;  %v13128_v24 = vor.u32 %v15239_v9, %v13127_v26  ;;  %v8047_v25 = vpop.f32.mrf.mxu2  ;;  %v11168_v29 = vor.u32 %v14749_v22, %v11167_v7  ;;  %v11092_v16 = vor.u32 %v14724_v34, %v11089_v1  ;;  %v15359_v14 = vld [vmem:[#allocation6 + $0x15cc] sm:$0xf0]  ;;  %v14714_v7 = vld [vmem:[#allocation6 + $0x1ac] sm:$0xf]  ;;  %v11049_v22 = vld [vmem:[#allocation6 + $0x1d0] sm:$0xf0] }
 0x36b   :  { %v12648_v9 = vor.u32 %v15119_v5, %v12647_v4  ;;  %v11052_v25 = vor.u32 %v14714_v7, %v11049_v22  ;;  %v15089_v34 = vld [vmem:[#allocation6 + $0xd5c] sm:$0xf0]  ;;  %v12487_v22 = vld [vmem:[#allocation6 + $0xce8] sm:$0xf] }
 0x36c   :  { %8299 = vmatpush.bf16.msra.mxu2 %v12928_v31  ;;  %v12767_v31 = vld [vmem:[#allocation6 + $0xf18] sm:$0xf]  ;;  %v15329_v4 = vld [vmem:[#allocation6 + $0x14dc] sm:$0xf0] }
 0x36d   :  { %8312 = vmatpush.bf16.msra.mxu3 %v13248_v30  ;;  %v8060_v30 = vpop.f32.mrf.mxu3  ;;  %v12768_v46 = vor.u32 %v15149_v28, %v12767_v31  ;;  %v15349_v31 = vld [vmem:[#allocation6 + $0x157c] sm:$0xf0]  ;;  %v11372_v28 = vor.u32 %v14794_v0, %v11369_v35  ;;  %v15079_v0 = vld [vmem:[#allocation6 + $0xd0c] sm:$0xf0] }
 0x36e   :  { %8274 = vmatpush.bf16.msra.mxu0 %v12248_v50  ;;  %v11449_v50 = vld [vmem:[#allocation6 + $0x4f0] sm:$0xf0]  ;;  %8238 = vmatpush.bf16.msrb.mxu1 %v11168_v29  ;;  %v8032_v39 = vpop.f32.mrf.mxu1  ;;  %v13567_v29 = vld [vmem:[#allocation6 + $0x1558] sm:$0xf]  ;;  %v14704_v30 = vld [vmem:[#allocation6 + $0x15c] sm:$0xf] }
 0x36f   :  { %v11452_v62 = vor.u32 %v14814_v42, %v11449_v50  ;;  %v8033_v20 = vadd.f32 %v8032_v39, %v16059_v32 }
 0x370   :  { %8300 = vmatpush.bf16.msra.mxu2 %v12888_v45  ;;  %v12687_v45 = vld [vmem:[#allocation6 + $0xe78] sm:$0xf] }
 0x371   :  { %8313 = vmatpush.bf16.msra.mxu3 %v13208_v58  ;;  %v13088_v58 = vor.u32 %v15229_v56, %v13087_v43  ;;  %v12688_v63 = vor.u32 %v15129_v47, %v12687_v45  ;;  %8239 = vmatmul.bf16.vlgmr.msrb.gmra.mxu1 %v15863_v61  ;;  %v14784_v56 = vld [vmem:[#allocation6 + $0x3dc] sm:$0xf]  ;;  %v8046_v38 = vadd.f32 %v16061_v40, %v8033_v20  ;;  %v13527_v45 = vld [vmem:[#allocation6 + $0x1508] sm:$0xf]  ;;  %v15339_v47 = vld [vmem:[#allocation6 + $0x152c] sm:$0xf0] }
 0x372   :  { %8275 = vmatpush.bf16.msra.mxu0 %v12208_v3  ;;  %8283 = vmatpush.bf16.msra.mxu1 %v12728_v36  ;;  %v14804_v3 = vld [vmem:[#allocation6 + $0x47c] sm:$0xf]  ;;  %v11009_v36 = vld [vmem:[#allocation6 + $0x180] sm:$0xf0]  ;;  %v11289_v40 = vld [vmem:[#allocation6 + $0x3b0] sm:$0xf0] }
 0x373   :  { %v8059_v32 = vadd.f32 %v16063_v59, %v8046_v38  ;;  %v11012_v50 = vor.u32 %v14704_v30, %v11009_v36  ;;  %v13528_v59 = vor.u32 %v15339_v47, %v13527_v45  ;;  %v13447_v20 = vld [vmem:[#allocation6 + $0x1468] sm:$0xf]  ;;  %v11209_v30 = vld [vmem:[#allocation6 + $0x310] sm:$0xf0]  ;;  %v12447_v36 = vld [vmem:[#allocation6 + $0xc98] sm:$0xf] }
 0x374   :  { %8301 = vmatpush.bf16.msra.mxu2 %v12848_v37  ;;  %v11409_v37 = vld [vmem:[#allocation6 + $0x4a0] sm:$0xf0]  ;;  %v14007_v38 = vld [vmem:[#allocation6 + $0x18c8] sm:$0xf]  ;;  %v14664_v47 = vld [vmem:[#allocation6 + $0x1c] sm:$0xf] }
 0x375   :  { %8314 = vmatpush.bf16.msra.mxu3 %v13168_v6  ;;  %v13648_v6 = vor.u32 %v15369_v57, %v13647_v12  ;;  %v11412_v26 = vor.u32 %v14804_v3, %v11409_v37  ;;  %v14774_v12 = vld [vmem:[#allocation6 + $0x38c] sm:$0xf]  ;;  %v13487_v37 = vld [vmem:[#allocation6 + $0x14b8] sm:$0xf] }
 0x376   :  { %8276 = vmatpush.bf16.msra.mxu0 %v12168_v23  ;;  %8284 = vmatpush.bf16.msra.mxu1 %v12688_v63  ;;  %v12607_v23 = vld [vmem:[#allocation6 + $0xdd8] sm:$0xf]  ;;  %v8034_v1 = vpop.f32.mrf.mxu1  ;;  %v11292_v5 = vor.u32 %v14774_v12, %v11289_v40  ;;  %v11169_v12 = vld [vmem:[#allocation6 + $0x2c0] sm:$0xf0]  ;;  %v14894_v40 = vld [vmem:[#allocation6 + $0x74c] sm:$0xf] }
 0x377   :  { %v12527_v63 = vld [vmem:[#allocation6 + $0xd38] sm:$0xf]  ;;  %v15134_v1 = vld [vmem:[#allocation6 + $0xecc] sm:$0xf] }
 0x378   :  { %8302 = vmatpush.bf16.msra.mxu2 %v12808_v18  ;;  %v15109_v18 = vld [vmem:[#allocation6 + $0xdfc] sm:$0xf0] }
 0x379   :  { %8315 = vmatpush.bf16.msra.mxu3 %v13128_v24  ;;  %v13608_v24 = vor.u32 %v15359_v14, %v13607_v19  ;;  %v12608_v43 = vor.u32 %v15109_v18, %v12607_v23  ;;  %v14684_v19 = vld [vmem:[#allocation6 + $0xbc] sm:$0xf]  ;;  %v10929_v14 = vld [vmem:[#allocation6 + $0xe0] sm:$0xf0]  ;;  %v13488_v18 = vor.u32 %v15329_v4, %v13487_v37  ;;  %v13967_v37 = vld [vmem:[#allocation6 + $0x1878] sm:$0xf] }
 0x37a   :  { %8277 = vmatpush.bf16.msra.mxu0 %v12128_v60  ;;  %8285 = vmatpush.bf16.msra.mxu1 %v12648_v9  ;;  %v8071_v42 = vpop.f32.mrf.mxu0  ;;  %v13568_v60 = vor.u32 %v15349_v31, %v13567_v29  ;;  %v10932_v39 = vor.u32 %v14684_v19, %v10929_v14  ;;  %v12488_v29 = vor.u32 %v15079_v0, %v12487_v22  ;;  %v14674_v31 = vld [vmem:[#allocation6 + $0x6c] sm:$0xf]  ;;  %v15449_v4 = vld [vmem:[#allocation6 + $0x189c] sm:$0xf0]  ;;  %v14884_v14 = vld [vmem:[#allocation6 + $0x6fc] sm:$0xf] }
 0x37b   :  { %v16072_v57 = vadd.f32 %v8071_v42, %v8059_v32  ;;  %v13407_v42 = vld [vmem:[#allocation6 + $0x1418] sm:$0xf]  ;;  %v15309_v32 = vld [vmem:[#allocation6 + $0x143c] sm:$0xf0]  ;;  %v12369_v22 = vld [vmem:[#allocation6 + $0xc20] sm:$0xf0] }
 0x37c   :  { %8303 = vmatpush.bf16.msra.mxu2 %v12768_v46  ;;  %v14694_v46 = vld [vmem:[#allocation6 + $0x10c] sm:$0xf]  ;;  %v15124_v0 = vld [vmem:[#allocation6 + $0xe7c] sm:$0xf] }
 0x37d   :  { %8316 = vmatpush.bf16.msra.mxu3 %v13088_v58  ;;  %8278 = vmatmul.bf16.vlgmr.msra.gmra.mxu0 %v15882_v51  ;;  %v11332_v58 = vor.u32 %v14784_v56, %v11329_v44  ;;  %v15069_v56 = vld [vmem:[#allocation6 + $0xcbc] sm:$0xf0]  ;;  %v15459_v44 = vld [vmem:[#allocation6 + $0x18ec] sm:$0xf0] }
 0x37e   :  { %8322 = vmatpush.bf16.msrb.mxu0 %v13688_v53  ;;  %8286 = vmatpush.bf16.msra.mxu1 %v12608_v43  ;;  %v12568_v53 = vor.u32 %v15099_v21, %v12567_v41  ;;  %v14754_v43 = vld [vmem:[#allocation6 + $0x2ec] sm:$0xf]  ;;  %v12448_v45 = vor.u32 %v15069_v56, %v12447_v36  ;;  %v12649_v56 = vld [vmem:[#allocation6 + $0xe50] sm:$0xf0] }
 0x37f   :  { %8304 = vmatmul.bf16.vlgmr.msra.gmra.mxu2 %v15880_v49  ;;  %v15114_v36 = vld [vmem:[#allocation6 + $0xe2c] sm:$0xf] }
 0x380   :  { %8348 = vmatpush.bf16.msrb.mxu2 %v11132_v54  ;;  %8317 = vmatmul.bf16.vlgmr.msra.gmra.mxu3 %v15890_v10  ;;  %v10969_v54 = vld [vmem:[#allocation6 + $0x130] sm:$0xf0] }
 0x381   :  { %8361 = vmatpush.bf16.msrb.mxu3 %v11452_v62  ;;  %v3423_v62 = vperm.slane %v16049_v13, 5  ;;  %v10972_v3 = vor.u32 %v14694_v46, %v10969_v54  ;;  %v11249_v13 = vld [vmem:[#allocation6 + $0x360] sm:$0xf0]  ;;  %v14008_v54 = vor.u32 %v15459_v44, %v14007_v38  ;;  %v13887_v38 = vld [vmem:[#allocation6 + $0x17d8] sm:$0xf] }
 0x382   :  { %8323 = vmatpush.bf16.msrb.mxu0 %v13648_v6  ;;  %8287 = vmatpush.bf16.msra.mxu1 %v12568_v53  ;;  %v8097_v6 = vpop.f32.mrf.mxu2  ;;  %v8073_v35 = vpop.f32.mrf.mxu0  ;;  %v10849_v46 = vld [vmem:[#allocation6 + $0x40] sm:$0xf0]  ;;  %v15429_v44 = vld [vmem:[#allocation6 + $0x17fc] sm:$0xf0] }
 0x383   :  { %v8098_v9 = vadd.f32 %v8097_v6, %v3423_v62  ;;  %v8110_v7 = vpop.f32.mrf.mxu3  ;;  %v11769_v62 = vld [vmem:[#allocation6 + $0x770] sm:$0xf0]  ;;  %v12689_v35 = vld [vmem:[#allocation6 + $0xea0] sm:$0xf0] }
 0x384   :  { %8349 = vmatpush.bf16.msrb.mxu2 %v11092_v16  ;;  %v12528_v16 = vor.u32 %v15089_v34, %v12527_v63  ;;  %v15054_v63 = vld [vmem:[#allocation6 + $0xc4c] sm:$0xf]  ;;  %v12409_v34 = vld [vmem:[#allocation6 + $0xc70] sm:$0xf0] }
 0x385   :  { %8362 = vmatpush.bf16.msrb.mxu3 %v11412_v26  ;;  %v14764_v26 = vld [vmem:[#allocation6 + $0x33c] sm:$0xf]  ;;  %v16075_v23 = vadd.f32 %v8110_v7, %v8098_v9  ;;  %v12412_v19 = vor.u32 %v15054_v63, %v12409_v34  ;;  %v13968_v7 = vor.u32 %v15449_v4, %v13967_v37  ;;  %v15014_v4 = vld [vmem:[#allocation6 + $0xb0c] sm:$0xf] }
 0x386   :  { %8324 = vmatpush.bf16.msrb.mxu0 %v13608_v24  ;;  %v15319_v24 = vld [vmem:[#allocation6 + $0x148c] sm:$0xf0]  ;;  %8288 = vmatpush.bf16.msra.mxu1 %v12528_v16  ;;  %v11772_v16 = vor.u32 %v14894_v40, %v11769_v62 }
 0x387   :  { %v13448_v41 = vor.u32 %v15319_v24, %v13447_v20  ;;  %v15419_v40 = vld [vmem:[#allocation6 + $0x17ac] sm:$0xf0] }
 0x388   :  { %8350 = vmatpush.bf16.msrb.mxu2 %v11052_v25  ;;  %v11252_v25 = vor.u32 %v14764_v26, %v11249_v13  ;;  %v11729_v26 = vld [vmem:[#allocation6 + $0x720] sm:$0xf0]  ;;  %v15044_v13 = vld [vmem:[#allocation6 + $0xbfc] sm:$0xf] }
 0x389   :  { %8363 = vmatpush.bf16.msrb.mxu3 %v11372_v28  ;;  %v10889_v28 = vld [vmem:[#allocation6 + $0x90] sm:$0xf0]  ;;  %v11732_v20 = vor.u32 %v14884_v14, %v11729_v26  ;;  %v12372_v24 = vor.u32 %v15044_v13, %v12369_v22  ;;  %v15409_v14 = vld [vmem:[#allocation6 + $0x175c] sm:$0xf0]  ;;  %v11569_v13 = vld [vmem:[#allocation6 + $0x5e0] sm:$0xf0] }
 0x38a   :  { %8325 = vmatpush.bf16.msrb.mxu0 %v13568_v60  ;;  %v10892_v21 = vor.u32 %v14674_v31, %v10889_v28  ;;  %8289 = vmatpush.bf16.msra.mxu1 %v12488_v29  ;;  %v11212_v60 = vor.u32 %v14754_v43, %v11209_v30  ;;  %v11689_v29 = vld [vmem:[#allocation6 + $0x6d0] sm:$0xf0]  ;;  %v12692_v31 = vor.u32 %v15124_v0, %v12689_v35  ;;  %v15034_v43 = vld [vmem:[#allocation6 + $0xbac] sm:$0xf] }
 0x38b   :  { %v8112_v53 = vpop.f32.mrf.mxu3  ;;  %v12329_v30 = vld [vmem:[#allocation6 + $0xbd0] sm:$0xf0] }
 0x38c   :  { %8351 = vmatpush.bf16.msrb.mxu2 %v11012_v50  ;;  %v8099_v50 = vpop.f32.mrf.mxu2  ;;  %v15104_v53 = vld [vmem:[#allocation6 + $0xddc] sm:$0xf] }
 0x38d   :  { %8364 = vmatpush.bf16.msrb.mxu3 %v11332_v58  ;;  %v14744_v58 = vld [vmem:[#allocation6 + $0x29c] sm:$0xf]  ;;  %v11649_v50 = vld [vmem:[#allocation6 + $0x680] sm:$0xf0] }
 0x38e   :  { %8326 = vmatpush.bf16.msrb.mxu0 %v13528_v59  ;;  %v13408_v59 = vor.u32 %v15309_v32, %v13407_v42  ;;  %8290 = vmatpush.bf16.msra.mxu1 %v12448_v45  ;;  %v11172_v6 = vor.u32 %v14744_v58, %v11169_v12  ;;  %v12332_v32 = vor.u32 %v15034_v43, %v12329_v30  ;;  %v12289_v58 = vld [vmem:[#allocation6 + $0xb80] sm:$0xf0]  ;;  %v13847_v12 = vld [vmem:[#allocation6 + $0x1788] sm:$0xf] }
 0x38f   :  { %v12652_v45 = vor.u32 %v15114_v36, %v12649_v56  ;;  %v13848_v37 = vor.u32 %v15419_v40, %v13847_v12  ;;  %v14834_v36 = vld [vmem:[#allocation6 + $0x56c] sm:$0xf]  ;;  %v11529_v56 = vld [vmem:[#allocation6 + $0x590] sm:$0xf0]  ;;  %v11489_v12 = vld [vmem:[#allocation6 + $0x540] sm:$0xf0] }
 0x390   :  { %8352 = vmatpush.bf16.msrb.mxu2 %v10972_v3  ;;  %v12729_v3 = vld [vmem:[#allocation6 + $0xef0] sm:$0xf0] }
 0x391   :  { %8365 = vmatpush.bf16.msrb.mxu3 %v11292_v5  ;;  %v10852_v5 = vor.u32 %v14664_v47, %v10849_v46  ;;  %v12732_v9 = vor.u32 %v15134_v1, %v12729_v3  ;;  %8291 = vmatmul.bf16.vlgmr.msra.gmra.mxu1 %v15884_v52  ;;  %v13888_v47 = vor.u32 %v15429_v44, %v13887_v38  ;;  %v15024_v46 = vld [vmem:[#allocation6 + $0xb5c] sm:$0xf]  ;;  %v14854_v1 = vld [vmem:[#allocation6 + $0x60c] sm:$0xf] }
 0x392   :  { %8327 = vmatpush.bf16.msrb.mxu0 %v13488_v18  ;;  %8335 = vmatpush.bf16.msrb.mxu1 %v14008_v54  ;;  %v13927_v18 = vld [vmem:[#allocation6 + $0x1828] sm:$0xf]  ;;  %v12609_v54 = vld [vmem:[#allocation6 + $0xe00] sm:$0xf0]  ;;  %v12292_v34 = vor.u32 %v15024_v46, %v12289_v58  ;;  %v12089_v46 = vld [vmem:[#allocation6 + $0x9f0] sm:$0xf0]  ;;  %v11532_v58 = vor.u32 %v14834_v36, %v11529_v56 }
 0x393   :  { %v12612_v3 = vor.u32 %v15104_v53, %v12609_v54  ;;  %v14824_v54 = vld [vmem:[#allocation6 + $0x51c] sm:$0xf]  ;;  %v14954_v36 = vld [vmem:[#allocation6 + $0x92c] sm:$0xf]  ;;  %v12009_v56 = vld [vmem:[#allocation6 + $0x950] sm:$0xf0] }
 0x394   :  { %8353 = vmatpush.bf16.msrb.mxu2 %v10932_v39  ;;  %v15439_v39 = vld [vmem:[#allocation6 + $0x184c] sm:$0xf0] }
 0x395   :  { %8366 = vmatpush.bf16.msrb.mxu3 %v11252_v25  ;;  %v14874_v25 = vld [vmem:[#allocation6 + $0x6ac] sm:$0xf]  ;;  %v13928_v28 = vor.u32 %v15439_v39, %v13927_v18  ;;  %v15004_v18 = vld [vmem:[#allocation6 + $0xabc] sm:$0xf]  ;;  %v12209_v39 = vld [vmem:[#allocation6 + $0xae0] sm:$0xf0] }
 0x396   :  { %8328 = vmatpush.bf16.msrb.mxu0 %v13448_v41  ;;  %8336 = vmatpush.bf16.msrb.mxu1 %v13968_v7  ;;  %v8084_v41 = vpop.f32.mrf.mxu1  ;;  %v11692_v42 = vor.u32 %v14874_v25, %v11689_v29  ;;  %v14844_v7 = vld [vmem:[#allocation6 + $0x5bc] sm:$0xf]  ;;  %v12529_v25 = vld [vmem:[#allocation6 + $0xd60] sm:$0xf0]  ;;  %v13767_v29 = vld [vmem:[#allocation6 + $0x16e8] sm:$0xf]  ;;  %v12212_v30 = vor.u32 %v15004_v18, %v12209_v39 }
 0x397   :  { %v11572_v43 = vor.u32 %v14844_v7, %v11569_v13  ;;  %v12049_v7 = vld [vmem:[#allocation6 + $0x9a0] sm:$0xf0]  ;;  %v15204_v39 = vld [vmem:[#allocation6 + $0x10fc] sm:$0xf] }
 0x398   :  { %8354 = vmatpush.bf16.msrb.mxu2 %v10892_v21  ;;  %v16082_v21 = vadd.f32 %v8084_v41, %v16072_v57  ;;  %v14994_v41 = vld [vmem:[#allocation6 + $0xa6c] sm:$0xf] }
 0x399   :  { %8367 = vmatpush.bf16.msrb.mxu3 %v11212_v60  ;;  %v14864_v60 = vld [vmem:[#allocation6 + $0x65c] sm:$0xf] }
 0x39a   :  { %8329 = vmatpush.bf16.msrb.mxu0 %v13408_v59  ;;  %8337 = vmatpush.bf16.msrb.mxu1 %v13928_v28  ;;  %v8123_v62 = vpop.f32.mrf.mxu0  ;;  %v11652_v63 = vor.u32 %v14864_v60, %v11649_v50  ;;  %v11609_v59 = vld [vmem:[#allocation6 + $0x630] sm:$0xf0]  ;;  %v13727_v50 = vld [vmem:[#allocation6 + $0x1698] sm:$0xf] }
 0x39b   :  { %v16085_v57 = vadd.f32 %v8123_v62, %v16075_v23  ;;  %v12489_v60 = vld [vmem:[#allocation6 + $0xd10] sm:$0xf0] }
 0x39c   :  { %8355 = vmatpush.bf16.msrb.mxu2 %v10852_v5  ;;  %v12249_v5 = vld [vmem:[#allocation6 + $0xb30] sm:$0xf0] }
 0x39d   :  { %8368 = vmatpush.bf16.msrb.mxu3 %v11172_v6  ;;  %8330 = vmatmul.bf16.vlgmr.msrb.gmra.mxu0 %v15898_v11  ;;  %v15094_v6 = vld [vmem:[#allocation6 + $0xd8c] sm:$0xf]  ;;  %v12252_v23 = vor.u32 %v15014_v4, %v12249_v5  ;;  %v12449_v4 = vld [vmem:[#allocation6 + $0xcc0] sm:$0xf0] }
 0x39e   :  { %8374 = vmatpush.bf16.msra.mxu0 %v11772_v16  ;;  %8338 = vmatpush.bf16.msrb.mxu1 %v13888_v47  ;;  %v12569_v16 = vld [vmem:[#allocation6 + $0xdb0] sm:$0xf0]  ;;  %v8086_v26 = vpop.f32.mrf.mxu1  ;;  %v14974_v47 = vld [vmem:[#allocation6 + $0x9cc] sm:$0xf] }
 0x39f   :  { %8356 = vmatmul.bf16.vlgmr.msrb.gmra.mxu2 %v15861_v2  ;;  %v12572_v22 = vor.u32 %v15094_v6, %v12569_v16  ;;  %v15214_v5 = vld [vmem:[#allocation6 + $0x114c] sm:$0xf]  ;;  %v13049_v6 = vld [vmem:[#allocation6 + $0x1170] sm:$0xf0]  ;;  %v11492_v26 = vor.u32 %v14824_v54, %v11489_v12 }
 0x3a0   :  { %8400 = vmatpush.bf16.msra.mxu2 %v12412_v19  ;;  %8369 = vmatmul.bf16.vlgmr.msrb.gmra.mxu3 %v15863_v61  ;;  %v13807_v19 = vld [vmem:[#allocation6 + $0x1738] sm:$0xf]  ;;  %v15374_v16 = vld [vmem:[#allocation6 + $0x164c] sm:$0xf] }
 0x3a1   :  { %8413 = vmatpush.bf16.msra.mxu3 %v12732_v9  ;;  %v11612_v9 = vor.u32 %v14854_v1, %v11609_v59  ;;  %v13808_v35 = vor.u32 %v15409_v14, %v13807_v19  ;;  %v12129_v1 = vld [vmem:[#allocation6 + $0xa40] sm:$0xf0]  ;;  %v15064_v59 = vld [vmem:[#allocation6 + $0xc9c] sm:$0xf]  ;;  %v13689_v19 = vld [vmem:[#allocation6 + $0x1670] sm:$0xf0] }
 0x3a2   :  { %8375 = vmatpush.bf16.msra.mxu0 %v11732_v20  ;;  %8339 = vmatpush.bf16.msrb.mxu1 %v13848_v37  ;;  %v16087_v0 = vpop.f32.mrf.mxu2  ;;  %v15084_v20 = vld [vmem:[#allocation6 + $0xd3c] sm:$0xf]  ;;  %v8125_v28 = vpop.f32.mrf.mxu0  ;;  %v12092_v37 = vor.u32 %v14974_v47, %v12089_v46  ;;  %v15454_v14 = vld [vmem:[#allocation6 + $0x18cc] sm:$0xf]  ;;  %v13692_v18 = vor.u32 %v15374_v16, %v13689_v19  ;;  %v13929_v46 = vld [vmem:[#allocation6 + $0x1850] sm:$0xf0] }
 0x3a3   :  { %v12532_v38 = vor.u32 %v15084_v20, %v12529_v25  ;;  %v13009_v20 = vld [vmem:[#allocation6 + $0x1120] sm:$0xf0]  ;;  %v15434_v47 = vld [vmem:[#allocation6 + $0x182c] sm:$0xf]  ;;  %v11929_v19 = vld [vmem:[#allocation6 + $0x8b0] sm:$0xf0] }
 0x3a4   :  { %8401 = vmatpush.bf16.msra.mxu2 %v12372_v24  ;;  %v16089_v24 = vpop.f32.mrf.mxu3  ;;  %v13649_v28 = vld [vmem:[#allocation6 + $0x1620] sm:$0xf0]  ;;  %v14934_v16 = vld [vmem:[#allocation6 + $0x88c] sm:$0xf] }
 0x3a5   :  { %8414 = vmatpush.bf16.msra.mxu3 %v12692_v31  ;;  %v15399_v31 = vld [vmem:[#allocation6 + $0x170c] sm:$0xf0] }
 0x3a6   :  { %8376 = vmatpush.bf16.msra.mxu0 %v11692_v42  ;;  %8340 = vmatpush.bf16.msrb.mxu1 %v13808_v35  ;;  %v13768_v44 = vor.u32 %v15399_v31, %v13767_v29  ;;  %v12169_v42 = vld [vmem:[#allocation6 + $0xa90] sm:$0xf0]  ;;  %v13052_v35 = vor.u32 %v15214_v5, %v13049_v6  ;;  %v15364_v31 = vld [vmem:[#allocation6 + $0x15fc] sm:$0xf]  ;;  %v13889_v6 = vld [vmem:[#allocation6 + $0x1800] sm:$0xf0] }
 0x3a7   :  { %v12172_v53 = vor.u32 %v14994_v41, %v12169_v42  ;;  %v15194_v41 = vld [vmem:[#allocation6 + $0x10ac] sm:$0xf]  ;;  %v12969_v42 = vld [vmem:[#allocation6 + $0x10d0] sm:$0xf0] }
 0x3a8   :  { %8402 = vmatpush.bf16.msra.mxu2 %v12332_v32  ;;  %v15074_v32 = vld [vmem:[#allocation6 + $0xcec] sm:$0xf] }
 0x3a9   :  { %8415 = vmatpush.bf16.msra.mxu3 %v12652_v45  ;;  %v15389_v45 = vld [vmem:[#allocation6 + $0x16bc] sm:$0xf0]  ;;  %v12492_v40 = vor.u32 %v15074_v32, %v12489_v60  ;;  %v12012_v60 = vor.u32 %v14954_v36, %v12009_v56 }
 0x3aa   :  { %8377 = vmatpush.bf16.msra.mxu0 %v11652_v63  ;;  %8341 = vmatpush.bf16.msrb.mxu1 %v13768_v44  ;;  %v8151_v62 = vpop.f32.mrf.mxu2  ;;  %v13728_v63 = vor.u32 %v15389_v45, %v13727_v50  ;;  %v13652_v44 = vor.u32 %v15364_v31, %v13649_v28  ;;  %v15354_v50 = vld [vmem:[#allocation6 + $0x15ac] sm:$0xf]  ;;  %v13609_v45 = vld [vmem:[#allocation6 + $0x15d0] sm:$0xf0] }
 0x3ab   :  { %v13612_v62 = vor.u32 %v15354_v50, %v13609_v45  ;;  %v14914_v50 = vld [vmem:[#allocation6 + $0x7ec] sm:$0xf]  ;;  %v11849_v45 = vld [vmem:[#allocation6 + $0x810] sm:$0xf0] }
 0x3ac   :  { %8403 = vmatpush.bf16.msra.mxu2 %v12292_v34  ;;  %v14984_v34 = vld [vmem:[#allocation6 + $0xa1c] sm:$0xf] }
 0x3ad   :  { %8416 = vmatpush.bf16.msra.mxu3 %v12612_v3  ;;  %v8164_v3 = vpop.f32.mrf.mxu3  ;;  %v12132_v13 = vor.u32 %v14984_v34, %v12129_v1  ;;  %v12929_v34 = vld [vmem:[#allocation6 + $0x1080] sm:$0xf0]  ;;  %v13932_v1 = vor.u32 %v15434_v47, %v13929_v46 }
 0x3ae   :  { %8378 = vmatpush.bf16.msra.mxu0 %v11612_v9  ;;  %v14009_v9 = vld [vmem:[#allocation6 + $0x18f0] sm:$0xf0]  ;;  %8342 = vmatpush.bf16.msrb.mxu1 %v13728_v63  ;;  %v8136_v54 = vpop.f32.mrf.mxu1  ;;  %v15184_v63 = vld [vmem:[#allocation6 + $0x105c] sm:$0xf] }
 0x3af   :  { %v14012_v25 = vor.u32 %v15454_v14, %v14009_v9  ;;  %v8137_v12 = vadd.f32 %v8136_v54, %v16085_v57  ;;  %v15344_v3 = vld [vmem:[#allocation6 + $0x155c] sm:$0xf]  ;;  %v12809_v54 = vld [vmem:[#allocation6 + $0xf90] sm:$0xf0] }
 0x3b0   :  { %8404 = vmatpush.bf16.msra.mxu2 %v12252_v23  ;;  %v14964_v23 = vld [vmem:[#allocation6 + $0x97c] sm:$0xf] }
 0x3b1   :  { %8417 = vmatpush.bf16.msra.mxu3 %v12572_v22  ;;  %v12452_v22 = vor.u32 %v15064_v59, %v12449_v4  ;;  %v12052_v29 = vor.u32 %v14964_v23, %v12049_v7  ;;  %8343 = vmatmul.bf16.vlgmr.msrb.gmra.mxu1 %v15905_v27  ;;  %v15424_v4 = vld [vmem:[#allocation6 + $0x17dc] sm:$0xf]  ;;  %v8150_v5 = vadd.f32 %v16087_v0, %v8137_v12  ;;  %v15174_v23 = vld [vmem:[#allocation6 + $0x100c] sm:$0xf]  ;;  %v12889_v7 = vld [vmem:[#allocation6 + $0x1030] sm:$0xf0] }
 0x3b2   :  { %8379 = vmatpush.bf16.msra.mxu0 %v11572_v43  ;;  %8387 = vmatpush.bf16.msra.mxu1 %v12092_v37  ;;  %v15444_v43 = vld [vmem:[#allocation6 + $0x187c] sm:$0xf]  ;;  %v13569_v37 = vld [vmem:[#allocation6 + $0x1580] sm:$0xf0] }
 0x3b3   :  { %v8163_v57 = vadd.f32 %v16089_v24, %v8150_v5  ;;  %v13572_v9 = vor.u32 %v15344_v3, %v13569_v37  ;;  %v12892_v24 = vor.u32 %v15174_v23, %v12889_v7  ;;  %v11809_v3 = vld [vmem:[#allocation6 + $0x7c0] sm:$0xf0]  ;;  %v15294_v37 = vld [vmem:[#allocation6 + $0x13cc] sm:$0xf]  ;;  %v15384_v7 = vld [vmem:[#allocation6 + $0x169c] sm:$0xf] }
 0x3b4   :  { %8405 = vmatpush.bf16.msra.mxu2 %v12212_v30  ;;  %v13969_v30 = vld [vmem:[#allocation6 + $0x18a0] sm:$0xf0] }
 0x3b5   :  { %8418 = vmatpush.bf16.msra.mxu3 %v12532_v38  ;;  %v13012_v38 = vor.u32 %v15204_v39, %v13009_v20  ;;  %v13972_v32 = vor.u32 %v15444_v43, %v13969_v30  ;;  %v15414_v39 = vld [vmem:[#allocation6 + $0x178c] sm:$0xf]  ;;  %v13849_v20 = vld [vmem:[#allocation6 + $0x17b0] sm:$0xf0]  ;;  %v15164_v43 = vld [vmem:[#allocation6 + $0xfbc] sm:$0xf] }
 0x3b6   :  { %8380 = vmatpush.bf16.msra.mxu0 %v11532_v58  ;;  %8388 = vmatpush.bf16.msra.mxu1 %v12052_v29  ;;  %v14944_v58 = vld [vmem:[#allocation6 + $0x8dc] sm:$0xf]  ;;  %v11889_v29 = vld [vmem:[#allocation6 + $0x860] sm:$0xf0]  ;;  %v8138_v31 = vpop.f32.mrf.mxu1  ;;  %v13852_v36 = vor.u32 %v15414_v39, %v13849_v20  ;;  %v14740_v39 = vld [vmem:[#allocation6 + $0x274] sm:$0xf0] }
 0x3b7   :  { %v12849_v30 = vld [vmem:[#allocation6 + $0xfe0] sm:$0xf0]  ;;  %v11775_v20 = vld [vmem:[#allocation6 + $0x750] sm:$0xf] }
 0x3b8   :  { %8406 = vmatpush.bf16.msra.mxu2 %v12172_v53  ;;  %v11969_v53 = vld [vmem:[#allocation6 + $0x900] sm:$0xf0]  ;;  %v12852_v46 = vor.u32 %v15164_v43, %v12849_v30 }
 0x3b9   :  { %8419 = vmatpush.bf16.msra.mxu3 %v12492_v40  ;;  %v12972_v40 = vor.u32 %v15194_v41, %v12969_v42  ;;  %v11972_v59 = vor.u32 %v14944_v58, %v11969_v53  ;;  %v13489_v41 = vld [vmem:[#allocation6 + $0x14e0] sm:$0xf0]  ;;  %v15404_v42 = vld [vmem:[#allocation6 + $0x173c] sm:$0xf]  ;;  %v15154_v53 = vld [vmem:[#allocation6 + $0xf6c] sm:$0xf] }
 0x3ba   :  { %8381 = vmatpush.bf16.msra.mxu0 %v11492_v26  ;;  %8389 = vmatpush.bf16.msra.mxu1 %v12012_v60  ;;  %v8175_v14 = vpop.f32.mrf.mxu0  ;;  %v12932_v26 = vor.u32 %v15184_v63, %v12929_v34  ;;  %v13809_v60 = vld [vmem:[#allocation6 + $0x1760] sm:$0xf0]  ;;  %v13449_v63 = vld [vmem:[#allocation6 + $0x1490] sm:$0xf0]  ;;  %v15394_v34 = vld [vmem:[#allocation6 + $0x16ec] sm:$0xf]  ;;  %v12812_v5 = vor.u32 %v15154_v53, %v12809_v54 }
 0x3bb   :  { %v16098_v0 = vadd.f32 %v8175_v14, %v8163_v57  ;;  %v13812_v12 = vor.u32 %v15404_v42, %v13809_v60  ;;  %v13409_v23 = vld [vmem:[#allocation6 + $0x1440] sm:$0xf0]  ;;  %v14730_v42 = vld [vmem:[#allocation6 + $0x224] sm:$0xf0]  ;;  %v15274_v53 = vld [vmem:[#allocation6 + $0x132c] sm:$0xf] }
 0x3bc   :  { %8407 = vmatpush.bf16.msra.mxu2 %v12132_v13  ;;  %v13892_v13 = vor.u32 %v15424_v4, %v13889_v6  ;;  %v13369_v4 = vld [vmem:[#allocation6 + $0x13f0] sm:$0xf0]  ;;  %v13329_v43 = vld [vmem:[#allocation6 + $0x13a0] sm:$0xf0] }
 0x3bd   :  { %8420 = vmatpush.bf16.msra.mxu3 %v12452_v22  ;;  %8382 = vmatmul.bf16.vlgmr.msra.gmra.mxu0 %v15865_v48  ;;  %v11932_v22 = vor.u32 %v14934_v16, %v11929_v19  ;;  %v15144_v16 = vld [vmem:[#allocation6 + $0xf1c] sm:$0xf]  ;;  %v12769_v19 = vld [vmem:[#allocation6 + $0xf40] sm:$0xf0]  ;;  %v13289_v54 = vld [vmem:[#allocation6 + $0x1350] sm:$0xf0] }
 0x3be   :  { %8426 = vmatpush.bf16.msrb.mxu0 %v13052_v35  ;;  %8390 = vmatpush.bf16.msra.mxu1 %v11972_v59  ;;  %v15334_v35 = vld [vmem:[#allocation6 + $0x150c] sm:$0xf]  ;;  %v14904_v59 = vld [vmem:[#allocation6 + $0x79c] sm:$0xf]  ;;  %v12772_v31 = vor.u32 %v15144_v16, %v12769_v19 }
 0x3bf   :  { %8408 = vmatmul.bf16.vlgmr.msra.gmra.mxu2 %v15882_v51 }
 0x3c0   :  { %8452 = vmatpush.bf16.msrb.mxu2 %v13692_v18  ;;  %8421 = vmatmul.bf16.vlgmr.msra.gmra.mxu3 %v15884_v52  ;;  %v13529_v18 = vld [vmem:[#allocation6 + $0x1530] sm:$0xf0] }
 0x3c1   :  { %8465 = vmatpush.bf16.msrb.mxu3 %v14012_v25  ;;  %v14924_v25 = vld [vmem:[#allocation6 + $0x83c] sm:$0xf]  ;;  %v13532_v28 = vor.u32 %v15334_v35, %v13529_v18  ;;  %v13729_v35 = vld [vmem:[#allocation6 + $0x16c0] sm:$0xf0]  ;;  %v11135_v18 = vld [vmem:[#allocation6 + $0x250] sm:$0xf] }
 0x3c2   :  { %8427 = vmatpush.bf16.msrb.mxu0 %v13012_v38  ;;  %8391 = vmatpush.bf16.msra.mxu1 %v11932_v22  ;;  %v16100_v56 = vpop.f32.mrf.mxu2  ;;  %v11892_v38 = vor.u32 %v14924_v25, %v11889_v29  ;;  %v8177_v47 = vpop.f32.mrf.mxu0  ;;  %v13372_v22 = vor.u32 %v15294_v37, %v13369_v4  ;;  %v14900_v25 = vld [vmem:[#allocation6 + $0x774] sm:$0xf0]  ;;  %v12095_v29 = vld [vmem:[#allocation6 + $0x9d0] sm:$0xf] }
 0x3c3   :  { %v14890_v47 = vld [vmem:[#allocation6 + $0x724] sm:$0xf0]  ;;  %v12015_v37 = vld [vmem:[#allocation6 + $0x930] sm:$0xf]  ;;  %v14960_v4 = vld [vmem:[#allocation6 + $0x954] sm:$0xf0] }
 0x3c4   :  { %8453 = vmatpush.bf16.msrb.mxu2 %v13652_v44  ;;  %v15324_v44 = vld [vmem:[#allocation6 + $0x14bc] sm:$0xf] }
 0x3c5   :  { %8466 = vmatpush.bf16.msrb.mxu3 %v13972_v32  ;;  %v16102_v32 = vpop.f32.mrf.mxu3  ;;  %v13492_v58 = vor.u32 %v15324_v44, %v13489_v41  ;;  %v11776_v44 = vor.u32 %v14900_v25, %v11775_v20  ;;  %v11095_v41 = vld [vmem:[#allocation6 + $0x200] sm:$0xf]  ;;  %v15254_v20 = vld [vmem:[#allocation6 + $0x128c] sm:$0xf]  ;;  %v13209_v25 = vld [vmem:[#allocation6 + $0x12b0] sm:$0xf0] }
 0x3c6   :  { %8428 = vmatpush.bf16.msrb.mxu0 %v12972_v40  ;;  %8392 = vmatpush.bf16.msra.mxu1 %v11892_v38  ;;  %v11852_v40 = vor.u32 %v14914_v50, %v11849_v45  ;;  %v11136_v38 = vor.u32 %v14740_v39, %v11135_v18  ;;  %v11735_v45 = vld [vmem:[#allocation6 + $0x700] sm:$0xf]  ;;  %v14950_v39 = vld [vmem:[#allocation6 + $0x904] sm:$0xf0] }
 0x3c8   :  { %8454 = vmatpush.bf16.msrb.mxu2 %v13612_v62  ;;  %v15314_v62 = vld [vmem:[#allocation6 + $0x146c] sm:$0xf] }
 0x3c9   :  { %8467 = vmatpush.bf16.msrb.mxu3 %v13932_v1  ;;  %v13769_v1 = vld [vmem:[#allocation6 + $0x1710] sm:$0xf0]  ;;  %v13452_v6 = vor.u32 %v15314_v62, %v13449_v63  ;;  %v11055_v62 = vld [vmem:[#allocation6 + $0x1b0] sm:$0xf]  ;;  %v14720_v63 = vld [vmem:[#allocation6 + $0x1d4] sm:$0xf0] }
 0x3ca   :  { %8429 = vmatpush.bf16.msrb.mxu0 %v12932_v26  ;;  %8393 = vmatpush.bf16.msra.mxu1 %v11852_v40  ;;  %v13772_v14 = vor.u32 %v15394_v34, %v13769_v1  ;;  %v8203_v57 = vpop.f32.mrf.mxu2  ;;  %v11812_v26 = vor.u32 %v14904_v59, %v11809_v3  ;;  %v11736_v40 = vor.u32 %v14890_v47, %v11735_v45  ;;  %v11695_v59 = vld [vmem:[#allocation6 + $0x6b0] sm:$0xf]  ;;  %v14880_v3 = vld [vmem:[#allocation6 + $0x6d4] sm:$0xf0]  ;;  %v10935_v47 = vld [vmem:[#allocation6 + $0xc0] sm:$0xf] }
 0x3cb   :  { %v13292_v1 = vor.u32 %v15274_v53, %v13289_v54  ;;  %v11696_v57 = vor.u32 %v14880_v3, %v11695_v59  ;;  %v13129_v59 = vld [vmem:[#allocation6 + $0x1210] sm:$0xf0] }
 0x3cc   :  { %8455 = vmatpush.bf16.msrb.mxu2 %v13572_v9  ;;  %v15304_v9 = vld [vmem:[#allocation6 + $0x141c] sm:$0xf] }
 0x3cd   :  { %8468 = vmatpush.bf16.msrb.mxu3 %v13892_v13  ;;  %v8216_v13 = vpop.f32.mrf.mxu3  ;;  %v13412_v30 = vor.u32 %v15304_v9, %v13409_v23  ;;  %v14710_v9 = vld [vmem:[#allocation6 + $0x184] sm:$0xf0]  ;;  %v12016_v23 = vor.u32 %v14960_v4, %v12015_v37 }
 0x3ce   :  { %8430 = vmatpush.bf16.msrb.mxu0 %v12892_v24  ;;  %v14980_v24 = vld [vmem:[#allocation6 + $0x9f4] sm:$0xf0]  ;;  %8394 = vmatpush.bf16.msra.mxu1 %v11812_v26  ;;  %v8188_v16 = vpop.f32.mrf.mxu1  ;;  %v11015_v26 = vld [vmem:[#allocation6 + $0x160] sm:$0xf] }
 0x3cf   :  { %v12096_v60 = vor.u32 %v14980_v24, %v12095_v29  ;;  %v8189_v19 = vadd.f32 %v8188_v16, %v16098_v0  ;;  %v11655_v13 = vld [vmem:[#allocation6 + $0x660] sm:$0xf] }
 0x3d0   :  { %8456 = vmatpush.bf16.msrb.mxu2 %v13532_v28  ;;  %v15284_v28 = vld [vmem:[#allocation6 + $0x137c] sm:$0xf] }
 0x3d1   :  { %8469 = vmatpush.bf16.msrb.mxu3 %v13852_v36  ;;  %v13732_v36 = vor.u32 %v15384_v7, %v13729_v35  ;;  %v13332_v50 = vor.u32 %v15284_v28, %v13329_v43  ;;  %8395 = vmatmul.bf16.vlgmr.msra.gmra.mxu1 %v15867_v55  ;;  %v11975_v35 = vld [vmem:[#allocation6 + $0x8e0] sm:$0xf]  ;;  %v8202_v18 = vadd.f32 %v16100_v56, %v8189_v19  ;;  %v10975_v28 = vld [vmem:[#allocation6 + $0x110] sm:$0xf]  ;;  %v14700_v43 = vld [vmem:[#allocation6 + $0x134] sm:$0xf0] }
 0x3d2   :  { %8431 = vmatpush.bf16.msrb.mxu0 %v12852_v46  ;;  %8439 = vmatpush.bf16.msrb.mxu1 %v13372_v22  ;;  %v12055_v46 = vld [vmem:[#allocation6 + $0x980] sm:$0xf]  ;;  %v14870_v22 = vld [vmem:[#allocation6 + $0x684] sm:$0xf0]  ;;  %v14860_v56 = vld [vmem:[#allocation6 + $0x634] sm:$0xf0] }
 0x3d3   :  { %v16113_v0 = vadd.f32 %v16102_v32, %v8202_v18  ;;  %v11656_v24 = vor.u32 %v14870_v22, %v11655_v13  ;;  %v10976_v32 = vor.u32 %v14700_v43, %v10975_v28  ;;  %v11455_v13 = vld [vmem:[#allocation6 + $0x4d0] sm:$0xf]  ;;  %v14820_v22 = vld [vmem:[#allocation6 + $0x4f4] sm:$0xf0]  ;;  %v11495_v28 = vld [vmem:[#allocation6 + $0x520] sm:$0xf] }
 0x3d4   :  { %8457 = vmatpush.bf16.msrb.mxu2 %v13492_v58  ;;  %v14970_v58 = vld [vmem:[#allocation6 + $0x9a4] sm:$0xf0] }
 0x3d5   :  { %8470 = vmatpush.bf16.msrb.mxu3 %v13812_v12  ;;  %v11096_v12 = vor.u32 %v14730_v42, %v11095_v41  ;;  %v12056_v34 = vor.u32 %v14970_v58, %v12055_v46  ;;  %v14940_v41 = vld [vmem:[#allocation6 + $0x8b4] sm:$0xf0]  ;;  %v15244_v42 = vld [vmem:[#allocation6 + $0x123c] sm:$0xf]  ;;  %v14690_v46 = vld [vmem:[#allocation6 + $0xe4] sm:$0xf0] }
 0x3d6   :  { %8432 = vmatpush.bf16.msrb.mxu0 %v12812_v5  ;;  %8440 = vmatpush.bf16.msrb.mxu1 %v13332_v50  ;;  %v15264_v5 = vld [vmem:[#allocation6 + $0x12dc] sm:$0xf]  ;;  %v8190_v50 = vpop.f32.mrf.mxu1  ;;  %v10936_v37 = vor.u32 %v14690_v46, %v10935_v47  ;;  %v14830_v43 = vld [vmem:[#allocation6 + $0x544] sm:$0xf0]  ;;  %v11415_v47 = vld [vmem:[#allocation6 + $0x480] sm:$0xf] }
 0x3d7   :  { %v13375_v50 = vld [vmem:[#allocation6 + $0x13d0] sm:$0xf]  ;;  %v14810_v46 = vld [vmem:[#allocation6 + $0x4a4] sm:$0xf0] }
 0x3d8   :  { %8458 = vmatpush.bf16.msrb.mxu2 %v13452_v6  ;;  %v13249_v6 = vld [vmem:[#allocation6 + $0x1300] sm:$0xf0] }
 0x3d9   :  { %8471 = vmatpush.bf16.msrb.mxu3 %v13772_v14  ;;  %v11056_v14 = vor.u32 %v14720_v63, %v11055_v62  ;;  %v13252_v7 = vor.u32 %v15264_v5, %v13249_v6  ;;  %v11895_v62 = vld [vmem:[#allocation6 + $0x840] sm:$0xf]  ;;  %v10895_v5 = vld [vmem:[#allocation6 + $0x70] sm:$0xf]  ;;  %v14680_v6 = vld [vmem:[#allocation6 + $0x94] sm:$0xf0] }
 0x3da   :  { %8433 = vmatpush.bf16.msrb.mxu0 %v12772_v31  ;;  %8441 = vmatpush.bf16.msrb.mxu1 %v13292_v1  ;;  %v16110_v29 = vpop.f32.mrf.mxu0  ;;  %v11016_v31 = vor.u32 %v14710_v9, %v11015_v26  ;;  %v15234_v1 = vld [vmem:[#allocation6 + $0x11ec] sm:$0xf]  ;;  %v11855_v26 = vld [vmem:[#allocation6 + $0x7f0] sm:$0xf]  ;;  %v14920_v9 = vld [vmem:[#allocation6 + $0x814] sm:$0xf0] }
 0x3db   :  { %v13132_v19 = vor.u32 %v15234_v1, %v13129_v59  ;;  %v12375_v1 = vld [vmem:[#allocation6 + $0xc00] sm:$0xf]  ;;  %v15050_v59 = vld [vmem:[#allocation6 + $0xc24] sm:$0xf0] }
 0x3dc   :  { %8459 = vmatpush.bf16.msrb.mxu2 %v13412_v30  ;;  %v11976_v30 = vor.u32 %v14950_v39, %v11975_v35  ;;  %v10896_v35 = vor.u32 %v14680_v6, %v10895_v5  ;;  %v10855_v39 = vld [vmem:[#allocation6 + $0x20] sm:$0xf]  ;;  %v15210_v5 = vld [vmem:[#allocation6 + $0x1124] sm:$0xf0] }
 0x3dd   :  { %8472 = vmatpush.bf16.msrb.mxu3 %v13732_v36  ;;  %8434 = vmatmul.bf16.vlgmr.msrb.gmra.mxu0 %v15880_v49  ;;  %v13212_v36 = vor.u32 %v15254_v20, %v13209_v25  ;;  %v14670_v20 = vld [vmem:[#allocation6 + $0x44] sm:$0xf0]  ;;  %v11856_v25 = vor.u32 %v14920_v9, %v11855_v26  ;;  %v13335_v6 = vld [vmem:[#allocation6 + $0x1380] sm:$0xf]  ;;  %v12335_v9 = vld [vmem:[#allocation6 + $0xbb0] sm:$0xf] }
 0x3de   :  { %8478 = vmatpush.bf16.msra.mxu0 %v11136_v38  ;;  %8442 = vmatpush.bf16.msrb.mxu1 %v13252_v7  ;;  %v11615_v38 = vld [vmem:[#allocation6 + $0x610] sm:$0xf]  ;;  %v13089_v7 = vld [vmem:[#allocation6 + $0x11c0] sm:$0xf0] }
 0x3df   :  { %8460 = vmatmul.bf16.vlgmr.msrb.gmra.mxu2 %v15898_v11  ;;  %v11616_v45 = vor.u32 %v14860_v56, %v11615_v38  ;;  %v11456_v38 = vor.u32 %v14820_v22, %v11455_v13  ;;  %v14910_v56 = vld [vmem:[#allocation6 + $0x7c4] sm:$0xf0]  ;;  %v12975_v22 = vld [vmem:[#allocation6 + $0x10b0] sm:$0xf] }
 0x3e0   :  { %8504 = vmatpush.bf16.msra.mxu2 %v11776_v44  ;;  %8473 = vmatmul.bf16.vlgmr.msrb.gmra.mxu3 %v15905_v27  ;;  %v11935_v44 = vld [vmem:[#allocation6 + $0x890] sm:$0xf] }
 0x3e1   :  { %8517 = vmatpush.bf16.msra.mxu3 %v12096_v60  ;;  %v13169_v60 = vld [vmem:[#allocation6 + $0x1260] sm:$0xf0]  ;;  %v11936_v58 = vor.u32 %v14940_v41, %v11935_v44  ;;  %v12415_v44 = vld [vmem:[#allocation6 + $0xc50] sm:$0xf]  ;;  %v15060_v41 = vld [vmem:[#allocation6 + $0xc74] sm:$0xf0] }
 0x3e2   :  { %8479 = vmatpush.bf16.msra.mxu0 %v11096_v12  ;;  %8443 = vmatpush.bf16.msrb.mxu1 %v13212_v36  ;;  %v16115_v53 = vpop.f32.mrf.mxu2  ;;  %v13172_v54 = vor.u32 %v15244_v42, %v13169_v60  ;;  %v11575_v12 = vld [vmem:[#allocation6 + $0x5c0] sm:$0xf]  ;;  %v8229_v3 = vpop.f32.mrf.mxu0  ;;  %v13055_v42 = vld [vmem:[#allocation6 + $0x1150] sm:$0xf]  ;;  %v15220_v60 = vld [vmem:[#allocation6 + $0x1174] sm:$0xf0] }
 0x3e3   :  { %v16117_v63 = vpop.f32.mrf.mxu3 }
 0x3e4   :  { %8505 = vmatpush.bf16.msra.mxu2 %v11736_v40  ;;  %v14850_v40 = vld [vmem:[#allocation6 + $0x5e4] sm:$0xf0] }
 0x3e5   :  { %8518 = vmatpush.bf16.msra.mxu3 %v12056_v34  ;;  %v14930_v34 = vld [vmem:[#allocation6 + $0x864] sm:$0xf0]  ;;  %v11576_v4 = vor.u32 %v14850_v40, %v11575_v12  ;;  %v16119_v12 = vld [vmem:[#allocation7] sm:$0xff] }
 0x3e6   :  { %8480 = vmatpush.bf16.msra.mxu0 %v11056_v14  ;;  %8444 = vmatpush.bf16.msrb.mxu1 %v13172_v54  ;;  %v11896_v16 = vor.u32 %v14930_v34, %v11895_v62  ;;  %v11535_v14 = vld [vmem:[#allocation6 + $0x570] sm:$0xf]  ;;  %v3424_v40 = vperm.slane %v16119_v12, 6  ;;  %v12416_v62 = vor.u32 %v15060_v41, %v12415_v44  ;;  %v13056_v34 = vor.u32 %v15220_v60, %v13055_v42  ;;  %v12935_v44 = vld [vmem:[#allocation6 + $0x1060] sm:$0xf] }
 0x3e7   :  { %v15190_v41 = vld [vmem:[#allocation6 + $0x1084] sm:$0xf0]  ;;  %v13255_v42 = vld [vmem:[#allocation6 + $0x12e0] sm:$0xf] }
 0x3e8   :  { %8506 = vmatpush.bf16.msra.mxu2 %v11696_v57  ;;  %v14840_v57 = vld [vmem:[#allocation6 + $0x594] sm:$0xf0] }
 0x3e9   :  { %8519 = vmatpush.bf16.msra.mxu3 %v12016_v23  ;;  %v15224_v23 = vld [vmem:[#allocation6 + $0x119c] sm:$0xf]  ;;  %v11536_v18 = vor.u32 %v14840_v57, %v11535_v14  ;;  %v14800_v14 = vld [vmem:[#allocation6 + $0x454] sm:$0xf0]  ;;  %v12376_v57 = vor.u32 %v15050_v59, %v12375_v1  ;;  %v12895_v59 = vld [vmem:[#allocation6 + $0x1010] sm:$0xf] }
 0x3ea   :  { %8481 = vmatpush.bf16.msra.mxu0 %v11016_v31  ;;  %8445 = vmatpush.bf16.msrb.mxu1 %v13132_v19  ;;  %v8255_v31 = vpop.f32.mrf.mxu2  ;;  %v11375_v19 = vld [vmem:[#allocation6 + $0x430] sm:$0xf] }
 0x3eb   :  { %v8268_v36 = vpop.f32.mrf.mxu3  ;;  %v11376_v13 = vor.u32 %v14800_v14, %v11375_v19  ;;  %v14790_v31 = vld [vmem:[#allocation6 + $0x404] sm:$0xf0]  ;;  %v12215_v14 = vld [vmem:[#allocation6 + $0xac0] sm:$0xf] }
 0x3ec   :  { %8507 = vmatpush.bf16.msra.mxu2 %v11656_v24  ;;  %v13092_v24 = vor.u32 %v15224_v23, %v13089_v7  ;;  %v15040_v23 = vld [vmem:[#allocation6 + $0xbd4] sm:$0xf0]  ;;  %v12295_v36 = vld [vmem:[#allocation6 + $0xb60] sm:$0xf] }
 0x3ed   :  { %8520 = vmatpush.bf16.msra.mxu3 %v11976_v30  ;;  %v11815_v30 = vld [vmem:[#allocation6 + $0x7a0] sm:$0xf] }
 0x3ee   :  { %8482 = vmatpush.bf16.msra.mxu0 %v10976_v32  ;;  %v10856_v32 = vor.u32 %v14670_v20, %v10855_v39  ;;  %8446 = vmatpush.bf16.msrb.mxu1 %v13092_v24  ;;  %v11816_v54 = vor.u32 %v14910_v56, %v11815_v30  ;;  %v8228_v39 = vadd.f32 %v16110_v29, %v3424_v40  ;;  %v15280_v20 = vld [vmem:[#allocation6 + $0x1354] sm:$0xf0]  ;;  %v8240_v24 = vpop.f32.mrf.mxu1  ;;  %v12255_v40 = vld [vmem:[#allocation6 + $0xb10] sm:$0xf] }
 0x3f0   :  { %8508 = vmatpush.bf16.msra.mxu2 %v11616_v45  ;;  %v15300_v45 = vld [vmem:[#allocation6 + $0x13f4] sm:$0xf0] }
 0x3f1   :  { %8521 = vmatpush.bf16.msra.mxu3 %v11936_v58  ;;  %v11496_v58 = vor.u32 %v14830_v43, %v11495_v28  ;;  %v13376_v3 = vor.u32 %v15300_v45, %v13375_v50  ;;  %8447 = vmatmul.bf16.vlgmr.msrb.gmra.mxu1 %v15890_v10  ;;  %v8241_v28 = vadd.f32 %v8240_v24, %v8228_v39  ;;  %v15270_v50 = vld [vmem:[#allocation6 + $0x1304] sm:$0xf0]  ;;  %v14780_v45 = vld [vmem:[#allocation6 + $0x3b4] sm:$0xf0]  ;;  %v11215_v39 = vld [vmem:[#allocation6 + $0x2f0] sm:$0xf] }
 0x3f2   :  { %8483 = vmatpush.bf16.msra.mxu0 %v10936_v37  ;;  %8491 = vmatpush.bf16.msra.mxu1 %v11456_v38  ;;  %v11416_v37 = vor.u32 %v14810_v46, %v11415_v47  ;;  %v12336_v43 = vor.u32 %v15040_v23, %v12335_v9  ;;  %v15030_v38 = vld [vmem:[#allocation6 + $0xb84] sm:$0xf0] }
 0x3f3   :  { %v8254_v60 = vadd.f32 %v16115_v53, %v8241_v28  ;;  %v12175_v28 = vld [vmem:[#allocation6 + $0xa70] sm:$0xf] }
 0x3f4   :  { %8509 = vmatpush.bf16.msra.mxu2 %v11576_v4  ;;  %v13015_v4 = vld [vmem:[#allocation6 + $0x1100] sm:$0xf] }
 0x3f5   :  { %8522 = vmatpush.bf16.msra.mxu3 %v11896_v16  ;;  %v15290_v16 = vld [vmem:[#allocation6 + $0x13a4] sm:$0xf0]  ;;  %v13016_v26 = vor.u32 %v15210_v5, %v13015_v4  ;;  %v8267_v46 = vadd.f32 %v16117_v63, %v8254_v60  ;;  %v15260_v4 = vld [vmem:[#allocation6 + $0x12b4] sm:$0xf0]  ;;  %v11255_v5 = vld [vmem:[#allocation6 + $0x340] sm:$0xf] }
 0x3f6   :  { %8484 = vmatpush.bf16.msra.mxu0 %v10896_v35  ;;  %8492 = vmatpush.bf16.msra.mxu1 %v11416_v37  ;;  %v13336_v7 = vor.u32 %v15290_v16, %v13335_v6  ;;  %v15200_v35 = vld [vmem:[#allocation6 + $0x10d4] sm:$0xf0]  ;;  %v13215_v37 = vld [vmem:[#allocation6 + $0x1290] sm:$0xf]  ;;  %v14770_v6 = vld [vmem:[#allocation6 + $0x364] sm:$0xf0]  ;;  %v8242_v16 = vpop.f32.mrf.mxu1 }
 0x3f7   :  { %v12976_v30 = vor.u32 %v15200_v35, %v12975_v22  ;;  %v11256_v23 = vor.u32 %v14770_v6, %v11255_v5  ;;  %v13175_v22 = vld [vmem:[#allocation6 + $0x1240] sm:$0xf]  ;;  %v12735_v60 = vld [vmem:[#allocation6 + $0xed0] sm:$0xf]  ;;  %v15380_v5 = vld [vmem:[#allocation6 + $0x1674] sm:$0xf0] }
 0x3f8   :  { %8510 = vmatpush.bf16.msra.mxu2 %v11536_v18  ;;  %v13295_v18 = vld [vmem:[#allocation6 + $0x1330] sm:$0xf]  ;;  %v14735_v6 = vld [vmem:[#allocation6 + $0x254] sm:$0xf]  ;;  %v11137_v16 = vld [vmem:[#allocation6 + $0x278] sm:$0xf0] }
 0x3f9   :  { %8523 = vmatpush.bf16.msra.mxu3 %v11856_v25  ;;  %v11335_v25 = vld [vmem:[#allocation6 + $0x3e0] sm:$0xf]  ;;  %v13296_v29 = vor.u32 %v15280_v20, %v13295_v18  ;;  %v15250_v18 = vld [vmem:[#allocation6 + $0x1264] sm:$0xf0]  ;;  %v14760_v20 = vld [vmem:[#allocation6 + $0x314] sm:$0xf0] }
 0x3fa   :  { %8485 = vmatpush.bf16.msra.mxu0 %v10856_v32  ;;  %8493 = vmatpush.bf16.msra.mxu1 %v11376_v13  ;;  %v11336_v56 = vor.u32 %v14790_v31, %v11335_v25  ;;  %v11295_v32 = vld [vmem:[#allocation6 + $0x390] sm:$0xf]  ;;  %v8279_v47 = vpop.f32.mrf.mxu0  ;;  %v15170_v13 = vld [vmem:[#allocation6 + $0xfe4] sm:$0xf0] }
 0x3fb   :  { %v11296_v1 = vor.u32 %v14780_v45, %v11295_v32  ;;  %v16129_v53 = vadd.f32 %v8279_v47, %v8267_v46  ;;  %v12135_v47 = vld [vmem:[#allocation6 + $0xa20] sm:$0xf]  ;;  %v14990_v46 = vld [vmem:[#allocation6 + $0xa44] sm:$0xf0] }
 0x3fc   :  { %8511 = vmatpush.bf16.msra.mxu2 %v11496_v58  ;;  %v12296_v58 = vor.u32 %v15030_v38, %v12295_v36  ;;  %v11216_v36 = vor.u32 %v14760_v20, %v11215_v39  ;;  %v12815_v38 = vld [vmem:[#allocation6 + $0xf70] sm:$0xf]  ;;  %v15370_v39 = vld [vmem:[#allocation6 + $0x1624] sm:$0xf0] }
 0x3fd   :  { %8524 = vmatpush.bf16.msra.mxu3 %v11816_v54  ;;  %8486 = vmatmul.bf16.vlgmr.msra.gmra.mxu0 %v15861_v2  ;;  %v12936_v54 = vor.u32 %v15190_v41, %v12935_v44  ;;  %v15240_v44 = vld [vmem:[#allocation6 + $0x1214] sm:$0xf0]  ;;  %v11175_v41 = vld [vmem:[#allocation6 + $0x2a0] sm:$0xf] }
 0x3fe   :  { %8530 = vmatpush.bf16.msrb.mxu0 %v12416_v62  ;;  %v15020_v62 = vld [vmem:[#allocation6 + $0xb34] sm:$0xf0]  ;;  %8494 = vmatpush.bf16.msra.mxu1 %v11336_v56  ;;  %v13135_v56 = vld [vmem:[#allocation6 + $0x11f0] sm:$0xf] }
 0x3ff   :  { %8512 = vmatmul.bf16.vlgmr.msra.gmra.mxu2 %v15865_v48  ;;  %v12256_v63 = vor.u32 %v15020_v62, %v12255_v40  ;;  %v12775_v62 = vld [vmem:[#allocation6 + $0xf20] sm:$0xf] }
 0x400   :  { %8556 = vmatpush.bf16.msrb.mxu2 %v13056_v34  ;;  %8525 = vmatmul.bf16.vlgmr.msra.gmra.mxu3 %v15867_v55  ;;  %v13256_v34 = vor.u32 %v15270_v50, %v13255_v42  ;;  %v14750_v42 = vld [vmem:[#allocation6 + $0x2c4] sm:$0xf0]  ;;  %v15140_v50 = vld [vmem:[#allocation6 + $0xef4] sm:$0xf0] }
 0x401   :  { %8569 = vmatpush.bf16.msrb.mxu3 %v13376_v3  ;;  %v15180_v3 = vld [vmem:[#allocation6 + $0x1034] sm:$0xf0]  ;;  %v11176_v40 = vor.u32 %v14750_v42, %v11175_v41 }
 0x402   :  { %8531 = vmatpush.bf16.msrb.mxu0 %v12376_v57  ;;  %v12896_v19 = vor.u32 %v15180_v3, %v12895_v59  ;;  %v15010_v57 = vld [vmem:[#allocation6 + $0xae4] sm:$0xf0]  ;;  %8495 = vmatpush.bf16.msra.mxu1 %v11296_v1  ;;  %v16131_v9 = vpop.f32.mrf.mxu2  ;;  %v8281_v25 = vpop.f32.mrf.mxu0  ;;  %v13095_v1 = vld [vmem:[#allocation6 + $0x11a0] sm:$0xf]  ;;  %v12736_v3 = vor.u32 %v15140_v50, %v12735_v60  ;;  %v14715_v60 = vld [vmem:[#allocation6 + $0x1b4] sm:$0xf] }
 0x403   :  { %v16133_v35 = vpop.f32.mrf.mxu3  ;;  %v12216_v31 = vor.u32 %v15010_v57, %v12215_v14  ;;  %v11457_v14 = vld [vmem:[#allocation6 + $0x4f8] sm:$0xf0]  ;;  %v12695_v57 = vld [vmem:[#allocation6 + $0xe80] sm:$0xf] }
 0x404   :  { %8557 = vmatpush.bf16.msrb.mxu2 %v13016_v26  ;;  %v13216_v26 = vor.u32 %v15260_v4, %v13215_v37  ;;  %v15230_v37 = vld [vmem:[#allocation6 + $0x11c4] sm:$0xf0]  ;;  %v13695_v4 = vld [vmem:[#allocation6 + $0x1650] sm:$0xf]  ;;  %v11057_v50 = vld [vmem:[#allocation6 + $0x1d8] sm:$0xf0] }
 0x405   :  { %8570 = vmatpush.bf16.msrb.mxu3 %v13336_v7  ;;  %v12855_v7 = vld [vmem:[#allocation6 + $0xfc0] sm:$0xf] }
 0x406   :  { %8532 = vmatpush.bf16.msrb.mxu0 %v12336_v43  ;;  %v12856_v24 = vor.u32 %v15170_v13, %v12855_v7  ;;  %v15000_v43 = vld [vmem:[#allocation6 + $0xa94] sm:$0xf0]  ;;  %8496 = vmatpush.bf16.msra.mxu1 %v11256_v23  ;;  %v13096_v7 = vor.u32 %v15230_v37, %v13095_v1  ;;  %v13696_v13 = vor.u32 %v15380_v5, %v13695_v4  ;;  %v15350_v1 = vld [vmem:[#allocation6 + $0x1584] sm:$0xf0]  ;;  %v14705_v37 = vld [vmem:[#allocation6 + $0x164] sm:$0xf] }
 0x407   :  { %v12176_v32 = vor.u32 %v15000_v43, %v12175_v28  ;;  %v14805_v28 = vld [vmem:[#allocation6 + $0x484] sm:$0xf]  ;;  %v11417_v43 = vld [vmem:[#allocation6 + $0x4a8] sm:$0xf0] }
 0x408   :  { %8558 = vmatpush.bf16.msrb.mxu2 %v12976_v30  ;;  %v13176_v30 = vor.u32 %v15250_v18, %v13175_v22  ;;  %v11140_v22 = vor.u32 %v14735_v6, %v11137_v16  ;;  %v13655_v18 = vld [vmem:[#allocation6 + $0x1600] sm:$0xf]  ;;  %v11420_v41 = vor.u32 %v14805_v28, %v11417_v43  ;;  %v11017_v4 = vld [vmem:[#allocation6 + $0x188] sm:$0xf0]  ;;  %v14785_v5 = vld [vmem:[#allocation6 + $0x3e4] sm:$0xf] }
 0x409   :  { %8571 = vmatpush.bf16.msrb.mxu3 %v13296_v29  ;;  %v15160_v29 = vld [vmem:[#allocation6 + $0xf94] sm:$0xf0]  ;;  %v11337_v16 = vld [vmem:[#allocation6 + $0x408] sm:$0xf0]  ;;  %v15090_v28 = vld [vmem:[#allocation6 + $0xd64] sm:$0xf0] }
 0x40a   :  { %8533 = vmatpush.bf16.msrb.mxu0 %v12296_v58  ;;  %v12816_v45 = vor.u32 %v15160_v29, %v12815_v38  ;;  %8497 = vmatpush.bf16.msra.mxu1 %v11216_v36  ;;  %v13136_v58 = vor.u32 %v15240_v44, %v13135_v56  ;;  %v15120_v36 = vld [vmem:[#allocation6 + $0xe54] sm:$0xf0]  ;;  %v13656_v38 = vor.u32 %v15370_v39, %v13655_v18  ;;  %v13615_v56 = vld [vmem:[#allocation6 + $0x15b0] sm:$0xf]  ;;  %v10977_v39 = vld [vmem:[#allocation6 + $0x138] sm:$0xf0] }
 0x40b   :  { %v8320_v59 = vpop.f32.mrf.mxu3  ;;  %v15360_v44 = vld [vmem:[#allocation6 + $0x15d4] sm:$0xf0] }
 0x40c   :  { %8559 = vmatpush.bf16.msrb.mxu2 %v12936_v54  ;;  %v8307_v54 = vpop.f32.mrf.mxu2 }
 0x40d   :  { %8572 = vmatpush.bf16.msrb.mxu3 %v13256_v34  ;;  %v15150_v34 = vld [vmem:[#allocation6 + $0xf44] sm:$0xf0] }
 0x40e   :  { %8534 = vmatpush.bf16.msrb.mxu0 %v12256_v63  ;;  %v14815_v63 = vld [vmem:[#allocation6 + $0x4d4] sm:$0xf]  ;;  %8498 = vmatpush.bf16.msra.mxu1 %v11176_v40  ;;  %v12776_v23 = vor.u32 %v15150_v34, %v12775_v62  ;;  %v13616_v40 = vor.u32 %v15360_v44, %v13615_v56  ;;  %v11060_v62 = vor.u32 %v14715_v60, %v11057_v50  ;;  %v13575_v34 = vld [vmem:[#allocation6 + $0x1560] sm:$0xf]  ;;  %v14765_v60 = vld [vmem:[#allocation6 + $0x344] sm:$0xf] }
 0x40f   :  { %v11460_v20 = vor.u32 %v14815_v63, %v11457_v14  ;;  %v12575_v63 = vld [vmem:[#allocation6 + $0xd90] sm:$0xf] }
 0x410   :  { %8560 = vmatpush.bf16.msrb.mxu2 %v12896_v19  ;;  %v12136_v19 = vor.u32 %v14990_v46, %v12135_v47  ;;  %v12615_v47 = vld [vmem:[#allocation6 + $0xde0] sm:$0xf]  ;;  %v15110_v46 = vld [vmem:[#allocation6 + $0xe04] sm:$0xf0] }
 0x411   :  { %8573 = vmatpush.bf16.msrb.mxu3 %v13216_v26  ;;  %v15130_v26 = vld [vmem:[#allocation6 + $0xea4] sm:$0xf0]  ;;  %8499 = vmatmul.bf16.vlgmr.msra.gmra.mxu1 %v15863_v61 }
 0x412   :  { %8535 = vmatpush.bf16.msrb.mxu0 %v12216_v31  ;;  %8543 = vmatpush.bf16.msrb.mxu1 %v12736_v3  ;;  %v12696_v25 = vor.u32 %v15130_v26, %v12695_v57  ;;  %v14725_v31 = vld [vmem:[#allocation6 + $0x204] sm:$0xf]  ;;  %v12616_v3 = vor.u32 %v15110_v46, %v12615_v47  ;;  %v13576_v57 = vor.u32 %v15350_v1, %v13575_v34  ;;  %v15080_v47 = vld [vmem:[#allocation6 + $0xd14] sm:$0xf0] }
 0x413   :  { %v11020_v26 = vor.u32 %v14705_v37, %v11017_v4  ;;  %v15320_v34 = vld [vmem:[#allocation6 + $0x1494] sm:$0xf0]  ;;  %v10897_v37 = vld [vmem:[#allocation6 + $0x98] sm:$0xf0]  ;;  %v14755_v4 = vld [vmem:[#allocation6 + $0x2f4] sm:$0xf] }
 0x414   :  { %8561 = vmatpush.bf16.msrb.mxu2 %v12856_v24  ;;  %v11097_v24 = vld [vmem:[#allocation6 + $0x228] sm:$0xf0] }
 0x415   :  { %8574 = vmatpush.bf16.msrb.mxu3 %v13176_v30  ;;  %v12655_v30 = vld [vmem:[#allocation6 + $0xe30] sm:$0xf]  ;;  %v11100_v29 = vor.u32 %v14725_v31, %v11097_v24  ;;  %v3425_v31 = vperm.slane %v16119_v12, 7  ;;  %v12535_v24 = vld [vmem:[#allocation6 + $0xd40] sm:$0xf] }
 0x416   :  { %8536 = vmatpush.bf16.msrb.mxu0 %v12176_v32  ;;  %8544 = vmatpush.bf16.msrb.mxu1 %v12696_v25  ;;  %v12656_v42 = vor.u32 %v15120_v36, %v12655_v30  ;;  %v14795_v32 = vld [vmem:[#allocation6 + $0x434] sm:$0xf]  ;;  %v13495_v36 = vld [vmem:[#allocation6 + $0x14c0] sm:$0xf]  ;;  %v12536_v44 = vor.u32 %v15090_v28, %v12535_v24  ;;  %v11257_v12 = vld [vmem:[#allocation6 + $0x368] sm:$0xf0] }
 0x417   :  { %v11260_v1 = vor.u32 %v14765_v60, %v11257_v12  ;;  %v14895_v24 = vld [vmem:[#allocation6 + $0x754] sm:$0xf]  ;;  %v11777_v28 = vld [vmem:[#allocation6 + $0x778] sm:$0xf0] }
 0x418   :  { %8562 = vmatpush.bf16.msrb.mxu2 %v12816_v45  ;;  %v11377_v45 = vld [vmem:[#allocation6 + $0x458] sm:$0xf0] }
 0x419   :  { %8575 = vmatpush.bf16.msrb.mxu3 %v13136_v58  ;;  %v8292_v58 = vpop.f32.mrf.mxu1  ;;  %v11380_v59 = vor.u32 %v14795_v32, %v11377_v45  ;;  %v12495_v45 = vld [vmem:[#allocation6 + $0xcf0] sm:$0xf] }
 0x41a   :  { %8537 = vmatpush.bf16.msrb.mxu0 %v12136_v19  ;;  %v8293_v54 = vadd.f32 %v8292_v58, %v16129_v53  ;;  %8545 = vmatpush.bf16.msrb.mxu1 %v12656_v42  ;;  %v15100_v19 = vld [vmem:[#allocation6 + $0xdb4] sm:$0xf0]  ;;  %v8331_v14 = vpop.f32.mrf.mxu0  ;;  %v10937_v42 = vld [vmem:[#allocation6 + $0xe8] sm:$0xf0] }
 0x41b   :  { %v12576_v18 = vor.u32 %v15100_v19, %v12575_v63  ;;  %v14015_v63 = vld [vmem:[#allocation6 + $0x18d0] sm:$0xf]  ;;  %v15460_v19 = vld [vmem:[#allocation6 + $0x18f4] sm:$0xf0] }
 0x41c   :  { %8563 = vmatpush.bf16.msrb.mxu2 %v12776_v23  ;;  %v8306_v6 = vadd.f32 %v16131_v9, %v8293_v54  ;;  %v13535_v23 = vld [vmem:[#allocation6 + $0x1510] sm:$0xf]  ;;  %v11297_v9 = vld [vmem:[#allocation6 + $0x3b8] sm:$0xf0] }
 0x41d   :  { %8576 = vmatpush.bf16.msrb.mxu3 %v13096_v7  ;;  %8538 = vmatmul.bf16.vlgmr.msrb.gmra.mxu0 %v15882_v51  ;;  %v15340_v7 = vld [vmem:[#allocation6 + $0x1534] sm:$0xf0] }
 0x41e   :  { %8582 = vmatpush.bf16.msra.mxu0 %v13696_v13  ;;  %v8319_v53 = vadd.f32 %v16133_v35, %v8306_v6  ;;  %v14695_v13 = vld [vmem:[#allocation6 + $0x114] sm:$0xf]  ;;  %8546 = vmatpush.bf16.msrb.mxu1 %v12616_v3  ;;  %v13536_v35 = vor.u32 %v15340_v7, %v13535_v23  ;;  %v12455_v6 = vld [vmem:[#allocation6 + $0xca0] sm:$0xf] }
 0x41f   :  { %8564 = vmatmul.bf16.vlgmr.msrb.gmra.mxu2 %v15880_v49  ;;  %v10980_v30 = vor.u32 %v14695_v13, %v10977_v39  ;;  %v14675_v3 = vld [vmem:[#allocation6 + $0x74] sm:$0xf]  ;;  %v14745_v39 = vld [vmem:[#allocation6 + $0x2a4] sm:$0xf] }
 0x420   :  { %8608 = vmatpush.bf16.msra.mxu2 %v11140_v22  ;;  %8577 = vmatmul.bf16.vlgmr.msrb.gmra.mxu3 %v15890_v10  ;;  %v11340_v22 = vor.u32 %v14785_v5, %v11337_v16  ;;  %v16142_v25 = vadd.f32 %v8331_v14, %v8319_v53  ;;  %v11217_v5 = vld [vmem:[#allocation6 + $0x318] sm:$0xf0]  ;;  %v15070_v16 = vld [vmem:[#allocation6 + $0xcc4] sm:$0xf0]  ;;  %v10900_v53 = vor.u32 %v14675_v3, %v10897_v37  ;;  %v14875_v3 = vld [vmem:[#allocation6 + $0x6b4] sm:$0xf] }
 0x421   :  { %8621 = vmatpush.bf16.msra.mxu3 %v11460_v20  ;;  %v14775_v20 = vld [vmem:[#allocation6 + $0x394] sm:$0xf]  ;;  %v8294_v43 = vpop.f32.mrf.mxu1  ;;  %v11220_v23 = vor.u32 %v14755_v4, %v11217_v5  ;;  %v12456_v13 = vor.u32 %v15070_v16, %v12455_v6  ;;  %v11697_v37 = vld [vmem:[#allocation6 + $0x6d8] sm:$0xf0] }
 0x422   :  { %8583 = vmatpush.bf16.msra.mxu0 %v13656_v38  ;;  %v15330_v38 = vld [vmem:[#allocation6 + $0x14e4] sm:$0xf0]  ;;  %8547 = vmatpush.bf16.msrb.mxu1 %v12576_v18  ;;  %v8357_v56 = vpop.f32.mrf.mxu2  ;;  %v8333_v46 = vpop.f32.mrf.mxu0  ;;  %v10857_v18 = vld [vmem:[#allocation6 + $0x48] sm:$0xf0]  ;;  %v15055_v43 = vld [vmem:[#allocation6 + $0xc54] sm:$0xf] }
 0x423   :  { %v8358_v50 = vadd.f32 %v8357_v56, %v3425_v31  ;;  %v8370_v32 = vpop.f32.mrf.mxu3  ;;  %v13496_v54 = vor.u32 %v15330_v38, %v13495_v36  ;;  %v11177_v31 = vld [vmem:[#allocation6 + $0x2c8] sm:$0xf0]  ;;  %v12737_v38 = vld [vmem:[#allocation6 + $0xef8] sm:$0xf0]  ;;  %v15450_v56 = vld [vmem:[#allocation6 + $0x18a4] sm:$0xf0] }
 0x424   :  { %8609 = vmatpush.bf16.msra.mxu2 %v11100_v29  ;;  %v11300_v29 = vor.u32 %v14775_v20, %v11297_v9  ;;  %v14016_v9 = vor.u32 %v15460_v19, %v14015_v63  ;;  %v12377_v46 = vld [vmem:[#allocation6 + $0xc28] sm:$0xf0]  ;;  %v15035_v6 = vld [vmem:[#allocation6 + $0xbb4] sm:$0xf]  ;;  %v12337_v16 = vld [vmem:[#allocation6 + $0xbd8] sm:$0xf0] }
 0x425   :  { %8622 = vmatpush.bf16.msra.mxu3 %v11420_v41  ;;  %v14685_v41 = vld [vmem:[#allocation6 + $0xc4] sm:$0xf]  ;;  %v16145_v58 = vadd.f32 %v8370_v32, %v8358_v50  ;;  %v11737_v32 = vld [vmem:[#allocation6 + $0x728] sm:$0xf0]  ;;  %v15115_v63 = vld [vmem:[#allocation6 + $0xe34] sm:$0xf] }
 0x426   :  { %8584 = vmatpush.bf16.msra.mxu0 %v13616_v40  ;;  %v10940_v40 = vor.u32 %v14685_v41, %v10937_v42  ;;  %8548 = vmatpush.bf16.msrb.mxu1 %v12536_v44  ;;  %v11180_v41 = vor.u32 %v14745_v39, %v11177_v31  ;;  %v11780_v42 = vor.u32 %v14895_v24, %v11777_v28  ;;  %v14885_v50 = vld [vmem:[#allocation6 + $0x704] sm:$0xf]  ;;  %v12657_v19 = vld [vmem:[#allocation6 + $0xe58] sm:$0xf0]  ;;  %v12617_v31 = vld [vmem:[#allocation6 + $0xe08] sm:$0xf0] }
 0x427   :  { %v13855_v24 = vld [vmem:[#allocation6 + $0x1790] sm:$0xf] }
 0x428   :  { %8610 = vmatpush.bf16.msra.mxu2 %v11060_v62  ;;  %v13455_v62 = vld [vmem:[#allocation6 + $0x1470] sm:$0xf] }
 0x429   :  { %8623 = vmatpush.bf16.msra.mxu3 %v11380_v59  ;;  %v12496_v59 = vor.u32 %v15080_v47, %v12495_v45  ;;  %v13456_v14 = vor.u32 %v15320_v34, %v13455_v62  ;;  %v15045_v47 = vld [vmem:[#allocation6 + $0xc04] sm:$0xf]  ;;  %v13935_v62 = vld [vmem:[#allocation6 + $0x1830] sm:$0xf]  ;;  %v15440_v34 = vld [vmem:[#allocation6 + $0x1854] sm:$0xf0] }
 0x42a   :  { %8585 = vmatpush.bf16.msra.mxu0 %v13576_v57  ;;  %v13415_v57 = vld [vmem:[#allocation6 + $0x1420] sm:$0xf]  ;;  %v8359_v7 = vpop.f32.mrf.mxu2  ;;  %v13936_v5 = vor.u32 %v15440_v34, %v13935_v62  ;;  %v15005_v62 = vld [vmem:[#allocation6 + $0xac4] sm:$0xf]  ;;  %v12217_v34 = vld [vmem:[#allocation6 + $0xae8] sm:$0xf0] }
 0x42b   :  { %8549 = vmatpush.bf16.msrb.mxu1 %v12496_v59  ;;  %v8372_v20 = vpop.f32.mrf.mxu3  ;;  %v12380_v59 = vor.u32 %v15045_v47, %v12377_v46  ;;  %v12340_v7 = vor.u32 %v15035_v6, %v12337_v16  ;;  %v11577_v47 = vld [vmem:[#allocation6 + $0x5e8] sm:$0xf0]  ;;  %v12220_v16 = vor.u32 %v15005_v62, %v12217_v34  ;;  %v15205_v34 = vld [vmem:[#allocation6 + $0x1104] sm:$0xf] }
 0x42c   :  { %8611 = vmatpush.bf16.msra.mxu2 %v11020_v26  ;;  %v15310_v26 = vld [vmem:[#allocation6 + $0x1444] sm:$0xf0]  ;;  %v12297_v20 = vld [vmem:[#allocation6 + $0xb88] sm:$0xf0] }
 0x42d   :  { %8624 = vmatpush.bf16.msra.mxu3 %v11340_v22  ;;  %v14665_v22 = vld [vmem:[#allocation6 + $0x24] sm:$0xf]  ;;  %v13416_v36 = vor.u32 %v15310_v26, %v13415_v57 }
 0x42e   :  { %8586 = vmatpush.bf16.msra.mxu0 %v13536_v35  ;;  %v12417_v35 = vld [vmem:[#allocation6 + $0xc78] sm:$0xf0]  ;;  %v10860_v44 = vor.u32 %v14665_v22, %v10857_v18  ;;  %v8344_v57 = vpop.f32.mrf.mxu1  ;;  %v11657_v22 = vld [vmem:[#allocation6 + $0x688] sm:$0xf0]  ;;  %v12660_v18 = vor.u32 %v15115_v63, %v12657_v19  ;;  %v14835_v63 = vld [vmem:[#allocation6 + $0x574] sm:$0xf] }
 0x42f   :  { %8550 = vmatpush.bf16.msrb.mxu1 %v12456_v13  ;;  %v12420_v60 = vor.u32 %v15055_v43, %v12417_v35  ;;  %v16152_v26 = vadd.f32 %v8344_v57, %v16142_v25  ;;  %v14865_v13 = vld [vmem:[#allocation6 + $0x664] sm:$0xf]  ;;  %v11537_v19 = vld [vmem:[#allocation6 + $0x598] sm:$0xf0]  ;;  %v14995_v57 = vld [vmem:[#allocation6 + $0xa74] sm:$0xf] }
 0x430   :  { %8612 = vmatpush.bf16.msra.mxu2 %v10980_v30  ;;  %v15135_v30 = vld [vmem:[#allocation6 + $0xed4] sm:$0xf]  ;;  %v11660_v43 = vor.u32 %v14865_v13, %v11657_v22  ;;  %v12497_v13 = vld [vmem:[#allocation6 + $0xd18] sm:$0xf0]  ;;  %v13735_v22 = vld [vmem:[#allocation6 + $0x16a0] sm:$0xf] }
 0x431   :  { %8625 = vmatpush.bf16.msra.mxu3 %v11300_v29  ;;  %v13975_v29 = vld [vmem:[#allocation6 + $0x1880] sm:$0xf]  ;;  %v12740_v12 = vor.u32 %v15135_v30, %v12737_v38  ;;  %v14855_v30 = vld [vmem:[#allocation6 + $0x614] sm:$0xf] }
 0x432   :  { %8587 = vmatpush.bf16.msra.mxu0 %v13496_v54  ;;  %v13976_v45 = vor.u32 %v15450_v56, %v13975_v29  ;;  %v15125_v54 = vld [vmem:[#allocation6 + $0xe84] sm:$0xf]  ;;  %8551 = vmatmul.bf16.vlgmr.msrb.gmra.mxu1 %v15884_v52  ;;  %v15015_v56 = vld [vmem:[#allocation6 + $0xb14] sm:$0xf] }
 0x433   :  { %8595 = vmatpush.bf16.msra.mxu1 %v14016_v9  ;;  %v15105_v9 = vld [vmem:[#allocation6 + $0xde4] sm:$0xf] }
 0x434   :  { %8613 = vmatpush.bf16.msra.mxu2 %v10940_v40  ;;  %v12697_v40 = vld [vmem:[#allocation6 + $0xea8] sm:$0xf0]  ;;  %v12620_v38 = vor.u32 %v15105_v9, %v12617_v31  ;;  %v14825_v31 = vld [vmem:[#allocation6 + $0x524] sm:$0xf] }
 0x435   :  { %8626 = vmatpush.bf16.msra.mxu3 %v11260_v1  ;;  %v11740_v1 = vor.u32 %v14885_v50, %v11737_v32  ;;  %v12700_v4 = vor.u32 %v15125_v54, %v12697_v40  ;;  %v15410_v50 = vld [vmem:[#allocation6 + $0x1764] sm:$0xf0] }
 0x436   :  { %8588 = vmatpush.bf16.msra.mxu0 %v13456_v14  ;;  %v13895_v14 = vld [vmem:[#allocation6 + $0x17e0] sm:$0xf]  ;;  %v8346_v32 = vpop.f32.mrf.mxu1 }
 0x437   :  { %8596 = vmatpush.bf16.msra.mxu1 %v13976_v45  ;;  %v14845_v45 = vld [vmem:[#allocation6 + $0x5c4] sm:$0xf] }
 0x438   :  { %8614 = vmatpush.bf16.msra.mxu2 %v10900_v53  ;;  %v15430_v53 = vld [vmem:[#allocation6 + $0x1804] sm:$0xf0]  ;;  %v11580_v6 = vor.u32 %v14845_v45, %v11577_v47  ;;  %v12057_v45 = vld [vmem:[#allocation6 + $0x9a8] sm:$0xf0] }
 0x439   :  { %8627 = vmatpush.bf16.msra.mxu3 %v11220_v23  ;;  %v11700_v23 = vor.u32 %v14875_v3, %v11697_v37  ;;  %v13896_v39 = vor.u32 %v15430_v53, %v13895_v14  ;;  %v12537_v3 = vld [vmem:[#allocation6 + $0xd68] sm:$0xf0]  ;;  %v13775_v37 = vld [vmem:[#allocation6 + $0x16f0] sm:$0xf] }
 0x43a   :  { %8589 = vmatpush.bf16.msra.mxu0 %v13416_v36  ;;  %v8383_v28 = vpop.f32.mrf.mxu0  ;;  %v11617_v36 = vld [vmem:[#allocation6 + $0x638] sm:$0xf0] }
 0x43b   :  { %8597 = vmatpush.bf16.msra.mxu1 %v13936_v5  ;;  %v16155_v25 = vadd.f32 %v8383_v28, %v16145_v58 }
 0x43c   :  { %8615 = vmatpush.bf16.msra.mxu2 %v10860_v44  ;;  %v12257_v44 = vld [vmem:[#allocation6 + $0xb38] sm:$0xf0] }
 0x43d   :  { %8628 = vmatpush.bf16.msra.mxu3 %v11180_v41  ;;  %8590 = vmatmul.bf16.vlgmr.msra.gmra.mxu0 %v15898_v11  ;;  %v15095_v41 = vld [vmem:[#allocation6 + $0xd94] sm:$0xf]  ;;  %v12260_v58 = vor.u32 %v15015_v56, %v12257_v44  ;;  %v12457_v56 = vld [vmem:[#allocation6 + $0xcc8] sm:$0xf0] }
 0x43e   :  { %8634 = vmatpush.bf16.msrb.mxu0 %v11780_v42  ;;  %v12577_v42 = vld [vmem:[#allocation6 + $0xdb8] sm:$0xf0]  ;;  %v15215_v44 = vld [vmem:[#allocation6 + $0x1154] sm:$0xf] }
 0x43f   :  { %8616 = vmatmul.bf16.vlgmr.msra.gmra.mxu2 %v15861_v2  ;;  %v15025_v2 = vld [vmem:[#allocation6 + $0xb64] sm:$0xf]  ;;  %8598 = vmatpush.bf16.msra.mxu1 %v13896_v39  ;;  %v12580_v46 = vor.u32 %v15095_v41, %v12577_v42  ;;  %v14975_v39 = vld [vmem:[#allocation6 + $0x9d4] sm:$0xf]  ;;  %v13057_v41 = vld [vmem:[#allocation6 + $0x1178] sm:$0xf0] }
 0x440   :  { %8660 = vmatpush.bf16.msrb.mxu2 %v12420_v60  ;;  %8629 = vmatmul.bf16.vlgmr.msra.gmra.mxu3 %v15863_v61  ;;  %v15420_v61 = vld [vmem:[#allocation6 + $0x17b4] sm:$0xf0]  ;;  %v12300_v35 = vor.u32 %v15025_v2, %v12297_v20  ;;  %v13815_v60 = vld [vmem:[#allocation6 + $0x1740] sm:$0xf]  ;;  %v12097_v2 = vld [vmem:[#allocation6 + $0x9f8] sm:$0xf0]  ;;  %v11540_v20 = vor.u32 %v14835_v63, %v11537_v19 }
 0x441   :  { %8673 = vmatpush.bf16.msrb.mxu3 %v12740_v12  ;;  %v13856_v29 = vor.u32 %v15420_v61, %v13855_v24  ;;  %v11620_v12 = vor.u32 %v14855_v30, %v11617_v36  ;;  %v13816_v40 = vor.u32 %v15410_v50, %v13815_v60  ;;  %v11497_v24 = vld [vmem:[#allocation6 + $0x548] sm:$0xf0]  ;;  %v15065_v36 = vld [vmem:[#allocation6 + $0xca4] sm:$0xf]  ;;  %v15375_v42 = vld [vmem:[#allocation6 + $0x1654] sm:$0xf] }
 0x442   :  { %8635 = vmatpush.bf16.msrb.mxu0 %v11740_v1  ;;  %v16157_v54 = vpop.f32.mrf.mxu2  ;;  %v15085_v1 = vld [vmem:[#allocation6 + $0xd44] sm:$0xf]  ;;  %v8385_v5 = vpop.f32.mrf.mxu0  ;;  %v12137_v30 = vld [vmem:[#allocation6 + $0xa48] sm:$0xf0]  ;;  %v13697_v60 = vld [vmem:[#allocation6 + $0x1678] sm:$0xf0]  ;;  %v11500_v32 = vor.u32 %v14825_v31, %v11497_v24 }
 0x443   :  { %8599 = vmatpush.bf16.msra.mxu1 %v13856_v29  ;;  %v12540_v14 = vor.u32 %v15085_v1, %v12537_v3  ;;  %v12100_v29 = vor.u32 %v14975_v39, %v12097_v2  ;;  %v15455_v50 = vld [vmem:[#allocation6 + $0x18d4] sm:$0xf]  ;;  %v13700_v62 = vor.u32 %v15375_v42, %v13697_v60  ;;  %v13017_v1 = vld [vmem:[#allocation6 + $0x1128] sm:$0xf0]  ;;  %v12017_v19 = vld [vmem:[#allocation6 + $0x958] sm:$0xf0] }
 0x444   :  { %8661 = vmatpush.bf16.msrb.mxu2 %v12380_v59  ;;  %v16159_v59 = vpop.f32.mrf.mxu3  ;;  %v13657_v5 = vld [vmem:[#allocation6 + $0x1628] sm:$0xf0]  ;;  %v14955_v63 = vld [vmem:[#allocation6 + $0x934] sm:$0xf]  ;;  %v13937_v2 = vld [vmem:[#allocation6 + $0x1858] sm:$0xf0] }
 0x445   :  { %8674 = vmatpush.bf16.msrb.mxu3 %v12700_v4  ;;  %v15400_v4 = vld [vmem:[#allocation6 + $0x1714] sm:$0xf0]  ;;  %v15435_v39 = vld [vmem:[#allocation6 + $0x1834] sm:$0xf] }
 0x446   :  { %8636 = vmatpush.bf16.msrb.mxu0 %v11700_v23  ;;  %v13776_v53 = vor.u32 %v15400_v4, %v13775_v37  ;;  %v12177_v23 = vld [vmem:[#allocation6 + $0xa98] sm:$0xf0]  ;;  %v15365_v4 = vld [vmem:[#allocation6 + $0x1604] sm:$0xf] }
 0x447   :  { %8600 = vmatpush.bf16.msra.mxu1 %v13816_v40  ;;  %v12180_v9 = vor.u32 %v14995_v57, %v12177_v23  ;;  %v13060_v40 = vor.u32 %v15215_v44, %v13057_v41  ;;  %v15195_v57 = vld [vmem:[#allocation6 + $0x10b4] sm:$0xf]  ;;  %v12977_v23 = vld [vmem:[#allocation6 + $0x10d8] sm:$0xf0] }
 0x448   :  { %8662 = vmatpush.bf16.msrb.mxu2 %v12340_v7  ;;  %v15075_v7 = vld [vmem:[#allocation6 + $0xcf4] sm:$0xf]  ;;  %v11937_v44 = vld [vmem:[#allocation6 + $0x8b8] sm:$0xf0] }
 0x449   :  { %8675 = vmatpush.bf16.msrb.mxu3 %v12660_v18  ;;  %v15390_v18 = vld [vmem:[#allocation6 + $0x16c4] sm:$0xf0]  ;;  %v12500_v61 = vor.u32 %v15075_v7, %v12497_v13  ;;  %v12020_v13 = vor.u32 %v14955_v63, %v12017_v19  ;;  %v15325_v63 = vld [vmem:[#allocation6 + $0x14c4] sm:$0xf]  ;;  %v13497_v19 = vld [vmem:[#allocation6 + $0x14e8] sm:$0xf0] }
 0x44a   :  { %8637 = vmatpush.bf16.msrb.mxu0 %v11660_v43  ;;  %v8411_v28 = vpop.f32.mrf.mxu2  ;;  %v13736_v43 = vor.u32 %v15390_v18, %v13735_v22  ;;  %v15355_v22 = vld [vmem:[#allocation6 + $0x15b4] sm:$0xf]  ;;  %v13617_v18 = vld [vmem:[#allocation6 + $0x15d8] sm:$0xf0] }
 0x44b   :  { %8601 = vmatpush.bf16.msra.mxu1 %v13776_v53  ;;  %v13660_v53 = vor.u32 %v15365_v4, %v13657_v5  ;;  %v13620_v28 = vor.u32 %v15355_v22, %v13617_v18  ;;  %v12857_v4 = vld [vmem:[#allocation6 + $0xfe8] sm:$0xf0]  ;;  %v13500_v18 = vor.u32 %v15325_v63, %v13497_v19  ;;  %v15265_v63 = vld [vmem:[#allocation6 + $0x12e4] sm:$0xf] }
 0x44c   :  { %8663 = vmatpush.bf16.msrb.mxu2 %v12300_v35  ;;  %v14985_v35 = vld [vmem:[#allocation6 + $0xa24] sm:$0xf]  ;;  %v13257_v19 = vld [vmem:[#allocation6 + $0x1308] sm:$0xf0] }
 0x44d   :  { %8676 = vmatpush.bf16.msrb.mxu3 %v12620_v38  ;;  %v8424_v38 = vpop.f32.mrf.mxu3  ;;  %v12140_v47 = vor.u32 %v14985_v35, %v12137_v30  ;;  %v12937_v35 = vld [vmem:[#allocation6 + $0x1088] sm:$0xf0]  ;;  %v13940_v30 = vor.u32 %v15435_v39, %v13937_v2  ;;  %v15155_v39 = vld [vmem:[#allocation6 + $0xf74] sm:$0xf]  ;;  %v12817_v2 = vld [vmem:[#allocation6 + $0xf98] sm:$0xf0] }
 0x44e   :  { %8638 = vmatpush.bf16.msrb.mxu0 %v11620_v12  ;;  %v14017_v12 = vld [vmem:[#allocation6 + $0x18f8] sm:$0xf0]  ;;  %v8396_v31 = vpop.f32.mrf.mxu1  ;;  %v15425_v38 = vld [vmem:[#allocation6 + $0x17e4] sm:$0xf] }
 0x44f   :  { %8602 = vmatpush.bf16.msra.mxu1 %v13736_v43  ;;  %v14020_v3 = vor.u32 %v15455_v50, %v14017_v12  ;;  %v8397_v24 = vadd.f32 %v8396_v31, %v16155_v25  ;;  %v15185_v43 = vld [vmem:[#allocation6 + $0x1064] sm:$0xf]  ;;  %v15175_v50 = vld [vmem:[#allocation6 + $0x1014] sm:$0xf] }
 0x450   :  { %8664 = vmatpush.bf16.msrb.mxu2 %v12260_v58  ;;  %v14965_v58 = vld [vmem:[#allocation6 + $0x984] sm:$0xf]  ;;  %v12940_v42 = vor.u32 %v15185_v43, %v12937_v35  ;;  %v15315_v31 = vld [vmem:[#allocation6 + $0x1474] sm:$0xf]  ;;  %v11817_v35 = vld [vmem:[#allocation6 + $0x7c8] sm:$0xf0] }
 0x451   :  { %8677 = vmatpush.bf16.msrb.mxu3 %v12580_v46  ;;  %v12460_v46 = vor.u32 %v15065_v36, %v12457_v56  ;;  %v12060_v37 = vor.u32 %v14965_v58, %v12057_v45  ;;  %v15345_v36 = vld [vmem:[#allocation6 + $0x1564] sm:$0xf]  ;;  %v13897_v56 = vld [vmem:[#allocation6 + $0x1808] sm:$0xf0]  ;;  %v15335_v45 = vld [vmem:[#allocation6 + $0x1514] sm:$0xf] }
 0x452   :  { %8639 = vmatpush.bf16.msrb.mxu0 %v11580_v6  ;;  %v15445_v6 = vld [vmem:[#allocation6 + $0x1884] sm:$0xf]  ;;  %8603 = vmatmul.bf16.vlgmr.msra.gmra.mxu1 %v15905_v27  ;;  %v13900_v12 = vor.u32 %v15425_v38, %v13897_v56 }
 0x453   :  { %8647 = vmatpush.bf16.msrb.mxu1 %v12100_v29  ;;  %v8410_v29 = vadd.f32 %v16157_v54, %v8397_v24  ;;  %v13457_v24 = vld [vmem:[#allocation6 + $0x1498] sm:$0xf0]  ;;  %v14905_v43 = vld [vmem:[#allocation6 + $0x7a4] sm:$0xf] }
 0x454   :  { %8665 = vmatpush.bf16.msrb.mxu2 %v12220_v16  ;;  %v13977_v16 = vld [vmem:[#allocation6 + $0x18a8] sm:$0xf0]  ;;  %v11820_v56 = vor.u32 %v14905_v43, %v11817_v35 }
 0x455   :  { %8678 = vmatpush.bf16.msrb.mxu3 %v12540_v14  ;;  %v13020_v14 = vor.u32 %v15205_v34, %v13017_v1  ;;  %v13980_v7 = vor.u32 %v15445_v6, %v13977_v16  ;;  %v8423_v25 = vadd.f32 %v16159_v59, %v8410_v29  ;;  %v11897_v34 = vld [vmem:[#allocation6 + $0x868] sm:$0xf0] }
 0x456   :  { %8640 = vmatpush.bf16.msrb.mxu0 %v11540_v20  ;;  %v14945_v20 = vld [vmem:[#allocation6 + $0x8e4] sm:$0xf]  ;;  %v8398_v1 = vpop.f32.mrf.mxu1 }
 0x457   :  { %8648 = vmatpush.bf16.msrb.mxu1 %v12060_v37  ;;  %v15165_v37 = vld [vmem:[#allocation6 + $0xfc4] sm:$0xf] }
 0x458   :  { %8666 = vmatpush.bf16.msrb.mxu2 %v12180_v9  ;;  %v11977_v9 = vld [vmem:[#allocation6 + $0x908] sm:$0xf0]  ;;  %v12860_v22 = vor.u32 %v15165_v37, %v12857_v4  ;;  %v15467_v37 = vld [vmem:[#allocation9 + $0x30] sm:$0xff] }
 0x459   :  { %8679 = vmatpush.bf16.msrb.mxu3 %v12500_v61  ;;  %v12980_v61 = vor.u32 %v15195_v57, %v12977_v23  ;;  %v13817_v57 = vld [vmem:[#allocation6 + $0x1768] sm:$0xf0]  ;;  %v14915_v23 = vld [vmem:[#allocation6 + $0x7f4] sm:$0xf]  ;;  %v15483_v4 = vld [vmem:[#allocation9 + $0xb0] sm:$0xff] }
 0x45a   :  { %8641 = vmatpush.bf16.msrb.mxu0 %v11500_v32  ;;  %v8435_v41 = vpop.f32.mrf.mxu0  ;;  %v12897_v32 = vld [vmem:[#allocation6 + $0x1038] sm:$0xf0] }
 0x45b   :  { %8649 = vmatpush.bf16.msrb.mxu1 %v12020_v13  ;;  %v16168_v54 = vadd.f32 %v8435_v41, %v8423_v25  ;;  %v12900_v59 = vor.u32 %v15175_v50, %v12897_v32  ;;  %v15305_v41 = vld [vmem:[#allocation6 + $0x1424] sm:$0xf]  ;;  %v13737_v32 = vld [vmem:[#allocation6 + $0x16c8] sm:$0xf0] }
 0x45c   :  { %8667 = vmatpush.bf16.msrb.mxu2 %v12140_v47  ;;  %v13537_v47 = vld [vmem:[#allocation6 + $0x1538] sm:$0xf0]  ;;  %v15385_v50 = vld [vmem:[#allocation6 + $0x16a4] sm:$0xf] }
 0x45d   :  { %8680 = vmatpush.bf16.msrb.mxu3 %v12460_v46  ;;  %8642 = vmatmul.bf16.vlgmr.msrb.gmra.mxu0 %v15865_v48  ;;  %v11980_v48 = vor.u32 %v14945_v20, %v11977_v9  ;;  %v15415_v46 = vld [vmem:[#allocation6 + $0x1794] sm:$0xf] }
 0x45e   :  { %8686 = vmatpush.bf16.msra.mxu0 %v13060_v40  ;;  %v13857_v40 = vld [vmem:[#allocation6 + $0x17b8] sm:$0xf0] }
 0x45f   :  { %8668 = vmatmul.bf16.vlgmr.msrb.gmra.mxu2 %v15882_v51  ;;  %v13577_v51 = vld [vmem:[#allocation6 + $0x1588] sm:$0xf0]  ;;  %8650 = vmatpush.bf16.msrb.mxu1 %v11980_v48  ;;  %v13860_v5 = vor.u32 %v15415_v46, %v13857_v40  ;;  %v13377_v48 = vld [vmem:[#allocation6 + $0x13f8] sm:$0xf0]  ;;  %v13740_v46 = vor.u32 %v15385_v50, %v13737_v32  ;;  %v15468_v40 = vld [vmem:[#allocation9 + $0x38] sm:$0xff] }
 0x460   :  { %8712 = vmatpush.bf16.msra.mxu2 %v13700_v62  ;;  %8681 = vmatmul.bf16.vlgmr.msrb.gmra.mxu3 %v15884_v52  ;;  %v14935_v52 = vld [vmem:[#allocation6 + $0x894] sm:$0xf]  ;;  %v13580_v60 = vor.u32 %v15345_v36, %v13577_v51  ;;  %v14925_v62 = vld [vmem:[#allocation6 + $0x844] sm:$0xf]  ;;  %v12820_v36 = vor.u32 %v15155_v39, %v12817_v2  ;;  %v13460_v51 = vor.u32 %v15315_v31, %v13457_v24  ;;  %v15481_v2 = vld [vmem:[#allocation9 + $0xa0] sm:$0xff] }
 0x461   :  { %8725 = vmatpush.bf16.msra.mxu3 %v14020_v3  ;;  %v11940_v58 = vor.u32 %v14935_v52, %v11937_v44  ;;  %v13540_v3 = vor.u32 %v15335_v45, %v13537_v47  ;;  %v11900_v16 = vor.u32 %v14925_v62, %v11897_v34  ;;  %v15145_v52 = vld [vmem:[#allocation6 + $0xf24] sm:$0xf]  ;;  %v12777_v44 = vld [vmem:[#allocation6 + $0xf48] sm:$0xf0] }
 0x462   :  { %8687 = vmatpush.bf16.msra.mxu0 %v13020_v14  ;;  %v16170_v6 = vpop.f32.mrf.mxu2  ;;  %v15405_v14 = vld [vmem:[#allocation6 + $0x1744] sm:$0xf]  ;;  %v8437_v13 = vpop.f32.mrf.mxu0  ;;  %v13337_v45 = vld [vmem:[#allocation6 + $0x13a8] sm:$0xf0] }
 0x463   :  { %8651 = vmatpush.bf16.msrb.mxu1 %v11940_v58  ;;  %v13820_v20 = vor.u32 %v15405_v14, %v13817_v57  ;;  %v15285_v58 = vld [vmem:[#allocation6 + $0x1384] sm:$0xf]  ;;  %v15466_v57 = vld [vmem:[#allocation9 + $0x28] sm:$0xff]  ;;  %v13260_v13 = vor.u32 %v15265_v63, %v13257_v19  ;;  %v13177_v31 = vld [vmem:[#allocation6 + $0x1268] sm:$0xf0] }
 0x464   :  { %8713 = vmatpush.bf16.msra.mxu2 %v13660_v53  ;;  %v16172_v53 = vpop.f32.mrf.mxu3  ;;  %v15484_v62 = vld [vmem:[#allocation9 + $0xb8] sm:$0xff]  ;;  %v13340_v1 = vor.u32 %v15285_v58, %v13337_v45  ;;  %v15461_v58 = vld [vmem:[#allocation9] sm:$0xff]  ;;  %v15523_v19 = vld [vmem:[#allocation9 + $0x1f0] sm:$0xff] }
 0x465   :  { %8726 = vmatpush.bf16.msra.mxu3 %v13980_v7  ;;  %v11857_v7 = vld [vmem:[#allocation6 + $0x818] sm:$0xf0]  ;;  %v15492_v34 = vld [vmem:[#allocation9 + $0xf8] sm:$0xff] }
 0x466   :  { %8688 = vmatpush.bf16.msra.mxu0 %v12980_v61  ;;  %v11860_v9 = vor.u32 %v14915_v23, %v11857_v7  ;;  %v15395_v61 = vld [vmem:[#allocation6 + $0x16f4] sm:$0xf]  ;;  %v16189_v45 = vld [vmem:[#allocation7 + $0x8] sm:$0x3] }
 0x467   :  { %8652 = vmatpush.bf16.msrb.mxu1 %v11900_v16  ;;  %v15482_v23 = vld [vmem:[#allocation9 + $0xa8] sm:$0xff] }
 0x468   :  { %8714 = vmatpush.bf16.msra.mxu2 %v13620_v28  ;;  %v13777_v28 = vld [vmem:[#allocation6 + $0x1718] sm:$0xf0]  ;;  %v15490_v7 = vld [vmem:[#allocation9 + $0xe8] sm:$0xff] }
 0x469   :  { %8727 = vmatpush.bf16.msra.mxu3 %v13940_v30  ;;  %v15295_v30 = vld [vmem:[#allocation6 + $0x13d4] sm:$0xf]  ;;  %v13780_v38 = vor.u32 %v15395_v61, %v13777_v28  ;;  %v15480_v61 = vld [vmem:[#allocation9 + $0x98] sm:$0xff] }
 0x46a   :  { %8689 = vmatpush.bf16.msra.mxu0 %v12940_v42  ;;  %v8463_v29 = vpop.f32.mrf.mxu2  ;;  %v13380_v42 = vor.u32 %v15295_v30, %v13377_v48  ;;  %v15488_v28 = vld [vmem:[#allocation9 + $0xd8] sm:$0xff]  ;;  %v15235_v30 = vld [vmem:[#allocation6 + $0x11f4] sm:$0xf]  ;;  %v13137_v48 = vld [vmem:[#allocation6 + $0x1218] sm:$0xf0] }
 0x46b   :  { %8653 = vmatpush.bf16.msrb.mxu1 %v11860_v9  ;;  %v15245_v9 = vld [vmem:[#allocation6 + $0x1244] sm:$0xf]  ;;  %v15487_v29 = vld [vmem:[#allocation9 + $0xd0] sm:$0xff] }
 0x46c   :  { %8715 = vmatpush.bf16.msra.mxu2 %v13580_v60  ;;  %v8476_v25 = vpop.f32.mrf.mxu3  ;;  %v13417_v60 = vld [vmem:[#allocation6 + $0x1448] sm:$0xf0]  ;;  %v13180_v43 = vor.u32 %v15245_v9, %v13177_v31  ;;  %v15496_v9 = vld [vmem:[#allocation9 + $0x118] sm:$0xff] }
 0x46d   :  { %8728 = vmatpush.bf16.msra.mxu3 %v13900_v12  ;;  %v12780_v12 = vor.u32 %v15145_v52, %v12777_v44  ;;  %v13420_v47 = vor.u32 %v15305_v41, %v13417_v60  ;;  %v15225_v52 = vld [vmem:[#allocation6 + $0x11a4] sm:$0xf]  ;;  %v13097_v44 = vld [vmem:[#allocation6 + $0x11c8] sm:$0xf0]  ;;  %v15462_v41 = vld [vmem:[#allocation9 + $0x8] sm:$0xff] }
 0x46e   :  { %8690 = vmatpush.bf16.msra.mxu0 %v12900_v59  ;;  %v15275_v59 = vld [vmem:[#allocation6 + $0x1334] sm:$0xf]  ;;  %v13100_v50 = vor.u32 %v15225_v52, %v13097_v44  ;;  %v15512_v31 = vld [vmem:[#allocation9 + $0x198] sm:$0xff]  ;;  %v8739_v52 = vmax.f32 %v15973_v17, 0.0 }
 0x46f   :  { %8654 = vmatpush.bf16.msrb.mxu1 %v11820_v56  ;;  %v13140_v56 = vor.u32 %v15235_v30, %v13137_v48  ;;  %v15478_v25 = vld [vmem:[#allocation9 + $0x88] sm:$0xff]  ;;  %v15519_v30 = vld [vmem:[#allocation9 + $0x1d0] sm:$0xff] }
 0x470   :  { %8716 = vmatpush.bf16.msra.mxu2 %v13540_v3  ;;  %v13297_v3 = vld [vmem:[#allocation6 + $0x1358] sm:$0xf0]  ;;  %v15470_v48 = vld [vmem:[#allocation9 + $0x48] sm:$0xff] }
 0x471   :  { %8729 = vmatpush.bf16.msra.mxu3 %v13860_v5  ;;  %v15491_v5 = vld [vmem:[#allocation9 + $0xf0] sm:$0xff]  ;;  %v13300_v16 = vor.u32 %v15275_v59, %v13297_v3  ;;  %v8741_v59 = vmax.f32 %v16043_v15, 0.0  ;;  %v15524_v3 = vld [vmem:[#allocation9 + $0x1f8] sm:$0xff]  ;;  %v15474_v15 = vld [vmem:[#allocation9 + $0x68] sm:$0xff] }
 0x472   :  { %8691 = vmatpush.bf16.msra.mxu0 %v12860_v22  ;;  %8655 = vmatmul.bf16.vlgmr.msrb.gmra.mxu1 %v15867_v55  ;;  %v8448_v55 = vpop.f32.mrf.mxu1 }
 0x473   :  { %8699 = vmatpush.bf16.msra.mxu1 %v13380_v42  ;;  %v8449_v14 = vadd.f32 %v8448_v55, %v16168_v54  ;;  %v15489_v54 = vld [vmem:[#allocation9 + $0xe0] sm:$0xff]  ;;  %v15486_v42 = vld [vmem:[#allocation9 + $0xc8] sm:$0xff]  ;;  %v8751_v63 = vpack.c.bf16 %v8741_v59, %v8741_v59 }
 0x474   :  { %8717 = vmatpush.bf16.msra.mxu2 %v13500_v18  ;;  %v13217_v18 = vld [vmem:[#allocation6 + $0x12b8] sm:$0xf0] }
 0x475   :  { %8730 = vmatpush.bf16.msra.mxu3 %v13820_v20  ;;  %v8462_v22 = vadd.f32 %v16170_v6, %v8449_v14  ;;  %v15464_v6 = vld [vmem:[#allocation9 + $0x18] sm:$0xff] }
 0x476   :  { %8692 = vmatpush.bf16.msra.mxu0 %v12820_v36 }
 0x477   :  { %8700 = vmatpush.bf16.msra.mxu1 %v13340_v1  ;;  %v16183_v39 = vadd.f32 %v16172_v53, %v8462_v22  ;;  %v15516_v1 = vld [vmem:[#allocation9 + $0x1b8] sm:$0xff] }
 0x478   :  { %8718 = vmatpush.bf16.msra.mxu2 %v13460_v51  ;;  %v15463_v51 = vld [vmem:[#allocation9 + $0x10] sm:$0xff] }
 0x479   :  { %8731 = vmatpush.bf16.msra.mxu3 %v13780_v38  ;;  %v15479_v38 = vld [vmem:[#allocation9 + $0x90] sm:$0xff] }
 0x47a   :  { %8693 = vmatpush.bf16.msra.mxu0 %v12780_v12  ;;  %v8450_v24 = vpop.f32.mrf.mxu1  ;;  %v15476_v12 = vld [vmem:[#allocation9 + $0x78] sm:$0xff] }
 0x47b   :  { %8701 = vmatpush.bf16.msra.mxu1 %v13300_v16  ;;  %v15520_v24 = vld [vmem:[#allocation9 + $0x1d8] sm:$0xff] }
 0x47c   :  { %8719 = vmatpush.bf16.msra.mxu2 %v13420_v47  ;;  %v15477_v47 = vld [vmem:[#allocation9 + $0x80] sm:$0xff] }
 0x47d   :  { %8732 = vmatpush.bf16.msra.mxu3 %v13740_v46  ;;  %8694 = vmatmul.bf16.vlgmr.msra.gmra.mxu0 %v15880_v49  ;;  %v15255_v49 = vld [vmem:[#allocation6 + $0x1294] sm:$0xf]  ;;  %v15485_v46 = vld [vmem:[#allocation9 + $0xc0] sm:$0xff] }
 0x47e   :  { %9402 = vmatpush.bf16.msrb.mxu0 %v15468_v40  ;;  %v13220_v20 = vor.u32 %v15255_v49, %v13217_v18  ;;  %v8738_v40 = vmax.f32 %v15950_v8, 0.0  ;;  %v15499_v8 = vld [vmem:[#allocation9 + $0x130] sm:$0xff] }
 0x47f   :  { %8720 = vmatmul.bf16.vlgmr.msra.gmra.mxu2 %v15898_v11  ;;  %v16180_v11 = vpop.f32.mrf.mxu0  ;;  %8702 = vmatpush.bf16.msra.mxu1 %v13260_v13  ;;  %v15473_v13 = vld [vmem:[#allocation9 + $0x60] sm:$0xff] }
 0x480   :  { %9428 = vmatpush.bf16.msrb.mxu2 %v15484_v62  ;;  %8733 = vmatmul.bf16.vlgmr.msra.gmra.mxu3 %v15905_v27  ;;  %v15465_v27 = vld [vmem:[#allocation9 + $0x20] sm:$0xff]  ;;  %v8740_v62 = vmax.f32 %v16012_v33, 0.0  ;;  %v15515_v33 = vld [vmem:[#allocation9 + $0x1b0] sm:$0xff] }
 0x481   :  { %9441 = vmatpush.bf16.msrb.mxu3 %v15492_v34  ;;  %v15500_v34 = vld [vmem:[#allocation9 + $0x138] sm:$0xff] }
 0x482   :  { %9403 = vmatpush.bf16.msrb.mxu0 %v15467_v37  ;;  %v16185_v53 = vpop.f32.mrf.mxu2  ;;  %v15475_v37 = vld [vmem:[#allocation9 + $0x70] sm:$0xff]  ;;  %v8750_v16 = vpack.c.bf16 %v8740_v62, %v8740_v62 }
 0x483   :  { %8703 = vmatpush.bf16.msra.mxu1 %v13220_v20  ;;  %v16187_v35 = vpop.f32.mrf.mxu3 }
 0x484   :  { %9429 = vmatpush.bf16.msrb.mxu2 %v15483_v4  ;;  %v3426_v4 = vperm.slane %v16189_v45, 0 }
 0x485   :  { %9442 = vmatpush.bf16.msrb.mxu3 %v15491_v5  ;;  %v8748_v5 = vpack.c.bf16 %v8738_v40, %v8738_v40 }
 0x486   :  { %9404 = vmatpush.bf16.msrb.mxu0 %v15466_v57  ;;  %v8488_v55 = vadd.f32 %v16180_v11, %v3426_v4  ;;  %v15498_v57 = vld [vmem:[#allocation9 + $0x128] sm:$0xff]  ;;  %v15497_v11 = vld [vmem:[#allocation9 + $0x120] sm:$0xff]  ;;  %v3427_v4 = vperm.slane %v16189_v45, 1 }
 0x487   :  { %v8489_v36 = vpop.f32.mrf.mxu0  ;;  %8704 = vmatpush.bf16.msra.mxu1 %v13180_v43  ;;  %v15495_v43 = vld [vmem:[#allocation9 + $0x110] sm:$0xff]  ;;  %v15501_v45 = vld [vmem:[#allocation9 + $0x140] sm:$0xff] }
 0x488   :  { %9430 = vmatpush.bf16.msrb.mxu2 %v15482_v23  ;;  %v15514_v23 = vld [vmem:[#allocation9 + $0x1a8] sm:$0xff] }
 0x489   :  { %9443 = vmatpush.bf16.msrb.mxu3 %v15490_v7  ;;  %v15522_v7 = vld [vmem:[#allocation9 + $0x1e8] sm:$0xff] }
 0x48a   :  { %9405 = vmatpush.bf16.msrb.mxu0 %v15465_v27  ;;  %v8515_v60 = vpop.f32.mrf.mxu2  ;;  %v15513_v27 = vld [vmem:[#allocation9 + $0x1a0] sm:$0xff]  ;;  %v15494_v36 = vld [vmem:[#allocation9 + $0x108] sm:$0xff] }
 0x48b   :  { %8705 = vmatpush.bf16.msra.mxu1 %v13140_v56  ;;  %v8528_v32 = vpop.f32.mrf.mxu3  ;;  %v15469_v56 = vld [vmem:[#allocation9 + $0x40] sm:$0xff] }
 0x48c   :  { %9431 = vmatpush.bf16.msrb.mxu2 %v15481_v2  ;;  %v15521_v2 = vld [vmem:[#allocation9 + $0x1e0] sm:$0xff]  ;;  %v8749_v32 = vpack.c.bf16 %v8739_v52, %v8739_v52  ;;  %v15534_v52 = vld [vmem:[#allocation9 + $0x248] sm:$0xff] }
 0x48d   :  { %9444 = vmatpush.bf16.msrb.mxu3 %v15489_v54  ;;  %v15472_v54 = vld [vmem:[#allocation9 + $0x58] sm:$0xff]  ;;  %v15509_v60 = vld [vmem:[#allocation9 + $0x180] sm:$0xff] }
 0x48e   :  { %9406 = vmatpush.bf16.msrb.mxu0 %v15464_v6 }
 0x48f   :  { %8706 = vmatpush.bf16.msra.mxu1 %v13100_v50  ;;  %v15517_v50 = vld [vmem:[#allocation9 + $0x1c0] sm:$0xff] }
 0x490   :  { %9432 = vmatpush.bf16.msrb.mxu2 %v15480_v61  ;;  %v15471_v61 = vld [vmem:[#allocation9 + $0x50] sm:$0xff] }
 0x491   :  { %9445 = vmatpush.bf16.msrb.mxu3 %v15488_v28 }
 0x492   :  { %9407 = vmatpush.bf16.msrb.mxu0 %v15463_v51  ;;  %8707 = vmatmul.bf16.vlgmr.msra.gmra.mxu1 %v15890_v10  ;;  %v8500_v10 = vpop.f32.mrf.mxu1  ;;  %v15510_v51 = vld [vmem:[#allocation9 + $0x188] sm:$0xff] }
 0x493   :  { %9415 = vmatpush.bf16.msrb.mxu1 %v15476_v12  ;;  %v8501_v14 = vadd.f32 %v8500_v10, %v8488_v55  ;;  %v8744_v12 = vmax.f32 %v16152_v26, 0.0  ;;  %v15502_v10 = vld [vmem:[#allocation9 + $0x148] sm:$0xff] }
 0x494   :  { %9433 = vmatpush.bf16.msrb.mxu2 %v15479_v38  ;;  %v15518_v38 = vld [vmem:[#allocation9 + $0x1c8] sm:$0xff] }
 0x495   :  { %9446 = vmatpush.bf16.msrb.mxu3 %v15487_v29  ;;  %v8514_v22 = vadd.f32 %v16185_v53, %v8501_v14  ;;  %v8754_v40 = vpack.c.bf16 %v8744_v12, %v8744_v12  ;;  %v15527_v14 = vld [vmem:[#allocation9 + $0x210] sm:$0xff] }
 0x496   :  { %9408 = vmatpush.bf16.msrb.mxu0 %v15462_v41  ;;  %v15508_v41 = vld [vmem:[#allocation9 + $0x178] sm:$0xff] }
 0x497   :  { %9416 = vmatpush.bf16.msrb.mxu1 %v15475_v37  ;;  %v16201_v18 = vadd.f32 %v16187_v35, %v8514_v22  ;;  %v15511_v35 = vld [vmem:[#allocation9 + $0x190] sm:$0xff]  ;;  %v15529_v37 = vld [vmem:[#allocation9 + $0x220] sm:$0xff] }
 0x498   :  { %9434 = vmatpush.bf16.msrb.mxu2 %v15478_v25  ;;  %v15493_v25 = vld [vmem:[#allocation9 + $0x100] sm:$0xff] }
 0x499   :  { %9447 = vmatpush.bf16.msrb.mxu3 %v15486_v42  ;;  %v8742_v42 = vmax.f32 %v16082_v21, 0.0  ;;  %v15506_v21 = vld [vmem:[#allocation9 + $0x168] sm:$0xff] }
 0x49a   :  { %9409 = vmatpush.bf16.msrb.mxu0 %v15461_v58  ;;  %v16198_v49 = vpop.f32.mrf.mxu0  ;;  %v8502_v20 = vpop.f32.mrf.mxu1  ;;  %v8745_v58 = vmax.f32 %v16183_v39, 0.0  ;;  %v15505_v39 = vld [vmem:[#allocation9 + $0x160] sm:$0xff] }
 0x49b   :  { %9417 = vmatpush.bf16.msrb.mxu1 %v15474_v15  ;;  %v8752_v17 = vpack.c.bf16 %v8742_v42, %v8742_v42 }
 0x49c   :  { %9435 = vmatpush.bf16.msrb.mxu2 %v15477_v47  ;;  %v15507_v47 = vld [vmem:[#allocation9 + $0x170] sm:$0xff]  ;;  %v8755_v62 = vpack.c.bf16 %v8745_v58, %v8745_v58 }
 0x49d   :  { %9448 = vmatpush.bf16.msrb.mxu3 %v15485_v46  ;;  %9410 = vmatmul.bf16.vlgmr.msrb.gmra.mxu0 %v8748_v5  ;;  %v15532_v46 = vld [vmem:[#allocation9 + $0x238] sm:$0xff] }
 0x49e   :  { %9454 = vmatpush.bf16.msra.mxu0 %v15500_v34  ;;  %v15531_v34 = vld [vmem:[#allocation9 + $0x230] sm:$0xff] }
 0x49f   :  { %9436 = vmatmul.bf16.vlgmr.msrb.gmra.mxu2 %v8750_v16  ;;  %9418 = vmatpush.bf16.msrb.mxu1 %v15473_v13  ;;  %v15503_v16 = vld [vmem:[#allocation9 + $0x150] sm:$0xff]  ;;  %v8743_v13 = vmax.f32 %v16113_v0, 0.0 }
 0x4a0   :  { %9480 = vmatpush.bf16.msra.mxu2 %v15516_v1  ;;  %9449 = vmatmul.bf16.vlgmr.msrb.gmra.mxu3 %v8751_v63  ;;  %v15530_v1 = vld [vmem:[#allocation9 + $0x228] sm:$0xff] }
 0x4a1   :  { %9493 = vmatpush.bf16.msra.mxu3 %v15524_v3  ;;  %v15504_v3 = vld [vmem:[#allocation9 + $0x158] sm:$0xff] }
 0x4a2   :  { %9455 = vmatpush.bf16.msra.mxu0 %v15499_v8  ;;  %v16203_v6 = vpop.f32.mrf.mxu2  ;;  %v8541_v53 = vpop.f32.mrf.mxu0  ;;  %v15528_v8 = vld [vmem:[#allocation9 + $0x218] sm:$0xff] }
 0x4a3   :  { %9419 = vmatpush.bf16.msrb.mxu1 %v15472_v54  ;;  %v16205_v28 = vpop.f32.mrf.mxu3  ;;  %v8753_v54 = vpack.c.bf16 %v8743_v13, %v8743_v13  ;;  %v15540_v53 = vld [vmem:[#allocation9 + $0x278] sm:$0xff] }
 0x4a4   :  { %9481 = vmatpush.bf16.msra.mxu2 %v15515_v33 }
 0x4a5   :  { %9494 = vmatpush.bf16.msra.mxu3 %v15523_v19 }
 0x4a6   :  { %9456 = vmatpush.bf16.msra.mxu0 %v15498_v57  ;;  %v8540_v57 = vadd.f32 %v16198_v49, %v16201_v18 }
 0x4a7   :  { %9420 = vmatpush.bf16.msrb.mxu1 %v15471_v61 }
 0x4a8   :  { %9482 = vmatpush.bf16.msra.mxu2 %v15514_v23 }
 0x4a9   :  { %9495 = vmatpush.bf16.msra.mxu3 %v15522_v7  ;;  %v15526_v7 = vld [vmem:[#allocation9 + $0x208] sm:$0xff] }
 0x4aa   :  { %9457 = vmatpush.bf16.msra.mxu0 %v15497_v11  ;;  %v8567_v29 = vpop.f32.mrf.mxu2 }
 0x4ab   :  { %9421 = vmatpush.bf16.msrb.mxu1 %v15470_v48  ;;  %v8580_v44 = vpop.f32.mrf.mxu3  ;;  %v15538_v48 = vld [vmem:[#allocation9 + $0x268] sm:$0xff]  ;;  %v15535_v29 = vld [vmem:[#allocation9 + $0x250] sm:$0xff] }
 0x4ac   :  { %9483 = vmatpush.bf16.msra.mxu2 %v15513_v27 }
 0x4ad   :  { %9496 = vmatpush.bf16.msra.mxu3 %v15521_v2  ;;  %v15525_v2 = vld [vmem:[#allocation9 + $0x200] sm:$0xff] }
 0x4ae   :  { %9458 = vmatpush.bf16.msra.mxu0 %v15496_v9 }
 0x4af   :  { %9422 = vmatpush.bf16.msrb.mxu1 %v15469_v56  ;;  %v8552_v26 = vpop.f32.mrf.mxu1 }
 0x4b0   :  { %9484 = vmatpush.bf16.msra.mxu2 %v15512_v31  ;;  %v8553_v23 = vadd.f32 %v8552_v26, %v8540_v57 }
 0x4b1   :  { %9497 = vmatpush.bf16.msra.mxu3 %v15520_v24 }
 0x4b2   :  { %9459 = vmatpush.bf16.msra.mxu0 %v15495_v43  ;;  %9423 = vmatmul.bf16.vlgmr.msrb.gmra.mxu1 %v8749_v32  ;;  %v8566_v27 = vadd.f32 %v16203_v6, %v8553_v23  ;;  %v15539_v6 = vld [vmem:[#allocation9 + $0x270] sm:$0xff] }
 0x4b3   :  { %9467 = vmatpush.bf16.msra.mxu1 %v15508_v41  ;;  %v15533_v41 = vld [vmem:[#allocation9 + $0x240] sm:$0xff] }
 0x4b4   :  { %9485 = vmatpush.bf16.msra.mxu2 %v15511_v35  ;;  %v8579_v20 = vadd.f32 %v16205_v28, %v8566_v27  ;;  %v15537_v28 = vld [vmem:[#allocation9 + $0x260] sm:$0xff] }
 0x4b5   :  { %9498 = vmatpush.bf16.msra.mxu3 %v15519_v30 }
 0x4b6   :  { %9460 = vmatpush.bf16.msra.mxu0 %v15494_v36 }
 0x4b7   :  { %9468 = vmatpush.bf16.msra.mxu1 %v15507_v47  ;;  %v8554_v5 = vpop.f32.mrf.mxu1 }
 0x4b8   :  { %9486 = vmatpush.bf16.msra.mxu2 %v15510_v51 }
 0x4b9   :  { %9499 = vmatpush.bf16.msra.mxu3 %v15518_v38  ;;  %v15536_v38 = vld [vmem:[#allocation9 + $0x258] sm:$0xff] }
 0x4ba   :  { %9461 = vmatpush.bf16.msra.mxu0 %v15493_v25  ;;  %v8591_v59 = vpop.f32.mrf.mxu0 }
 0x4bb   :  { %9469 = vmatpush.bf16.msra.mxu1 %v15506_v21  ;;  %v8592_v49 = vadd.f32 %v8591_v59, %v8579_v20 }
 0x4bc   :  { %9487 = vmatpush.bf16.msra.mxu2 %v15509_v60 }
 0x4bd   :  { %9500 = vmatpush.bf16.msra.mxu3 %v15517_v50  ;;  %9462 = vmatmul.bf16.vlgmr.msra.gmra.mxu0 %v8752_v17 }
 0x4be   :  { %9506 = vmatpush.bf16.msrb.mxu0 %v15532_v46 }
 0x4bf   :  { %9488 = vmatmul.bf16.vlgmr.msra.gmra.mxu2 %v8754_v40  ;;  %9470 = vmatpush.bf16.msra.mxu1 %v15505_v39 }
 0x4c0   :  { %9501 = vmatmul.bf16.vlgmr.msra.gmra.mxu3 %v8755_v62 }
 0x4c2   :  { %9507 = vmatpush.bf16.msrb.mxu0 %v15531_v34  ;;  %v8617_v33 = vpop.f32.mrf.mxu2  ;;  %v8593_v15 = vpop.f32.mrf.mxu0 }
 0x4c3   :  { %9471 = vmatpush.bf16.msra.mxu1 %v15504_v3  ;;  %v8618_v63 = vadd.f32 %v8617_v33, %v3427_v4  ;;  %v8630_v19 = vpop.f32.mrf.mxu3  ;;  %v15551_v33 = vld [vmem:[#allocation10] ss:$0 sm:$0xff] }
 0x4c5   :  { %v8631_v55 = vadd.f32 %v8630_v19, %v8618_v63 }
 0x4c6   :  { %9508 = vmatpush.bf16.msrb.mxu0 %v15530_v1 }
 0x4c7   :  { %9472 = vmatpush.bf16.msra.mxu1 %v15503_v16 }
 0x4ca   :  { %9509 = vmatpush.bf16.msrb.mxu0 %v15529_v37  ;;  %v8619_v22 = vpop.f32.mrf.mxu2 }
 0x4cb   :  { %9473 = vmatpush.bf16.msra.mxu1 %v15502_v10  ;;  %v8632_v11 = vpop.f32.mrf.mxu3 }
 0x4ce   :  { %9510 = vmatpush.bf16.msrb.mxu0 %v15528_v8 }
 0x4cf   :  { %9474 = vmatpush.bf16.msra.mxu1 %v15501_v45  ;;  %v8604_v18 = vpop.f32.mrf.mxu1 }
 0x4d0   :  { %v8605_v9 = vadd.f32 %v8604_v18, %v8592_v49 }
 0x4d2   :  { %9511 = vmatpush.bf16.msrb.mxu0 %v15527_v14  ;;  %9475 = vmatmul.bf16.vlgmr.msra.gmra.mxu1 %v8753_v54  ;;  %v8746_v31 = vmax.f32 %v8605_v9, 0.0 }
 0x4d3   :  { %9519 = vmatpush.bf16.msrb.mxu1 %v15540_v53 }
 0x4d4   :  { %v8756_v61 = vpack.c.bf16 %v8746_v31, %v8746_v31 }
 0x4d6   :  { %9512 = vmatpush.bf16.msrb.mxu0 %v15526_v7 }
 0x4d7   :  { %v8606_v0 = vpop.f32.mrf.mxu1  ;;  %9520 = vmatpush.bf16.msrb.mxu1 %v15539_v6 }
 0x4da   :  { %9513 = vmatpush.bf16.msrb.mxu0 %v15525_v2  ;;  %v8643_v24 = vpop.f32.mrf.mxu0 }
 0x4db   :  { %9521 = vmatpush.bf16.msrb.mxu1 %v15538_v48  ;;  %v8644_v32 = vadd.f32 %v8643_v24, %v8631_v55 }
 0x4dd   :  { %9514 = vmatmul.bf16.vlgmr.msrb.gmra.mxu0 %v8756_v61 }
 0x4df   :  { %9522 = vmatpush.bf16.msrb.mxu1 %v15537_v28 }
 0x4e2   :  { %v8669_v43 = vpop.f32.mrf.mxu2  ;;  %v8645_v30 = vpop.f32.mrf.mxu0 }
 0x4e3   :  { %v8682_v35 = vpop.f32.mrf.mxu3  ;;  %9523 = vmatpush.bf16.msrb.mxu1 %v15536_v38 }
 0x4e7   :  { %9524 = vmatpush.bf16.msrb.mxu1 %v15535_v29 }
 0x4ea   :  { %v8671_v36 = vpop.f32.mrf.mxu2 }
 0x4eb   :  { %v8684_v51 = vpop.f32.mrf.mxu3  ;;  %9525 = vmatpush.bf16.msrb.mxu1 %v15534_v52 }
 0x4ef   :  { %v8656_v56 = vpop.f32.mrf.mxu1  ;;  %9526 = vmatpush.bf16.msrb.mxu1 %v15533_v41 }
 0x4f0   :  { %v8657_v12 = vadd.f32 %v8656_v56, %v8644_v32 }
 0x4f2   :  { %v8670_v46 = vadd.f32 %v8669_v43, %v8657_v12 }
 0x4f4   :  { %v8683_v17 = vadd.f32 %v8682_v35, %v8670_v46 }
 0x4f7   :  { %v8658_v25 = vpop.f32.mrf.mxu1 }
 0x4fa   :  { %v8695_v44 = vpop.f32.mrf.mxu0 }
 0x4fb   :  { %v8696_v40 = vadd.f32 %v8695_v44, %v8683_v17 }
 0x502   :  { %v8721_v42 = vpop.f32.mrf.mxu2  ;;  %v8697_v50 = vpop.f32.mrf.mxu0 }
 0x503   :  { %v8734_v60 = vpop.f32.mrf.mxu3 }
 0x50a   :  { %v8723_v58 = vpop.f32.mrf.mxu2 }
 0x50b   :  { %v8736_v47 = vpop.f32.mrf.mxu3 }
 0x50f   :  { %v8708_v62 = vpop.f32.mrf.mxu1 }
 0x510   :  { %v8709_v21 = vadd.f32 %v8708_v62, %v8696_v40 }
 0x512   :  { %v8722_v34 = vadd.f32 %v8721_v42, %v8709_v21 }
 0x514   :  { %v8735_v39 = vadd.f32 %v8734_v60, %v8722_v34 }
 0x516   :  { %v8747_v1 = vmax.f32 %v8735_v39, 0.0 }
 0x517   :  { %v8710_v59 = vpop.f32.mrf.mxu1 }
 0x518   :  { %v8757_v3 = vpack.c.bf16 %v8747_v1, %v8747_v1 }
 0x51a   :  { %v9411_v26 = vpop.f32.mrf.mxu0  ;;  %9527 = vmatmul.bf16.vlgmr.msrb.gmra.mxu1 %v8757_v3 }
 0x51b   :  { %v9412_v63 = vadd.f32 %v15551_v33, %v9411_v26 }
 0x522   :  { %v9437_v37 = vpop.f32.mrf.mxu2  ;;  %v9413_v5 = vpop.f32.mrf.mxu0 }
 0x523   :  { %v9450_v4 = vpop.f32.mrf.mxu3 }
 0x52a   :  { %v9439_v16 = vpop.f32.mrf.mxu2 }
 0x52b   :  { %v9452_v8 = vpop.f32.mrf.mxu3 }
 0x52f   :  { %v9424_v19 = vpop.f32.mrf.mxu1 }
 0x530   :  { %v9425_v15 = vadd.f32 %v9424_v19, %v9412_v63 }
 0x532   :  { %v9438_v55 = vadd.f32 %v9437_v37, %v9425_v15 }
 0x534   :  { %v9451_v14 = vadd.f32 %v9450_v4, %v9438_v55 }
 0x537   :  { %v9426_v23 = vpop.f32.mrf.mxu1 }
 0x53a   :  { %v9463_v10 = vpop.f32.mrf.mxu0 }
 0x53b   :  { %v9464_v57 = vadd.f32 %v9463_v10, %v9451_v14 }
 0x542   :  { %v9489_v45 = vpop.f32.mrf.mxu2  ;;  %v9465_v13 = vpop.f32.mrf.mxu0 }
 0x543   :  { %v9502_v7 = vpop.f32.mrf.mxu3 }
 0x54a   :  { %v9491_v22 = vpop.f32.mrf.mxu2 }
 0x54b   :  { %v9504_v11 = vpop.f32.mrf.mxu3 }
 0x54f   :  { %v9476_v27 = vpop.f32.mrf.mxu1 }
 0x550   :  { %v9477_v2 = vadd.f32 %v9476_v27, %v9464_v57 }
 0x552   :  { %v9490_v54 = vadd.f32 %v9489_v45, %v9477_v2 }
 0x554   :  { %v9503_v20 = vadd.f32 %v9502_v7, %v9490_v54 }
 0x557   :  { %v9478_v49 = vpop.f32.mrf.mxu1 }
 0x55a   :  { %v9515_v18 = vpop.f32.mrf.mxu0 }
 0x55b   :  { %v9516_v31 = vadd.f32 %v9515_v18, %v9503_v20 }
 0x562   :  { %v9517_v9 = vpop.f32.mrf.mxu0 }
 0x597   :  { %v9528_v24 = vpop.f32.mrf.mxu1 }
 0x598   :  { %v9529_v61 = vadd.f32 %v9528_v24, %v9516_v31 }
 0x59a   :  { %9532 = vst [vmem:[%s16227_s7] sm:$0xff] %v9529_v61 }
 0x59f   :  { %v9530_v0 = vpop.f32.mrf.mxu1 }
 0x5a0   :  { %9537 = vsyncpa [#allocation3], 1 }
 0x5a1   :  { %9538 = vsyncpa [#allocation5], 1 }
 0x5a2   :  { %9539 = vsyncpa [#allocation8], 1 }
 0x5a3   :  { %9540 = vsyncpa [#allocation11], 1 }

</bundles_post_ra>
